<compile_context>
chip_gen: v7x
topology: tpu7x:2x2x1
jax: 0.10.0
libtpu: 0.0.40
codegen_flags: <defaults>
</compile_context>

<pallas_src>
import jax
import jax.numpy as jnp
from jax.experimental import pallas as pl
from jax.experimental.pallas import tpu as pltpu


# ------------------------------ Fused kernel ---------------------------------

def _fused_forward_kernel(x_ref,
                          w1_ref, b1_ref, w2_ref, b2_ref,
                          w3_ref, b3_ref, w4_ref, b4_ref,
                          fc_cnn_w_ref, fc_cnn_b_ref,
                          gru_w_ref, gru_b_ih_ref, gru_b_hh_ref,
                          fc_w_ref, fc_b_ref,
                          o_ref):
    """Processes one batch element per grid step (grid = (B,)). All refs VMEM."""

    def conv3_relu(x, w_ref, b_ref):
        # Conv1d(kernel=3, padding=1) as three accumulated matmuls over
        # row-shifted, zero-padded views of x (channels-last, rows = length).
        # Accumulation stays in f32 across the three dots (MXU / v7x MRB).
        c_in = x.shape[1]
        zrow = jnp.zeros((1, c_in), jnp.float32)
        left = jnp.concatenate([zrow, x[:-1, :]], axis=0)    # x[l - 1]
        right = jnp.concatenate([x[1:, :], zrow], axis=0)    # x[l + 1]
        y = (jnp.dot(left, w_ref[0], preferred_element_type=jnp.float32)
             + jnp.dot(x, w_ref[1], preferred_element_type=jnp.float32)
             + jnp.dot(right, w_ref[2], preferred_element_type=jnp.float32)
             + b_ref[...])
        return jnp.maximum(y, 0.0)                           # fused ReLU epilogue

    def maxpool2(y):
        # MaxPool1d(kernel_size=2), floor semantics (trailing odd row dropped,
        # matching PyTorch ceil_mode=False). Row counts here are <= 8, so a
        # fully unrolled pairwise max + one sublane concat is cheap and
        # layout-safe.
        # TODO(synk): for large L switch to a strided VMEM read
        #             (scratch ref + pl.ds(start, n, stride=2)).
        m = y.shape[0]
        pairs = [jnp.maximum(y[2 * i:2 * i + 1, :], y[2 * i + 1:2 * i + 2, :])
                 for i in range(m // 2)]
        return jnp.concatenate(pairs, axis=0)

    x = x_ref[0]                                             # (L, C_in)
    a = maxpool2(conv3_relu(x, w1_ref, b1_ref))              # (L/2, 64)
    a = maxpool2(conv3_relu(a, w2_ref, b2_ref))              # (L/4, 128)
    a = conv3_relu(a, w3_ref, b3_ref)                        # (L/4, 512)
    a = conv3_relu(a, w4_ref, b4_ref)                        # (L/4, 1024)

    # AdaptiveAvgPool1d(1) + fc_cnn fused: mean over length then one matmul,
    # never materializing the (L/4, 1024) activation outside VMEM.
    a = jnp.mean(a, axis=0, keepdims=True)                   # (1, 1024)
    h = (jnp.dot(a, fc_cnn_w_ref[...], preferred_element_type=jnp.float32)
         + fc_cnn_b_ref[...])                                # (1, 128)

    # Single-timestep bidirectional GRU with h0 = 0. Forward/backward input
    # projections are merged into one matmul; column order
    # [r_f, r_b | z_f, z_b | n_f, n_b] makes concat(h_fwd, h_bwd) a no-op.
    g = (jnp.dot(h, gru_w_ref[...], preferred_element_type=jnp.float32)
         + gru_b_ih_ref[...])                                # (1, 6H)
    bhh = gru_b_hh_ref[...]
    h2 = g.shape[1] // 3                                     # 2 * hidden
    r = jax.nn.sigmoid(g[:, :h2] + bhh[:, :h2])
    z = jax.nn.sigmoid(g[:, h2:2 * h2] + bhh[:, h2:2 * h2])
    n = jnp.tanh(g[:, 2 * h2:] + r * bhh[:, 2 * h2:])
    h_gru = (1.0 - z) * n                                    # (1, 2H) = [fwd | bwd]

    out = (jnp.dot(h_gru, fc_w_ref[...], preferred_element_type=jnp.float32)
           + fc_b_ref[...])                                  # (1, output_size)
    o_ref[0] = out


# ------------------------- One-time weight layout prep ------------------------

_PARAM_ORDER = ("conv1_w", "conv1_b", "conv2_w", "conv2_b", "conv3_w", "conv3_b",
                "conv4_w", "conv4_b", "fc_cnn_w", "fc_cnn_b",
                "gru_w", "gru_b_ih", "gru_b_hh", "fc_w", "fc_b")


def prepare_params(p, hidden=64, dtype=jnp.float32):
    """Hoisted out of forward(): conv weights -> (K, C_in, C_out), FC weights
    transposed, GRU fwd/bwd projections merged with gate-interleaved columns,
    biases reshaped to (1, N). Call once; outputs are layout-ready kernel
    inputs. dtype=jnp.bfloat16 halves weight VMEM/HBM traffic on larger
    workloads (matmuls still accumulate in f32)."""
    H = hidden

    def conv_w(w):                       # (C_out, C_in, K) -> (K, C_in, C_out)
        return jnp.transpose(w, (2, 1, 0))

    def merge_w(wf, wb):                 # (3H, 128) x2 -> (128, 6H)
        wf, wb = wf.T, wb.T
        return jnp.concatenate(
            [wf[:, 0:H], wb[:, 0:H], wf[:, H:2 * H], wb[:, H:2 * H],
             wf[:, 2 * H:], wb[:, 2 * H:]], axis=1)

    def merge_b(bf, bb):                 # (3H,) x2 -> (1, 6H)
        return jnp.concatenate(
            [bf[0:H], bb[0:H], bf[H:2 * H], bb[H:2 * H], bf[2 * H:], bb[2 * H:]]
        ).reshape(1, -1)

    pp = {
        "conv1_w": conv_w(p["conv1_w"]), "conv1_b": p["conv1_b"].reshape(1, -1),
        "conv2_w": conv_w(p["conv2_w"]), "conv2_b": p["conv2_b"].reshape(1, -1),
        "conv3_w": conv_w(p["conv3_w"]), "conv3_b": p["conv3_b"].reshape(1, -1),
        "conv4_w": conv_w(p["conv4_w"]), "conv4_b": p["conv4_b"].reshape(1, -1),
        "fc_cnn_w": p["fc_cnn_w"].T, "fc_cnn_b": p["fc_cnn_b"].reshape(1, -1),
        "gru_w": merge_w(p["gru_w_ih_f"], p["gru_w_ih_b"]),
        "gru_b_ih": merge_b(p["gru_b_ih_f"], p["gru_b_ih_b"]),
        "gru_b_hh": merge_b(p["gru_b_hh_f"], p["gru_b_hh_b"]),
        "fc_w": p["fc_w"].T, "fc_b": p["fc_b"].reshape(1, -1),
    }
    return {k: v.astype(dtype) for k, v in pp.items()}


# --------------------------------- Wrapper ------------------------------------

def forward(x_ncl, pp):
    """Fused Pallas implementation of BiGRUModelChannelAttention.forward.
    x_ncl: (B, num_channels, L) in PyTorch NCW layout; pp: prepare_params()."""
    B, C_in, L = x_ncl.shape
    x_blc = jnp.transpose(x_ncl, (0, 2, 1))                  # (B, L, C_in)
    out_size = pp["fc_b"].shape[-1]
    hidden = pp["gru_b_hh"].shape[-1] // 6

    params = [pp[k] for k in _PARAM_ORDER]

    def resident(arr):
        # Whole-array block with a constant index map: weights are fetched once
        # and stay resident in VMEM across the batch grid.
        nd = arr.ndim

        def imap(b):
            return (0,) * nd

        return pl.BlockSpec(arr.shape, imap)

    in_specs = [pl.BlockSpec((1, L, C_in), lambda b: (b, 0, 0))]
    in_specs += [resident(w) for w in params]
    out_specs = pl.BlockSpec((1, 1, out_size), lambda b: (b, 0, 0))

    # Advisory cost estimate for the XLA scheduler (per review).
    L2, L4 = L // 2, L // 4
    mkn = [(L, 3 * C_in, 64), (L2, 3 * 64, 128), (L4, 3 * 128, 512),
           (L4, 3 * 512, 1024), (1, 1024, 128), (1, 128, 6 * hidden),
           (1, 2 * hidden, out_size)]
    flops = 2 * B * sum(m * k * n for m, k, n in mkn)
    param_bytes = sum(int(w.size) * w.dtype.itemsize for w in params)
    bytes_accessed = int(param_bytes
                         + x_ncl.size * x_ncl.dtype.itemsize
                         + B * out_size * 4)
    cost = pl.CostEstimate(flops=flops, transcendentals=B * 6 * hidden,
                           bytes_accessed=bytes_accessed)

    out = pl.pallas_call(
        _fused_forward_kernel,
        out_shape=jax.ShapeDtypeStruct((B, 1, out_size), jnp.float32),
        grid_spec=pltpu.PrefetchScalarGridSpec(
            num_scalar_prefetch=0,
            grid=(B,),                               # per-batch; 2 TCs on v7x
            in_specs=in_specs,
            out_specs=out_specs),
        compiler_params=pltpu.CompilerParams(
            dimension_semantics=("parallel",),
            vmem_limit_bytes=48 * 1024 * 1024),      # ~7.6 MiB f32 weights x2 buffers
        cost_estimate=cost,
    )(x_blc, *params)
    return out.reshape(B, out_size)


# ------------------------------ Parameter init --------------------------------

def init_params(key, num_channels, output_size, hidden=64):
    def u(k, shape, fan_in):
        bound = 1.0 / (fan_in ** 0.5)
        return jax.random.uniform(k, shape, jnp.float32, -bound, bound)

    ks = list(jax.random.split(key, 24))
    p = {}
    p["conv1_w"] = u(ks[0], (64, num_channels, 3), num_channels * 3)
    p["conv1_b"] = u(ks[1], (64,), num_channels * 3)
    p["conv2_w"] = u(ks[2], (128, 64, 3), 64 * 3)
    p["conv2_b"] = u(ks[3], (128,), 64 * 3)
    p["conv3_w"] = u(ks[4], (512, 128, 3), 128 * 3)
    p["conv3_b"] = u(ks[5], (512,), 128 * 3)
    p["conv4_w"] = u(ks[6], (1024, 512, 3), 512 * 3)
    p["conv4_b"] = u(ks[7], (1024,), 512 * 3)
    p["fc_cnn_w"] = u(ks[8], (128, 1024), 1024)
    p["fc_cnn_b"] = u(ks[9], (128,), 1024)
    # GRU (PyTorch layout). weight_hh is irrelevant because h0 == 0.
    p["gru_w_ih_f"] = u(ks[10], (3 * hidden, 128), hidden)
    p["gru_b_ih_f"] = u(ks[11], (3 * hidden,), hidden)
    p["gru_b_hh_f"] = u(ks[12], (3 * hidden,), hidden)
    p["gru_w_ih_b"] = u(ks[13], (3 * hidden, 128), hidden)
    p["gru_b_ih_b"] = u(ks[14], (3 * hidden,), hidden)
    p["gru_b_hh_b"] = u(ks[15], (3 * hidden,), hidden)
    p["fc_w"] = u(ks[16], (output_size, 2 * hidden), 2 * hidden)
    p["fc_b"] = u(ks[17], (output_size,), 2 * hidden)
    return p


# ----------------------------- Pure-JAX reference ------------------------------

def ref_forward(x_ncl, p, hidden=64):
    def conv1d(x, w, b):
        y = jax.lax.conv_general_dilated(
            x, w, window_strides=(1,), padding=((1, 1),),
            dimension_numbers=("NCH", "OIH", "NCH"))
        return y + b[None, :, None]

    x = jax.nn.relu(conv1d(x_ncl, p["conv1_w"], p["conv1_b"]))
    B, C, L = x.shape
    x = x.reshape(B, C, L // 2, 2).max(axis=-1)
    x = jax.nn.relu(conv1d(x, p["conv2_w"], p["conv2_b"]))
    B, C, L = x.shape
    x = x.reshape(B, C, L // 2, 2).max(axis=-1)
    x = jax.nn.relu(conv1d(x, p["conv3_w"], p["conv3_b"]))
    x = jax.nn.relu(conv1d(x, p["conv4_w"], p["conv4_b"]))
    x = x.mean(axis=-1)
    x = x @ p["fc_cnn_w"].T + p["fc_cnn_b"]

    def gru_cell(x, w_ih, b_ih, b_hh):
        g = x @ w_ih.T + b_ih
        H = hidden
        r = jax.nn.sigmoid(g[:, :H] + b_hh[:H])
        z = jax.nn.sigmoid(g[:, H:2 * H] + b_hh[H:2 * H])
        n = jnp.tanh(g[:, 2 * H:] + r * b_hh[2 * H:])
        return (1.0 - z) * n

    hf = gru_cell(x, p["gru_w_ih_f"], p["gru_b_ih_f"], p["gru_b_hh_f"])
    hb = gru_cell(x, p["gru_w_ih_b"], p["gru_b_ih_b"], p["gru_b_hh_b"])
    out = jnp.concatenate([hf, hb], axis=-1)
    return out @ p["fc_w"].T + p["fc_b"]


# ---------------------------------- Main ---------------------------------------

if __name__ == "__main__":
    batch = 2
    num_channels = 4
    seq_length = 16
    output_size = 8
    hidden = 64

    key = jax.random.PRNGKey(0)
    k_x, k_p = jax.random.split(key)
    x = jax.random.normal(k_x, (batch, num_channels, seq_length), jnp.float32)
    params = init_params(k_p, num_channels, output_size, hidden)
    prepared = prepare_params(params, hidden)     # one-time layout prep

    out = jax.block_until_ready(jax.jit(forward)(x, prepared))

    ref = jax.block_until_ready(ref_forward(x, params, hidden))
    assert out.shape == (batch, output_size), out.shape
    assert jnp.allclose(out, ref, rtol=1e-2, atol=1e-3), (
        "mismatch", float(jnp.max(jnp.abs(out - ref))))

    print("KERNEL_OK")
</pallas_src>

<mosaic_0001>
module attributes {stable_mosaic.version = 11 : i64} {
  func.func @_fused_forward_kernel(%arg0: i32, %arg1: memref<1x16x4xf32, #tpu.memory_space<vmem>>, %arg2: memref<3x4x64xf32, #tpu.memory_space<vmem>>, %arg3: memref<1x64xf32, #tpu.memory_space<vmem>>, %arg4: memref<3x64x128xf32, #tpu.memory_space<vmem>>, %arg5: memref<1x128xf32, #tpu.memory_space<vmem>>, %arg6: memref<3x128x512xf32, #tpu.memory_space<vmem>>, %arg7: memref<1x512xf32, #tpu.memory_space<vmem>>, %arg8: memref<3x512x1024xf32, #tpu.memory_space<vmem>>, %arg9: memref<1x1024xf32, #tpu.memory_space<vmem>>, %arg10: memref<1024x128xf32, #tpu.memory_space<vmem>>, %arg11: memref<1x128xf32, #tpu.memory_space<vmem>>, %arg12: memref<128x384xf32, #tpu.memory_space<vmem>>, %arg13: memref<1x384xf32, #tpu.memory_space<vmem>>, %arg14: memref<1x384xf32, #tpu.memory_space<vmem>>, %arg15: memref<128x8xf32, #tpu.memory_space<vmem>>, %arg16: memref<1x8xf32, #tpu.memory_space<vmem>>, %arg17: memref<1x1x8xf32, #tpu.memory_space<vmem>>) attributes {dimension_semantics = [#tpu.dimension_semantics<parallel>], iteration_bounds = array<i64: 2>, scalar_prefetch = 0 : i64, scratch_operands = 0 : i64, tpu.core_type = #tpu.core_type<tc>, window_params = [{transform_indices = @transform_0, window_bounds = array<i64: 1, 16, 4>}, {pipeline_mode = #tpu.pipeline_mode<synchronous>, transform_indices = @transform_1, window_bounds = array<i64: 3, 4, 64>}, {pipeline_mode = #tpu.pipeline_mode<synchronous>, transform_indices = @transform_2, window_bounds = array<i64: 1, 64>}, {pipeline_mode = #tpu.pipeline_mode<synchronous>, transform_indices = @transform_3, window_bounds = array<i64: 3, 64, 128>}, {pipeline_mode = #tpu.pipeline_mode<synchronous>, transform_indices = @transform_4, window_bounds = array<i64: 1, 128>}, {pipeline_mode = #tpu.pipeline_mode<synchronous>, transform_indices = @transform_5, window_bounds = array<i64: 3, 128, 512>}, {pipeline_mode = #tpu.pipeline_mode<synchronous>, transform_indices = @transform_6, window_bounds = array<i64: 1, 512>}, {pipeline_mode = #tpu.pipeline_mode<synchronous>, transform_indices = @transform_7, window_bounds = array<i64: 3, 512, 1024>}, {pipeline_mode = #tpu.pipeline_mode<synchronous>, transform_indices = @transform_8, window_bounds = array<i64: 1, 1024>}, {pipeline_mode = #tpu.pipeline_mode<synchronous>, transform_indices = @transform_9, window_bounds = array<i64: 1024, 128>}, {pipeline_mode = #tpu.pipeline_mode<synchronous>, transform_indices = @transform_10, window_bounds = array<i64: 1, 128>}, {pipeline_mode = #tpu.pipeline_mode<synchronous>, transform_indices = @transform_11, window_bounds = array<i64: 128, 384>}, {pipeline_mode = #tpu.pipeline_mode<synchronous>, transform_indices = @transform_12, window_bounds = array<i64: 1, 384>}, {pipeline_mode = #tpu.pipeline_mode<synchronous>, transform_indices = @transform_13, window_bounds = array<i64: 1, 384>}, {pipeline_mode = #tpu.pipeline_mode<synchronous>, transform_indices = @transform_14, window_bounds = array<i64: 128, 8>}, {pipeline_mode = #tpu.pipeline_mode<synchronous>, transform_indices = @transform_15, window_bounds = array<i64: 1, 8>}, {transform_indices = @transform_16, window_bounds = array<i64: 1, 1, 8>}]} {
    %c0 = arith.constant 0 : index
    %c0_0 = arith.constant 0 : index
    %c0_1 = arith.constant 0 : index
    %0 = vector.load %arg1[%c0, %c0_0, %c0_1] : memref<1x16x4xf32, #tpu.memory_space<vmem>>, vector<1x16x4xf32>
    %1 = vector.shape_cast %0 : vector<1x16x4xf32> to vector<16x4xf32>
    %cst = arith.constant 0.000000e+00 : f32
    %2 = vector.broadcast %cst : f32 to vector<1x4xf32>
    %3 = vector.extract_strided_slice %1 {offsets = [0, 0], sizes = [15, 4], strides = [1, 1]} : vector<16x4xf32> to vector<15x4xf32>
    %4 = tpu.concatenate %2, %3 in 0 : vector<1x4xf32>, vector<15x4xf32> -> vector<16x4xf32>
    %5 = vector.extract_strided_slice %1 {offsets = [1, 0], sizes = [15, 4], strides = [1, 1]} : vector<16x4xf32> to vector<15x4xf32>
    %6 = tpu.concatenate %5, %2 in 0 : vector<15x4xf32>, vector<1x4xf32> -> vector<16x4xf32>
    %c0_2 = arith.constant 0 : index
    %c0_3 = arith.constant 0 : index
    %c0_4 = arith.constant 0 : index
    %7 = vector.load %arg2[%c0_2, %c0_3, %c0_4] : memref<3x4x64xf32, #tpu.memory_space<vmem>>, vector<1x4x64xf32>
    %8 = vector.shape_cast %7 : vector<1x4x64xf32> to vector<4x64xf32>
    %cst_5 = arith.constant dense<0.000000e+00> : vector<16x64xf32>
    %9 = tpu.matmul %4, %8, %cst_5 {dimension_numbers = #tpu.dot_dimension_numbers<[1], [0], [0], [1], [0, 0, 1, 1], [], []>} : vector<16x4xf32>, vector<4x64xf32>, vector<16x64xf32> -> vector<16x64xf32>
    %c1 = arith.constant 1 : index
    %c0_6 = arith.constant 0 : index
    %c0_7 = arith.constant 0 : index
    %10 = vector.load %arg2[%c1, %c0_6, %c0_7] : memref<3x4x64xf32, #tpu.memory_space<vmem>>, vector<1x4x64xf32>
    %11 = vector.shape_cast %10 : vector<1x4x64xf32> to vector<4x64xf32>
    %cst_8 = arith.constant dense<0.000000e+00> : vector<16x64xf32>
    %12 = tpu.matmul %1, %11, %cst_8 {dimension_numbers = #tpu.dot_dimension_numbers<[1], [0], [0], [1], [0, 0, 1, 1], [], []>} : vector<16x4xf32>, vector<4x64xf32>, vector<16x64xf32> -> vector<16x64xf32>
    %13 = arith.addf %9, %12 : vector<16x64xf32>
    %c2 = arith.constant 2 : index
    %c0_9 = arith.constant 0 : index
    %c0_10 = arith.constant 0 : index
    %14 = vector.load %arg2[%c2, %c0_9, %c0_10] : memref<3x4x64xf32, #tpu.memory_space<vmem>>, vector<1x4x64xf32>
    %15 = vector.shape_cast %14 : vector<1x4x64xf32> to vector<4x64xf32>
    %cst_11 = arith.constant dense<0.000000e+00> : vector<16x64xf32>
    %16 = tpu.matmul %6, %15, %cst_11 {dimension_numbers = #tpu.dot_dimension_numbers<[1], [0], [0], [1], [0, 0, 1, 1], [], []>} : vector<16x4xf32>, vector<4x64xf32>, vector<16x64xf32> -> vector<16x64xf32>
    %17 = arith.addf %13, %16 : vector<16x64xf32>
    %c0_12 = arith.constant 0 : index
    %c0_13 = arith.constant 0 : index
    %18 = vector.load %arg3[%c0_12, %c0_13] : memref<1x64xf32, #tpu.memory_space<vmem>>, vector<1x64xf32>
    %19 = vector.broadcast %18 : vector<1x64xf32> to vector<16x64xf32>
    %20 = arith.addf %17, %19 : vector<16x64xf32>
    %cst_14 = arith.constant 0.000000e+00 : f32
    %21 = vector.broadcast %cst_14 : f32 to vector<16x64xf32>
    %22 = arith.maximumf %20, %21 : vector<16x64xf32>
    %23 = vector.extract_strided_slice %22 {offsets = [0, 0], sizes = [1, 64], strides = [1, 1]} : vector<16x64xf32> to vector<1x64xf32>
    %24 = vector.extract_strided_slice %22 {offsets = [1, 0], sizes = [1, 64], strides = [1, 1]} : vector<16x64xf32> to vector<1x64xf32>
    %25 = arith.maximumf %23, %24 : vector<1x64xf32>
    %26 = vector.extract_strided_slice %22 {offsets = [2, 0], sizes = [1, 64], strides = [1, 1]} : vector<16x64xf32> to vector<1x64xf32>
    %27 = vector.extract_strided_slice %22 {offsets = [3, 0], sizes = [1, 64], strides = [1, 1]} : vector<16x64xf32> to vector<1x64xf32>
    %28 = arith.maximumf %26, %27 : vector<1x64xf32>
    %29 = vector.extract_strided_slice %22 {offsets = [4, 0], sizes = [1, 64], strides = [1, 1]} : vector<16x64xf32> to vector<1x64xf32>
    %30 = vector.extract_strided_slice %22 {offsets = [5, 0], sizes = [1, 64], strides = [1, 1]} : vector<16x64xf32> to vector<1x64xf32>
    %31 = arith.maximumf %29, %30 : vector<1x64xf32>
    %32 = vector.extract_strided_slice %22 {offsets = [6, 0], sizes = [1, 64], strides = [1, 1]} : vector<16x64xf32> to vector<1x64xf32>
    %33 = vector.extract_strided_slice %22 {offsets = [7, 0], sizes = [1, 64], strides = [1, 1]} : vector<16x64xf32> to vector<1x64xf32>
    %34 = arith.maximumf %32, %33 : vector<1x64xf32>
    %35 = vector.extract_strided_slice %22 {offsets = [8, 0], sizes = [1, 64], strides = [1, 1]} : vector<16x64xf32> to vector<1x64xf32>
    %36 = vector.extract_strided_slice %22 {offsets = [9, 0], sizes = [1, 64], strides = [1, 1]} : vector<16x64xf32> to vector<1x64xf32>
    %37 = arith.maximumf %35, %36 : vector<1x64xf32>
    %38 = vector.extract_strided_slice %22 {offsets = [10, 0], sizes = [1, 64], strides = [1, 1]} : vector<16x64xf32> to vector<1x64xf32>
    %39 = vector.extract_strided_slice %22 {offsets = [11, 0], sizes = [1, 64], strides = [1, 1]} : vector<16x64xf32> to vector<1x64xf32>
    %40 = arith.maximumf %38, %39 : vector<1x64xf32>
    %41 = vector.extract_strided_slice %22 {offsets = [12, 0], sizes = [1, 64], strides = [1, 1]} : vector<16x64xf32> to vector<1x64xf32>
    %42 = vector.extract_strided_slice %22 {offsets = [13, 0], sizes = [1, 64], strides = [1, 1]} : vector<16x64xf32> to vector<1x64xf32>
    %43 = arith.maximumf %41, %42 : vector<1x64xf32>
    %44 = vector.extract_strided_slice %22 {offsets = [14, 0], sizes = [1, 64], strides = [1, 1]} : vector<16x64xf32> to vector<1x64xf32>
    %45 = vector.extract_strided_slice %22 {offsets = [15, 0], sizes = [1, 64], strides = [1, 1]} : vector<16x64xf32> to vector<1x64xf32>
    %46 = arith.maximumf %44, %45 : vector<1x64xf32>
    %47 = tpu.concatenate %25, %28, %31, %34, %37, %40, %43, %46 in 0 : vector<1x64xf32>, vector<1x64xf32>, vector<1x64xf32>, vector<1x64xf32>, vector<1x64xf32>, vector<1x64xf32>, vector<1x64xf32>, vector<1x64xf32> -> vector<8x64xf32>
    %cst_15 = arith.constant 0.000000e+00 : f32
    %48 = vector.broadcast %cst_15 : f32 to vector<1x64xf32>
    %49 = vector.extract_strided_slice %47 {offsets = [0, 0], sizes = [7, 64], strides = [1, 1]} : vector<8x64xf32> to vector<7x64xf32>
    %50 = tpu.concatenate %48, %49 in 0 : vector<1x64xf32>, vector<7x64xf32> -> vector<8x64xf32>
    %51 = vector.extract_strided_slice %47 {offsets = [1, 0], sizes = [7, 64], strides = [1, 1]} : vector<8x64xf32> to vector<7x64xf32>
    %52 = tpu.concatenate %51, %48 in 0 : vector<7x64xf32>, vector<1x64xf32> -> vector<8x64xf32>
    %c0_16 = arith.constant 0 : index
    %c0_17 = arith.constant 0 : index
    %c0_18 = arith.constant 0 : index
    %53 = vector.load %arg4[%c0_16, %c0_17, %c0_18] : memref<3x64x128xf32, #tpu.memory_space<vmem>>, vector<1x64x128xf32>
    %54 = vector.shape_cast %53 : vector<1x64x128xf32> to vector<64x128xf32>
    %cst_19 = arith.constant dense<0.000000e+00> : vector<8x128xf32>
    %55 = tpu.matmul %50, %54, %cst_19 {dimension_numbers = #tpu.dot_dimension_numbers<[1], [0], [0], [1], [0, 0, 1, 1], [], []>} : vector<8x64xf32>, vector<64x128xf32>, vector<8x128xf32> -> vector<8x128xf32>
    %c1_20 = arith.constant 1 : index
    %c0_21 = arith.constant 0 : index
    %c0_22 = arith.constant 0 : index
    %56 = vector.load %arg4[%c1_20, %c0_21, %c0_22] : memref<3x64x128xf32, #tpu.memory_space<vmem>>, vector<1x64x128xf32>
    %57 = vector.shape_cast %56 : vector<1x64x128xf32> to vector<64x128xf32>
    %cst_23 = arith.constant dense<0.000000e+00> : vector<8x128xf32>
    %58 = tpu.matmul %47, %57, %cst_23 {dimension_numbers = #tpu.dot_dimension_numbers<[1], [0], [0], [1], [0, 0, 1, 1], [], []>} : vector<8x64xf32>, vector<64x128xf32>, vector<8x128xf32> -> vector<8x128xf32>
    %59 = arith.addf %55, %58 : vector<8x128xf32>
    %c2_24 = arith.constant 2 : index
    %c0_25 = arith.constant 0 : index
    %c0_26 = arith.constant 0 : index
    %60 = vector.load %arg4[%c2_24, %c0_25, %c0_26] : memref<3x64x128xf32, #tpu.memory_space<vmem>>, vector<1x64x128xf32>
    %61 = vector.shape_cast %60 : vector<1x64x128xf32> to vector<64x128xf32>
    %cst_27 = arith.constant dense<0.000000e+00> : vector<8x128xf32>
    %62 = tpu.matmul %52, %61, %cst_27 {dimension_numbers = #tpu.dot_dimension_numbers<[1], [0], [0], [1], [0, 0, 1, 1], [], []>} : vector<8x64xf32>, vector<64x128xf32>, vector<8x128xf32> -> vector<8x128xf32>
    %63 = arith.addf %59, %62 : vector<8x128xf32>
    %c0_28 = arith.constant 0 : index
    %c0_29 = arith.constant 0 : index
    %64 = vector.load %arg5[%c0_28, %c0_29] : memref<1x128xf32, #tpu.memory_space<vmem>>, vector<1x128xf32>
    %65 = vector.broadcast %64 : vector<1x128xf32> to vector<8x128xf32>
    %66 = arith.addf %63, %65 : vector<8x128xf32>
    %cst_30 = arith.constant 0.000000e+00 : f32
    %67 = vector.broadcast %cst_30 : f32 to vector<8x128xf32>
    %68 = arith.maximumf %66, %67 : vector<8x128xf32>
    %69 = vector.extract_strided_slice %68 {offsets = [0, 0], sizes = [1, 128], strides = [1, 1]} : vector<8x128xf32> to vector<1x128xf32>
    %70 = vector.extract_strided_slice %68 {offsets = [1, 0], sizes = [1, 128], strides = [1, 1]} : vector<8x128xf32> to vector<1x128xf32>
    %71 = arith.maximumf %69, %70 : vector<1x128xf32>
    %72 = vector.extract_strided_slice %68 {offsets = [2, 0], sizes = [1, 128], strides = [1, 1]} : vector<8x128xf32> to vector<1x128xf32>
    %73 = vector.extract_strided_slice %68 {offsets = [3, 0], sizes = [1, 128], strides = [1, 1]} : vector<8x128xf32> to vector<1x128xf32>
    %74 = arith.maximumf %72, %73 : vector<1x128xf32>
    %75 = vector.extract_strided_slice %68 {offsets = [4, 0], sizes = [1, 128], strides = [1, 1]} : vector<8x128xf32> to vector<1x128xf32>
    %76 = vector.extract_strided_slice %68 {offsets = [5, 0], sizes = [1, 128], strides = [1, 1]} : vector<8x128xf32> to vector<1x128xf32>
    %77 = arith.maximumf %75, %76 : vector<1x128xf32>
    %78 = vector.extract_strided_slice %68 {offsets = [6, 0], sizes = [1, 128], strides = [1, 1]} : vector<8x128xf32> to vector<1x128xf32>
    %79 = vector.extract_strided_slice %68 {offsets = [7, 0], sizes = [1, 128], strides = [1, 1]} : vector<8x128xf32> to vector<1x128xf32>
    %80 = arith.maximumf %78, %79 : vector<1x128xf32>
    %81 = tpu.concatenate %71, %74, %77, %80 in 0 : vector<1x128xf32>, vector<1x128xf32>, vector<1x128xf32>, vector<1x128xf32> -> vector<4x128xf32>
    %cst_31 = arith.constant 0.000000e+00 : f32
    %82 = vector.broadcast %cst_31 : f32 to vector<1x128xf32>
    %83 = vector.extract_strided_slice %81 {offsets = [0, 0], sizes = [3, 128], strides = [1, 1]} : vector<4x128xf32> to vector<3x128xf32>
    %84 = tpu.concatenate %82, %83 in 0 : vector<1x128xf32>, vector<3x128xf32> -> vector<4x128xf32>
    %85 = vector.extract_strided_slice %81 {offsets = [1, 0], sizes = [3, 128], strides = [1, 1]} : vector<4x128xf32> to vector<3x128xf32>
    %86 = tpu.concatenate %85, %82 in 0 : vector<3x128xf32>, vector<1x128xf32> -> vector<4x128xf32>
    %c0_32 = arith.constant 0 : index
    %c0_33 = arith.constant 0 : index
    %c0_34 = arith.constant 0 : index
    %87 = vector.load %arg6[%c0_32, %c0_33, %c0_34] : memref<3x128x512xf32, #tpu.memory_space<vmem>>, vector<1x128x512xf32>
    %88 = vector.shape_cast %87 : vector<1x128x512xf32> to vector<128x512xf32>
    %cst_35 = arith.constant dense<0.000000e+00> : vector<4x512xf32>
    %89 = tpu.matmul %84, %88, %cst_35 {dimension_numbers = #tpu.dot_dimension_numbers<[1], [0], [0], [1], [0, 0, 1, 1], [], []>} : vector<4x128xf32>, vector<128x512xf32>, vector<4x512xf32> -> vector<4x512xf32>
    %c1_36 = arith.constant 1 : index
    %c0_37 = arith.constant 0 : index
    %c0_38 = arith.constant 0 : index
    %90 = vector.load %arg6[%c1_36, %c0_37, %c0_38] : memref<3x128x512xf32, #tpu.memory_space<vmem>>, vector<1x128x512xf32>
    %91 = vector.shape_cast %90 : vector<1x128x512xf32> to vector<128x512xf32>
    %cst_39 = arith.constant dense<0.000000e+00> : vector<4x512xf32>
    %92 = tpu.matmul %81, %91, %cst_39 {dimension_numbers = #tpu.dot_dimension_numbers<[1], [0], [0], [1], [0, 0, 1, 1], [], []>} : vector<4x128xf32>, vector<128x512xf32>, vector<4x512xf32> -> vector<4x512xf32>
    %93 = arith.addf %89, %92 : vector<4x512xf32>
    %c2_40 = arith.constant 2 : index
    %c0_41 = arith.constant 0 : index
    %c0_42 = arith.constant 0 : index
    %94 = vector.load %arg6[%c2_40, %c0_41, %c0_42] : memref<3x128x512xf32, #tpu.memory_space<vmem>>, vector<1x128x512xf32>
    %95 = vector.shape_cast %94 : vector<1x128x512xf32> to vector<128x512xf32>
    %cst_43 = arith.constant dense<0.000000e+00> : vector<4x512xf32>
    %96 = tpu.matmul %86, %95, %cst_43 {dimension_numbers = #tpu.dot_dimension_numbers<[1], [0], [0], [1], [0, 0, 1, 1], [], []>} : vector<4x128xf32>, vector<128x512xf32>, vector<4x512xf32> -> vector<4x512xf32>
    %97 = arith.addf %93, %96 : vector<4x512xf32>
    %c0_44 = arith.constant 0 : index
    %c0_45 = arith.constant 0 : index
    %98 = vector.load %arg7[%c0_44, %c0_45] : memref<1x512xf32, #tpu.memory_space<vmem>>, vector<1x512xf32>
    %99 = vector.broadcast %98 : vector<1x512xf32> to vector<4x512xf32>
    %100 = arith.addf %97, %99 : vector<4x512xf32>
    %cst_46 = arith.constant 0.000000e+00 : f32
    %101 = vector.broadcast %cst_46 : f32 to vector<4x512xf32>
    %102 = arith.maximumf %100, %101 : vector<4x512xf32>
    %cst_47 = arith.constant 0.000000e+00 : f32
    %103 = vector.broadcast %cst_47 : f32 to vector<1x512xf32>
    %104 = vector.extract_strided_slice %102 {offsets = [0, 0], sizes = [3, 512], strides = [1, 1]} : vector<4x512xf32> to vector<3x512xf32>
    %105 = tpu.concatenate %103, %104 in 0 : vector<1x512xf32>, vector<3x512xf32> -> vector<4x512xf32>
    %106 = vector.extract_strided_slice %102 {offsets = [1, 0], sizes = [3, 512], strides = [1, 1]} : vector<4x512xf32> to vector<3x512xf32>
    %107 = tpu.concatenate %106, %103 in 0 : vector<3x512xf32>, vector<1x512xf32> -> vector<4x512xf32>
    %c0_48 = arith.constant 0 : index
    %c0_49 = arith.constant 0 : index
    %c0_50 = arith.constant 0 : index
    %108 = vector.load %arg8[%c0_48, %c0_49, %c0_50] : memref<3x512x1024xf32, #tpu.memory_space<vmem>>, vector<1x512x1024xf32>
    %109 = vector.shape_cast %108 : vector<1x512x1024xf32> to vector<512x1024xf32>
    %cst_51 = arith.constant dense<0.000000e+00> : vector<4x1024xf32>
    %110 = tpu.matmul %105, %109, %cst_51 {dimension_numbers = #tpu.dot_dimension_numbers<[1], [0], [0], [1], [0, 0, 1, 1], [], []>} : vector<4x512xf32>, vector<512x1024xf32>, vector<4x1024xf32> -> vector<4x1024xf32>
    %c1_52 = arith.constant 1 : index
    %c0_53 = arith.constant 0 : index
    %c0_54 = arith.constant 0 : index
    %111 = vector.load %arg8[%c1_52, %c0_53, %c0_54] : memref<3x512x1024xf32, #tpu.memory_space<vmem>>, vector<1x512x1024xf32>
    %112 = vector.shape_cast %111 : vector<1x512x1024xf32> to vector<512x1024xf32>
    %cst_55 = arith.constant dense<0.000000e+00> : vector<4x1024xf32>
    %113 = tpu.matmul %102, %112, %cst_55 {dimension_numbers = #tpu.dot_dimension_numbers<[1], [0], [0], [1], [0, 0, 1, 1], [], []>} : vector<4x512xf32>, vector<512x1024xf32>, vector<4x1024xf32> -> vector<4x1024xf32>
    %114 = arith.addf %110, %113 : vector<4x1024xf32>
    %c2_56 = arith.constant 2 : index
    %c0_57 = arith.constant 0 : index
    %c0_58 = arith.constant 0 : index
    %115 = vector.load %arg8[%c2_56, %c0_57, %c0_58] : memref<3x512x1024xf32, #tpu.memory_space<vmem>>, vector<1x512x1024xf32>
    %116 = vector.shape_cast %115 : vector<1x512x1024xf32> to vector<512x1024xf32>
    %cst_59 = arith.constant dense<0.000000e+00> : vector<4x1024xf32>
    %117 = tpu.matmul %107, %116, %cst_59 {dimension_numbers = #tpu.dot_dimension_numbers<[1], [0], [0], [1], [0, 0, 1, 1], [], []>} : vector<4x512xf32>, vector<512x1024xf32>, vector<4x1024xf32> -> vector<4x1024xf32>
    %118 = arith.addf %114, %117 : vector<4x1024xf32>
    %c0_60 = arith.constant 0 : index
    %c0_61 = arith.constant 0 : index
    %119 = vector.load %arg9[%c0_60, %c0_61] : memref<1x1024xf32, #tpu.memory_space<vmem>>, vector<1x1024xf32>
    %120 = vector.broadcast %119 : vector<1x1024xf32> to vector<4x1024xf32>
    %121 = arith.addf %118, %120 : vector<4x1024xf32>
    %cst_62 = arith.constant 0.000000e+00 : f32
    %122 = vector.broadcast %cst_62 : f32 to vector<4x1024xf32>
    %123 = arith.maximumf %121, %122 : vector<4x1024xf32>
    %cst_63 = arith.constant dense<0.000000e+00> : vector<1024xf32>
    %124 = vector.multi_reduction <add>, %123, %cst_63 [0] : vector<4x1024xf32> to vector<1024xf32>
    %125 = vector.shape_cast %124 : vector<1024xf32> to vector<1x1024xf32>
    %cst_64 = arith.constant 4.000000e+00 : f32
    %126 = vector.broadcast %cst_64 : f32 to vector<1x1024xf32>
    %127 = arith.divf %125, %126 : vector<1x1024xf32>
    %c0_65 = arith.constant 0 : index
    %c0_66 = arith.constant 0 : index
    %128 = vector.load %arg10[%c0_65, %c0_66] : memref<1024x128xf32, #tpu.memory_space<vmem>>, vector<1024x128xf32>
    %cst_67 = arith.constant dense<0.000000e+00> : vector<1x128xf32>
    %129 = tpu.matmul %127, %128, %cst_67 {dimension_numbers = #tpu.dot_dimension_numbers<[1], [0], [0], [1], [0, 0, 1, 1], [], []>} : vector<1x1024xf32>, vector<1024x128xf32>, vector<1x128xf32> -> vector<1x128xf32>
    %c0_68 = arith.constant 0 : index
    %c0_69 = arith.constant 0 : index
    %130 = vector.load %arg11[%c0_68, %c0_69] : memref<1x128xf32, #tpu.memory_space<vmem>>, vector<1x128xf32>
    %131 = arith.addf %129, %130 : vector<1x128xf32>
    %c0_70 = arith.constant 0 : index
    %c0_71 = arith.constant 0 : index
    %132 = vector.load %arg12[%c0_70, %c0_71] : memref<128x384xf32, #tpu.memory_space<vmem>>, vector<128x384xf32>
    %cst_72 = arith.constant dense<0.000000e+00> : vector<1x384xf32>
    %133 = tpu.matmul %131, %132, %cst_72 {dimension_numbers = #tpu.dot_dimension_numbers<[1], [0], [0], [1], [0, 0, 1, 1], [], []>} : vector<1x128xf32>, vector<128x384xf32>, vector<1x384xf32> -> vector<1x384xf32>
    %c0_73 = arith.constant 0 : index
    %c0_74 = arith.constant 0 : index
    %134 = vector.load %arg13[%c0_73, %c0_74] : memref<1x384xf32, #tpu.memory_space<vmem>>, vector<1x384xf32>
    %135 = arith.addf %133, %134 : vector<1x384xf32>
    %c0_75 = arith.constant 0 : index
    %c0_76 = arith.constant 0 : index
    %136 = vector.load %arg14[%c0_75, %c0_76] : memref<1x384xf32, #tpu.memory_space<vmem>>, vector<1x384xf32>
    %137 = vector.extract_strided_slice %135 {offsets = [0, 0], sizes = [1, 128], strides = [1, 1]} : vector<1x384xf32> to vector<1x128xf32>
    %138 = vector.extract_strided_slice %136 {offsets = [0, 0], sizes = [1, 128], strides = [1, 1]} : vector<1x384xf32> to vector<1x128xf32>
    %139 = arith.addf %137, %138 : vector<1x128xf32>
    %140 = arith.negf %139 : vector<1x128xf32>
    %141 = math.exp %140 : vector<1x128xf32>
    %cst_77 = arith.constant 1.000000e+00 : f32
    %142 = vector.broadcast %cst_77 : f32 to vector<1x128xf32>
    %143 = arith.addf %142, %141 : vector<1x128xf32>
    %144 = arith.divf %142, %143 : vector<1x128xf32>
    %145 = vector.extract_strided_slice %135 {offsets = [0, 128], sizes = [1, 128], strides = [1, 1]} : vector<1x384xf32> to vector<1x128xf32>
    %146 = vector.extract_strided_slice %136 {offsets = [0, 128], sizes = [1, 128], strides = [1, 1]} : vector<1x384xf32> to vector<1x128xf32>
    %147 = arith.addf %145, %146 : vector<1x128xf32>
    %148 = arith.negf %147 : vector<1x128xf32>
    %149 = math.exp %148 : vector<1x128xf32>
    %cst_78 = arith.constant 1.000000e+00 : f32
    %150 = vector.broadcast %cst_78 : f32 to vector<1x128xf32>
    %151 = arith.addf %150, %149 : vector<1x128xf32>
    %152 = arith.divf %150, %151 : vector<1x128xf32>
    %153 = vector.extract_strided_slice %135 {offsets = [0, 256], sizes = [1, 128], strides = [1, 1]} : vector<1x384xf32> to vector<1x128xf32>
    %154 = vector.extract_strided_slice %136 {offsets = [0, 256], sizes = [1, 128], strides = [1, 1]} : vector<1x384xf32> to vector<1x128xf32>
    %155 = arith.mulf %144, %154 : vector<1x128xf32>
    %156 = arith.addf %153, %155 : vector<1x128xf32>
    %157 = math.tanh %156 : vector<1x128xf32>
    %cst_79 = arith.constant 1.000000e+00 : f32
    %158 = vector.broadcast %cst_79 : f32 to vector<1x128xf32>
    %159 = arith.subf %158, %152 : vector<1x128xf32>
    %160 = arith.mulf %159, %157 : vector<1x128xf32>
    %c0_80 = arith.constant 0 : index
    %c0_81 = arith.constant 0 : index
    %161 = vector.load %arg15[%c0_80, %c0_81] : memref<128x8xf32, #tpu.memory_space<vmem>>, vector<128x8xf32>
    %cst_82 = arith.constant dense<0.000000e+00> : vector<1x8xf32>
    %162 = tpu.matmul %160, %161, %cst_82 {dimension_numbers = #tpu.dot_dimension_numbers<[1], [0], [0], [1], [0, 0, 1, 1], [], []>} : vector<1x128xf32>, vector<128x8xf32>, vector<1x8xf32> -> vector<1x8xf32>
    %c0_83 = arith.constant 0 : index
    %c0_84 = arith.constant 0 : index
    %163 = vector.load %arg16[%c0_83, %c0_84] : memref<1x8xf32, #tpu.memory_space<vmem>>, vector<1x8xf32>
    %164 = arith.addf %162, %163 : vector<1x8xf32>
    %c0_85 = arith.constant 0 : index
    %c0_86 = arith.constant 0 : index
    %c0_87 = arith.constant 0 : index
    %165 = vector.load %arg17[%c0_85, %c0_86, %c0_87] : memref<1x1x8xf32, #tpu.memory_space<vmem>>, vector<1x1x8xf32>
    %166 = vector.shape_cast %165 : vector<1x1x8xf32> to vector<1x8xf32>
    %167 = vector.shape_cast %164 : vector<1x8xf32> to vector<1x1x8xf32>
    tpu.vector_store %arg17[%c0_85, %c0_86, %c0_87], %167 {strides = array<i32>} : memref<1x1x8xf32, #tpu.memory_space<vmem>>, vector<1x1x8xf32>,
    return
  }
  func.func @transform_0(%arg0: i32) -> (i32, i32, i32) {
    %c0_i32 = arith.constant 0 : i32
    %c0_i32_0 = arith.constant 0 : i32
    %c0_i32_1 = arith.constant 0 : i32
    return %arg0, %c0_i32, %c0_i32_0 : i32, i32, i32
  }
  func.func @transform_1(%arg0: i32) -> (i32, i32, i32) {
    %c0_i32 = arith.constant 0 : i32
    %c0_i32_0 = arith.constant 0 : i32
    %c0_i32_1 = arith.constant 0 : i32
    %c0_i32_2 = arith.constant 0 : i32
    return %c0_i32, %c0_i32_0, %c0_i32_1 : i32, i32, i32
  }
  func.func @transform_2(%arg0: i32) -> (i32, i32) {
    %c0_i32 = arith.constant 0 : i32
    %c0_i32_0 = arith.constant 0 : i32
    %c0_i32_1 = arith.constant 0 : i32
    return %c0_i32, %c0_i32_0 : i32, i32
  }
  func.func @transform_3(%arg0: i32) -> (i32, i32, i32) {
    %c0_i32 = arith.constant 0 : i32
    %c0_i32_0 = arith.constant 0 : i32
    %c0_i32_1 = arith.constant 0 : i32
    %c0_i32_2 = arith.constant 0 : i32
    return %c0_i32, %c0_i32_0, %c0_i32_1 : i32, i32, i32
  }
  func.func @transform_4(%arg0: i32) -> (i32, i32) {
    %c0_i32 = arith.constant 0 : i32
    %c0_i32_0 = arith.constant 0 : i32
    %c0_i32_1 = arith.constant 0 : i32
    return %c0_i32, %c0_i32_0 : i32, i32
  }
  func.func @transform_5(%arg0: i32) -> (i32, i32, i32) {
    %c0_i32 = arith.constant 0 : i32
    %c0_i32_0 = arith.constant 0 : i32
    %c0_i32_1 = arith.constant 0 : i32
    %c0_i32_2 = arith.constant 0 : i32
    return %c0_i32, %c0_i32_0, %c0_i32_1 : i32, i32, i32
  }
  func.func @transform_6(%arg0: i32) -> (i32, i32) {
    %c0_i32 = arith.constant 0 : i32
    %c0_i32_0 = arith.constant 0 : i32
    %c0_i32_1 = arith.constant 0 : i32
    return %c0_i32, %c0_i32_0 : i32, i32
  }
  func.func @transform_7(%arg0: i32) -> (i32, i32, i32) {
    %c0_i32 = arith.constant 0 : i32
    %c0_i32_0 = arith.constant 0 : i32
    %c0_i32_1 = arith.constant 0 : i32
    %c0_i32_2 = arith.constant 0 : i32
    return %c0_i32, %c0_i32_0, %c0_i32_1 : i32, i32, i32
  }
  func.func @transform_8(%arg0: i32) -> (i32, i32) {
    %c0_i32 = arith.constant 0 : i32
    %c0_i32_0 = arith.constant 0 : i32
    %c0_i32_1 = arith.constant 0 : i32
    return %c0_i32, %c0_i32_0 : i32, i32
  }
  func.func @transform_9(%arg0: i32) -> (i32, i32) {
    %c0_i32 = arith.constant 0 : i32
    %c0_i32_0 = arith.constant 0 : i32
    %c0_i32_1 = arith.constant 0 : i32
    return %c0_i32, %c0_i32_0 : i32, i32
  }
  func.func @transform_10(%arg0: i32) -> (i32, i32) {
    %c0_i32 = arith.constant 0 : i32
    %c0_i32_0 = arith.constant 0 : i32
    %c0_i32_1 = arith.constant 0 : i32
    return %c0_i32, %c0_i32_0 : i32, i32
  }
  func.func @transform_11(%arg0: i32) -> (i32, i32) {
    %c0_i32 = arith.constant 0 : i32
    %c0_i32_0 = arith.constant 0 : i32
    %c0_i32_1 = arith.constant 0 : i32
    return %c0_i32, %c0_i32_0 : i32, i32
  }
  func.func @transform_12(%arg0: i32) -> (i32, i32) {
    %c0_i32 = arith.constant 0 : i32
    %c0_i32_0 = arith.constant 0 : i32
    %c0_i32_1 = arith.constant 0 : i32
    return %c0_i32, %c0_i32_0 : i32, i32
  }
  func.func @transform_13(%arg0: i32) -> (i32, i32) {
    %c0_i32 = arith.constant 0 : i32
    %c0_i32_0 = arith.constant 0 : i32
    %c0_i32_1 = arith.constant 0 : i32
    return %c0_i32, %c0_i32_0 : i32, i32
  }
  func.func @transform_14(%arg0: i32) -> (i32, i32) {
    %c0_i32 = arith.constant 0 : i32
    %c0_i32_0 = arith.constant 0 : i32
    %c0_i32_1 = arith.constant 0 : i32
    return %c0_i32, %c0_i32_0 : i32, i32
  }
  func.func @transform_15(%arg0: i32) -> (i32, i32) {
    %c0_i32 = arith.constant 0 : i32
    %c0_i32_0 = arith.constant 0 : i32
    %c0_i32_1 = arith.constant 0 : i32
    return %c0_i32, %c0_i32_0 : i32, i32
  }
  func.func @transform_16(%arg0: i32) -> (i32, i32, i32) {
    %c0_i32 = arith.constant 0 : i32
    %c0_i32_0 = arith.constant 0 : i32
    %c0_i32_1 = arith.constant 0 : i32
    return %arg0, %c0_i32, %c0_i32_0 : i32, i32, i32
  }
}

</mosaic_0001>

<bundles_post_ra>
// kernel: forward.1
= control target key start
LH: loop header
LB: loop body
LE: loop exit
PB: predicated region body
PF: predicated region fallthrough
CT: control target
= control target key end

     0   :  { %s10337_s0 = inlined_call_operand.vmem [shape: f32[2,16,4], index: 0, kind: input, shape index: {}]   ;;  %s10338_s1 = inlined_call_operand.hbm [shape: f32[3,4,64], index: 1, kind: input, shape index: {}]   ;;  %s10339_s2 = inlined_call_operand.hbm [shape: f32[1,64], index: 2, kind: input, shape index: {}]   ;;  %s10340_s3 = inlined_call_operand.hbm [shape: f32[3,64,128], index: 3, kind: input, shape index: {}]   ;;  %s10341_s4 = inlined_call_operand.hbm [shape: f32[1,128], index: 4, kind: input, shape index: {}]   ;;  %s10342_s5 = inlined_call_operand.hbm [shape: f32[3,128,512], index: 5, kind: input, shape index: {}]   ;;  %s10343_s6 = inlined_call_operand.hbm [shape: f32[1,512], index: 6, kind: input, shape index: {}]   ;;  %s10344_s7 = inlined_call_operand.hbm [shape: f32[3,512,1024], index: 7, kind: input, shape index: {}]   ;;  %s10345_s8 = inlined_call_operand.hbm [shape: f32[1,1024], index: 8, kind: input, shape index: {}]   ;;  %s10346_s9 = inlined_call_operand.hbm [shape: f32[1024,128], index: 9, kind: input, shape index: {}]   ;;  %s10347_s10 = inlined_call_operand.hbm [shape: f32[1,128], index: 10, kind: input, shape index: {}]   ;;  %s10348_s11 = inlined_call_operand.hbm [shape: f32[128,384], index: 11, kind: input, shape index: {}]   ;;  %s10349_s12 = inlined_call_operand.hbm [shape: f32[1,384], index: 12, kind: input, shape index: {}]   ;;  %s10350_s13 = inlined_call_operand.hbm [shape: f32[1,384], index: 13, kind: input, shape index: {}]   ;;  %s10351_s14 = inlined_call_operand.vmem [shape: f32[128,8], index: 14, kind: input, shape index: {}]   ;;  %s10352_s15 = inlined_call_operand.hbm [shape: f32[1,8], index: 15, kind: input, shape index: {}]   ;;  %s10353_s16 = inlined_call_operand.hbm [shape: f32[2,1,8], index: 16, kind: output, shape index: {}]  }
   0x1   :  { %10370 = sst [smem:[#allocation43_spill]] %s10337_s0 }
   0x2   :  { %10371 = sst [smem:[#allocation44_spill]] %s10338_s1 }
   0x3   :  { %10372 = sst [smem:[#allocation45_spill]] %s10339_s2 }
   0x4   :  { %10373 = sst [smem:[#allocation46_spill]] %s10340_s3 }
   0x5   :  { %10374 = sst [smem:[#allocation47_spill]] %s10341_s4 }
   0x6   :  { %10375 = sst [smem:[#allocation48_spill]] %s10353_s16 }
   0x7   :  { %21 = vsyncpa [#allocation3], 0 }
   0x8   :  { %22 = vsyncpa [#allocation6], 0 }
   0x9   :  { %23 = vsyncpa [#allocation9], 0 }
   0xa   :  { %24 = vsyncpa [#allocation12], 0 }
   0xb   :  { %25 = vsyncpa [#allocation15], 0 }
   0xc   :  { %26 = vsyncpa [#allocation18], 0 }
   0xd   :  { %27 = vsyncpa [#allocation21], 0 }
   0xe   :  { %28 = vsyncpa [#allocation24], 0 }
   0xf   :  { %29 = vsyncpa [#allocation4], 0 }
  0x10   :  { %31 = vsyncpa [#allocation4 + $0x1], 0  ;;  %s9589_s21 = smov 0   ;;  %s9591_s22 = smov 0  }
  0x11   :  { %s9593_s23 = smov 0   ;;  %s9595_s24 = smov 0  }
  0x12 LB: > { %10376 = sst [smem:[#allocation35_spill]] %s9463_s21  ;;  %s9610_s25 = sadd.s32 4294967295, %s9475_s24   ;;  %s9475_s24 = sphi %s9595_s24, %s10423_s24   ;;  %s9471_s23 = sphi %s9593_s23, %s10426_s23   ;;  %s9467_s22 = sphi %s9591_s22, %s10425_s22   ;;  %s9463_s21 = sphi %s9589_s21, %s10424_s21  }
  0x13   : > { %10377 = sst [smem:[#allocation36_spill]] %s9467_s22  ;;  %s6303_s26 = sadd.s32 4294967294, %s9475_s24  }
  0x14   : > { %10378 = sst [smem:[#allocation37_spill]] %s9471_s23  ;;  %s9614_s27 = sadd.s32 1, %s9475_s24  }
  0x15   : > { %10379 = sst [smem:[#allocation38_spill]] %s9475_s24  ;;  %s385_s28 = sadd.s32 1, %s9471_s23 }
  0x16   : > { %10380 = sst [smem:[#allocation39_spill]] %s9614_s27  ;;  %s382_s29 = ssub.s32 %s9475_s24, %s9614_s27 }
  0x17   : > { %p395_p0 = scmp.ne.s32.totalorder %s9471_s23, %s9467_s22  ;;  %p383_p1 = scmp.eq.s32.totalorder %s382_s29, 0 }
  0x18   : > { %p396_p2 = scmp.eq.s32.totalorder %s9610_s25, 1  ;;  %p401_p3 = scmp.ne.s32.totalorder %s9467_s22, %s9463_s21 }
  0x19   : > { %p402_p4 = scmp.eq.s32.totalorder %s6303_s26, 1  ;;  %p6304_p7 = scmp.ge.s32.totalorder %s9475_s24, 1 }
  0x1a   : > { %s9625_s30 = scalar_select %p383_p1, %s9471_s23, %s385_s28  }
  0x1b   : > { %p9627_p5 = por %p396_p2, %p395_p0  ;;  %p9631_p6 = por %p402_p4, %p401_p3 }
  0x1c   : > { %10381 = sst [smem:[#allocation40_spill]] %s9625_s30  ;;  %p409_p8 = scmp.lt.s32.totalorder %s9475_s24, 3 }
  0x1d   : > { %s10382_s0 = scalar_select %p9627_p5, 1, 0 }
  0x1e   : > { %s10384_s17 = scalar_select %p9631_p6, 1, 0 }
  0x1f   : > { %10383 = sst [smem:[#allocation41_spill]] %s10382_s0  ;;  %p10361_p9 = scmp.eq.s32.totalorder %s9610_s25, 0 }
  0x20   : > { %10385 = sst [smem:[#allocation42_spill]] %s10384_s17  ;;  %p9638_p10 = pnand %p6304_p7, %p409_p8 }
  0x21   : > { %s9477_s19 = smov [#allocation5]   ;;  %s9478_s26 = smov [#allocation8]  }
  0x22   : > { %s10386_s18 = scalar_select %p9638_p10, 1, 0 }
  0x23   : > { %s435_s20 = sshll.u32 %s9477_s19, 4  ;;  %p8845_p11 = pneg %p9638_p10  ;;  %s436_s20 = int_to_ptr.vmem [resolvable:$true] %s435_s20 }
  0x24   : > { %s459_s28 = sshll.u32 %s9478_s26, 4  ;;  %s9479_s30 = smov [#allocation11]   ;;  %s9650_s28 = int_to_ptr.vmem [resolvable:$true] %s459_s28 }
  0x25   : > { %p9646_p12 = pnand %p10361_p9, %p8845_p11  ;;  %s483_s23 = sshll.u32 %s9479_s30, 4  ;;  %s9652_s23 = int_to_ptr.vmem [resolvable:$true] %s483_s23 }
  0x26   : > { %s10388_s2 = sld [smem:[#allocation45_spill]] }
  0x27   : > { %p9662_p0 = pneg %p9646_p12 }
  0x2c   : > { %s8989_s19 = scalar_lea.hbm %s10388_s2, 16 }
  0x2d   : > { %p8990_p13 = scmp.ne.s32.totalorder %s10388_s2, %s8989_s19  ;;  %p8996_p3 = scmp.lt.u32.totalorder %s8989_s19, %s10388_s2 }
  0x2f   : > { %p8992_p1 = pnand %p9662_p0, %p8990_p13 }
  0x31   : > { %p8993_p2 = pneg %p8992_p1 }
  0x33   : > { %p8998_p4 = pnand %p8996_p3, %p8993_p2 }
  0x35   : > { %9001 = shalt.err (!%p8998_p4)
}
  0x36   : > { %s9002_s27 = scalar_lea.vmem %s436_s20, 16  ;;  %s9009_s21 = scalar_lea.vmem %s436_s20, 32 }
  0x37   : > { %p9003_p7 = scmp.ne.s32.totalorder %s436_s20, %s9002_s27  ;;  %p9010_p9 = scmp.lt.s32.totalorder %s436_s20, %s436_s20 }
  0x38   : > { %p9011_p6 = scmp.lt.s32.totalorder %s9009_s21, %s9002_s27 }
  0x39   : > { %p9005_p8 = pnand %p9003_p7, %p9662_p0 }
  0x3a   : > { %p9012_p5 = por %p9011_p6, %p9010_p9 }
  0x3b   : > { %p9006_p11 = pneg %p9005_p8 }
  0x3d   : > { %p9013_p10 = pnand %p9012_p5, %p9006_p11 }
  0x3f   : > { %9016 = shalt.err (!%p9013_p10)
}
  0x40   : > { %8851 = dma.hbm_to_vmem [thread:$0]  (!%p9646_p12), %s10388_s2, 16, %s436_s20, [#allocation6]  }
  0x41   : > { %s10390_s4 = sld [smem:[#allocation47_spill]] }
  0x47   : > { %s9017_s30 = scalar_lea.hbm %s10390_s4, 16 }
  0x48   : > { %p9018_p13 = scmp.ne.s32.totalorder %s10390_s4, %s9017_s30  ;;  %p9024_p5 = scmp.lt.u32.totalorder %s9017_s30, %s10390_s4 }
  0x4a   : > { %p9020_p1 = pnand %p9018_p13, %p9662_p0 }
  0x4c   : > { %p9021_p6 = pneg %p9020_p1 }
  0x4e   : > { %p9026_p9 = pnand %p9024_p5, %p9021_p6 }
  0x50   : > { %9029 = shalt.err (!%p9026_p9)
}
  0x51   : > { %s9030_s20 = scalar_lea.vmem %s9650_s28, 16  ;;  %s9037_s22 = scalar_lea.vmem %s9650_s28, 32 }
  0x52   : > { %p9031_p10 = scmp.ne.s32.totalorder %s9650_s28, %s9030_s20  ;;  %p9038_p4 = scmp.lt.s32.totalorder %s9650_s28, %s9650_s28 }
  0x53   : > { %p9039_p7 = scmp.lt.s32.totalorder %s9037_s22, %s9030_s20 }
  0x54   : > { %p9033_p2 = pnand %p9031_p10, %p9662_p0 }
  0x55   : > { %p9040_p8 = por %p9039_p7, %p9038_p4 }
  0x56   : > { %p9034_p3 = pneg %p9033_p2 }
  0x58   : > { %p9041_p11 = pnand %p9040_p8, %p9034_p3 }
  0x5a   : > { %9044 = shalt.err (!%p9041_p11)
}
  0x5b   : > { %8857 = dma.hbm_to_vmem [thread:$0]  (!%p9646_p12), %s10390_s4, 16, %s9650_s28, [#allocation9]  }
  0x5c   : > { %s9045_s19 = scalar_lea.hbm %s10343_s6, 64 }
  0x5d   : > { %p9046_p13 = scmp.ne.s32.totalorder %s10343_s6, %s9045_s19  ;;  %p9052_p5 = scmp.lt.u32.totalorder %s9045_s19, %s10343_s6 }
  0x5f   : > { %p9048_p1 = pnand %p9046_p13, %p9662_p0 }
  0x61   : > { %p9049_p6 = pneg %p9048_p1 }
  0x63   : > { %p9054_p9 = pnand %p9052_p5, %p9049_p6 }
  0x65   : > { %9057 = shalt.err (!%p9054_p9)
}
  0x66   : > { %s9058_s28 = scalar_lea.vmem %s9652_s23, 64  ;;  %p9066_p4 = scmp.lt.s32.totalorder %s9652_s23, %s9652_s23 }
  0x67   : > { %p9059_p10 = scmp.ne.s32.totalorder %s9652_s23, %s9058_s28  ;;  %p9067_p7 = scmp.lt.s32.totalorder %s9058_s28, %s9058_s28 }
  0x69   : > { %p9061_p2 = pnand %p9059_p10, %p9662_p0  ;;  %p9068_p8 = por %p9067_p7, %p9066_p4 }
  0x6b   : > { %p9062_p3 = pneg %p9061_p2 }
  0x6d   : > { %p9069_p11 = pnand %p9068_p8, %p9062_p3 }
  0x6f   : > { %9072 = shalt.err (!%p9069_p11)
}
  0x70   : > { %8863 = dma.hbm_to_vmem [thread:$0]  (!%p9646_p12), %s10343_s6, 64, %s9652_s23, [#allocation12]  }
  0x71   : > { %s9480_s24 = smov [#allocation14]   ;;  %s9481_s16 = smov [#allocation17]  }
  0x72   : > { %s507_s17 = sshll.u32 %s9480_s24, 4  ;;  %s531_s19 = sshll.u32 %s9481_s16, 4  ;;  %s508_s17 = int_to_ptr.vmem [resolvable:$true] %s507_s17  ;;  %s532_s19 = int_to_ptr.vmem [resolvable:$true] %s531_s19 }
  0x73   : > { %s9073_s21 = scalar_lea.hbm %s10345_s8, 128 }
  0x74   : > { %p9074_p13 = scmp.ne.s32.totalorder %s10345_s8, %s9073_s21  ;;  %p9080_p5 = scmp.lt.u32.totalorder %s9073_s21, %s10345_s8 }
  0x76   : > { %p9076_p1 = pnand %p9074_p13, %p9662_p0 }
  0x78   : > { %p9077_p6 = pneg %p9076_p1 }
  0x7a   : > { %p9082_p9 = pnand %p9080_p5, %p9077_p6 }
  0x7c   : > { %9085 = shalt.err (!%p9082_p9)
}
  0x7d   : > { %s9086_s23 = scalar_lea.vmem %s508_s17, 128  ;;  %p9094_p4 = scmp.lt.s32.totalorder %s508_s17, %s508_s17 }
  0x7e   : > { %p9087_p10 = scmp.ne.s32.totalorder %s508_s17, %s9086_s23  ;;  %p9095_p7 = scmp.lt.s32.totalorder %s9086_s23, %s9086_s23 }
  0x80   : > { %p9089_p2 = pnand %p9087_p10, %p9662_p0  ;;  %p9096_p8 = por %p9095_p7, %p9094_p4 }
  0x82   : > { %p9090_p3 = pneg %p9089_p2 }
  0x84   : > { %p9097_p11 = pnand %p9096_p8, %p9090_p3 }
  0x86   : > { %9100 = shalt.err (!%p9097_p11)
}
  0x87   : > { %8869 = dma.hbm_to_vmem [thread:$0]  (!%p9646_p12), %s10345_s8, 128, %s508_s17, [#allocation15]  }
  0x88   : > { %s9101_s30 = scalar_lea.hbm %s10347_s10, 16 }
  0x89   : > { %p9102_p13 = scmp.ne.s32.totalorder %s10347_s10, %s9101_s30  ;;  %p9108_p5 = scmp.lt.u32.totalorder %s9101_s30, %s10347_s10 }
  0x8b   : > { %p9104_p1 = pnand %p9102_p13, %p9662_p0 }
  0x8d   : > { %p9105_p6 = pneg %p9104_p1 }
  0x8f   : > { %p9110_p9 = pnand %p9108_p5, %p9105_p6 }
  0x91   : > { %9113 = shalt.err (!%p9110_p9)
}
  0x92   : > { %s9114_s22 = scalar_lea.vmem %s532_s19, 16  ;;  %s9121_s17 = scalar_lea.vmem %s532_s19, 32 }
  0x93   : > { %p9115_p10 = scmp.ne.s32.totalorder %s532_s19, %s9114_s22  ;;  %p9122_p4 = scmp.lt.s32.totalorder %s532_s19, %s532_s19 }
  0x94   : > { %p9123_p7 = scmp.lt.s32.totalorder %s9121_s17, %s9114_s22 }
  0x95   : > { %p9117_p2 = pnand %p9115_p10, %p9662_p0 }
  0x96   : > { %p9124_p8 = por %p9123_p7, %p9122_p4 }
  0x97   : > { %p9118_p3 = pneg %p9117_p2 }
  0x99   : > { %p9125_p11 = pnand %p9124_p8, %p9118_p3 }
  0x9b   : > { %9128 = shalt.err (!%p9125_p11)
}
  0x9c   : > { %8875 = dma.hbm_to_vmem [thread:$0]  (!%p9646_p12), %s10347_s10, 16, %s532_s19, [#allocation18]  }
  0x9d   : > { %s9482_s24 = smov [#allocation20]   ;;  %s9483_s16 = smov [#allocation2]  }
  0x9e   : > { %s555_s2 = sshll.u32 %s9482_s24, 4  ;;  %s421_s30 = sshll.u32 %s9483_s16, 4  ;;  %s556_s2 = int_to_ptr.vmem [resolvable:$true] %s555_s2  ;;  %s422_s30 = int_to_ptr.vmem [resolvable:$true] %s421_s30 }
  0x9f   : > { %s9129_s20 = scalar_lea.hbm %s10349_s12, 48 }
  0xa0   : > { %p9130_p13 = scmp.ne.s32.totalorder %s10349_s12, %s9129_s20  ;;  %p9136_p5 = scmp.lt.u32.totalorder %s9129_s20, %s10349_s12 }
  0xa2   : > { %p9132_p1 = pnand %p9130_p13, %p9662_p0 }
  0xa4   : > { %p9133_p6 = pneg %p9132_p1 }
  0xa6   : > { %p9138_p9 = pnand %p9136_p5, %p9133_p6 }
  0xa8   : > { %9141 = shalt.err (!%p9138_p9)
}
  0xa9   : > { %s9142_s19 = scalar_lea.vmem %s556_s2, 48  ;;  %s9149_s0 = scalar_lea.vmem %s556_s2, 64 }
  0xaa   : > { %p9143_p10 = scmp.ne.s32.totalorder %s556_s2, %s9142_s19  ;;  %p9150_p4 = scmp.lt.s32.totalorder %s556_s2, %s556_s2 }
  0xab   : > { %p9151_p7 = scmp.lt.s32.totalorder %s9149_s0, %s9142_s19 }
  0xac   : > { %p9145_p2 = pnand %p9143_p10, %p9662_p0 }
  0xad   : > { %p9152_p8 = por %p9151_p7, %p9150_p4 }
  0xae   : > { %p9146_p3 = pneg %p9145_p2 }
  0xb0   : > { %p9153_p11 = pnand %p9152_p8, %p9146_p3 }
  0xb2   : > { %9156 = shalt.err (!%p9153_p11)
}
  0xb3   : > { %8881 = dma.hbm_to_vmem [thread:$0]  (!%p9646_p12), %s10349_s12, 48, %s556_s2, [#allocation21]  }
  0xb4   : > { %s10391_s1 = sld [smem:[#allocation44_spill]] }
  0xba   : > { %s9157_s20 = scalar_lea.hbm %s10391_s1, 192 }
  0xbb   : > { %p9158_p13 = scmp.ne.s32.totalorder %s10391_s1, %s9157_s20  ;;  %p9164_p5 = scmp.lt.u32.totalorder %s9157_s20, %s10391_s1 }
  0xbd   : > { %p9160_p1 = pnand %p9158_p13, %p9662_p0 }
  0xbf   : > { %p9161_p6 = pneg %p9160_p1 }
  0xc1   : > { %p9166_p9 = pnand %p9164_p5, %p9161_p6 }
  0xc3   : > { %9169 = shalt.err (!%p9166_p9)
}
  0xc4   : > { %s9170_s19 = scalar_lea.vmem %s422_s30, 192  ;;  %p9178_p4 = scmp.lt.s32.totalorder %s422_s30, %s422_s30 }
  0xc5   : > { %p9171_p10 = scmp.ne.s32.totalorder %s422_s30, %s9170_s19  ;;  %p9179_p7 = scmp.lt.s32.totalorder %s9170_s19, %s9170_s19 }
  0xc7   : > { %p9173_p2 = pnand %p9171_p10, %p9662_p0  ;;  %p9180_p8 = por %p9179_p7, %p9178_p4 }
  0xc9   : > { %p9174_p3 = pneg %p9173_p2 }
  0xcb   : > { %p9181_p11 = pnand %p9180_p8, %p9174_p3 }
  0xcd   : > { %9184 = shalt.err (!%p9181_p11)
}
  0xce   : > { %s10367_s2 = smov 64   ;;  %s9485_s0 = smov 4  }
  0xcf   : > { %8848 = dma.hbm_to_vmem [thread:$0]  (!%p9646_p12), %s10391_s1, 192, %s422_s30, [#allocation3], %s10367_s2, %s10367_s2, %s9485_s0  }
  0xd0   : > { %s9486_s27 = smov [#allocation7]   ;;  %s10392_s3 = sld [smem:[#allocation46_spill]] }
  0xd1   : > { %s445_s21 = sshll.u32 %s9486_s27, 4  ;;  %s446_s21 = int_to_ptr.vmem [resolvable:$true] %s445_s21 }
  0xd6   : > { %s9185_s22 = scalar_lea.hbm %s10392_s3, 3072 }
  0xd7   : > { %p9186_p13 = scmp.ne.s32.totalorder %s10392_s3, %s9185_s22  ;;  %p9192_p5 = scmp.lt.u32.totalorder %s9185_s22, %s10392_s3 }
  0xd9   : > { %p9188_p1 = pnand %p9186_p13, %p9662_p0 }
  0xdb   : > { %p9189_p6 = pneg %p9188_p1 }
  0xdd   : > { %p9194_p9 = pnand %p9192_p5, %p9189_p6 }
  0xdf   : > { %9197 = shalt.err (!%p9194_p9)
}
  0xe0   : > { %s9198_s30 = scalar_lea.vmem %s446_s21, 3072  ;;  %p9206_p4 = scmp.lt.s32.totalorder %s446_s21, %s446_s21 }
  0xe1   : > { %p9199_p10 = scmp.ne.s32.totalorder %s446_s21, %s9198_s30  ;;  %p9207_p7 = scmp.lt.s32.totalorder %s9198_s30, %s9198_s30 }
  0xe3   : > { %p9201_p2 = pnand %p9199_p10, %p9662_p0  ;;  %p9208_p8 = por %p9207_p7, %p9206_p4 }
  0xe5   : > { %p9202_p3 = pneg %p9201_p2 }
  0xe7   : > { %p9209_p11 = pnand %p9208_p8, %p9202_p3 }
  0xe9   : > { %9212 = shalt.err (!%p9209_p11)
}
  0xea   : > { %s10368_s0 = smov 128   ;;  %s10369_s24 = smov 8  }
  0xeb   : > { %8854 = dma.hbm_to_vmem [thread:$0]  (!%p9646_p12), %s10392_s3, 3072, %s446_s21, [#allocation6], %s10368_s0, %s10368_s0, %s10369_s24  }
  0xec   : > { %s9489_s27 = smov [#allocation10]   ;;  %s9213_s17 = scalar_lea.hbm %s10342_s5, 24576 }
  0xed   : > { %s469_s20 = sshll.u32 %s9489_s27, 4  ;;  %p9214_p13 = scmp.ne.s32.totalorder %s10342_s5, %s9213_s17  ;;  %s470_s20 = int_to_ptr.vmem [resolvable:$true] %s469_s20 }
  0xee   : > { %p9220_p5 = scmp.lt.u32.totalorder %s9213_s17, %s10342_s5 }
  0xef   : > { %p9216_p1 = pnand %p9214_p13, %p9662_p0 }
  0xf1   : > { %p9217_p6 = pneg %p9216_p1 }
  0xf3   : > { %p9222_p9 = pnand %p9220_p5, %p9217_p6 }
  0xf5   : > { %9225 = shalt.err (!%p9222_p9)
}
  0xf6   : > { %s9226_s21 = scalar_lea.vmem %s470_s20, 24576  ;;  %p9234_p4 = scmp.lt.s32.totalorder %s470_s20, %s470_s20 }
  0xf7   : > { %p9227_p10 = scmp.ne.s32.totalorder %s470_s20, %s9226_s21  ;;  %p9235_p7 = scmp.lt.s32.totalorder %s9226_s21, %s9226_s21 }
  0xf9   : > { %p9229_p2 = pnand %p9227_p10, %p9662_p0  ;;  %p9236_p8 = por %p9235_p7, %p9234_p4 }
  0xfb   : > { %p9230_p3 = pneg %p9229_p2 }
  0xfd   : > { %p9237_p11 = pnand %p9236_p8, %p9230_p3 }
  0xff   : > { %9240 = shalt.err (!%p9237_p11)
}
 0x100   : > { %s9490_s4 = smov 512   ;;  %s9491_s16 = smov 32  }
 0x101   : > { %8860 = dma.hbm_to_vmem [thread:$0]  (!%p9646_p12), %s10342_s5, 24576, %s470_s20, [#allocation9], %s9490_s4, %s9490_s4, %s9491_s16  }
 0x102   : > { %s9492_s28 = smov [#allocation13]   ;;  %s9241_s19 = scalar_lea.hbm %s10344_s7, 196608 }
 0x103   : > { %s493_s22 = sshll.u32 %s9492_s28, 4  ;;  %p9242_p13 = scmp.ne.s32.totalorder %s10344_s7, %s9241_s19  ;;  %s494_s22 = int_to_ptr.vmem [resolvable:$true] %s493_s22 }
 0x104   : > { %p9248_p5 = scmp.lt.u32.totalorder %s9241_s19, %s10344_s7 }
 0x105   : > { %p9244_p1 = pnand %p9242_p13, %p9662_p0 }
 0x107   : > { %p9245_p6 = pneg %p9244_p1 }
 0x109   : > { %p9250_p9 = pnand %p9248_p5, %p9245_p6 }
 0x10b   : > { %9253 = shalt.err (!%p9250_p9)
}
 0x10c   : > { %s9254_s20 = scalar_lea.vmem %s494_s22, 196608  ;;  %p9262_p4 = scmp.lt.s32.totalorder %s494_s22, %s494_s22 }
 0x10d   : > { %p9255_p10 = scmp.ne.s32.totalorder %s494_s22, %s9254_s20  ;;  %p9263_p7 = scmp.lt.s32.totalorder %s9254_s20, %s9254_s20 }
 0x10f   : > { %p9257_p2 = pnand %p9255_p10, %p9662_p0  ;;  %p9264_p8 = por %p9263_p7, %p9262_p4 }
 0x111   : > { %p9258_p3 = pneg %p9257_p2 }
 0x113   : > { %p9265_p11 = pnand %p9264_p8, %p9258_p3 }
 0x115   : > { %9268 = shalt.err (!%p9265_p11)
}
 0x116   : > { %s9493_s4 = smov 1024   ;;  %s10393_s16 = smov 64  }
 0x117   : > { %8866 = dma.hbm_to_vmem [thread:$0]  (!%p9646_p12), %s10344_s7, 196608, %s494_s22, [#allocation12], %s9493_s4, %s9493_s4, %s10393_s16  }
 0x118   : > { %s9494_s24 = smov [#allocation16]   ;;  %s9495_s28 = smov [#allocation19]  }
 0x119   : > { %s517_s27 = sshll.u32 %s9494_s24, 4  ;;  %s541_s17 = sshll.u32 %s9495_s28, 4  ;;  %s518_s27 = int_to_ptr.vmem [resolvable:$true] %s517_s27  ;;  %s542_s17 = int_to_ptr.vmem [resolvable:$true] %s541_s17 }
 0x11a   : > { %s9269_s30 = scalar_lea.hbm %s10346_s9, 16384 }
 0x11b   : > { %p9270_p13 = scmp.ne.s32.totalorder %s10346_s9, %s9269_s30  ;;  %p9276_p5 = scmp.lt.u32.totalorder %s9269_s30, %s10346_s9 }
 0x11d   : > { %p9272_p1 = pnand %p9270_p13, %p9662_p0 }
 0x11f   : > { %p9273_p6 = pneg %p9272_p1 }
 0x121   : > { %p9278_p9 = pnand %p9276_p5, %p9273_p6 }
 0x123   : > { %9281 = shalt.err (!%p9278_p9)
}
 0x124   : > { %s9282_s22 = scalar_lea.vmem %s518_s27, 16384  ;;  %p9290_p4 = scmp.lt.s32.totalorder %s518_s27, %s518_s27 }
 0x125   : > { %p9283_p10 = scmp.ne.s32.totalorder %s518_s27, %s9282_s22  ;;  %p9291_p7 = scmp.lt.s32.totalorder %s9282_s22, %s9282_s22 }
 0x127   : > { %p9285_p2 = pnand %p9283_p10, %p9662_p0  ;;  %p9292_p8 = por %p9291_p7, %p9290_p4 }
 0x129   : > { %p9286_p3 = pneg %p9285_p2 }
 0x12b   : > { %p9293_p11 = pnand %p9292_p8, %p9286_p3 }
 0x12d   : > { %9296 = shalt.err (!%p9293_p11)
}
 0x12e   : > { %s10394_s4 = smov 8   ;;  %s10395_s16 = smov 128  }
 0x12f   : > { %8872 = dma.hbm_to_vmem [thread:$0]  (!%p9646_p12), %s10346_s9, 16384, %s518_s27, [#allocation15], %s10395_s16, %s10395_s16, %s10394_s4  }
 0x130   : > { %s9297_s23 = scalar_lea.hbm %s10348_s11, 6144 }
 0x131   : > { %p9298_p13 = scmp.ne.s32.totalorder %s10348_s11, %s9297_s23  ;;  %p9304_p5 = scmp.lt.u32.totalorder %s9297_s23, %s10348_s11 }
 0x133   : > { %p9300_p1 = pnand %p9298_p13, %p9662_p0 }
 0x135   : > { %p9301_p6 = pneg %p9300_p1 }
 0x137   : > { %p9306_p9 = pnand %p9304_p5, %p9301_p6 }
 0x139   : > { %9309 = shalt.err (!%p9306_p9)
}
 0x13a   : > { %s9310_s2 = scalar_lea.vmem %s542_s17, 6144  ;;  %p9318_p4 = scmp.lt.s32.totalorder %s542_s17, %s542_s17 }
 0x13b   : > { %p9311_p10 = scmp.ne.s32.totalorder %s542_s17, %s9310_s2  ;;  %p9319_p7 = scmp.lt.s32.totalorder %s9310_s2, %s9310_s2 }
 0x13d   : > { %p9313_p2 = pnand %p9311_p10, %p9662_p0  ;;  %p9320_p8 = por %p9319_p7, %p9318_p4 }
 0x13f   : > { %p9314_p3 = pneg %p9313_p2 }
 0x141   : > { %p9321_p11 = pnand %p9320_p8, %p9314_p3 }
 0x143   : > { %9324 = shalt.err (!%p9321_p11)
}
 0x144   : > { %s9496_s27 = smov 384   ;;  %s9497_s22 = smov 24  }
 0x145   : > { %8878 = dma.hbm_to_vmem [thread:$0]  (!%p9646_p12), %s10348_s11, 6144, %s542_s17, [#allocation18], %s9496_s27, %s9496_s27, %s9497_s22  }
 0x146   : > { %s9498_s1 = smov [#allocation22]   ;;  %s9499_s24 = smov [#allocation23]  }
 0x147   : > { %s566_s0 = sshll.u32 %s9498_s1, 4  ;;  %s580_s28 = sshll.u32 %s9499_s24, 4  ;;  %s567_s0 = int_to_ptr.vmem [resolvable:$true] %s566_s0  ;;  %s581_s28 = int_to_ptr.vmem [resolvable:$true] %s580_s28 }
 0x148   : > { %s9325_s30 = scalar_lea.hbm %s10350_s13, 48 }
 0x149   : > { %p9326_p13 = scmp.ne.s32.totalorder %s10350_s13, %s9325_s30  ;;  %p9332_p5 = scmp.lt.u32.totalorder %s9325_s30, %s10350_s13 }
 0x14b   : > { %p9328_p1 = pnand %p9326_p13, %p9662_p0 }
 0x14d   : > { %p9329_p6 = pneg %p9328_p1 }
 0x14f   : > { %p9334_p9 = pnand %p9332_p5, %p9329_p6 }
 0x151   : > { %9337 = shalt.err (!%p9334_p9)
}
 0x152   : > { %s9338_s17 = scalar_lea.vmem %s567_s0, 48  ;;  %s9345_s27 = scalar_lea.vmem %s567_s0, 64 }
 0x153   : > { %p9339_p10 = scmp.ne.s32.totalorder %s567_s0, %s9338_s17  ;;  %p9346_p4 = scmp.lt.s32.totalorder %s567_s0, %s567_s0 }
 0x154   : > { %p9347_p7 = scmp.lt.s32.totalorder %s9345_s27, %s9338_s17 }
 0x155   : > { %p9341_p2 = pnand %p9339_p10, %p9662_p0 }
 0x156   : > { %p9348_p8 = por %p9347_p7, %p9346_p4 }
 0x157   : > { %p9342_p3 = pneg %p9341_p2 }
 0x159   : > { %p9349_p11 = pnand %p9348_p8, %p9342_p3 }
 0x15b   : > { %9352 = shalt.err (!%p9349_p11)
}
 0x15c   : > { %8884 = dma.hbm_to_vmem [thread:$0]  (!%p9646_p12), %s10350_s13, 48, %s567_s0, [#allocation21]  }
 0x15d   : > { %s9353_s1 = scalar_lea.hbm %s10352_s15, 16 }
 0x15e   : > { %p9354_p13 = scmp.ne.s32.totalorder %s10352_s15, %s9353_s1  ;;  %p9360_p5 = scmp.lt.u32.totalorder %s9353_s1, %s10352_s15 }
 0x160   : > { %p9356_p1 = pnand %p9354_p13, %p9662_p0 }
 0x162   : > { %p9357_p6 = pneg %p9356_p1 }
 0x164   : > { %p9362_p9 = pnand %p9360_p5, %p9357_p6 }
 0x166   : > { %9365 = shalt.err (!%p9362_p9)
}
 0x167   : > { %s9366_s21 = scalar_lea.vmem %s581_s28, 16  ;;  %s9373_s0 = scalar_lea.vmem %s581_s28, 32 }
 0x168   : > { %p9367_p10 = scmp.ne.s32.totalorder %s581_s28, %s9366_s21  ;;  %p9374_p4 = scmp.lt.s32.totalorder %s581_s28, %s581_s28 }
 0x169   : > { %p9375_p7 = scmp.lt.s32.totalorder %s9373_s0, %s9366_s21 }
 0x16a   : > { %p9369_p2 = pnand %p9367_p10, %p9662_p0 }
 0x16b   : > { %p9376_p8 = por %p9375_p7, %p9374_p4 }
 0x16c   : > { %p9370_p3 = pneg %p9369_p2 }
 0x16e   : > { %p9377_p11 = pnand %p9376_p8, %p9370_p3 }
 0x170   : > { %9380 = shalt.err (!%p9377_p11)
}
 0x171   : > { %8887 = dma.hbm_to_vmem [thread:$0]  (!%p9646_p12), %s10352_s15, 16, %s581_s28, [#allocation24]  }
 0x172   : > { %p10396_p13 = scmp.ne.s32.totalorder %s10386_s18, 0 }
 0x173   : > { %p10397_p1 = scmp.eq.s32.totalorder (!%p10396_p13), %s9610_s25, 0 }
 0x174   : > { %601 = sbr.rel (%p10396_p13) target bundleno = 2841 (0xb19), region = 84 }
 0x17b   : > { %9426 = dma.done.wait (%p10397_p1), [#allocation3], 192   ;;  %p10398_p0 = pmov %p10397_p1 }
 0x17d   : > { %9428 = vsyncadd (%p10398_p0), [#allocation3], 4294967104  ;;  %p10399_p6 = pmov %p10398_p0 }
 0x17e   : > { %p10400_p5 = pmov %p10398_p0 }
 0x17f   : > { %9430 = dma.done.wait (%p10399_p6), [#allocation6], 3088  }
 0x180   : > { %9432 = vsyncadd (%p10400_p5), [#allocation6], 4294964208  ;;  %p10401_p9 = pmov %p10398_p0 }
 0x181   : > { %p10402_p12 = pmov %p10398_p0 }
 0x182   : > { %9434 = dma.done.wait (%p10401_p9), [#allocation9], 24592  }
 0x183   : > { %9436 = vsyncadd (%p10402_p12), [#allocation9], 4294942704  ;;  %p10403_p10 = pmov %p10398_p0 }
 0x184   : > { %p10404_p2 = pmov %p10398_p0 }
 0x185   : > { %9438 = dma.done.wait (%p10403_p10), [#allocation12], 196672  }
 0x186   : > { %9440 = vsyncadd (%p10404_p2), [#allocation12], 4294770624  ;;  %p10405_p3 = pmov %p10398_p0 }
 0x187   : > { %p10406_p4 = pmov %p10398_p0 }
 0x188   : > { %9442 = dma.done.wait (%p10405_p3), [#allocation15], 16512  }
 0x189   : > { %9444 = vsyncadd (%p10406_p4), [#allocation15], 4294950784  ;;  %p10407_p7 = pmov %p10398_p0 }
 0x18a   : > { %p10408_p8 = pmov %p10398_p0 }
 0x18b   : > { %9446 = dma.done.wait (%p10407_p7), [#allocation18], 6160  }
 0x18c   : > { %9448 = vsyncadd (%p10408_p8), [#allocation18], 4294961136  ;;  %p10409_p11 = pmov %p10398_p0 }
 0x18d   : > { %p10410_p13 = pmov %p10398_p0 }
 0x18e   : > { %9450 = dma.done.wait (%p10409_p11), [#allocation21], 96  }
 0x18f   : > { %9452 = vsyncadd (%p10410_p13), [#allocation21], 4294967200  ;;  %p10411_p1 = pmov %p10398_p0 }
 0x191   : > { %9454 = dma.done.wait (%p10411_p1), [#allocation24], 16  }
 0x192   : > { %9456 = vsyncadd (%p10398_p0), [#allocation24], 4294967280  ;;  %p702_p6 = scmp.lt.s32.totalorder %s9610_s25, 1  ;;  %vm731_vm0 = vcmask 1043456   ;;  %s10412_s17 = sld [smem:[#allocation43_spill]]  ;;  %vm726_vm1 = vcmask 31744  }
 0x193   : > { %v725_v0 = vld [vmem:[#allocation2 + $0x4] sm:$0xf]  ;;  %vm711_vm2 = vcmask 1040384   ;;  %v723_v4 = vld [vmem:[#allocation2] sm:$0xf]  ;;  %vm717_vm3 = vcmask 1046528  }
 0x194   : > { %s703_s18 = scalar_select %p702_p6, %s9610_s25, 1  ;;  %6621 = vmatprep.subr.msk.mxu0 %vm731_vm0, %v725_v0  ;;  %v894_v5 = vld [vmem:[#allocation2 + $0x8] sm:$0xf]  ;;  %v1042_v13 = vld [vmem:[#allocation7 + $0x40] sm:$0xff]  ;;  %v1043_v14 = vld [vmem:[#allocation7 + $0x48] sm:$0xff]  ;;  %v9500_v16 = vmov 0.0|0.0  }
 0x195   : > { %6622 = vmatpush3.msk.msra.mxu0 %vm731_vm0, %v725_v0  ;;  %v6764_v15 = vpack.c.bf16 %v1043_v14, %v1042_v13  ;;  %6763 = vmatprep.subr.bf16.mxu1 %v9500_v16  ;;  %v1044_v17 = vld [vmem:[#allocation7 + $0x50] sm:$0xff]  ;;  %v1045_v18 = vld [vmem:[#allocation7 + $0x58] sm:$0xff]  ;;  %v1046_v20 = vld [vmem:[#allocation7 + $0x60] sm:$0xff]  ;;  %vm9501_vm4 = vmmov 0   ;;  %v9502_v26 = vmov 0.0   ;;  %vm1016_vm5 = vcmask 1041408  }
 0x196   : > { %s6410_s29 = sshll.u32 %s703_s18, 4  ;;  %6626 = vmatprep.subr.msk.mxu0 %vm731_vm0, %v723_v4  ;;  %v6767_v19 = vpack.c.bf16 %v1045_v18, %v1044_v17  ;;  %v1047_v21 = vld [vmem:[#allocation7 + $0x68] sm:$0xff]  ;;  %v1048_v23 = vld [vmem:[#allocation7 + $0x70] sm:$0xff]  ;;  %v1049_v24 = vld [vmem:[#allocation7 + $0x78] sm:$0xff]  ;;  %6652 = vmatprep.mubr.msk.f32.mxu1 %vm9501_vm4, %v9502_v26  ;;  %vm1018_vm6 = vcmask 1042432   ;;  %vm1021_vm7 = vcmask 1044480  }
 0x197   : > { %6765 = vmatpush3.bf16.msra.mxu1 %v6764_v15  ;;  %v6770_v22 = vpack.c.bf16 %v1047_v21, %v1046_v20  ;;  %v6773_v25 = vpack.c.bf16 %v1049_v24, %v1048_v23  ;;  %v6346_v27 = vld [vmem:[#allocation5] ss:$0 sm:$0xff]  ;;  %v1033_v44 = vld [vmem:[#allocation7] sm:$0xff]  ;;  %v1034_v45 = vld [vmem:[#allocation7 + $0x8] sm:$0xff]  ;;  %vm1023_vm8 = vcmask 1045504   ;;  %vm1050_vm9 = vcmask 523264  }
 0x198   : > { %s706_s27 = scalar_lea.vmem %s10412_s17, %s6410_s29  ;;  %6766 = vmatprep.subr.bf16.mxu1 %v9500_v16  ;;  %v6776_v52 = vpack.c.bf16 %v1034_v45, %v1033_v44  ;;  %v1035_v54 = vld [vmem:[#allocation7 + $0x10] sm:$0xff]  ;;  %v1036_v55 = vld [vmem:[#allocation7 + $0x18] sm:$0xff]  ;;  %v1037_v58 = vld [vmem:[#allocation7 + $0x20] sm:$0xff]  ;;  %s10415_s18 = sld [smem:[#allocation36_spill]]  ;;  %vm6097_vm11 = vcmask 57344  }
 0x199   : > { %v707_v1 = vld [vmem:[%s706_s27] sm:$0xff]  ;;  %v708_v2 = vld [vmem:[%s706_s27 + $0x8] sm:$0xff]  ;;  %v6779_v57 = vpack.c.bf16 %v1036_v55, %v1035_v54  ;;  %v1038_v59 = vld [vmem:[#allocation7 + $0x28] sm:$0xff]  ;;  %s10416_s29 = sld [smem:[#allocation41_spill]]  ;;  %s6407_s28 = sshll.u32 %s9610_s25, 4 }
 0x19a   : > { %v712_v3 = vrot.slane %v707_v1, 7  ;;  %6623 = vmatprep.mubr.msk.f32.mxu0 %vm726_vm1, %v707_v1  ;;  %v713_v7 = vrot.slane %v708_v2, 7  ;;  %v718_v8 = vrot.slane %v707_v1, 1  ;;  %v719_v9 = vrot.slane %v708_v2, 1  ;;  %v1039_v61 = vld [vmem:[#allocation7 + $0x30] sm:$0xff]  ;;  %v1040_v62 = vld [vmem:[#allocation7 + $0x38] sm:$0xff]  ;;  %vm10027_vm10 = vmneg %vm711_vm2 }
 0x19b   : > { %6624 = vmatmul.mubr.msk.f32.vlgmr.msra.gmra.mrb[0].mxu0 %vm726_vm1, %v708_v2  ;;  %6768 = vmatpush3.bf16.msra.mxu1 %v6767_v19  ;;  %v6782_v60 = vpack.c.bf16 %v1038_v59, %v1037_v58  ;;  %v6785_v63 = vpack.c.bf16 %v1040_v62, %v1039_v61  ;;  %v1197_v0 = vld [vmem:[#allocation7 + $0x80] sm:$0xff]  ;;  %v1198_v1 = vld [vmem:[#allocation7 + $0x88] sm:$0xff]  ;;  %v1400_v62 = vld [vmem:[#allocation10 + $0x2d0] sm:$0xff]  ;;  %s10417_s3 = sld [smem:[#allocation48_spill]]  ;;  %s9503_s25 = smov [#allocation25]  }
 0x19c   : > { %v716_v6 = vsel %vm711_vm2, 0.0, %v712_v3  ;;  %6627 = vmatpush3.msk.msra.mxu0 %vm731_vm0, %v723_v4  ;;  %v714_v10 = vsel %vm711_vm2, %v712_v3, %v713_v7  ;;  %v720_v11 = vsel %vm717_vm3, %v718_v8, %v719_v9  ;;  %v722_v12 = vsel %vm717_vm3, %v719_v9, 0.0  ;;  %6769 = vmatprep.subr.bf16.mxu1 %v9500_v16  ;;  %v1199_v4 = vld [vmem:[#allocation7 + $0x90] sm:$0xff]  ;;  %v1201_v8 = vld [vmem:[#allocation7 + $0xa0] sm:$0xff]  ;;  %v1202_v9 = vld [vmem:[#allocation7 + $0xa8] sm:$0xff]  ;;  %s9385_s23 = sshll.u32 %s9503_s25, 4  ;;  %s9386_s23 = int_to_ptr.vmem [resolvable:$false] %s9385_s23 }
 0x19d   : > { %6628 = vmatprep.mubr.msk.f32.mxu0 %vm726_vm1, %v716_v6  ;;  %6631 = vmatprep.subr.msk.mxu0 %vm731_vm0, %v894_v5  ;;  %v6788_v3 = vpack.c.bf16 %v1198_v1, %v1197_v0  ;;  %v1375_v17 = vld [vmem:[#allocation10 + $0x208] sm:$0xff]  ;;  %v1377_v19 = vld [vmem:[#allocation10 + $0x218] sm:$0xff]  ;;  %v1374_v23 = vld [vmem:[#allocation10 + $0x200] sm:$0xff]  ;;  %s9387_s19 = scalar_lea.vmem %s9386_s23, 32 }
 0x19e   : > { %v1379_v18 = vld [vmem:[#allocation10 + $0x228] sm:$0xff]  ;;  %v1381_v21 = vld [vmem:[#allocation10 + $0x238] sm:$0xff]  ;;  %v1378_v24 = vld [vmem:[#allocation10 + $0x220] sm:$0xff]  ;;  %s700_s26 = sand.u32 1, %s10415_s18  }
 0x19f   : > { %6771 = vmatpush3.bf16.msra.mxu1 %v6770_v22  ;;  %v6799_v20 = vpack.c.bf16 %v1379_v18, %v1375_v17  ;;  %v6831_v22 = vpack.c.bf16 %v1381_v21, %v1377_v19  ;;  %v1393_v44 = vld [vmem:[#allocation10 + $0x298] sm:$0xff]  ;;  %v1403_v54 = vld [vmem:[#allocation10 + $0x2e8] sm:$0xff]  ;;  %v1398_v59 = vld [vmem:[#allocation10 + $0x2c0] sm:$0xff]  ;;  %s701_s17 = scalar_lea.vmem [#allocation25], %s700_s26  ;;  %s6100_s1 = scalar_lea.sflag [#allocation4], %s700_s26 }
 0x1a0   : > { %6772 = vmatprep.subr.bf16.mxu1 %v9500_v16  ;;  %v1397_v45 = vld [vmem:[#allocation10 + $0x2b8] sm:$0xff]  ;;  %v1402_v61 = vld [vmem:[#allocation10 + $0x2e0] sm:$0xff]  ;;  %v1407_v1 = vld [vmem:[#allocation10 + $0x308] sm:$0xff]  ;;  %s6112_s27 = sshll.u32 %s701_s17, 4  ;;  %p10418_p9 = scmp.ne.s32.totalorder %s10416_s29, 0  ;;  %s10297_s27 = int_to_ptr.vmem [resolvable:$true] %s6112_s27 }
 0x1a1   : > { %v1405_v58 = vld [vmem:[#allocation10 + $0x2f8] sm:$0xff]  ;;  %v6813_v0 = vpack.c.bf16 %v1402_v61, %v1398_v59  ;;  %s10295_s16 = scalar_lea.hbm %s10417_s3, %s6407_s28  ;;  %s9381_s24 = scalar_lea.vmem %s10297_s27, 16 }
 0x1a2   : > { %v1417_v17 = vld [vmem:[#allocation10 + $0x358] sm:$0xff]  ;;  %p9382_p5 = scmp.ne.s32.totalorder %s10297_s27, %s9381_s24  ;;  %p9388_p2 = scmp.lt.s32.totalorder %s10297_s27, %s9386_s23 }
 0x1a3   : > { %6629 = vmatmul.mubr.msk.f32.vlgmr.msra.gmra.mrb[0].mxu0 %vm726_vm1, %v714_v10  ;;  %6774 = vmatpush3.bf16.msra.mxu1 %v6773_v25  ;;  %v6794_v10 = vpack.c.bf16 %v1202_v9, %v1201_v8  ;;  %v1376_v25 = vld [vmem:[#allocation10 + $0x210] sm:$0xff]  ;;  %v1406_v8 = vld [vmem:[#allocation10 + $0x300] sm:$0xff]  ;;  %v1421_v19 = vld [vmem:[#allocation10 + $0x378] sm:$0xff]  ;;  %p9389_p3 = scmp.lt.s32.totalorder %s9387_s19, %s9381_s24 }
 0x1a4   : > { %6632 = vmatpush3.msk.msra.mxu0 %vm731_vm0, %v894_v5  ;;  %6633 = vmatprep.mubr.msk.f32.mxu0 %vm726_vm1, %v720_v11  ;;  %v1200_v5 = vld [vmem:[#allocation7 + $0x98] sm:$0xff]  ;;  %v1203_v11 = vld [vmem:[#allocation7 + $0xb0] sm:$0xff]  ;;  %v1410_v9 = vld [vmem:[#allocation10 + $0x320] sm:$0xff]  ;;  %v6851_v21 = vpack.c.bf16 %v1421_v19, %v1417_v17  ;;  %p9383_p12 = pnand %p9382_p5, %p10418_p9 }
 0x1a5   : > { %6775 = vmatprep.subr.bf16.mxu1 %v9500_v16  ;;  %v6791_v7 = vpack.c.bf16 %v1200_v5, %v1199_v4  ;;  %6800 = vmatprep.subr.bf16.mxu0 %v6799_v20  ;;  %v1414_v20 = vld [vmem:[#allocation10 + $0x340] sm:$0xff]  ;;  %v1324_v17 = vld [vmem:[#allocation10 + $0x78] sm:$0xff]  ;;  %p9390_p4 = por %p9389_p3, %p9388_p2 }
 0x1a6   : > { %p9384_p10 = pneg %p9383_p12 }
 0x1a8   : > { %p9391_p7 = pnand %p9390_p4, %p9384_p10 }
 0x1ab   : > { %6634 = vmatmul.mubr.msk.f32.vlgmr.msra.gmra.mrb[0].mxu0 %vm726_vm1, %v722_v12  ;;  %v1204_v12 = vld [vmem:[#allocation7 + $0xb8] sm:$0xff] }
 0x1ac   : > { %1502 = vmatprep.mubr.f32.mxu0 %v9502_v26  ;;  %v6797_v13 = vpack.c.bf16 %v1204_v12, %v1203_v11  ;;  %v6817_v11 = vpack.c.bf16 %v1410_v9, %v1406_v8  ;;  %v1412_v12 = vld [vmem:[#allocation10 + $0x330] sm:$0xff]  ;;  %v1313_v8 = vld [vmem:[#allocation10 + $0x20] sm:$0xff] }
 0x1ad   : > { %v1311_v9 = vld [vmem:[#allocation10 + $0x10] sm:$0xff] }
 0x27e   : > { %v6635_v28 = vpop.f32.mrb[0].mxu0 }
 0x27f   : > { %v988_v29 = vadd.f32 %v6635_v28, %v6346_v27  ;;  %v969_v30 = vpop.f32.mrb[1].mxu0  ;;  %v1380_v28 = vld [vmem:[#allocation10 + $0x230] sm:$0xff] }
 0x280   : > { %v987_v31 = vadd.f32 %v6346_v27, %v969_v30  ;;  %v6801_v27 = vpack.c.bf16 %v1378_v24, %v1374_v23  ;;  %v1383_v30 = vld [vmem:[#allocation10 + $0x248] sm:$0xff]  ;;  %v1416_v23 = vld [vmem:[#allocation10 + $0x350] sm:$0xff] }
 0x281   : > { %v990_v32 = vmax.f32 %v988_v29, 0.0  ;;  %v6833_v29 = vpack.c.bf16 %v1380_v28, %v1376_v25  ;;  %v1420_v24 = vld [vmem:[#allocation10 + $0x370] sm:$0xff]  ;;  %v1423_v28 = vld [vmem:[#allocation10 + $0x388] sm:$0xff] }
 0x282   : > { %v989_v33 = vmax.f32 %v987_v31, 0.0  ;;  %6802 = vmatpush1.bf16.msra.mxu0 %v6801_v27  ;;  %v1387_v31 = vld [vmem:[#allocation10 + $0x268] sm:$0xff]  ;;  %v6853_v27 = vpack.c.bf16 %v1420_v24, %v1416_v23  ;;  %v1321_v23 = vld [vmem:[#allocation10 + $0x60] sm:$0xff] }
 0x283   : > { %v996_v34 = vrot.slane %v990_v32, 1 }
 0x284   : > { %v992_v35 = vrot.slane %v989_v33, 1 }
 0x285   : > { %v998_v37 = vmax.f32 %v990_v32, %v996_v34  ;;  %v1385_v32 = vld [vmem:[#allocation10 + $0x258] sm:$0xff] }
 0x286   : > { %v994_v36 = vmax.f32 %v989_v33, %v992_v35  ;;  %v6803_v33 = vpack.c.bf16 %v1387_v31, %v1383_v30  ;;  %v1389_v34 = vld [vmem:[#allocation10 + $0x278] sm:$0xff]  ;;  %v1382_v35 = vld [vmem:[#allocation10 + $0x240] sm:$0xff] }
 0x287   : > { %v1007_v42 = vrot.slane %v998_v37, 4  ;;  %v1009_v46 = vrot.slane %v998_v37, 5  ;;  %v1011_v48 = vrot.slane %v998_v37, 6  ;;  %v1013_v50 = vrot.slane %v998_v37, 7  ;;  %v1425_v30 = vld [vmem:[#allocation10 + $0x398] sm:$0xff] }
 0x288   : > { %v1000_v38 = vrot.slane %v994_v36, 1  ;;  %v1002_v39 = vrot.slane %v994_v36, 2  ;;  %v1004_v40 = vrot.slane %v994_v36, 3  ;;  %v6835_v37 = vpack.c.bf16 %v1389_v34, %v1385_v32  ;;  %6804 = vmatprep.subr.bf16.mxu0 %v6803_v33  ;;  %v1429_v32 = vld [vmem:[#allocation10 + $0x3b8] sm:$0xff]  ;;  %v1422_v33 = vld [vmem:[#allocation10 + $0x380] sm:$0xff] }
 0x289   : > { %v1426_v34 = vld [vmem:[#allocation10 + $0x3a0] sm:$0xff] }
 0x28a   : > { %v1015_v41 = vsel %vm711_vm2, %v994_v36, %v1000_v38  ;;  %v1386_v36 = vld [vmem:[#allocation10 + $0x260] sm:$0xff] }
 0x28b   : > { %v1017_v43 = vsel %vm1016_vm5, %v1015_v41, %v1002_v39  ;;  %v6805_v38 = vpack.c.bf16 %v1386_v36, %v1382_v35  ;;  %v1384_v39 = vld [vmem:[#allocation10 + $0x250] sm:$0xff]  ;;  %v1391_v41 = vld [vmem:[#allocation10 + $0x288] sm:$0xff]  ;;  %v6855_v35 = vpack.c.bf16 %v1429_v32, %v1425_v30  ;;  %v6825_v36 = vpack.c.bf16 %v1426_v34, %v1422_v33  ;;  %v1328_v33 = vld [vmem:[#allocation10 + $0x98] sm:$0xff] }
 0x28c   : > { %v1019_v47 = vsel %vm1018_vm6, %v1017_v43, %v1004_v40  ;;  %v1388_v40 = vld [vmem:[#allocation10 + $0x270] sm:$0xff]  ;;  %v1395_v43 = vld [vmem:[#allocation10 + $0x2a8] sm:$0xff]  ;;  %v1332_v34 = vld [vmem:[#allocation10 + $0xb8] sm:$0xff] }
 0x28d   : > { %v1020_v49 = vsel %vm731_vm0, %v1019_v47, %v1007_v42  ;;  %v6837_v42 = vpack.c.bf16 %v1388_v40, %v1384_v39  ;;  %6806 = vmatpush1.bf16.msra.mxu0 %v6805_v38  ;;  %v6839_v47 = vpack.c.bf16 %v1397_v45, %v1393_v44  ;;  %v1428_v38 = vld [vmem:[#allocation10 + $0x3b0] sm:$0xff]  ;;  %v1431_v40 = vld [vmem:[#allocation10 + $0x3c8] sm:$0xff]  ;;  %v1437_v44 = vld [vmem:[#allocation10 + $0x3f8] sm:$0xff] }
 0x28e   : > { %v1022_v51 = vsel %vm1021_vm7, %v1020_v49, %v1009_v46  ;;  %v6807_v46 = vpack.c.bf16 %v1395_v43, %v1391_v41  ;;  %v1394_v49 = vld [vmem:[#allocation10 + $0x2a0] sm:$0xff]  ;;  %v1435_v41 = vld [vmem:[#allocation10 + $0x3e8] sm:$0xff] }
 0x28f   : > { %v1024_v53 = vsel %vm1023_vm8, %v1022_v51, %v1011_v48  ;;  %v1390_v48 = vld [vmem:[#allocation10 + $0x280] sm:$0xff]  ;;  %v6827_v43 = vpack.c.bf16 %v1435_v41, %v1431_v40  ;;  %v1326_v30 = vld [vmem:[#allocation10 + $0x88] sm:$0xff]  ;;  %v6903_v40 = vpack.c.bf16 %v1332_v34, %v1328_v33  ;;  %v1327_v41 = vld [vmem:[#allocation10 + $0x90] sm:$0xff] }
 0x290   : > { %v1025_v56 = vsel %vm717_vm3, %v1024_v53, %v1013_v50  ;;  %v1392_v50 = vld [vmem:[#allocation10 + $0x290] sm:$0xff]  ;;  %v6809_v51 = vpack.c.bf16 %v1394_v49, %v1390_v48  ;;  %v1399_v53 = vld [vmem:[#allocation10 + $0x2c8] sm:$0xff]  ;;  %6808 = vmatprep.subr.bf16.mxu0 %v6807_v46  ;;  %v1430_v45 = vld [vmem:[#allocation10 + $0x3c0] sm:$0xff] }
 0x291   : > { %6653 = vmatmul.mubr.msk.f32.vlgmr.msra.gmra.mrb[0].mxu1 %vm1050_vm9, %v1025_v56  ;;  %v1027_v2 = vrot.slane %v1025_v56, 7  ;;  %v1030_v14 = vrot.slane %v1025_v56, 1  ;;  %v6811_v56 = vpack.c.bf16 %v1403_v54, %v1399_v53  ;;  %v1434_v46 = vld [vmem:[#allocation10 + $0x3e0] sm:$0xff]  ;;  %v1432_v49 = vld [vmem:[#allocation10 + $0x3d0] sm:$0xff]  ;;  %v1314_v53 = vld [vmem:[#allocation10 + $0x28] sm:$0xff] }
 0x292   : > { %6777 = vmatpush3.bf16.msra.mxu1 %v6776_v52  ;;  %6671 = vmatprep.mubr.msk.f32.mxu1 %vm9501_vm4, %v9502_v26  ;;  %v1396_v52 = vld [vmem:[#allocation10 + $0x2b0] sm:$0xff]  ;;  %v6829_v48 = vpack.c.bf16 %v1434_v46, %v1430_v45  ;;  %v1312_v54 = vld [vmem:[#allocation10 + $0x18] sm:$0xff]  ;;  %v1330_v32 = vld [vmem:[#allocation10 + $0xa8] sm:$0xff] }
 0x293   : > { %6778 = vmatprep.subr.bf16.mxu1 %v9500_v16  ;;  %v1029_v6 = vsel %vm711_vm2, 0.0, %v1027_v2  ;;  %v1032_v15 = vsel %vm717_vm3, %v1030_v14, 0.0  ;;  %v6841_v55 = vpack.c.bf16 %v1396_v52, %v1392_v50  ;;  %6810 = vmatpush1.bf16.msra.mxu0 %v6809_v51  ;;  %v1411_v2 = vld [vmem:[#allocation10 + $0x328] sm:$0xff]  ;;  %v1436_v50 = vld [vmem:[#allocation10 + $0x3f0] sm:$0xff]  ;;  %v1336_v45 = vld [vmem:[#allocation10 + $0xd8] sm:$0xff] }
 0x294   : > { %6812 = vmatprep.subr.bf16.mxu0 %v6811_v56  ;;  %v6815_v5 = vpack.c.bf16 %v1411_v2, %v1407_v1  ;;  %v1415_v14 = vld [vmem:[#allocation10 + $0x348] sm:$0xff]  ;;  %v6861_v52 = vpack.c.bf16 %v1436_v50, %v1432_v49  ;;  %v1340_v46 = vld [vmem:[#allocation10 + $0xf8] sm:$0xff]  ;;  %v1333_v49 = vld [vmem:[#allocation10 + $0xc0] sm:$0xff] }
 0x295   : > { %v1310_v51 = vld [vmem:[#allocation10 + $0x8] sm:$0xff]  ;;  %v1337_v50 = vld [vmem:[#allocation10 + $0xe0] sm:$0xff]  ;;  %v1372_v33 = vld [vmem:[#allocation10 + $0x1f8] sm:$0xff] }
 0x296   : > { %6780 = vmatpush3.bf16.msra.mxu1 %v6779_v57  ;;  %v1401_v57 = vld [vmem:[#allocation10 + $0x2d8] sm:$0xff]  ;;  %v6863_v56 = vpack.c.bf16 %v1314_v53, %v1310_v51  ;;  %v1335_v53 = vld [vmem:[#allocation10 + $0xd0] sm:$0xff] }
 0x297   : > { %6781 = vmatprep.subr.bf16.mxu1 %v9500_v16  ;;  %6814 = vmatpush1.bf16.msra.mxu0 %v6813_v0  ;;  %v6350_v0 = vld [vmem:[#allocation8] ss:$0 sm:$0xff] }
 0x298   : > { %6816 = vmatprep.subr.bf16.mxu0 %v6815_v5 }
 0x29a   : > { %6783 = vmatpush3.bf16.msra.mxu1 %v6782_v60  ;;  %v6843_v60 = vpack.c.bf16 %v1405_v58, %v1401_v57 }
 0x29b   : > { %6784 = vmatprep.subr.bf16.mxu1 %v9500_v16  ;;  %6818 = vmatpush1.bf16.msra.mxu0 %v6817_v11  ;;  %v1318_v11 = vld [vmem:[#allocation10 + $0x48] sm:$0xff] }
 0x29e   : > { %6786 = vmatpush3.bf16.msra.mxu1 %v6785_v63  ;;  %v1404_v63 = vld [vmem:[#allocation10 + $0x2f0] sm:$0xff] }
 0x29f   : > { %6787 = vmatprep.subr.bf16.mxu1 %v9500_v16  ;;  %v6845_v4 = vpack.c.bf16 %v1404_v63, %v1400_v62 }
 0x2a1   : > { %6672 = vmatmul.mubr.msk.f32.vlgmr.msra.gmra.mrb[2].mxu1 %vm1050_vm9, %v1029_v6  ;;  %v1413_v6 = vld [vmem:[#allocation10 + $0x338] sm:$0xff] }
 0x2a2   : > { %6789 = vmatpush3.bf16.msra.mxu1 %v6788_v3  ;;  %6690 = vmatprep.mubr.msk.f32.mxu1 %vm9501_vm4, %v9502_v26  ;;  %v1409_v3 = vld [vmem:[#allocation10 + $0x318] sm:$0xff] }
 0x2a3   : > { %6790 = vmatprep.subr.bf16.mxu1 %v9500_v16 }
 0x2a6   : > { %6792 = vmatpush3.bf16.msra.mxu1 %v6791_v7  ;;  %v6847_v7 = vpack.c.bf16 %v1413_v6, %v1409_v3 }
 0x2a7   : > { %6793 = vmatprep.subr.bf16.mxu1 %v9500_v16 }
 0x2aa   : > { %6795 = vmatpush3.bf16.msra.mxu1 %v6794_v10  ;;  %v1408_v10 = vld [vmem:[#allocation10 + $0x310] sm:$0xff] }
 0x2ab   : > { %6796 = vmatprep.subr.bf16.mxu1 %v9500_v16 }
 0x2ae   : > { %6798 = vmatpush3.bf16.msra.mxu1 %v6797_v13  ;;  %v6849_v13 = vpack.c.bf16 %v1412_v12, %v1408_v10  ;;  %v1315_v10 = vld [vmem:[#allocation10 + $0x30] sm:$0xff] }
 0x2af   : > { %6832 = vmatprep.subr.bf16.mxu1 %v6831_v22  ;;  %v1418_v22 = vld [vmem:[#allocation10 + $0x360] sm:$0xff] }
 0x2b0   : > { %v6821_v25 = vpack.c.bf16 %v1418_v22, %v1414_v20  ;;  %v1317_v22 = vld [vmem:[#allocation10 + $0x40] sm:$0xff] }
 0x2b1   : > { %6691 = vmatmul.mubr.msk.f32.vlgmr.msra.gmra.mrb[4].mxu1 %vm1050_vm9, %v1032_v15  ;;  %v1419_v15 = vld [vmem:[#allocation10 + $0x368] sm:$0xff] }
 0x2b2   : > { %1573 = vmatprep.mubr.f32.mxu1 %v9502_v26  ;;  %6834 = vmatpush1.bf16.msra.mxu1 %v6833_v29  ;;  %v6819_v18 = vpack.c.bf16 %v1419_v15, %v1415_v14  ;;  %v1427_v29 = vld [vmem:[#allocation10 + $0x3a8] sm:$0xff]  ;;  %v1320_v15 = vld [vmem:[#allocation10 + $0x58] sm:$0xff] }
 0x2b3   : > { %6836 = vmatprep.subr.bf16.mxu1 %v6835_v37  ;;  %v6823_v31 = vpack.c.bf16 %v1427_v29, %v1423_v28  ;;  %v1424_v37 = vld [vmem:[#allocation10 + $0x390] sm:$0xff]  ;;  %v1322_v14 = vld [vmem:[#allocation10 + $0x68] sm:$0xff] }
 0x2b4   : > { %6820 = vmatprep.subr.bf16.mxu0 %v6819_v18  ;;  %v6857_v39 = vpack.c.bf16 %v1428_v38, %v1424_v37  ;;  %v1319_v28 = vld [vmem:[#allocation10 + $0x50] sm:$0xff]  ;;  %v1325_v37 = vld [vmem:[#allocation10 + $0x80] sm:$0xff] }
 0x2b5   : > { %6822 = vmatpush1.bf16.msra.mxu0 %v6821_v25  ;;  %v6867_v25 = vpack.c.bf16 %v1322_v14, %v1318_v11  ;;  %v1323_v29 = vld [vmem:[#allocation10 + $0x70] sm:$0xff]  ;;  %v1329_v38 = vld [vmem:[#allocation10 + $0xa0] sm:$0xff] }
 0x2b6   : > { %6838 = vmatpush1.bf16.msra.mxu1 %v6837_v42  ;;  %6824 = vmatprep.subr.bf16.mxu0 %v6823_v31  ;;  %v1433_v42 = vld [vmem:[#allocation10 + $0x3d8] sm:$0xff]  ;;  %v1355_v14 = vld [vmem:[#allocation10 + $0x170] sm:$0xff] }
 0x2b7   : > { %6840 = vmatprep.subr.bf16.mxu1 %v6839_v47  ;;  %v6859_v47 = vpack.c.bf16 %v1437_v44, %v1433_v42  ;;  %v1331_v42 = vld [vmem:[#allocation10 + $0xb0] sm:$0xff]  ;;  %v1338_v44 = vld [vmem:[#allocation10 + $0xe8] sm:$0xff] }
 0x2b9   : > { %6826 = vmatpush1.bf16.msra.mxu0 %v6825_v36  ;;  %v6901_v36 = vpack.c.bf16 %v1323_v29, %v1319_v28  ;;  %v1363_v28 = vld [vmem:[#allocation10 + $0x1b0] sm:$0xff]  ;;  %v1366_v29 = vld [vmem:[#allocation10 + $0x1c8] sm:$0xff] }
 0x2ba   : > { %6842 = vmatpush1.bf16.msra.mxu1 %v6841_v55  ;;  %6828 = vmatprep.subr.bf16.mxu0 %v6827_v43  ;;  %v1316_v55 = vld [vmem:[#allocation10 + $0x38] sm:$0xff]  ;;  %v1334_v43 = vld [vmem:[#allocation10 + $0xc8] sm:$0xff] }
 0x2bb   : > { %6844 = vmatprep.subr.bf16.mxu1 %v6843_v60  ;;  %v6895_v57 = vpack.c.bf16 %v1316_v55, %v1312_v54  ;;  %v6875_v51 = vpack.c.bf16 %v1338_v44, %v1334_v43  ;;  %v1339_v54 = vld [vmem:[#allocation10 + $0xf0] sm:$0xff]  ;;  %v1342_v55 = vld [vmem:[#allocation10 + $0x108] sm:$0xff]  ;;  %v1726_v44 = vld [vmem:[#allocation10 + $0x418] sm:$0xff] }
 0x2bc   : > { %v1728_v43 = vld [vmem:[#allocation10 + $0x428] sm:$0xff] }
 0x2bd   : > { %6830 = vmatpush1.bf16.msra.mxu0 %v6829_v48  ;;  %v6905_v48 = vpack.c.bf16 %v1331_v42, %v1327_v41  ;;  %v1371_v41 = vld [vmem:[#allocation10 + $0x1f0] sm:$0xff]  ;;  %v1724_v42 = vld [vmem:[#allocation10 + $0x408] sm:$0xff] }
 0x2be   : > { %6846 = vmatpush1.bf16.msra.mxu1 %v6845_v4  ;;  %6864 = vmatprep.subr.bf16.mxu0 %v6863_v56  ;;  %v1346_v56 = vld [vmem:[#allocation10 + $0x128] sm:$0xff] }
 0x2bf   : > { %6848 = vmatprep.subr.bf16.mxu1 %v6847_v7  ;;  %v1309_v7 = vld [vmem:[#allocation10] sm:$0xff] }
 0x2c0   : > { %v6865_v20 = vpack.c.bf16 %v1313_v8, %v1309_v7 }
 0x2c2   : > { %6850 = vmatpush1.bf16.msra.mxu1 %v6849_v13 }
 0x2c3   : > { %6852 = vmatprep.subr.bf16.mxu1 %v6851_v21  ;;  %v6897_v21 = vpack.c.bf16 %v1315_v10, %v1311_v9  ;;  %v1349_v9 = vld [vmem:[#allocation10 + $0x140] sm:$0xff] }
 0x2c4   : > { %v1353_v10 = vld [vmem:[#allocation10 + $0x160] sm:$0xff] }
 0x2c6   : > { %6854 = vmatpush1.bf16.msra.mxu1 %v6853_v27  ;;  %v6899_v27 = vpack.c.bf16 %v1324_v17, %v1320_v15  ;;  %v1358_v15 = vld [vmem:[#allocation10 + $0x188] sm:$0xff] }
 0x2c7   : > { %6856 = vmatprep.subr.bf16.mxu1 %v6855_v35  ;;  %v6869_v35 = vpack.c.bf16 %v1321_v23, %v1317_v22  ;;  %v1362_v17 = vld [vmem:[#allocation10 + $0x1a8] sm:$0xff]  ;;  %v1357_v22 = vld [vmem:[#allocation10 + $0x180] sm:$0xff] }
 0x2c8   : > { %v1361_v23 = vld [vmem:[#allocation10 + $0x1a0] sm:$0xff] }
 0x2c9   : > { %v6889_v34 = vpack.c.bf16 %v1361_v23, %v1357_v22  ;;  %v1747_v23 = vld [vmem:[#allocation10 + $0x4c0] sm:$0xff] }
 0x2ca   : > { %6858 = vmatpush1.bf16.msra.mxu1 %v6857_v39  ;;  %v6871_v39 = vpack.c.bf16 %v1330_v32, %v1326_v30  ;;  %v1370_v30 = vld [vmem:[#allocation10 + $0x1e8] sm:$0xff]  ;;  %v1368_v32 = vld [vmem:[#allocation10 + $0x1d8] sm:$0xff] }
 0x2cb   : > { %6860 = vmatprep.subr.bf16.mxu1 %v6859_v47  ;;  %v6873_v47 = vpack.c.bf16 %v1329_v38, %v1325_v37  ;;  %v1369_v37 = vld [vmem:[#allocation10 + $0x1e0] sm:$0xff]  ;;  %v6891_v38 = vpack.c.bf16 %v1370_v30, %v1366_v29  ;;  %v1753_v29 = vld [vmem:[#allocation10 + $0x4f0] sm:$0xff]  ;;  %v1756_v30 = vld [vmem:[#allocation10 + $0x508] sm:$0xff] }
 0x2ce   : > { %6862 = vmatpush1.bf16.msra.mxu1 %v6861_v52  ;;  %v6907_v52 = vpack.c.bf16 %v1340_v46, %v1336_v45  ;;  %v1730_v45 = vld [vmem:[#allocation10 + $0x438] sm:$0xff] }
 0x2cf   : > { %6896 = vmatprep.subr.bf16.mxu1 %v6895_v57  ;;  %v1344_v57 = vld [vmem:[#allocation10 + $0x118] sm:$0xff] }
 0x364   : > { %v1119_v58 = vpop.f32.mrb[0].mxu1 }
 0x365   : > { %v6654_v59 = vpop.f32.mrb[1].mxu1 }
 0x366   : > { %v6877_v59 = vpack.c.bf16 %v1337_v50, %v1333_v49  ;;  %v1727_v49 = vld [vmem:[#allocation10 + $0x420] sm:$0xff]  ;;  %v6927_v50 = vpack.c.bf16 %v1728_v43, %v1724_v42  ;;  %v1761_v42 = vld [vmem:[#allocation10 + $0x530] sm:$0xff]  ;;  %v1764_v43 = vld [vmem:[#allocation10 + $0x548] sm:$0xff] }
 0x374   : > { %v1192_v60 = vpop.f32.mrb[2].mxu1 }
 0x375   : > { %v1193_v61 = vadd.f32 %v1192_v60, %v1119_v58  ;;  %v6673_v62 = vpop.f32.mrb[3].mxu1  ;;  %v1348_v58 = vld [vmem:[#allocation10 + $0x138] sm:$0xff]  ;;  %v6909_v60 = vpack.c.bf16 %v1339_v54, %v1335_v53  ;;  %v1729_v53 = vld [vmem:[#allocation10 + $0x430] sm:$0xff]  ;;  %v1732_v54 = vld [vmem:[#allocation10 + $0x448] sm:$0xff] }
 0x376   : > { %v1345_v62 = vld [vmem:[#allocation10 + $0x120] sm:$0xff] }
 0x384   : > { %v1274_v63 = vpop.f32.mrb[4].mxu1 }
 0x385   : > { %v1278_v1 = vadd.f32 %v1274_v63, %v1193_v61  ;;  %v6692_v2 = vpop.f32.mrb[5].mxu1  ;;  %v1341_v61 = vld [vmem:[#allocation10 + $0x100] sm:$0xff]  ;;  %v6879_v63 = vpack.c.bf16 %v1346_v56, %v1342_v55  ;;  %v1736_v55 = vld [vmem:[#allocation10 + $0x468] sm:$0xff]  ;;  %v1734_v56 = vld [vmem:[#allocation10 + $0x458] sm:$0xff] }
 0x386   : > { %v1347_v2 = vld [vmem:[#allocation10 + $0x130] sm:$0xff]  ;;  %v6881_v7 = vpack.c.bf16 %v1345_v62, %v1341_v61  ;;  %v1731_v61 = vld [vmem:[#allocation10 + $0x440] sm:$0xff] }
 0x387   : > { %v1286_v3 = vadd.f32 %v6350_v0, %v1278_v1  ;;  %v6911_v0 = vpack.c.bf16 %v1348_v58, %v1344_v57  ;;  %v1343_v1 = vld [vmem:[#allocation10 + $0x110] sm:$0xff]  ;;  %v1738_v57 = vld [vmem:[#allocation10 + $0x478] sm:$0xff]  ;;  %v1735_v62 = vld [vmem:[#allocation10 + $0x460] sm:$0xff] }
 0x388   : > { %v6913_v8 = vpack.c.bf16 %v1347_v2, %v1343_v1  ;;  %v6963_v1 = vpack.c.bf16 %v1738_v57, %v1734_v56  ;;  %v1733_v2 = vld [vmem:[#allocation10 + $0x450] sm:$0xff]  ;;  %v1776_v56 = vld [vmem:[#allocation10 + $0x5a8] sm:$0xff]  ;;  %v1774_v57 = vld [vmem:[#allocation10 + $0x598] sm:$0xff] }
 0x389   : > { %v1287_v4 = vmax.f32 %v1286_v3, 0.0  ;;  %v1350_v3 = vld [vmem:[#allocation10 + $0x148] sm:$0xff] }
 0x38a   : > { %v4210_v58 = vld [vmem:[#allocation13 + $0x21c8] sm:$0xff] }
 0x38b   : > { %v1289_v5 = vrot.slane %v1287_v4, 1 }
 0x38d   : > { %v1291_v6 = vmax.f32 %v1287_v4, %v1289_v5  ;;  %v1354_v4 = vld [vmem:[#allocation10 + $0x168] sm:$0xff]  ;;  %v1352_v5 = vld [vmem:[#allocation10 + $0x158] sm:$0xff] }
 0x38e   : > { %v6883_v11 = vpack.c.bf16 %v1354_v4, %v1350_v3  ;;  %v1737_v3 = vld [vmem:[#allocation10 + $0x470] sm:$0xff]  ;;  %v1740_v4 = vld [vmem:[#allocation10 + $0x488] sm:$0xff] }
 0x38f   : > { %v1293_v12 = vrot.slane %v1291_v6, 1  ;;  %v1295_v13 = vrot.slane %v1291_v6, 2  ;;  %v1297_v18 = vrot.slane %v1291_v6, 3 }
 0x391   : > { %v1299_v19 = vsel %vm711_vm2, %v1291_v6, %v1293_v12  ;;  %v1356_v6 = vld [vmem:[#allocation10 + $0x178] sm:$0xff] }
 0x392   : > { %v1300_v24 = vsel %vm1016_vm5, %v1299_v19, %v1295_v13  ;;  %v6915_v12 = vpack.c.bf16 %v1356_v6, %v1352_v5  ;;  %v1351_v13 = vld [vmem:[#allocation10 + $0x150] sm:$0xff]  ;;  %v1364_v19 = vld [vmem:[#allocation10 + $0x1b8] sm:$0xff]  ;;  %v1744_v5 = vld [vmem:[#allocation10 + $0x4a8] sm:$0xff] }
 0x393   : > { %v10020_v31 = vsel %vm1018_vm6, %v1300_v24, %v1297_v18  ;;  %v1360_v18 = vld [vmem:[#allocation10 + $0x198] sm:$0xff]  ;;  %v6887_v24 = vpack.c.bf16 %v1362_v17, %v1358_v15  ;;  %v1745_v15 = vld [vmem:[#allocation10 + $0x4b0] sm:$0xff]  ;;  %v1748_v17 = vld [vmem:[#allocation10 + $0x4c8] sm:$0xff] }
 0x394   : > { %1503 = vmatmul.mubr.f32.vlgmr.msra.gmra.mrb[2].mxu0 %v10020_v31  ;;  %1574 = vmatmul.mubr.f32.vlgmr.msra.gmra.mrb[6].mxu1 %v10020_v31  ;;  %v1742_v6 = vld [vmem:[#allocation10 + $0x498] sm:$0xff] }
 0x395   : > { %6866 = vmatpush1.bf16.msra.mxu0 %v6865_v20  ;;  %6898 = vmatpush1.bf16.msra.mxu1 %v6897_v21  ;;  %v6885_v20 = vpack.c.bf16 %v1353_v10, %v1349_v9  ;;  %v6917_v21 = vpack.c.bf16 %v1355_v14, %v1351_v13  ;;  %v6965_v9 = vpack.c.bf16 %v1737_v3, %v1733_v2  ;;  %v1739_v10 = vld [vmem:[#allocation10 + $0x480] sm:$0xff]  ;;  %v1741_v14 = vld [vmem:[#allocation10 + $0x490] sm:$0xff] }
 0x396   : > { %6868 = vmatprep.subr.bf16.mxu0 %v6867_v25  ;;  %6900 = vmatprep.subr.bf16.mxu1 %v6899_v27  ;;  %v6919_v25 = vpack.c.bf16 %v1364_v19, %v1360_v18  ;;  %v1359_v27 = vld [vmem:[#allocation10 + $0x190] sm:$0xff]  ;;  %v1752_v18 = vld [vmem:[#allocation10 + $0x4e8] sm:$0xff]  ;;  %v1750_v19 = vld [vmem:[#allocation10 + $0x4d8] sm:$0xff]  ;;  %v6969_v22 = vpack.c.bf16 %v1745_v15, %v1741_v14 }
 0x397   : > { %1644 = vmatprep.mubr.f32.mxu0 %v9502_v26  ;;  %1715 = vmatprep.mubr.f32.mxu1 %v9502_v26  ;;  %v1773_v2 = vld [vmem:[#allocation10 + $0x590] sm:$0xff] }
 0x398   : > { %v1777_v3 = vld [vmem:[#allocation10 + $0x5b0] sm:$0xff] }
 0x399   : > { %6870 = vmatpush1.bf16.msra.mxu0 %v6869_v35  ;;  %6902 = vmatpush1.bf16.msra.mxu1 %v6901_v36  ;;  %v6921_v35 = vpack.c.bf16 %v1363_v28, %v1359_v27  ;;  %v1365_v36 = vld [vmem:[#allocation10 + $0x1c0] sm:$0xff]  ;;  %v1749_v28 = vld [vmem:[#allocation10 + $0x4d0] sm:$0xff] }
 0x39a   : > { %6872 = vmatprep.subr.bf16.mxu0 %v6871_v39  ;;  %6904 = vmatprep.subr.bf16.mxu1 %v6903_v40  ;;  %v6923_v39 = vpack.c.bf16 %v1372_v33, %v1368_v32  ;;  %v1367_v40 = vld [vmem:[#allocation10 + $0x1d0] sm:$0xff]  ;;  %v6893_v46 = vpack.c.bf16 %v1369_v37, %v1365_v36  ;;  %v1760_v32 = vld [vmem:[#allocation10 + $0x528] sm:$0xff]  ;;  %v1758_v33 = vld [vmem:[#allocation10 + $0x518] sm:$0xff]  ;;  %v6973_v36 = vpack.c.bf16 %v1753_v29, %v1749_v28 }
 0x39b   : > { %v1755_v37 = vld [vmem:[#allocation10 + $0x500] sm:$0xff]  ;;  %v1781_v14 = vld [vmem:[#allocation10 + $0x5d0] sm:$0xff] }
 0x39c   : > { %v1785_v15 = vld [vmem:[#allocation10 + $0x5f0] sm:$0xff] }
 0x39d   : > { %6874 = vmatpush1.bf16.msra.mxu0 %v6873_v47  ;;  %6906 = vmatpush1.bf16.msra.mxu1 %v6905_v48  ;;  %v6925_v47 = vpack.c.bf16 %v1371_v41, %v1367_v40  ;;  %v1723_v48 = vld [vmem:[#allocation10 + $0x400] sm:$0xff]  ;;  %v1757_v41 = vld [vmem:[#allocation10 + $0x510] sm:$0xff] }
 0x39e   : > { %6876 = vmatprep.subr.bf16.mxu0 %v6875_v51  ;;  %6908 = vmatprep.subr.bf16.mxu1 %v6907_v52  ;;  %v6959_v51 = vpack.c.bf16 %v1730_v45, %v1726_v44  ;;  %v1725_v52 = vld [vmem:[#allocation10 + $0x410] sm:$0xff]  ;;  %v1768_v44 = vld [vmem:[#allocation10 + $0x568] sm:$0xff]  ;;  %v1766_v45 = vld [vmem:[#allocation10 + $0x558] sm:$0xff] }
 0x39f   : > { %v2506_v28 = vld [vmem:[#allocation13 + $0x1010] sm:$0xff] }
 0x3a0   : > { %v2514_v29 = vld [vmem:[#allocation13 + $0x1050] sm:$0xff] }
 0x3a1   : > { %6878 = vmatpush1.bf16.msra.mxu0 %v6877_v59  ;;  %6910 = vmatpush1.bf16.msra.mxu1 %v6909_v60  ;;  %v6929_v59 = vpack.c.bf16 %v1727_v49, %v1723_v48  ;;  %v6961_v60 = vpack.c.bf16 %v1729_v53, %v1725_v52  ;;  %v6977_v48 = vpack.c.bf16 %v1761_v42, %v1757_v41  ;;  %v1763_v49 = vld [vmem:[#allocation10 + $0x540] sm:$0xff]  ;;  %v1765_v53 = vld [vmem:[#allocation10 + $0x550] sm:$0xff] }
 0x3a2   : > { %6880 = vmatprep.subr.bf16.mxu0 %v6879_v63  ;;  %6912 = vmatprep.subr.bf16.mxu1 %v6911_v0  ;;  %v1303_v63 = vrot.slane %v10020_v31, 7  ;;  %v6931_v0 = vpack.c.bf16 %v1736_v55, %v1732_v54  ;;  %v1769_v54 = vld [vmem:[#allocation10 + $0x570] sm:$0xff]  ;;  %v1772_v55 = vld [vmem:[#allocation10 + $0x588] sm:$0xff] }
 0x3a3   : > { %v2522_v42 = vld [vmem:[#allocation13 + $0x1090] sm:$0xff] }
 0x3a5   : > { %6882 = vmatpush1.bf16.msra.mxu0 %v6881_v7  ;;  %6914 = vmatpush1.bf16.msra.mxu1 %v6913_v8  ;;  %v1746_v7 = vld [vmem:[#allocation10 + $0x4b8] sm:$0xff]  ;;  %v6933_v8 = vpack.c.bf16 %v1735_v62, %v1731_v61  ;;  %v6981_v61 = vpack.c.bf16 %v1769_v54, %v1765_v53  ;;  %v1771_v62 = vld [vmem:[#allocation10 + $0x580] sm:$0xff] }
 0x3a6   : > { %6884 = vmatprep.subr.bf16.mxu0 %v6883_v11  ;;  %6916 = vmatprep.subr.bf16.mxu1 %v6915_v12  ;;  %v1743_v11 = vld [vmem:[#allocation10 + $0x4a0] sm:$0xff]  ;;  %v6935_v12 = vpack.c.bf16 %v1744_v5, %v1740_v4  ;;  %v6967_v13 = vpack.c.bf16 %v1746_v7, %v1742_v6  ;;  %v1780_v4 = vld [vmem:[#allocation10 + $0x5c8] sm:$0xff]  ;;  %v1782_v6 = vld [vmem:[#allocation10 + $0x5d8] sm:$0xff] }
 0x3a7   : > { %v1784_v5 = vld [vmem:[#allocation10 + $0x5e8] sm:$0xff]  ;;  %v1786_v7 = vld [vmem:[#allocation10 + $0x5f8] sm:$0xff] }
 0x3a8   : > { %v2538_v53 = vld [vmem:[#allocation13 + $0x1110] sm:$0xff] }
 0x3a9   : > { %6886 = vmatpush1.bf16.msra.mxu0 %v6885_v20  ;;  %6918 = vmatpush1.bf16.msra.mxu1 %v6917_v21  ;;  %v1754_v20 = vld [vmem:[#allocation10 + $0x4f8] sm:$0xff]  ;;  %v6937_v21 = vpack.c.bf16 %v1743_v11, %v1739_v10  ;;  %v1779_v10 = vld [vmem:[#allocation10 + $0x5c0] sm:$0xff] }
 0x3aa   : > { %6888 = vmatprep.subr.bf16.mxu0 %v6887_v24  ;;  %6920 = vmatprep.subr.bf16.mxu1 %v6919_v25  ;;  %v1751_v24 = vld [vmem:[#allocation10 + $0x4e0] sm:$0xff]  ;;  %v6939_v25 = vpack.c.bf16 %v1752_v18, %v1748_v17  ;;  %v6971_v27 = vpack.c.bf16 %v1754_v20, %v1750_v19  ;;  %v2505_v17 = vld [vmem:[#allocation13 + $0x1008] sm:$0xff]  ;;  %v2546_v54 = vld [vmem:[#allocation13 + $0x1150] sm:$0xff] }
 0x3ab   : > { %v1783_v11 = vld [vmem:[#allocation10 + $0x5e0] sm:$0xff]  ;;  %v2513_v18 = vld [vmem:[#allocation13 + $0x1048] sm:$0xff] }
 0x3ac   : > { %v2507_v19 = vld [vmem:[#allocation13 + $0x1018] sm:$0xff] }
 0x3ad   : > { %6890 = vmatpush1.bf16.msra.mxu0 %v6889_v34  ;;  %6922 = vmatpush1.bf16.msra.mxu1 %v6921_v35  ;;  %v1762_v34 = vld [vmem:[#allocation10 + $0x538] sm:$0xff]  ;;  %v6941_v35 = vpack.c.bf16 %v1751_v24, %v1747_v23  ;;  %v2504_v23 = vld [vmem:[#allocation13 + $0x1000] sm:$0xff] }
 0x3ae   : > { %6892 = vmatprep.subr.bf16.mxu0 %v6891_v38  ;;  %6924 = vmatprep.subr.bf16.mxu1 %v6923_v39  ;;  %v1759_v38 = vld [vmem:[#allocation10 + $0x520] sm:$0xff]  ;;  %v6943_v39 = vpack.c.bf16 %v1760_v32, %v1756_v30  ;;  %v6975_v40 = vpack.c.bf16 %v1762_v34, %v1758_v33  ;;  %v2521_v30 = vld [vmem:[#allocation13 + $0x1088] sm:$0xff] }
 0x3af   : > { %v2515_v20 = vld [vmem:[#allocation13 + $0x1058] sm:$0xff]  ;;  %v2512_v24 = vld [vmem:[#allocation13 + $0x1040] sm:$0xff]  ;;  %v2529_v32 = vld [vmem:[#allocation13 + $0x10c8] sm:$0xff] }
 0x3b0   : > { %v2523_v33 = vld [vmem:[#allocation13 + $0x1098] sm:$0xff] }
 0x3b1   : > { %6894 = vmatpush1.bf16.msra.mxu0 %v6893_v46  ;;  %6926 = vmatpush1.bf16.msra.mxu1 %v6925_v47  ;;  %v1770_v46 = vld [vmem:[#allocation10 + $0x578] sm:$0xff]  ;;  %v6945_v47 = vpack.c.bf16 %v1759_v38, %v1755_v37  ;;  %v2520_v37 = vld [vmem:[#allocation13 + $0x1080] sm:$0xff] }
 0x3b2   : > { %6928 = vmatprep.subr.bf16.mxu0 %v6927_v50  ;;  %6960 = vmatprep.subr.bf16.mxu1 %v6959_v51  ;;  %v1767_v50 = vld [vmem:[#allocation10 + $0x560] sm:$0xff]  ;;  %v6947_v51 = vpack.c.bf16 %v1768_v44, %v1764_v43  ;;  %v6979_v52 = vpack.c.bf16 %v1770_v46, %v1766_v45  ;;  %v2530_v43 = vld [vmem:[#allocation13 + $0x10d0] sm:$0xff]  ;;  %v2537_v44 = vld [vmem:[#allocation13 + $0x1108] sm:$0xff] }
 0x3b3   : > { %v2531_v34 = vld [vmem:[#allocation13 + $0x10d8] sm:$0xff]  ;;  %v2528_v38 = vld [vmem:[#allocation13 + $0x10c0] sm:$0xff]  ;;  %v2545_v45 = vld [vmem:[#allocation13 + $0x1148] sm:$0xff] }
 0x3b4   : > { %6352 = vmatmul.mubr.msk.f32.vlgmr.msra.gmra.mrb[2].mxu0 %vm10027_vm10, %v1303_v63  ;;  %6354 = vmatmul.mubr.msk.f32.vlgmr.msra.gmra.mrb[6].mxu1 %vm10027_vm10, %v1303_v63  ;;  %v1775_v63 = vld [vmem:[#allocation10 + $0x5a0] sm:$0xff]  ;;  %v7123_v41 = vpack.c.bf16 %v2531_v34, %v2523_v33 }
 0x3b5   : > { %6930 = vmatpush1.bf16.msra.mxu0 %v6929_v59  ;;  %6962 = vmatpush1.bf16.msra.mxu1 %v6961_v60  ;;  %v1778_v59 = vld [vmem:[#allocation10 + $0x5b8] sm:$0xff]  ;;  %v6949_v60 = vpack.c.bf16 %v1767_v50, %v1763_v49  ;;  %v7125_v49 = vpack.c.bf16 %v2530_v43, %v2522_v42  ;;  %v2536_v50 = vld [vmem:[#allocation13 + $0x1100] sm:$0xff]  ;;  %v2617_v43 = vld [vmem:[#allocation13 + $0x1388] sm:$0xff] }
 0x3b6   : > { %6932 = vmatprep.subr.bf16.mxu0 %v6931_v0  ;;  %6964 = vmatprep.subr.bf16.mxu1 %v6963_v1  ;;  %v6951_v0 = vpack.c.bf16 %v1776_v56, %v1772_v55  ;;  %v6983_v1 = vpack.c.bf16 %v1778_v59, %v1774_v57  ;;  %v2539_v46 = vld [vmem:[#allocation13 + $0x1118] sm:$0xff]  ;;  %v2553_v55 = vld [vmem:[#allocation13 + $0x1188] sm:$0xff]  ;;  %v2610_v42 = vld [vmem:[#allocation13 + $0x1350] sm:$0xff] }
 0x3b7   : > { %1851 = vmatprep.mubr.f32.mxu0 %v9502_v26  ;;  %1922 = vmatprep.mubr.f32.mxu1 %v9502_v26  ;;  %v2561_v56 = vld [vmem:[#allocation13 + $0x11c8] sm:$0xff]  ;;  %v2555_v57 = vld [vmem:[#allocation13 + $0x1198] sm:$0xff] }
 0x3b8   : > { %v2563_v59 = vld [vmem:[#allocation13 + $0x11d8] sm:$0xff] }
 0x3b9   : > { %6934 = vmatpush1.bf16.msra.mxu0 %v6933_v8  ;;  %6966 = vmatpush1.bf16.msra.mxu1 %v6965_v9  ;;  %v6953_v8 = vpack.c.bf16 %v1775_v63, %v1771_v62  ;;  %v6985_v9 = vpack.c.bf16 %v1777_v3, %v1773_v2  ;;  %v2552_v62 = vld [vmem:[#allocation13 + $0x1180] sm:$0xff]  ;;  %v2554_v2 = vld [vmem:[#allocation13 + $0x1190] sm:$0xff]  ;;  %v2603_v33 = vld [vmem:[#allocation13 + $0x1318] sm:$0xff] }
 0x3ba   : > { %6936 = vmatprep.subr.bf16.mxu0 %v6935_v12  ;;  %6968 = vmatprep.subr.bf16.mxu1 %v6967_v13  ;;  %v6955_v12 = vpack.c.bf16 %v1784_v5, %v1780_v4  ;;  %v6987_v13 = vpack.c.bf16 %v1786_v7, %v1782_v6  ;;  %v2560_v63 = vld [vmem:[#allocation13 + $0x11c0] sm:$0xff]  ;;  %v2562_v3 = vld [vmem:[#allocation13 + $0x11d0] sm:$0xff]  ;;  %v2569_v4 = vld [vmem:[#allocation13 + $0x1208] sm:$0xff] }
 0x3bb   : > { %v2577_v5 = vld [vmem:[#allocation13 + $0x1248] sm:$0xff]  ;;  %v2571_v6 = vld [vmem:[#allocation13 + $0x1218] sm:$0xff] }
 0x3bc   : > { %v2579_v7 = vld [vmem:[#allocation13 + $0x1258] sm:$0xff] }
 0x3bd   : > { %6938 = vmatpush1.bf16.msra.mxu0 %v6937_v21  ;;  %6970 = vmatpush1.bf16.msra.mxu1 %v6969_v22  ;;  %v6957_v21 = vpack.c.bf16 %v1783_v11, %v1779_v10  ;;  %v6989_v22 = vpack.c.bf16 %v1785_v15, %v1781_v14  ;;  %v2568_v10 = vld [vmem:[#allocation13 + $0x1200] sm:$0xff]  ;;  %v2570_v14 = vld [vmem:[#allocation13 + $0x1210] sm:$0xff]  ;;  %v2611_v34 = vld [vmem:[#allocation13 + $0x1358] sm:$0xff] }
 0x3be   : > { %6940 = vmatprep.subr.bf16.mxu0 %v6939_v25  ;;  %6972 = vmatprep.subr.bf16.mxu1 %v6971_v27  ;;  %v6991_v25 = vpack.c.bf16 %v2513_v18, %v2505_v17  ;;  %v7119_v27 = vpack.c.bf16 %v2515_v20, %v2507_v19  ;;  %v2576_v11 = vld [vmem:[#allocation13 + $0x1240] sm:$0xff]  ;;  %v2578_v15 = vld [vmem:[#allocation13 + $0x1250] sm:$0xff]  ;;  %v2585_v17 = vld [vmem:[#allocation13 + $0x1288] sm:$0xff] }
 0x3bf   : > { %v2593_v18 = vld [vmem:[#allocation13 + $0x12c8] sm:$0xff]  ;;  %v2587_v19 = vld [vmem:[#allocation13 + $0x1298] sm:$0xff] }
 0x3c0   : > { %v2595_v20 = vld [vmem:[#allocation13 + $0x12d8] sm:$0xff] }
 0x3c1   : > { %6942 = vmatpush1.bf16.msra.mxu0 %v6941_v35  ;;  %6974 = vmatpush1.bf16.msra.mxu1 %v6973_v36  ;;  %v6993_v35 = vpack.c.bf16 %v2512_v24, %v2504_v23  ;;  %v7121_v36 = vpack.c.bf16 %v2514_v29, %v2506_v28  ;;  %v2584_v23 = vld [vmem:[#allocation13 + $0x1280] sm:$0xff]  ;;  %v2586_v28 = vld [vmem:[#allocation13 + $0x1290] sm:$0xff] }
 0x3c2   : > { %6944 = vmatprep.subr.bf16.mxu0 %v6943_v39  ;;  %6976 = vmatprep.subr.bf16.mxu1 %v6975_v40  ;;  %v1306_v39 = vrot.slane %v10020_v31, 1  ;;  %v6995_v40 = vpack.c.bf16 %v2529_v32, %v2521_v30  ;;  %v2544_v31 = vld [vmem:[#allocation13 + $0x1140] sm:$0xff]  ;;  %v2594_v29 = vld [vmem:[#allocation13 + $0x12d0] sm:$0xff]  ;;  %v2601_v30 = vld [vmem:[#allocation13 + $0x1308] sm:$0xff] }
 0x3c3   : > { %v2592_v24 = vld [vmem:[#allocation13 + $0x12c0] sm:$0xff]  ;;  %v2609_v32 = vld [vmem:[#allocation13 + $0x1348] sm:$0xff] }
 0x3c5   : > { %6946 = vmatpush1.bf16.msra.mxu0 %v6945_v47  ;;  %6978 = vmatpush1.bf16.msra.mxu1 %v6977_v48  ;;  %v2547_v47 = vld [vmem:[#allocation13 + $0x1158] sm:$0xff]  ;;  %v6997_v48 = vpack.c.bf16 %v2528_v38, %v2520_v37  ;;  %v2600_v37 = vld [vmem:[#allocation13 + $0x1300] sm:$0xff] }
 0x3c6   : > { %6948 = vmatprep.subr.bf16.mxu0 %v6947_v51  ;;  %6980 = vmatprep.subr.bf16.mxu1 %v6979_v52  ;;  %v6999_v51 = vpack.c.bf16 %v2545_v45, %v2537_v44  ;;  %v7127_v52 = vpack.c.bf16 %v2547_v47, %v2539_v46  ;;  %v2608_v38 = vld [vmem:[#allocation13 + $0x1340] sm:$0xff]  ;;  %v2625_v44 = vld [vmem:[#allocation13 + $0x13c8] sm:$0xff]  ;;  %v2619_v45 = vld [vmem:[#allocation13 + $0x1398] sm:$0xff] }
 0x3c7   : > { %v2627_v46 = vld [vmem:[#allocation13 + $0x13d8] sm:$0xff]  ;;  %v7017_v47 = vpack.c.bf16 %v2608_v38, %v2600_v37  ;;  %v2688_v37 = vld [vmem:[#allocation13 + $0x15c0] sm:$0xff] }
 0x3c9   : > { %6950 = vmatpush1.bf16.msra.mxu0 %v6949_v60  ;;  %6982 = vmatpush1.bf16.msra.mxu1 %v6981_v61  ;;  %v7001_v60 = vpack.c.bf16 %v2544_v31, %v2536_v50  ;;  %v7129_v61 = vpack.c.bf16 %v2546_v54, %v2538_v53  ;;  %v2624_v50 = vld [vmem:[#allocation13 + $0x13c0] sm:$0xff]  ;;  %v7019_v31 = vpack.c.bf16 %v2625_v44, %v2617_v43  ;;  %v2626_v53 = vld [vmem:[#allocation13 + $0x13d0] sm:$0xff]  ;;  %v2633_v54 = vld [vmem:[#allocation13 + $0x1408] sm:$0xff] }
 0x3ca   : > { %6952 = vmatprep.subr.bf16.mxu0 %v6951_v0  ;;  %6984 = vmatprep.subr.bf16.mxu1 %v6983_v1  ;;  %v7003_v0 = vpack.c.bf16 %v2561_v56, %v2553_v55  ;;  %v7131_v1 = vpack.c.bf16 %v2563_v59, %v2555_v57  ;;  %v2641_v55 = vld [vmem:[#allocation13 + $0x1448] sm:$0xff]  ;;  %v2635_v56 = vld [vmem:[#allocation13 + $0x1418] sm:$0xff] }
 0x3cb   : > { %v2643_v57 = vld [vmem:[#allocation13 + $0x1458] sm:$0xff]  ;;  %v2705_v43 = vld [vmem:[#allocation13 + $0x1648] sm:$0xff] }
 0x3cc   : > { %v2699_v44 = vld [vmem:[#allocation13 + $0x1618] sm:$0xff] }
 0x3cd   : > { %6954 = vmatpush1.bf16.msra.mxu0 %v6953_v8  ;;  %6986 = vmatpush1.bf16.msra.mxu1 %v6985_v9  ;;  %v7005_v8 = vpack.c.bf16 %v2560_v63, %v2552_v62  ;;  %v7133_v9 = vpack.c.bf16 %v2562_v3, %v2554_v2  ;;  %v2640_v62 = vld [vmem:[#allocation13 + $0x1440] sm:$0xff]  ;;  %v7023_v63 = vpack.c.bf16 %v2641_v55, %v2633_v54  ;;  %v2642_v2 = vld [vmem:[#allocation13 + $0x1450] sm:$0xff]  ;;  %v2649_v3 = vld [vmem:[#allocation13 + $0x1488] sm:$0xff] }
 0x3ce   : > { %6956 = vmatprep.subr.bf16.mxu0 %v6955_v12  ;;  %6988 = vmatprep.subr.bf16.mxu1 %v6987_v13  ;;  %v7007_v12 = vpack.c.bf16 %v2577_v5, %v2569_v4  ;;  %v7135_v13 = vpack.c.bf16 %v2579_v7, %v2571_v6  ;;  %v2657_v4 = vld [vmem:[#allocation13 + $0x14c8] sm:$0xff]  ;;  %v2651_v5 = vld [vmem:[#allocation13 + $0x1498] sm:$0xff] }
 0x3cf   : > { %v2659_v6 = vld [vmem:[#allocation13 + $0x14d8] sm:$0xff]  ;;  %v2721_v54 = vld [vmem:[#allocation13 + $0x16c8] sm:$0xff] }
 0x3d0   : > { %v2715_v55 = vld [vmem:[#allocation13 + $0x1698] sm:$0xff] }
 0x3d1   : > { %6958 = vmatpush1.bf16.msra.mxu0 %v6957_v21  ;;  %6990 = vmatpush1.bf16.msra.mxu1 %v6989_v22  ;;  %v7009_v21 = vpack.c.bf16 %v2576_v11, %v2568_v10  ;;  %v7137_v22 = vpack.c.bf16 %v2578_v15, %v2570_v14  ;;  %v2656_v10 = vld [vmem:[#allocation13 + $0x14c0] sm:$0xff]  ;;  %v7027_v11 = vpack.c.bf16 %v2657_v4, %v2649_v3  ;;  %v2658_v14 = vld [vmem:[#allocation13 + $0x14d0] sm:$0xff]  ;;  %v2665_v15 = vld [vmem:[#allocation13 + $0x1508] sm:$0xff] }
 0x3d2   : > { %6992 = vmatprep.subr.bf16.mxu0 %v6991_v25  ;;  %7120 = vmatprep.subr.bf16.mxu1 %v7119_v27  ;;  %v7011_v25 = vpack.c.bf16 %v2593_v18, %v2585_v17  ;;  %v7139_v27 = vpack.c.bf16 %v2595_v20, %v2587_v19  ;;  %v2673_v17 = vld [vmem:[#allocation13 + $0x1548] sm:$0xff]  ;;  %v2667_v18 = vld [vmem:[#allocation13 + $0x1518] sm:$0xff] }
 0x3d3   : > { %v2675_v19 = vld [vmem:[#allocation13 + $0x1558] sm:$0xff]  ;;  %v2737_v3 = vld [vmem:[#allocation13 + $0x1748] sm:$0xff] }
 0x3d4   : > { %6355 = vmatmul.mubr.msk.f32.vlgmr.msra.gmra.mrb[2].mxu0 %vm1018_vm6, %v1306_v39  ;;  %6356 = vmatmul.mubr.msk.f32.vlgmr.msra.gmra.mrb[6].mxu1 %vm1018_vm6, %v1306_v39  ;;  %v7015_v39 = vpack.c.bf16 %v2609_v32, %v2601_v30  ;;  %v2689_v30 = vld [vmem:[#allocation13 + $0x15c8] sm:$0xff]  ;;  %v2683_v32 = vld [vmem:[#allocation13 + $0x1598] sm:$0xff] }
 0x3d5   : > { %6994 = vmatpush1.bf16.msra.mxu0 %v6993_v35  ;;  %7122 = vmatpush1.bf16.msra.mxu1 %v7121_v36  ;;  %v7013_v35 = vpack.c.bf16 %v2592_v24, %v2584_v23  ;;  %v7141_v36 = vpack.c.bf16 %v2594_v29, %v2586_v28  ;;  %v2672_v23 = vld [vmem:[#allocation13 + $0x1540] sm:$0xff]  ;;  %v7031_v24 = vpack.c.bf16 %v2673_v17, %v2665_v15  ;;  %v2674_v28 = vld [vmem:[#allocation13 + $0x1550] sm:$0xff]  ;;  %v2681_v29 = vld [vmem:[#allocation13 + $0x1588] sm:$0xff] }
 0x3d6   : > { %6996 = vmatprep.subr.bf16.mxu0 %v6995_v40  ;;  %7124 = vmatprep.subr.bf16.mxu1 %v7123_v41  ;;  %v7143_v40 = vpack.c.bf16 %v2611_v34, %v2603_v33  ;;  %v2602_v41 = vld [vmem:[#allocation13 + $0x1310] sm:$0xff]  ;;  %v2691_v33 = vld [vmem:[#allocation13 + $0x15d8] sm:$0xff]  ;;  %v7035_v38 = vpack.c.bf16 %v2689_v30, %v2681_v29  ;;  %v2745_v17 = vld [vmem:[#allocation13 + $0x1788] sm:$0xff] }
 0x3d7   : > { %v2731_v4 = vld [vmem:[#allocation13 + $0x1718] sm:$0xff]  ;;  %v2761_v30 = vld [vmem:[#allocation13 + $0x1808] sm:$0xff] }
 0x3d9   : > { %6998 = vmatpush1.bf16.msra.mxu0 %v6997_v48  ;;  %7126 = vmatpush1.bf16.msra.mxu1 %v7125_v49  ;;  %v7145_v48 = vpack.c.bf16 %v2610_v42, %v2602_v41  ;;  %v2616_v49 = vld [vmem:[#allocation13 + $0x1380] sm:$0xff]  ;;  %v2690_v41 = vld [vmem:[#allocation13 + $0x15d0] sm:$0xff]  ;;  %v2697_v42 = vld [vmem:[#allocation13 + $0x1608] sm:$0xff] }
 0x3da   : > { %7000 = vmatprep.subr.bf16.mxu0 %v6999_v51  ;;  %7128 = vmatprep.subr.bf16.mxu1 %v7127_v52  ;;  %v7147_v51 = vpack.c.bf16 %v2627_v46, %v2619_v45  ;;  %v2618_v52 = vld [vmem:[#allocation13 + $0x1390] sm:$0xff]  ;;  %v7021_v59 = vpack.c.bf16 %v2624_v50, %v2616_v49  ;;  %v2707_v45 = vld [vmem:[#allocation13 + $0x1658] sm:$0xff]  ;;  %v2704_v49 = vld [vmem:[#allocation13 + $0x1640] sm:$0xff]  ;;  %v7039_v50 = vpack.c.bf16 %v2705_v43, %v2697_v42 }
 0x3dd   : > { %7002 = vmatpush1.bf16.msra.mxu0 %v7001_v60  ;;  %7130 = vmatpush1.bf16.msra.mxu1 %v7129_v61  ;;  %v7149_v60 = vpack.c.bf16 %v2626_v53, %v2618_v52  ;;  %v2632_v61 = vld [vmem:[#allocation13 + $0x1400] sm:$0xff]  ;;  %v2706_v52 = vld [vmem:[#allocation13 + $0x1650] sm:$0xff]  ;;  %v2713_v53 = vld [vmem:[#allocation13 + $0x1688] sm:$0xff] }
 0x3de   : > { %7004 = vmatprep.subr.bf16.mxu0 %v7003_v0  ;;  %7132 = vmatprep.subr.bf16.mxu1 %v7131_v1  ;;  %v7151_v0 = vpack.c.bf16 %v2643_v57, %v2635_v56  ;;  %v2634_v1 = vld [vmem:[#allocation13 + $0x1410] sm:$0xff]  ;;  %v7025_v7 = vpack.c.bf16 %v2640_v62, %v2632_v61  ;;  %v2723_v56 = vld [vmem:[#allocation13 + $0x16d8] sm:$0xff]  ;;  %v2720_v61 = vld [vmem:[#allocation13 + $0x16c0] sm:$0xff]  ;;  %v7043_v62 = vpack.c.bf16 %v2721_v54, %v2713_v53 }
 0x3df   : > { %v2768_v54 = vld [vmem:[#allocation13 + $0x1840] sm:$0xff] }
 0x3e1   : > { %7006 = vmatpush1.bf16.msra.mxu0 %v7005_v8  ;;  %7134 = vmatpush1.bf16.msra.mxu1 %v7133_v9  ;;  %v7153_v8 = vpack.c.bf16 %v2642_v2, %v2634_v1  ;;  %v2648_v9 = vld [vmem:[#allocation13 + $0x1480] sm:$0xff]  ;;  %v2722_v1 = vld [vmem:[#allocation13 + $0x16d0] sm:$0xff]  ;;  %v2729_v2 = vld [vmem:[#allocation13 + $0x1708] sm:$0xff] }
 0x3e2   : > { %7008 = vmatprep.subr.bf16.mxu0 %v7007_v12  ;;  %7136 = vmatprep.subr.bf16.mxu1 %v7135_v13  ;;  %v7155_v12 = vpack.c.bf16 %v2659_v6, %v2651_v5  ;;  %v2650_v13 = vld [vmem:[#allocation13 + $0x1490] sm:$0xff]  ;;  %v7029_v20 = vpack.c.bf16 %v2656_v10, %v2648_v9  ;;  %v2739_v5 = vld [vmem:[#allocation13 + $0x1758] sm:$0xff]  ;;  %v7047_v9 = vpack.c.bf16 %v2737_v3, %v2729_v2  ;;  %v2776_v3 = vld [vmem:[#allocation13 + $0x1880] sm:$0xff] }
 0x3e3   : > { %v7175_v10 = vpack.c.bf16 %v2739_v5, %v2731_v4  ;;  %v2784_v4 = vld [vmem:[#allocation13 + $0x18c0] sm:$0xff] }
 0x3e5   : > { %7010 = vmatpush1.bf16.msra.mxu0 %v7009_v21  ;;  %7138 = vmatpush1.bf16.msra.mxu1 %v7137_v22  ;;  %v7157_v21 = vpack.c.bf16 %v2658_v14, %v2650_v13  ;;  %v2664_v22 = vld [vmem:[#allocation13 + $0x1500] sm:$0xff]  ;;  %v2738_v13 = vld [vmem:[#allocation13 + $0x1750] sm:$0xff] }
 0x3e6   : > { %7012 = vmatprep.subr.bf16.mxu0 %v7011_v25  ;;  %7140 = vmatprep.subr.bf16.mxu1 %v7139_v27  ;;  %v7159_v25 = vpack.c.bf16 %v2675_v19, %v2667_v18  ;;  %v2666_v27 = vld [vmem:[#allocation13 + $0x1510] sm:$0xff]  ;;  %v7033_v34 = vpack.c.bf16 %v2672_v23, %v2664_v22  ;;  %v2753_v18 = vld [vmem:[#allocation13 + $0x17c8] sm:$0xff]  ;;  %v2747_v19 = vld [vmem:[#allocation13 + $0x1798] sm:$0xff] }
 0x3e7   : > { %v2744_v22 = vld [vmem:[#allocation13 + $0x1780] sm:$0xff] }
 0x3e8   : > { %v2752_v23 = vld [vmem:[#allocation13 + $0x17c0] sm:$0xff] }
 0x3e9   : > { %7014 = vmatpush1.bf16.msra.mxu0 %v7013_v35  ;;  %7142 = vmatpush1.bf16.msra.mxu1 %v7141_v36  ;;  %v7161_v35 = vpack.c.bf16 %v2674_v28, %v2666_v27  ;;  %v2680_v36 = vld [vmem:[#allocation13 + $0x1580] sm:$0xff]  ;;  %v2746_v27 = vld [vmem:[#allocation13 + $0x1790] sm:$0xff] }
 0x3ea   : > { %7016 = vmatprep.subr.bf16.mxu0 %v7015_v39  ;;  %7144 = vmatprep.subr.bf16.mxu1 %v7143_v40  ;;  %v7163_v39 = vpack.c.bf16 %v2691_v33, %v2683_v32  ;;  %v2682_v40 = vld [vmem:[#allocation13 + $0x1590] sm:$0xff]  ;;  %v7037_v46 = vpack.c.bf16 %v2688_v37, %v2680_v36  ;;  %v2769_v32 = vld [vmem:[#allocation13 + $0x1848] sm:$0xff]  ;;  %v2763_v33 = vld [vmem:[#allocation13 + $0x1818] sm:$0xff]  ;;  %v1935_v37 = vlaneseq }
 0x3eb   : > { %v2754_v28 = vld [vmem:[#allocation13 + $0x17d0] sm:$0xff] }
 0x3ec   : > { %v7181_v29 = vpack.c.bf16 %v2754_v28, %v2746_v27  ;;  %v2811_v27 = vld [vmem:[#allocation13 + $0x1998] sm:$0xff] }
 0x3ed   : > { %7018 = vmatpush1.bf16.msra.mxu0 %v7017_v47  ;;  %7146 = vmatpush1.bf16.msra.mxu1 %v7145_v48  ;;  %v7165_v47 = vpack.c.bf16 %v2690_v41, %v2682_v40  ;;  %v2696_v48 = vld [vmem:[#allocation13 + $0x1600] sm:$0xff]  ;;  %v1933_v41 = vld [vmem:[#allocation11] sm:$0xf] }
 0x3ee   : > { %7020 = vmatprep.subr.bf16.mxu0 %v7019_v31  ;;  %7148 = vmatprep.subr.bf16.mxu1 %v7147_v51  ;;  %v7167_v31 = vpack.c.bf16 %v2707_v45, %v2699_v44  ;;  %v2698_v51 = vld [vmem:[#allocation13 + $0x1610] sm:$0xff]  ;;  %v7041_v57 = vpack.c.bf16 %v2704_v49, %v2696_v48  ;;  %v2819_v28 = vld [vmem:[#allocation13 + $0x19d8] sm:$0xff] }
 0x3f1   : > { %7022 = vmatpush1.bf16.msra.mxu0 %v7021_v59  ;;  %7150 = vmatpush1.bf16.msra.mxu1 %v7149_v60  ;;  %v7169_v59 = vpack.c.bf16 %v2706_v52, %v2698_v51  ;;  %v2712_v60 = vld [vmem:[#allocation13 + $0x1680] sm:$0xff] }
 0x3f2   : > { %7024 = vmatprep.subr.bf16.mxu0 %v7023_v63  ;;  %7152 = vmatprep.subr.bf16.mxu1 %v7151_v0  ;;  %v7171_v63 = vpack.c.bf16 %v2723_v56, %v2715_v55  ;;  %v2714_v0 = vld [vmem:[#allocation13 + $0x1690] sm:$0xff]  ;;  %v7045_v6 = vpack.c.bf16 %v2720_v61, %v2712_v60  ;;  %v2785_v61 = vld [vmem:[#allocation13 + $0x18c8] sm:$0xff] }
 0x3f3   : > { %v2762_v55 = vld [vmem:[#allocation13 + $0x1810] sm:$0xff] }
 0x3f4   : > { %v2770_v56 = vld [vmem:[#allocation13 + $0x1850] sm:$0xff] }
 0x3f5   : > { %7026 = vmatpush1.bf16.msra.mxu0 %v7025_v7  ;;  %7154 = vmatpush1.bf16.msra.mxu1 %v7153_v8  ;;  %v7173_v7 = vpack.c.bf16 %v2722_v1, %v2714_v0  ;;  %v2728_v8 = vld [vmem:[#allocation13 + $0x1700] sm:$0xff]  ;;  %v7185_v2 = vpack.c.bf16 %v2770_v56, %v2762_v55  ;;  %v2841_v55 = vld [vmem:[#allocation13 + $0x1a88] sm:$0xff] }
 0x3f6   : > { %7028 = vmatprep.subr.bf16.mxu0 %v7027_v11  ;;  %7156 = vmatprep.subr.bf16.mxu1 %v7155_v12  ;;  %v2736_v11 = vld [vmem:[#allocation13 + $0x1740] sm:$0xff]  ;;  %v2730_v12 = vld [vmem:[#allocation13 + $0x1710] sm:$0xff]  ;;  %v2849_v56 = vld [vmem:[#allocation13 + $0x1ac8] sm:$0xff] }
 0x3f7   : > { %v7049_v14 = vpack.c.bf16 %v2736_v11, %v2728_v8  ;;  %v7177_v15 = vpack.c.bf16 %v2738_v13, %v2730_v12  ;;  %v2793_v8 = vld [vmem:[#allocation13 + $0x1908] sm:$0xff]  ;;  %v2795_v12 = vld [vmem:[#allocation13 + $0x1918] sm:$0xff] }
 0x3f8   : > { %v2801_v11 = vld [vmem:[#allocation13 + $0x1948] sm:$0xff]  ;;  %v2803_v13 = vld [vmem:[#allocation13 + $0x1958] sm:$0xff] }
 0x3f9   : > { %7030 = vmatpush1.bf16.msra.mxu0 %v7029_v20  ;;  %7158 = vmatpush1.bf16.msra.mxu1 %v7157_v21  ;;  %v7051_v20 = vpack.c.bf16 %v2753_v18, %v2745_v17  ;;  %v2755_v21 = vld [vmem:[#allocation13 + $0x17d8] sm:$0xff]  ;;  %v2792_v18 = vld [vmem:[#allocation13 + $0x1900] sm:$0xff] }
 0x3fa   : > { %7032 = vmatprep.subr.bf16.mxu0 %v7031_v24  ;;  %7160 = vmatprep.subr.bf16.mxu1 %v7159_v25  ;;  %v7179_v24 = vpack.c.bf16 %v2755_v21, %v2747_v19  ;;  %v7053_v25 = vpack.c.bf16 %v2752_v23, %v2744_v22  ;;  %v2800_v19 = vld [vmem:[#allocation13 + $0x1940] sm:$0xff]  ;;  %v7191_v21 = vpack.c.bf16 %v2803_v13, %v2795_v12  ;;  %v2794_v22 = vld [vmem:[#allocation13 + $0x1910] sm:$0xff] }
 0x3fb   : > { %v2802_v23 = vld [vmem:[#allocation13 + $0x1950] sm:$0xff]  ;;  %v2856_v12 = vld [vmem:[#allocation13 + $0x1b00] sm:$0xff] }
 0x3fc   : > { %v2864_v13 = vld [vmem:[#allocation13 + $0x1b40] sm:$0xff] }
 0x3fd   : > { %7034 = vmatpush1.bf16.msra.mxu0 %v7033_v34  ;;  %7162 = vmatpush1.bf16.msra.mxu1 %v7161_v35  ;;  %v7055_v34 = vpack.c.bf16 %v2769_v32, %v2761_v30  ;;  %v2771_v35 = vld [vmem:[#allocation13 + $0x1858] sm:$0xff]  ;;  %v7193_v30 = vpack.c.bf16 %v2802_v23, %v2794_v22  ;;  %v2808_v32 = vld [vmem:[#allocation13 + $0x1980] sm:$0xff] }
 0x3fe   : > { %7036 = vmatprep.subr.bf16.mxu0 %v7035_v38  ;;  %7164 = vmatprep.subr.bf16.mxu1 %v7163_v39  ;;  %v7183_v36 = vpack.c.bf16 %v2771_v35, %v2763_v33  ;;  %v10041_v38 = vshrl.u32 %v1935_v37, 7  ;;  %v2816_v33 = vld [vmem:[#allocation13 + $0x19c0] sm:$0xff]  ;;  %v7195_v35 = vpack.c.bf16 %v2819_v28, %v2811_v27  ;;  %v2818_v37 = vld [vmem:[#allocation13 + $0x19d0] sm:$0xff]  ;;  %v2875_v22 = vld [vmem:[#allocation13 + $0x1b98] sm:$0xff] }
 0x3ff   : > { %v2883_v23 = vld [vmem:[#allocation13 + $0x1bd8] sm:$0xff]  ;;  %v2872_v27 = vld [vmem:[#allocation13 + $0x1b80] sm:$0xff] }
 0x400   : > { %v10044_v39 = vsub.s32 0, %v10041_v38  ;;  %v10047_v40 = vsub.s32 2, %v10041_v38  ;;  %v10050_v42 = vsub.s32 1, %v10041_v38  ;;  %v1949_v43 = vsub.s32 3, %v10041_v38  ;;  %v2880_v28 = vld [vmem:[#allocation13 + $0x1bc0] sm:$0xff] }
 0x401   : > { %7038 = vmatpush1.bf16.msra.mxu0 %v7037_v46  ;;  %7166 = vmatpush1.bf16.msra.mxu1 %v7165_v47 }
 0x402   : > { %7040 = vmatprep.subr.bf16.mxu0 %v7039_v50  ;;  %7168 = vmatprep.subr.bf16.mxu1 %v7167_v31  ;;  %v1938_v44 = vrot.slane %v1933_v41, %v10044_v39  ;;  %v1946_v45 = vrot.slane %v1933_v41, %v10047_v40  ;;  %v1942_v46 = vrot.slane %v1933_v41, %v10050_v42  ;;  %v2760_v50 = vld [vmem:[#allocation13 + $0x1800] sm:$0xff] }
 0x403   : > { %v1950_v47 = vrot.slane %v1933_v41, %v1949_v43  ;;  %v7057_v1 = vpack.c.bf16 %v2768_v54, %v2760_v50  ;;  %v2825_v41 = vld [vmem:[#allocation13 + $0x1a08] sm:$0xff]  ;;  %v2832_v50 = vld [vmem:[#allocation13 + $0x1a40] sm:$0xff]  ;;  %v2834_v54 = vld [vmem:[#allocation13 + $0x1a50] sm:$0xff] }
 0x405   : > { %7042 = vmatpush1.bf16.msra.mxu0 %v7041_v57  ;;  %7170 = vmatpush1.bf16.msra.mxu1 %v7169_v59  ;;  %v2777_v59 = vld [vmem:[#allocation13 + $0x1888] sm:$0xff] }
 0x406   : > { %7044 = vmatprep.subr.bf16.mxu0 %v7043_v62  ;;  %7172 = vmatprep.subr.bf16.mxu1 %v7171_v63  ;;  %v2779_v62 = vld [vmem:[#allocation13 + $0x1898] sm:$0xff] }
 0x407   : > { %v2787_v63 = vld [vmem:[#allocation13 + $0x18d8] sm:$0xff] }
 0x409   : > { %7046 = vmatpush1.bf16.msra.mxu0 %v7045_v6  ;;  %7174 = vmatpush1.bf16.msra.mxu1 %v7173_v7  ;;  %v2778_v6 = vld [vmem:[#allocation13 + $0x1890] sm:$0xff] }
 0x40a   : > { %7048 = vmatprep.subr.bf16.mxu0 %v7047_v9  ;;  %7176 = vmatprep.subr.bf16.mxu1 %v7175_v10  ;;  %v2786_v7 = vld [vmem:[#allocation13 + $0x18d0] sm:$0xff]  ;;  %v7059_v9 = vpack.c.bf16 %v2785_v61, %v2777_v59  ;;  %v7187_v10 = vpack.c.bf16 %v2787_v63, %v2779_v62  ;;  %v2851_v59 = vld [vmem:[#allocation13 + $0x1ad8] sm:$0xff]  ;;  %v2840_v62 = vld [vmem:[#allocation13 + $0x1a80] sm:$0xff] }
 0x40b   : > { %v7189_v17 = vpack.c.bf16 %v2786_v7, %v2778_v6  ;;  %v2848_v63 = vld [vmem:[#allocation13 + $0x1ac0] sm:$0xff]  ;;  %v2857_v6 = vld [vmem:[#allocation13 + $0x1b08] sm:$0xff] }
 0x40c   : > { %v2865_v7 = vld [vmem:[#allocation13 + $0x1b48] sm:$0xff] }
 0x40d   : > { %7050 = vmatpush1.bf16.msra.mxu0 %v7049_v14  ;;  %7178 = vmatpush1.bf16.msra.mxu1 %v7177_v15  ;;  %v7061_v15 = vpack.c.bf16 %v2784_v4, %v2776_v3  ;;  %v2842_v3 = vld [vmem:[#allocation13 + $0x1a90] sm:$0xff] }
 0x40e   : > { %7052 = vmatprep.subr.bf16.mxu0 %v7051_v20  ;;  %7180 = vmatprep.subr.bf16.mxu1 %v7179_v24  ;;  %v7063_v20 = vpack.c.bf16 %v2801_v11, %v2793_v8  ;;  %v2809_v24 = vld [vmem:[#allocation13 + $0x1988] sm:$0xff]  ;;  %v2850_v4 = vld [vmem:[#allocation13 + $0x1ad0] sm:$0xff]  ;;  %v2859_v8 = vld [vmem:[#allocation13 + $0x1b18] sm:$0xff] }
 0x40f   : > { %v7205_v11 = vpack.c.bf16 %v2850_v4, %v2842_v3  ;;  %v2923_v3 = vld [vmem:[#allocation13 + $0x1d18] sm:$0xff] }
 0x410   : > { %v2931_v4 = vld [vmem:[#allocation13 + $0x1d58] sm:$0xff] }
 0x411   : > { %7054 = vmatpush1.bf16.msra.mxu0 %v7053_v25  ;;  %7182 = vmatpush1.bf16.msra.mxu1 %v7181_v29  ;;  %v2817_v25 = vld [vmem:[#allocation13 + $0x19c8] sm:$0xff]  ;;  %v7065_v29 = vpack.c.bf16 %v2800_v19, %v2792_v18  ;;  %v2858_v18 = vld [vmem:[#allocation13 + $0x1b10] sm:$0xff] }
 0x412   : > { %7056 = vmatprep.subr.bf16.mxu0 %v7055_v34  ;;  %7184 = vmatprep.subr.bf16.mxu1 %v7183_v36  ;;  %v7067_v34 = vpack.c.bf16 %v2817_v25, %v2809_v24  ;;  %v2810_v36 = vld [vmem:[#allocation13 + $0x1990] sm:$0xff]  ;;  %v7081_v24 = vpack.c.bf16 %v2864_v13, %v2856_v12 }
 0x413   : > { %v2866_v19 = vld [vmem:[#allocation13 + $0x1b50] sm:$0xff] }
 0x414   : > { %v7209_v25 = vpack.c.bf16 %v2866_v19, %v2858_v18  ;;  %v2922_v12 = vld [vmem:[#allocation13 + $0x1d10] sm:$0xff]  ;;  %v2939_v18 = vld [vmem:[#allocation13 + $0x1d98] sm:$0xff] }
 0x415   : > { %v2930_v13 = vld [vmem:[#allocation13 + $0x1d50] sm:$0xff]  ;;  %v2947_v19 = vld [vmem:[#allocation13 + $0x1dd8] sm:$0xff] }
 0x4a7   : > { %v1853_v48 = vpop.f32.mrb[2].mxu0  ;;  %v1924_v49 = vpop.f32.mrb[6].mxu1 }
 0x4a8   : > { %v1955_v31 = vadd.f32 %v1938_v44, %v1853_v48  ;;  %v10058_v51 = vadd.f32 %v1946_v45, %v1924_v49  ;;  %v1855_v52 = vpop.f32.mrb[3].mxu0  ;;  %v1926_v53 = vpop.f32.mrb[7].mxu1  ;;  %v2833_v44 = vld [vmem:[#allocation13 + $0x1a48] sm:$0xff]  ;;  %v2827_v45 = vld [vmem:[#allocation13 + $0x1a18] sm:$0xff]  ;;  %v7197_v48 = vpack.c.bf16 %v2818_v37, %v2810_v36  ;;  %v2824_v49 = vld [vmem:[#allocation13 + $0x1a00] sm:$0xff] }
 0x4a9   : > { %v1956_v57 = vadd.f32 %v1942_v46, %v1855_v52  ;;  %v1958_v60 = vadd.f32 %v1950_v47, %v1926_v53  ;;  %v2835_v46 = vld [vmem:[#allocation13 + $0x1a58] sm:$0xff]  ;;  %v7069_v47 = vpack.c.bf16 %v2816_v33, %v2808_v32  ;;  %v2826_v53 = vld [vmem:[#allocation13 + $0x1a10] sm:$0xff] }
 0x4aa   : > { %v10062_v5 = vmax.f32 %v1955_v31, 0.0  ;;  %v7071_v31 = vpack.c.bf16 %v2833_v44, %v2825_v41  ;;  %v7199_v52 = vpack.c.bf16 %v2835_v46, %v2827_v45  ;;  %v7201_v61 = vpack.c.bf16 %v2834_v54, %v2826_v53  ;;  %v2874_v32 = vld [vmem:[#allocation13 + $0x1b90] sm:$0xff]  ;;  %v2891_v36 = vld [vmem:[#allocation13 + $0x1c18] sm:$0xff]  ;;  %v2888_v45 = vld [vmem:[#allocation13 + $0x1c00] sm:$0xff] }
 0x4ab   : > { %v10060_v0 = vmax.f32 %v1956_v57, 0.0  ;;  %v10066_v14 = vmax.f32 %v1958_v60, 0.0  ;;  %v2843_v57 = vld [vmem:[#allocation13 + $0x1a98] sm:$0xff]  ;;  %v7073_v60 = vpack.c.bf16 %v2832_v50, %v2824_v49  ;;  %v2882_v33 = vld [vmem:[#allocation13 + $0x1bd0] sm:$0xff]  ;;  %v7085_v41 = vpack.c.bf16 %v2880_v28, %v2872_v27  ;;  %v2896_v46 = vld [vmem:[#allocation13 + $0x1c40] sm:$0xff] }
 0x4ac   : > { %v2899_v37 = vld [vmem:[#allocation13 + $0x1c58] sm:$0xff]  ;;  %v7213_v44 = vpack.c.bf16 %v2882_v33, %v2874_v32  ;;  %v2890_v49 = vld [vmem:[#allocation13 + $0x1c10] sm:$0xff] }
 0x4ad   : > { %3080 = vmatprep.mubr.f32.mxu0 %v10060_v0  ;;  %3222 = vmatprep.mubr.f32.mxu1 %v10060_v0  ;;  %v2898_v50 = vld [vmem:[#allocation13 + $0x1c50] sm:$0xff]  ;;  %v2907_v53 = vld [vmem:[#allocation13 + $0x1c98] sm:$0xff] }
 0x4ae   : > { %3081 = vmatmul.mubr.f32.vlgmr.msra.gmra.mrb[4].mxu0 %v10062_v5  ;;  %3223 = vmatmul.mubr.f32.vlgmr.msra.gmra.mrb[8].mxu1 %v10062_v5  ;;  %v2915_v54 = vld [vmem:[#allocation13 + $0x1cd8] sm:$0xff]  ;;  %v2938_v27 = vld [vmem:[#allocation13 + $0x1d90] sm:$0xff] }
 0x4af   : > { %7058 = vmatpush1.bf16.msra.mxu0 %v7057_v1  ;;  %7186 = vmatpush1.bf16.msra.mxu1 %v7185_v2  ;;  %v7075_v1 = vpack.c.bf16 %v2849_v56, %v2841_v55  ;;  %v7203_v2 = vpack.c.bf16 %v2851_v59, %v2843_v57  ;;  %v7089_v55 = vpack.c.bf16 %v2896_v46, %v2888_v45  ;;  %v2904_v57 = vld [vmem:[#allocation13 + $0x1c80] sm:$0xff]  ;;  %v2946_v28 = vld [vmem:[#allocation13 + $0x1dd0] sm:$0xff]  ;;  %v2955_v32 = vld [vmem:[#allocation13 + $0x1e18] sm:$0xff] }
 0x4b0   : > { %3151 = vmatprep.mubr.f32.mxu0 %v10066_v14  ;;  %3293 = vmatprep.mubr.f32.mxu1 %v10066_v14  ;;  %v7217_v56 = vpack.c.bf16 %v2898_v50, %v2890_v49  ;;  %v2912_v59 = vld [vmem:[#allocation13 + $0x1cc0] sm:$0xff]  ;;  %v2963_v33 = vld [vmem:[#allocation13 + $0x1e58] sm:$0xff]  ;;  %v2954_v45 = vld [vmem:[#allocation13 + $0x1e10] sm:$0xff] }
 0x4b1   : > { %7060 = vmatprep.subr.bf16.mxu0 %v7059_v9  ;;  %7188 = vmatprep.subr.bf16.mxu1 %v7187_v10  ;;  %v2867_v9 = vld [vmem:[#allocation13 + $0x1b58] sm:$0xff]  ;;  %v7077_v10 = vpack.c.bf16 %v2848_v63, %v2840_v62  ;;  %v2906_v62 = vld [vmem:[#allocation13 + $0x1c90] sm:$0xff] }
 0x4b2   : > { %v2914_v63 = vld [vmem:[#allocation13 + $0x1cd0] sm:$0xff]  ;;  %v2971_v49 = vld [vmem:[#allocation13 + $0x1e98] sm:$0xff] }
 0x4b3   : > { %7062 = vmatpush1.bf16.msra.mxu0 %v7061_v15  ;;  %7190 = vmatpush1.bf16.msra.mxu1 %v7189_v17  ;;  %v7079_v15 = vpack.c.bf16 %v2865_v7, %v2857_v6  ;;  %v7207_v17 = vpack.c.bf16 %v2867_v9, %v2859_v8  ;;  %v7093_v6 = vpack.c.bf16 %v2912_v59, %v2904_v57  ;;  %v2920_v8 = vld [vmem:[#allocation13 + $0x1d00] sm:$0xff]  ;;  %v2962_v46 = vld [vmem:[#allocation13 + $0x1e50] sm:$0xff]  ;;  %v2979_v50 = vld [vmem:[#allocation13 + $0x1ed8] sm:$0xff] }
 0x4b4   : > { %7064 = vmatprep.subr.bf16.mxu0 %v7063_v20  ;;  %7192 = vmatprep.subr.bf16.mxu1 %v7191_v21  ;;  %v2873_v20 = vld [vmem:[#allocation13 + $0x1b88] sm:$0xff]  ;;  %v7221_v7 = vpack.c.bf16 %v2914_v63, %v2906_v62  ;;  %v2928_v9 = vld [vmem:[#allocation13 + $0x1d40] sm:$0xff]  ;;  %v2970_v57 = vld [vmem:[#allocation13 + $0x1e90] sm:$0xff] }
 0x4b5   : > { %v2881_v21 = vld [vmem:[#allocation13 + $0x1bc8] sm:$0xff]  ;;  %v2978_v59 = vld [vmem:[#allocation13 + $0x1ed0] sm:$0xff]  ;;  %v2987_v62 = vld [vmem:[#allocation13 + $0x1f18] sm:$0xff] }
 0x4b6   : > { %v2995_v63 = vld [vmem:[#allocation13 + $0x1f58] sm:$0xff] }
 0x4b7   : > { %7066 = vmatpush1.bf16.msra.mxu0 %v7065_v29  ;;  %7194 = vmatpush1.bf16.msra.mxu1 %v7193_v30  ;;  %v7083_v29 = vpack.c.bf16 %v2881_v21, %v2873_v20  ;;  %v7211_v30 = vpack.c.bf16 %v2883_v23, %v2875_v22  ;;  %v7097_v20 = vpack.c.bf16 %v2928_v9, %v2920_v8  ;;  %v2936_v22 = vld [vmem:[#allocation13 + $0x1d80] sm:$0xff]  ;;  %v2986_v8 = vld [vmem:[#allocation13 + $0x1f10] sm:$0xff] }
 0x4b8   : > { %7068 = vmatprep.subr.bf16.mxu0 %v7067_v34  ;;  %7196 = vmatprep.subr.bf16.mxu1 %v7195_v35  ;;  %v2889_v34 = vld [vmem:[#allocation13 + $0x1c08] sm:$0xff]  ;;  %v7225_v21 = vpack.c.bf16 %v2930_v13, %v2922_v12  ;;  %v2944_v23 = vld [vmem:[#allocation13 + $0x1dc0] sm:$0xff]  ;;  %v2994_v9 = vld [vmem:[#allocation13 + $0x1f50] sm:$0xff] }
 0x4b9   : > { %v2897_v35 = vld [vmem:[#allocation13 + $0x1c48] sm:$0xff]  ;;  %v3003_v12 = vld [vmem:[#allocation13 + $0x1f98] sm:$0xff] }
 0x4ba   : > { %v3011_v13 = vld [vmem:[#allocation13 + $0x1fd8] sm:$0xff] }
 0x4bb   : > { %7070 = vmatpush1.bf16.msra.mxu0 %v7069_v47  ;;  %7198 = vmatpush1.bf16.msra.mxu1 %v7197_v48  ;;  %v7087_v47 = vpack.c.bf16 %v2897_v35, %v2889_v34  ;;  %v7215_v48 = vpack.c.bf16 %v2899_v37, %v2891_v36  ;;  %v7101_v34 = vpack.c.bf16 %v2944_v23, %v2936_v22  ;;  %v2952_v36 = vld [vmem:[#allocation13 + $0x1e00] sm:$0xff]  ;;  %v3002_v22 = vld [vmem:[#allocation13 + $0x1f90] sm:$0xff] }
 0x4bc   : > { %7072 = vmatprep.subr.bf16.mxu0 %v7071_v31  ;;  %7200 = vmatprep.subr.bf16.mxu1 %v7199_v52  ;;  %v2905_v31 = vld [vmem:[#allocation13 + $0x1c88] sm:$0xff]  ;;  %v7229_v35 = vpack.c.bf16 %v2946_v28, %v2938_v27  ;;  %v2960_v37 = vld [vmem:[#allocation13 + $0x1e40] sm:$0xff]  ;;  %v3010_v23 = vld [vmem:[#allocation13 + $0x1fd0] sm:$0xff] }
 0x4bd   : > { %v2913_v52 = vld [vmem:[#allocation13 + $0x1cc8] sm:$0xff]  ;;  %v2511_v27 = vld [vmem:[#allocation13 + $0x1038] sm:$0xff] }
 0x4be   : > { %v2519_v28 = vld [vmem:[#allocation13 + $0x1078] sm:$0xff] }
 0x4bf   : > { %7074 = vmatpush1.bf16.msra.mxu0 %v7073_v60  ;;  %7202 = vmatpush1.bf16.msra.mxu1 %v7201_v61  ;;  %v7091_v60 = vpack.c.bf16 %v2913_v52, %v2905_v31  ;;  %v7219_v61 = vpack.c.bf16 %v2915_v54, %v2907_v53  ;;  %v7105_v31 = vpack.c.bf16 %v2960_v37, %v2952_v36  ;;  %v2968_v53 = vld [vmem:[#allocation13 + $0x1e80] sm:$0xff]  ;;  %v2510_v36 = vld [vmem:[#allocation13 + $0x1030] sm:$0xff] }
 0x4c0   : > { %7076 = vmatprep.subr.bf16.mxu0 %v7075_v1  ;;  %7204 = vmatprep.subr.bf16.mxu1 %v7203_v2  ;;  %v2921_v1 = vld [vmem:[#allocation13 + $0x1d08] sm:$0xff]  ;;  %v7233_v52 = vpack.c.bf16 %v2962_v46, %v2954_v45  ;;  %v2976_v54 = vld [vmem:[#allocation13 + $0x1ec0] sm:$0xff]  ;;  %v2518_v37 = vld [vmem:[#allocation13 + $0x1070] sm:$0xff] }
 0x4c1   : > { %v2929_v2 = vld [vmem:[#allocation13 + $0x1d48] sm:$0xff]  ;;  %v2527_v45 = vld [vmem:[#allocation13 + $0x10b8] sm:$0xff] }
 0x4c2   : > { %v2535_v46 = vld [vmem:[#allocation13 + $0x10f8] sm:$0xff] }
 0x4c3   : > { %7078 = vmatpush1.bf16.msra.mxu0 %v7077_v10  ;;  %7206 = vmatpush1.bf16.msra.mxu1 %v7205_v11  ;;  %v7095_v10 = vpack.c.bf16 %v2929_v2, %v2921_v1  ;;  %v7223_v11 = vpack.c.bf16 %v2931_v4, %v2923_v3  ;;  %v7109_v1 = vpack.c.bf16 %v2976_v54, %v2968_v53  ;;  %v2984_v3 = vld [vmem:[#allocation13 + $0x1f00] sm:$0xff] }
 0x4c4   : > { %7080 = vmatprep.subr.bf16.mxu0 %v7079_v15  ;;  %7208 = vmatprep.subr.bf16.mxu1 %v7207_v17  ;;  %v2937_v15 = vld [vmem:[#allocation13 + $0x1d88] sm:$0xff]  ;;  %v7237_v2 = vpack.c.bf16 %v2978_v59, %v2970_v57  ;;  %v2992_v4 = vld [vmem:[#allocation13 + $0x1f40] sm:$0xff]  ;;  %v7379_v54 = vpack.c.bf16 %v2535_v46, %v2527_v45  ;;  %v2543_v59 = vld [vmem:[#allocation13 + $0x1138] sm:$0xff] }
 0x4c5   : > { %v2945_v17 = vld [vmem:[#allocation13 + $0x1dc8] sm:$0xff]  ;;  %v2588_v46 = vld [vmem:[#allocation13 + $0x12a0] sm:$0xff] }
 0x4c6   : > { %v2549_v57 = vld [vmem:[#allocation13 + $0x1168] sm:$0xff] }
 0x4c7   : > { %7082 = vmatpush1.bf16.msra.mxu0 %v7081_v24  ;;  %7210 = vmatpush1.bf16.msra.mxu1 %v7209_v25  ;;  %v7099_v24 = vpack.c.bf16 %v2945_v17, %v2937_v15  ;;  %v7227_v25 = vpack.c.bf16 %v2947_v19, %v2939_v18  ;;  %v7113_v15 = vpack.c.bf16 %v2992_v4, %v2984_v3  ;;  %v3000_v18 = vld [vmem:[#allocation13 + $0x1f80] sm:$0xff]  ;;  %v2550_v4 = vld [vmem:[#allocation13 + $0x1170] sm:$0xff] }
 0x4c8   : > { %7084 = vmatprep.subr.bf16.mxu0 %v7083_v29  ;;  %7212 = vmatprep.subr.bf16.mxu1 %v7211_v30  ;;  %v2953_v29 = vld [vmem:[#allocation13 + $0x1e08] sm:$0xff]  ;;  %v7241_v17 = vpack.c.bf16 %v2994_v9, %v2986_v8  ;;  %v3008_v19 = vld [vmem:[#allocation13 + $0x1fc0] sm:$0xff]  ;;  %v2559_v8 = vld [vmem:[#allocation13 + $0x11b8] sm:$0xff] }
 0x4c9   : > { %v2961_v30 = vld [vmem:[#allocation13 + $0x1e48] sm:$0xff]  ;;  %v2567_v9 = vld [vmem:[#allocation13 + $0x11f8] sm:$0xff] }
 0x4cb   : > { %7086 = vmatpush1.bf16.msra.mxu0 %v7085_v41  ;;  %7214 = vmatpush1.bf16.msra.mxu1 %v7213_v44  ;;  %v7103_v41 = vpack.c.bf16 %v2961_v30, %v2953_v29  ;;  %v7231_v44 = vpack.c.bf16 %v2963_v33, %v2955_v32  ;;  %v7117_v29 = vpack.c.bf16 %v3008_v19, %v3000_v18  ;;  %v2566_v19 = vld [vmem:[#allocation13 + $0x11f0] sm:$0xff] }
 0x4cc   : > { %7088 = vmatprep.subr.bf16.mxu0 %v7087_v47  ;;  %7216 = vmatprep.subr.bf16.mxu1 %v7215_v48  ;;  %v2969_v47 = vld [vmem:[#allocation13 + $0x1e88] sm:$0xff]  ;;  %v7245_v30 = vpack.c.bf16 %v3010_v23, %v3002_v22  ;;  %v7375_v33 = vpack.c.bf16 %v2519_v28, %v2511_v27  ;;  %v7387_v18 = vpack.c.bf16 %v2567_v9, %v2559_v8  ;;  %v2575_v22 = vld [vmem:[#allocation13 + $0x1238] sm:$0xff]  ;;  %v2572_v28 = vld [vmem:[#allocation13 + $0x1220] sm:$0xff] }
 0x4cd   : > { %v2977_v48 = vld [vmem:[#allocation13 + $0x1ec8] sm:$0xff]  ;;  %v2583_v23 = vld [vmem:[#allocation13 + $0x1278] sm:$0xff]  ;;  %v2620_v9 = vld [vmem:[#allocation13 + $0x13a0] sm:$0xff] }
 0x4cf   : > { %7090 = vmatpush1.bf16.msra.mxu0 %v7089_v55  ;;  %7218 = vmatpush1.bf16.msra.mxu1 %v7217_v56  ;;  %v7107_v55 = vpack.c.bf16 %v2977_v48, %v2969_v47  ;;  %v7235_v56 = vpack.c.bf16 %v2979_v50, %v2971_v49  ;;  %v10073_v48 = vmax.f32 %v10058_v51, 0.0  ;;  %v7377_v49 = vpack.c.bf16 %v2518_v37, %v2510_v36  ;;  %v2524_v50 = vld [vmem:[#allocation13 + $0x10a0] sm:$0xff]  ;;  %v2591_v36 = vld [vmem:[#allocation13 + $0x12b8] sm:$0xff] }
 0x4d0   : > { %7092 = vmatprep.subr.bf16.mxu0 %v7091_v60  ;;  %7220 = vmatprep.subr.bf16.mxu1 %v7219_v61  ;;  %v2985_v60 = vld [vmem:[#allocation13 + $0x1f08] sm:$0xff]  ;;  %v2599_v37 = vld [vmem:[#allocation13 + $0x12f8] sm:$0xff] }
 0x4d1   : > { %v2993_v61 = vld [vmem:[#allocation13 + $0x1f48] sm:$0xff] }
 0x4d3   : > { %7094 = vmatpush1.bf16.msra.mxu0 %v7093_v6  ;;  %7222 = vmatpush1.bf16.msra.mxu1 %v7221_v7  ;;  %v7111_v6 = vpack.c.bf16 %v2993_v61, %v2985_v60  ;;  %v7239_v7 = vpack.c.bf16 %v2995_v63, %v2987_v62  ;;  %v2551_v60 = vld [vmem:[#allocation13 + $0x1178] sm:$0xff]  ;;  %v2540_v63 = vld [vmem:[#allocation13 + $0x1120] sm:$0xff] }
 0x4d4   : > { %7096 = vmatprep.subr.bf16.mxu0 %v7095_v10  ;;  %7224 = vmatprep.subr.bf16.mxu1 %v7223_v11  ;;  %v3001_v10 = vld [vmem:[#allocation13 + $0x1f88] sm:$0xff]  ;;  %v7383_v3 = vpack.c.bf16 %v2551_v60, %v2543_v59  ;;  %v2604_v60 = vld [vmem:[#allocation13 + $0x1320] sm:$0xff] }
 0x4d5   : > { %v3009_v11 = vld [vmem:[#allocation13 + $0x1fc8] sm:$0xff] }
 0x4d7   : > { %7098 = vmatpush1.bf16.msra.mxu0 %v7097_v20  ;;  %7226 = vmatpush1.bf16.msra.mxu1 %v7225_v21  ;;  %v7115_v20 = vpack.c.bf16 %v3009_v11, %v3001_v10  ;;  %v7243_v21 = vpack.c.bf16 %v3011_v13, %v3003_v12  ;;  %v2556_v13 = vld [vmem:[#allocation13 + $0x11a0] sm:$0xff] }
 0x4d8   : > { %7100 = vmatprep.subr.bf16.mxu0 %v7099_v24  ;;  %7228 = vmatprep.subr.bf16.mxu1 %v7227_v25  ;;  %v2509_v24 = vld [vmem:[#allocation13 + $0x1028] sm:$0xff] }
 0x4d9   : > { %v2517_v25 = vld [vmem:[#allocation13 + $0x1068] sm:$0xff] }
 0x4da   : > { %v7247_v32 = vpack.c.bf16 %v2517_v25, %v2509_v24 }
 0x4db   : > { %7102 = vmatpush1.bf16.msra.mxu0 %v7101_v34  ;;  %7230 = vmatpush1.bf16.msra.mxu1 %v7229_v35  ;;  %v2508_v34 = vld [vmem:[#allocation13 + $0x1020] sm:$0xff] }
 0x4dc   : > { %7104 = vmatprep.subr.bf16.mxu0 %v7103_v41  ;;  %7232 = vmatprep.subr.bf16.mxu1 %v7231_v44  ;;  %v2516_v35 = vld [vmem:[#allocation13 + $0x1060] sm:$0xff]  ;;  %v2525_v41 = vld [vmem:[#allocation13 + $0x10a8] sm:$0xff] }
 0x4dd   : > { %v2533_v44 = vld [vmem:[#allocation13 + $0x10e8] sm:$0xff]  ;;  %v7249_v47 = vpack.c.bf16 %v2516_v35, %v2508_v34 }
 0x4de   : > { %v7251_v53 = vpack.c.bf16 %v2533_v44, %v2525_v41  ;;  %v2589_v34 = vld [vmem:[#allocation13 + $0x12a8] sm:$0xff] }
 0x4df   : > { %7106 = vmatpush1.bf16.msra.mxu0 %v7105_v31  ;;  %7234 = vmatpush1.bf16.msra.mxu1 %v7233_v52  ;;  %v2532_v31 = vld [vmem:[#allocation13 + $0x10e0] sm:$0xff]  ;;  %v2526_v52 = vld [vmem:[#allocation13 + $0x10b0] sm:$0xff]  ;;  %v2597_v35 = vld [vmem:[#allocation13 + $0x12e8] sm:$0xff] }
 0x4e0   : > { %7108 = vmatprep.subr.bf16.mxu0 %v7107_v55  ;;  %7236 = vmatprep.subr.bf16.mxu1 %v7235_v56  ;;  %v2534_v55 = vld [vmem:[#allocation13 + $0x10f0] sm:$0xff]  ;;  %v2541_v56 = vld [vmem:[#allocation13 + $0x1128] sm:$0xff]  ;;  %v7253_v51 = vpack.c.bf16 %v2532_v31, %v2524_v50  ;;  %v7267_v45 = vpack.c.bf16 %v2597_v35, %v2589_v34  ;;  %v7395_v50 = vpack.c.bf16 %v2599_v37, %v2591_v36  ;;  %v2652_v37 = vld [vmem:[#allocation13 + $0x14a0] sm:$0xff] }
 0x4e1   : > { %v7381_v61 = vpack.c.bf16 %v2534_v55, %v2526_v52  ;;  %v7255_v62 = vpack.c.bf16 %v2549_v57, %v2541_v56  ;;  %v2598_v31 = vld [vmem:[#allocation13 + $0x12f0] sm:$0xff]  ;;  %v2605_v52 = vld [vmem:[#allocation13 + $0x1328] sm:$0xff]  ;;  %v2615_v55 = vld [vmem:[#allocation13 + $0x1378] sm:$0xff] }
 0x4e3   : > { %7110 = vmatpush1.bf16.msra.mxu0 %v7109_v1  ;;  %7238 = vmatpush1.bf16.msra.mxu1 %v7237_v2  ;;  %v2548_v1 = vld [vmem:[#allocation13 + $0x1160] sm:$0xff]  ;;  %v2542_v2 = vld [vmem:[#allocation13 + $0x1130] sm:$0xff] }
 0x4e4   : > { %7112 = vmatprep.subr.bf16.mxu0 %v7111_v6  ;;  %7240 = vmatprep.subr.bf16.mxu1 %v7239_v7  ;;  %v2557_v6 = vld [vmem:[#allocation13 + $0x11a8] sm:$0xff]  ;;  %v7257_v10 = vpack.c.bf16 %v2548_v1, %v2540_v63  ;;  %v7385_v11 = vpack.c.bf16 %v2550_v4, %v2542_v2  ;;  %v2614_v63 = vld [vmem:[#allocation13 + $0x1370] sm:$0xff]  ;;  %v2631_v4 = vld [vmem:[#allocation13 + $0x13f8] sm:$0xff] }
 0x4e5   : > { %v2565_v7 = vld [vmem:[#allocation13 + $0x11e8] sm:$0xff] }
 0x4e6   : > { %v7259_v12 = vpack.c.bf16 %v2565_v7, %v2557_v6  ;;  %v2621_v1 = vld [vmem:[#allocation13 + $0x13a8] sm:$0xff] }
 0x4e7   : > { %7114 = vmatpush1.bf16.msra.mxu0 %v7113_v15  ;;  %7242 = vmatpush1.bf16.msra.mxu1 %v7241_v17  ;;  %v2564_v15 = vld [vmem:[#allocation13 + $0x11e0] sm:$0xff]  ;;  %v2558_v17 = vld [vmem:[#allocation13 + $0x11b0] sm:$0xff]  ;;  %v2629_v2 = vld [vmem:[#allocation13 + $0x13e8] sm:$0xff] }
 0x4e8   : > { %7116 = vmatprep.subr.bf16.mxu0 %v7115_v20  ;;  %7244 = vmatprep.subr.bf16.mxu1 %v7243_v21  ;;  %v2573_v20 = vld [vmem:[#allocation13 + $0x1228] sm:$0xff]  ;;  %v7261_v24 = vpack.c.bf16 %v2564_v15, %v2556_v13  ;;  %v7389_v25 = vpack.c.bf16 %v2566_v19, %v2558_v17  ;;  %v7275_v8 = vpack.c.bf16 %v2629_v2, %v2621_v1  ;;  %v2630_v13 = vld [vmem:[#allocation13 + $0x13f0] sm:$0xff]  ;;  %v2647_v19 = vld [vmem:[#allocation13 + $0x1478] sm:$0xff] }
 0x4e9   : > { %v2581_v21 = vld [vmem:[#allocation13 + $0x1268] sm:$0xff] }
 0x4ea   : > { %v7263_v27 = vpack.c.bf16 %v2581_v21, %v2573_v20  ;;  %v2637_v15 = vld [vmem:[#allocation13 + $0x1428] sm:$0xff] }
 0x4eb   : > { %7118 = vmatpush1.bf16.msra.mxu0 %v7117_v29  ;;  %7246 = vmatpush1.bf16.msra.mxu1 %v7245_v30  ;;  %v2580_v29 = vld [vmem:[#allocation13 + $0x1260] sm:$0xff]  ;;  %v2574_v30 = vld [vmem:[#allocation13 + $0x1230] sm:$0xff]  ;;  %v2645_v17 = vld [vmem:[#allocation13 + $0x1468] sm:$0xff] }
 0x4ec   : > { %7248 = vmatprep.subr.bf16.mxu0 %v7247_v32  ;;  %7376 = vmatprep.subr.bf16.mxu1 %v7375_v33  ;;  %v7391_v32 = vpack.c.bf16 %v2583_v23, %v2575_v22  ;;  %v2582_v33 = vld [vmem:[#allocation13 + $0x1270] sm:$0xff]  ;;  %v7265_v41 = vpack.c.bf16 %v2580_v29, %v2572_v28  ;;  %v7279_v22 = vpack.c.bf16 %v2645_v17, %v2637_v15  ;;  %v2636_v23 = vld [vmem:[#allocation13 + $0x1420] sm:$0xff]  ;;  %v2653_v29 = vld [vmem:[#allocation13 + $0x14a8] sm:$0xff] }
 0x4ed   : > { %v7393_v44 = vpack.c.bf16 %v2582_v33, %v2574_v30  ;;  %v2646_v28 = vld [vmem:[#allocation13 + $0x1470] sm:$0xff]  ;;  %v2661_v30 = vld [vmem:[#allocation13 + $0x14e8] sm:$0xff]  ;;  %v2663_v33 = vld [vmem:[#allocation13 + $0x14f8] sm:$0xff] }
 0x4ee   : > { %3152 = vmatmul.mubr.f32.vlgmr.msra.gmra.mrb[4].mxu0 %v10073_v48  ;;  %3294 = vmatmul.mubr.f32.vlgmr.msra.gmra.mrb[8].mxu1 %v10073_v48  ;;  %v7283_v36 = vpack.c.bf16 %v2661_v30, %v2653_v29 }
 0x4ef   : > { %7250 = vmatpush1.bf16.msra.mxu0 %v7249_v47  ;;  %3364 = vmatprep.mubr.f32.mxu0 %v10060_v0  ;;  %v2596_v47 = vld [vmem:[#allocation13 + $0x12e0] sm:$0xff] }
 0x4f0   : > { %7378 = vmatpush1.bf16.msra.mxu1 %v7377_v49  ;;  %3506 = vmatprep.mubr.f32.mxu1 %v10060_v0  ;;  %v2590_v49 = vld [vmem:[#allocation13 + $0x12b0] sm:$0xff]  ;;  %v7269_v56 = vpack.c.bf16 %v2596_v47, %v2588_v46  ;;  %v2669_v47 = vld [vmem:[#allocation13 + $0x1528] sm:$0xff] }
 0x4f1   : > { %7252 = vmatprep.subr.bf16.mxu0 %v7251_v53  ;;  %7380 = vmatprep.subr.bf16.mxu1 %v7379_v54  ;;  %v2613_v53 = vld [vmem:[#allocation13 + $0x1368] sm:$0xff]  ;;  %v2607_v54 = vld [vmem:[#allocation13 + $0x1338] sm:$0xff]  ;;  %v7397_v57 = vpack.c.bf16 %v2598_v31, %v2590_v49  ;;  %v2662_v46 = vld [vmem:[#allocation13 + $0x14f0] sm:$0xff] }
 0x4f2   : > { %v7271_v59 = vpack.c.bf16 %v2613_v53, %v2605_v52  ;;  %v2677_v49 = vld [vmem:[#allocation13 + $0x1568] sm:$0xff]  ;;  %v2679_v31 = vld [vmem:[#allocation13 + $0x1578] sm:$0xff] }
 0x4f3   : > { %7254 = vmatpush1.bf16.msra.mxu0 %v7253_v51  ;;  %v2612_v51 = vld [vmem:[#allocation13 + $0x1360] sm:$0xff] }
 0x4f4   : > { %7382 = vmatpush1.bf16.msra.mxu1 %v7381_v61  ;;  %7256 = vmatprep.subr.bf16.mxu0 %v7255_v62  ;;  %v2606_v61 = vld [vmem:[#allocation13 + $0x1330] sm:$0xff]  ;;  %v7399_v62 = vpack.c.bf16 %v2615_v55, %v2607_v54  ;;  %v7273_v6 = vpack.c.bf16 %v2612_v51, %v2604_v60  ;;  %v7287_v54 = vpack.c.bf16 %v2677_v49, %v2669_v47  ;;  %v2668_v55 = vld [vmem:[#allocation13 + $0x1520] sm:$0xff]  ;;  %v2685_v51 = vld [vmem:[#allocation13 + $0x15a8] sm:$0xff] }
 0x4f5   : > { %7384 = vmatprep.subr.bf16.mxu1 %v7383_v3  ;;  %v2623_v3 = vld [vmem:[#allocation13 + $0x13b8] sm:$0xff]  ;;  %v7401_v7 = vpack.c.bf16 %v2614_v63, %v2606_v61  ;;  %v2678_v60 = vld [vmem:[#allocation13 + $0x1570] sm:$0xff]  ;;  %v2693_v61 = vld [vmem:[#allocation13 + $0x15e8] sm:$0xff] }
 0x4f6   : > { %v2695_v63 = vld [vmem:[#allocation13 + $0x15f8] sm:$0xff] }
 0x4f7   : > { %7258 = vmatpush1.bf16.msra.mxu0 %v7257_v10  ;;  %v2628_v10 = vld [vmem:[#allocation13 + $0x13e0] sm:$0xff] }
 0x4f8   : > { %7386 = vmatpush1.bf16.msra.mxu1 %v7385_v11  ;;  %7260 = vmatprep.subr.bf16.mxu0 %v7259_v12  ;;  %v2622_v11 = vld [vmem:[#allocation13 + $0x13b0] sm:$0xff]  ;;  %v7403_v12 = vpack.c.bf16 %v2631_v4, %v2623_v3  ;;  %v7277_v20 = vpack.c.bf16 %v2628_v10, %v2620_v9  ;;  %v7291_v3 = vpack.c.bf16 %v2693_v61, %v2685_v51  ;;  %v2684_v4 = vld [vmem:[#allocation13 + $0x15a0] sm:$0xff]  ;;  %v2701_v10 = vld [vmem:[#allocation13 + $0x1628] sm:$0xff] }
 0x4f9   : > { %7388 = vmatprep.subr.bf16.mxu1 %v7387_v18  ;;  %v2639_v18 = vld [vmem:[#allocation13 + $0x1438] sm:$0xff]  ;;  %v7405_v21 = vpack.c.bf16 %v2630_v13, %v2622_v11  ;;  %v2694_v9 = vld [vmem:[#allocation13 + $0x15f0] sm:$0xff]  ;;  %v2709_v11 = vld [vmem:[#allocation13 + $0x1668] sm:$0xff] }
 0x4fa   : > { %v2711_v13 = vld [vmem:[#allocation13 + $0x1678] sm:$0xff] }
 0x4fb   : > { %7262 = vmatpush1.bf16.msra.mxu0 %v7261_v24  ;;  %v2644_v24 = vld [vmem:[#allocation13 + $0x1460] sm:$0xff] }
 0x4fc   : > { %7390 = vmatpush1.bf16.msra.mxu1 %v7389_v25  ;;  %7264 = vmatprep.subr.bf16.mxu0 %v7263_v27  ;;  %v2638_v25 = vld [vmem:[#allocation13 + $0x1430] sm:$0xff]  ;;  %v7407_v27 = vpack.c.bf16 %v2647_v19, %v2639_v18  ;;  %v7281_v34 = vpack.c.bf16 %v2644_v24, %v2636_v23  ;;  %v7295_v18 = vpack.c.bf16 %v2709_v11, %v2701_v10  ;;  %v2700_v19 = vld [vmem:[#allocation13 + $0x1620] sm:$0xff]  ;;  %v2717_v24 = vld [vmem:[#allocation13 + $0x16a8] sm:$0xff] }
 0x4fd   : > { %7392 = vmatprep.subr.bf16.mxu1 %v7391_v32  ;;  %v2655_v32 = vld [vmem:[#allocation13 + $0x14b8] sm:$0xff]  ;;  %v7409_v35 = vpack.c.bf16 %v2646_v28, %v2638_v25  ;;  %v2710_v23 = vld [vmem:[#allocation13 + $0x1670] sm:$0xff]  ;;  %v2725_v25 = vld [vmem:[#allocation13 + $0x16e8] sm:$0xff] }
 0x4fe   : > { %v2727_v28 = vld [vmem:[#allocation13 + $0x16f8] sm:$0xff] }
 0x4ff   : > { %7266 = vmatpush1.bf16.msra.mxu0 %v7265_v41  ;;  %v2660_v41 = vld [vmem:[#allocation13 + $0x14e0] sm:$0xff] }
 0x500   : > { %7394 = vmatpush1.bf16.msra.mxu1 %v7393_v44  ;;  %7268 = vmatprep.subr.bf16.mxu0 %v7267_v45  ;;  %v2654_v44 = vld [vmem:[#allocation13 + $0x14b0] sm:$0xff]  ;;  %v7411_v45 = vpack.c.bf16 %v2663_v33, %v2655_v32  ;;  %v7285_v52 = vpack.c.bf16 %v2660_v41, %v2652_v37  ;;  %v7299_v32 = vpack.c.bf16 %v2725_v25, %v2717_v24  ;;  %v2716_v33 = vld [vmem:[#allocation13 + $0x16a0] sm:$0xff]  ;;  %v2733_v41 = vld [vmem:[#allocation13 + $0x1728] sm:$0xff] }
 0x501   : > { %7396 = vmatprep.subr.bf16.mxu1 %v7395_v50  ;;  %v2671_v50 = vld [vmem:[#allocation13 + $0x1538] sm:$0xff]  ;;  %v7413_v53 = vpack.c.bf16 %v2662_v46, %v2654_v44  ;;  %v2726_v37 = vld [vmem:[#allocation13 + $0x16f0] sm:$0xff]  ;;  %v2741_v44 = vld [vmem:[#allocation13 + $0x1768] sm:$0xff] }
 0x502   : > { %v2743_v46 = vld [vmem:[#allocation13 + $0x1778] sm:$0xff] }
 0x503   : > { %7270 = vmatpush1.bf16.msra.mxu0 %v7269_v56  ;;  %v2676_v56 = vld [vmem:[#allocation13 + $0x1560] sm:$0xff]  ;;  %v2791_v24 = vld [vmem:[#allocation13 + $0x18f8] sm:$0xff] }
 0x504   : > { %7398 = vmatpush1.bf16.msra.mxu1 %v7397_v57  ;;  %7272 = vmatprep.subr.bf16.mxu0 %v7271_v59  ;;  %v2670_v57 = vld [vmem:[#allocation13 + $0x1530] sm:$0xff]  ;;  %v7415_v59 = vpack.c.bf16 %v2679_v31, %v2671_v50  ;;  %v7289_v1 = vpack.c.bf16 %v2676_v56, %v2668_v55  ;;  %v7303_v50 = vpack.c.bf16 %v2741_v44, %v2733_v41  ;;  %v2732_v31 = vld [vmem:[#allocation13 + $0x1720] sm:$0xff]  ;;  %v2749_v56 = vld [vmem:[#allocation13 + $0x17a8] sm:$0xff] }
 0x505   : > { %7400 = vmatprep.subr.bf16.mxu1 %v7399_v62  ;;  %v2687_v62 = vld [vmem:[#allocation13 + $0x15b8] sm:$0xff]  ;;  %v7417_v2 = vpack.c.bf16 %v2678_v60, %v2670_v57  ;;  %v2742_v55 = vld [vmem:[#allocation13 + $0x1770] sm:$0xff]  ;;  %v2757_v57 = vld [vmem:[#allocation13 + $0x17e8] sm:$0xff] }
 0x506   : > { %v2759_v60 = vld [vmem:[#allocation13 + $0x17f8] sm:$0xff] }
 0x507   : > { %7274 = vmatpush1.bf16.msra.mxu0 %v7273_v6  ;;  %v2692_v6 = vld [vmem:[#allocation13 + $0x15e0] sm:$0xff] }
 0x508   : > { %7402 = vmatpush1.bf16.msra.mxu1 %v7401_v7  ;;  %7276 = vmatprep.subr.bf16.mxu0 %v7275_v8  ;;  %v2686_v7 = vld [vmem:[#allocation13 + $0x15b0] sm:$0xff]  ;;  %v7419_v8 = vpack.c.bf16 %v2695_v63, %v2687_v62  ;;  %v7293_v15 = vpack.c.bf16 %v2692_v6, %v2684_v4  ;;  %v7307_v62 = vpack.c.bf16 %v2757_v57, %v2749_v56  ;;  %v2748_v63 = vld [vmem:[#allocation13 + $0x17a0] sm:$0xff]  ;;  %v2765_v6 = vld [vmem:[#allocation13 + $0x1828] sm:$0xff] }
 0x509   : > { %7404 = vmatprep.subr.bf16.mxu1 %v7403_v12  ;;  %v2703_v12 = vld [vmem:[#allocation13 + $0x1638] sm:$0xff]  ;;  %v7421_v17 = vpack.c.bf16 %v2694_v9, %v2686_v7  ;;  %v2758_v4 = vld [vmem:[#allocation13 + $0x17f0] sm:$0xff]  ;;  %v2773_v7 = vld [vmem:[#allocation13 + $0x1868] sm:$0xff] }
 0x50a   : > { %v2775_v9 = vld [vmem:[#allocation13 + $0x1878] sm:$0xff] }
 0x50b   : > { %7278 = vmatpush1.bf16.msra.mxu0 %v7277_v20  ;;  %v2708_v20 = vld [vmem:[#allocation13 + $0x1660] sm:$0xff] }
 0x50c   : > { %7406 = vmatpush1.bf16.msra.mxu1 %v7405_v21  ;;  %7280 = vmatprep.subr.bf16.mxu0 %v7279_v22  ;;  %v2702_v21 = vld [vmem:[#allocation13 + $0x1630] sm:$0xff]  ;;  %v7423_v22 = vpack.c.bf16 %v2711_v13, %v2703_v12  ;;  %v7297_v29 = vpack.c.bf16 %v2708_v20, %v2700_v19  ;;  %v7311_v12 = vpack.c.bf16 %v2773_v7, %v2765_v6  ;;  %v2764_v13 = vld [vmem:[#allocation13 + $0x1820] sm:$0xff]  ;;  %v2781_v20 = vld [vmem:[#allocation13 + $0x18a8] sm:$0xff] }
 0x50d   : > { %7408 = vmatprep.subr.bf16.mxu1 %v7407_v27  ;;  %v2719_v27 = vld [vmem:[#allocation13 + $0x16b8] sm:$0xff]  ;;  %v7425_v30 = vpack.c.bf16 %v2710_v23, %v2702_v21  ;;  %v2774_v19 = vld [vmem:[#allocation13 + $0x1870] sm:$0xff]  ;;  %v2789_v21 = vld [vmem:[#allocation13 + $0x18e8] sm:$0xff] }
 0x50e   : > { %v2783_v23 = vld [vmem:[#allocation13 + $0x18b8] sm:$0xff] }
 0x50f   : > { %7282 = vmatpush1.bf16.msra.mxu0 %v7281_v34  ;;  %v2724_v34 = vld [vmem:[#allocation13 + $0x16e0] sm:$0xff] }
 0x510   : > { %7410 = vmatpush1.bf16.msra.mxu1 %v7409_v35  ;;  %7284 = vmatprep.subr.bf16.mxu0 %v7283_v36  ;;  %v2718_v35 = vld [vmem:[#allocation13 + $0x16b0] sm:$0xff]  ;;  %v7427_v36 = vpack.c.bf16 %v2727_v28, %v2719_v27  ;;  %v7301_v47 = vpack.c.bf16 %v2724_v34, %v2716_v33  ;;  %v2780_v27 = vld [vmem:[#allocation13 + $0x18a0] sm:$0xff]  ;;  %v2797_v33 = vld [vmem:[#allocation13 + $0x1928] sm:$0xff] }
 0x511   : > { %7412 = vmatprep.subr.bf16.mxu1 %v7411_v45  ;;  %v2735_v45 = vld [vmem:[#allocation13 + $0x1738] sm:$0xff]  ;;  %v7429_v49 = vpack.c.bf16 %v2726_v37, %v2718_v35  ;;  %v2788_v28 = vld [vmem:[#allocation13 + $0x18e0] sm:$0xff]  ;;  %v2805_v34 = vld [vmem:[#allocation13 + $0x1968] sm:$0xff]  ;;  %v7443_v35 = vpack.c.bf16 %v2791_v24, %v2783_v23 }
 0x512   : > { %v2807_v37 = vld [vmem:[#allocation13 + $0x1978] sm:$0xff]  ;;  %v7317_v41 = vpack.c.bf16 %v2788_v28, %v2780_v27  ;;  %v2844_v23 = vld [vmem:[#allocation13 + $0x1aa0] sm:$0xff]  ;;  %v2854_v28 = vld [vmem:[#allocation13 + $0x1af0] sm:$0xff] }
 0x513   : > { %7286 = vmatpush1.bf16.msra.mxu0 %v7285_v52  ;;  %v2740_v52 = vld [vmem:[#allocation13 + $0x1760] sm:$0xff] }
 0x514   : > { %7414 = vmatpush1.bf16.msra.mxu1 %v7413_v53  ;;  %7288 = vmatprep.subr.bf16.mxu0 %v7287_v54  ;;  %v2734_v53 = vld [vmem:[#allocation13 + $0x1730] sm:$0xff]  ;;  %v7431_v54 = vpack.c.bf16 %v2743_v46, %v2735_v45  ;;  %v7305_v51 = vpack.c.bf16 %v2740_v52, %v2732_v31  ;;  %v7319_v45 = vpack.c.bf16 %v2805_v34, %v2797_v33  ;;  %v2796_v46 = vld [vmem:[#allocation13 + $0x1920] sm:$0xff]  ;;  %v2813_v52 = vld [vmem:[#allocation13 + $0x19a8] sm:$0xff] }
 0x515   : > { %7416 = vmatprep.subr.bf16.mxu1 %v7415_v59  ;;  %v2751_v59 = vld [vmem:[#allocation13 + $0x17b8] sm:$0xff]  ;;  %v7433_v61 = vpack.c.bf16 %v2742_v55, %v2734_v53  ;;  %v2806_v31 = vld [vmem:[#allocation13 + $0x1970] sm:$0xff]  ;;  %v2821_v53 = vld [vmem:[#allocation13 + $0x19e8] sm:$0xff] }
 0x516   : > { %v2823_v55 = vld [vmem:[#allocation13 + $0x19f8] sm:$0xff]  ;;  %v2852_v24 = vld [vmem:[#allocation13 + $0x1ae0] sm:$0xff] }
 0x517   : > { %7290 = vmatpush1.bf16.msra.mxu0 %v7289_v1  ;;  %v2756_v1 = vld [vmem:[#allocation13 + $0x17e0] sm:$0xff]  ;;  %v2871_v33 = vld [vmem:[#allocation13 + $0x1b78] sm:$0xff]  ;;  %v7333_v34 = vpack.c.bf16 %v2852_v24, %v2844_v23  ;;  %v2918_v23 = vld [vmem:[#allocation13 + $0x1cf0] sm:$0xff] }
 0x518   : > { %7418 = vmatpush1.bf16.msra.mxu1 %v7417_v2  ;;  %7292 = vmatprep.subr.bf16.mxu0 %v7291_v3  ;;  %v2750_v2 = vld [vmem:[#allocation13 + $0x17b0] sm:$0xff]  ;;  %v7435_v3 = vpack.c.bf16 %v2759_v60, %v2751_v59  ;;  %v7309_v10 = vpack.c.bf16 %v2756_v1, %v2748_v63  ;;  %v7323_v59 = vpack.c.bf16 %v2821_v53, %v2813_v52  ;;  %v2812_v60 = vld [vmem:[#allocation13 + $0x19a0] sm:$0xff]  ;;  %v2829_v1 = vld [vmem:[#allocation13 + $0x1a28] sm:$0xff] }
 0x519   : > { %7420 = vmatprep.subr.bf16.mxu1 %v7419_v8  ;;  %v2767_v8 = vld [vmem:[#allocation13 + $0x1838] sm:$0xff]  ;;  %v7437_v11 = vpack.c.bf16 %v2758_v4, %v2750_v2  ;;  %v2822_v63 = vld [vmem:[#allocation13 + $0x19f0] sm:$0xff]  ;;  %v2837_v2 = vld [vmem:[#allocation13 + $0x1a68] sm:$0xff] }
 0x51a   : > { %v2839_v4 = vld [vmem:[#allocation13 + $0x1a78] sm:$0xff]  ;;  %v2925_v24 = vld [vmem:[#allocation13 + $0x1d28] sm:$0xff] }
 0x51b   : > { %7294 = vmatpush1.bf16.msra.mxu0 %v7293_v15  ;;  %v2772_v15 = vld [vmem:[#allocation13 + $0x1860] sm:$0xff] }
 0x51c   : > { %7422 = vmatpush1.bf16.msra.mxu1 %v7421_v17  ;;  %7296 = vmatprep.subr.bf16.mxu0 %v7295_v18  ;;  %v7439_v17 = vpack.c.bf16 %v2775_v9, %v2767_v8  ;;  %v2766_v18 = vld [vmem:[#allocation13 + $0x1830] sm:$0xff]  ;;  %v7327_v8 = vpack.c.bf16 %v2837_v2, %v2829_v1  ;;  %v2828_v9 = vld [vmem:[#allocation13 + $0x1a20] sm:$0xff] }
 0x51d   : > { %7424 = vmatprep.subr.bf16.mxu1 %v7423_v22  ;;  %v7313_v22 = vpack.c.bf16 %v2772_v15, %v2764_v13  ;;  %v7441_v25 = vpack.c.bf16 %v2774_v19, %v2766_v18  ;;  %v2838_v13 = vld [vmem:[#allocation13 + $0x1a70] sm:$0xff]  ;;  %v2845_v15 = vld [vmem:[#allocation13 + $0x1aa8] sm:$0xff]  ;;  %v2847_v18 = vld [vmem:[#allocation13 + $0x1ab8] sm:$0xff] }
 0x51e   : > { %v2855_v19 = vld [vmem:[#allocation13 + $0x1af8] sm:$0xff] }
 0x51f   : > { %7298 = vmatpush1.bf16.msra.mxu0 %v7297_v29  ;;  %v2782_v29 = vld [vmem:[#allocation13 + $0x18b0] sm:$0xff]  ;;  %v7459_v27 = vpack.c.bf16 %v2855_v19, %v2847_v18  ;;  %v2908_v19 = vld [vmem:[#allocation13 + $0x1ca0] sm:$0xff] }
 0x520   : > { %7426 = vmatpush1.bf16.msra.mxu1 %v7425_v30  ;;  %7300 = vmatprep.subr.bf16.mxu0 %v7299_v32  ;;  %v7315_v30 = vpack.c.bf16 %v2789_v21, %v2781_v20  ;;  %v2790_v32 = vld [vmem:[#allocation13 + $0x18f0] sm:$0xff] }
 0x521   : > { %7428 = vmatprep.subr.bf16.mxu1 %v7427_v36  ;;  %v2799_v36 = vld [vmem:[#allocation13 + $0x1938] sm:$0xff]  ;;  %v7445_v44 = vpack.c.bf16 %v2790_v32, %v2782_v29  ;;  %v2861_v29 = vld [vmem:[#allocation13 + $0x1b28] sm:$0xff] }
 0x522   : > { %v2863_v32 = vld [vmem:[#allocation13 + $0x1b38] sm:$0xff] }
 0x523   : > { %7302 = vmatpush1.bf16.msra.mxu0 %v7301_v47  ;;  %v2804_v47 = vld [vmem:[#allocation13 + $0x1960] sm:$0xff] }
 0x524   : > { %7430 = vmatpush1.bf16.msra.mxu1 %v7429_v49  ;;  %7304 = vmatprep.subr.bf16.mxu0 %v7303_v50  ;;  %v2798_v49 = vld [vmem:[#allocation13 + $0x1930] sm:$0xff]  ;;  %v7447_v50 = vpack.c.bf16 %v2807_v37, %v2799_v36  ;;  %v7321_v56 = vpack.c.bf16 %v2804_v47, %v2796_v46  ;;  %v2860_v37 = vld [vmem:[#allocation13 + $0x1b20] sm:$0xff]  ;;  %v2877_v47 = vld [vmem:[#allocation13 + $0x1ba8] sm:$0xff] }
 0x525   : > { %7432 = vmatprep.subr.bf16.mxu1 %v7431_v54  ;;  %v2815_v54 = vld [vmem:[#allocation13 + $0x19b8] sm:$0xff]  ;;  %v7449_v57 = vpack.c.bf16 %v2806_v31, %v2798_v49  ;;  %v2870_v46 = vld [vmem:[#allocation13 + $0x1b70] sm:$0xff]  ;;  %v2885_v49 = vld [vmem:[#allocation13 + $0x1be8] sm:$0xff] }
 0x526   : > { %v2887_v31 = vld [vmem:[#allocation13 + $0x1bf8] sm:$0xff] }
 0x527   : > { %7306 = vmatpush1.bf16.msra.mxu0 %v7305_v51  ;;  %v2820_v51 = vld [vmem:[#allocation13 + $0x19e0] sm:$0xff] }
 0x528   : > { %7434 = vmatpush1.bf16.msra.mxu1 %v7433_v61  ;;  %7308 = vmatprep.subr.bf16.mxu0 %v7307_v62  ;;  %v2814_v61 = vld [vmem:[#allocation13 + $0x19b0] sm:$0xff]  ;;  %v7451_v62 = vpack.c.bf16 %v2823_v55, %v2815_v54  ;;  %v7325_v6 = vpack.c.bf16 %v2820_v51, %v2812_v60  ;;  %v7339_v54 = vpack.c.bf16 %v2885_v49, %v2877_v47  ;;  %v2876_v55 = vld [vmem:[#allocation13 + $0x1ba0] sm:$0xff]  ;;  %v2893_v51 = vld [vmem:[#allocation13 + $0x1c28] sm:$0xff] }
 0x529   : > { %7436 = vmatprep.subr.bf16.mxu1 %v7435_v3  ;;  %v2831_v3 = vld [vmem:[#allocation13 + $0x1a38] sm:$0xff]  ;;  %v7453_v7 = vpack.c.bf16 %v2822_v63, %v2814_v61  ;;  %v2886_v60 = vld [vmem:[#allocation13 + $0x1bf0] sm:$0xff]  ;;  %v2901_v61 = vld [vmem:[#allocation13 + $0x1c68] sm:$0xff] }
 0x52a   : > { %v2903_v63 = vld [vmem:[#allocation13 + $0x1c78] sm:$0xff] }
 0x52b   : > { %7310 = vmatpush1.bf16.msra.mxu0 %v7309_v10  ;;  %v2836_v10 = vld [vmem:[#allocation13 + $0x1a60] sm:$0xff] }
 0x52c   : > { %7438 = vmatpush1.bf16.msra.mxu1 %v7437_v11  ;;  %7312 = vmatprep.subr.bf16.mxu0 %v7311_v12  ;;  %v2830_v11 = vld [vmem:[#allocation13 + $0x1a30] sm:$0xff]  ;;  %v7455_v12 = vpack.c.bf16 %v2839_v4, %v2831_v3  ;;  %v7329_v20 = vpack.c.bf16 %v2836_v10, %v2828_v9  ;;  %v7343_v3 = vpack.c.bf16 %v2901_v61, %v2893_v51  ;;  %v2892_v4 = vld [vmem:[#allocation13 + $0x1c20] sm:$0xff]  ;;  %v2909_v10 = vld [vmem:[#allocation13 + $0x1ca8] sm:$0xff] }
 0x52d   : > { %7440 = vmatprep.subr.bf16.mxu1 %v7439_v17  ;;  %v2853_v17 = vld [vmem:[#allocation13 + $0x1ae8] sm:$0xff]  ;;  %v7457_v21 = vpack.c.bf16 %v2838_v13, %v2830_v11  ;;  %v2902_v9 = vld [vmem:[#allocation13 + $0x1c70] sm:$0xff]  ;;  %v2919_v13 = vld [vmem:[#allocation13 + $0x1cf8] sm:$0xff] }
 0x52e   : > { %3365 = vmatmul.mubr.f32.vlgmr.msra.gmra.mrb[6].mxu0 %v10062_v5  ;;  %v2917_v11 = vld [vmem:[#allocation13 + $0x1ce8] sm:$0xff] }
 0x52f   : > { %3507 = vmatmul.mubr.f32.vlgmr.msra.gmra.mrb[10].mxu1 %v10062_v5  ;;  %7314 = vmatpush1.bf16.msra.mxu0 %v7313_v22  ;;  %v7331_v22 = vpack.c.bf16 %v2853_v17, %v2845_v15  ;;  %v7347_v18 = vpack.c.bf16 %v2917_v11, %v2909_v10 }
 0x530   : > { %3435 = vmatprep.mubr.f32.mxu0 %v10066_v14  ;;  %7442 = vmatpush1.bf16.msra.mxu1 %v7441_v25  ;;  %v2846_v25 = vld [vmem:[#allocation13 + $0x1ab0] sm:$0xff] }
 0x531   : > { %3577 = vmatprep.mubr.f32.mxu1 %v10066_v14  ;;  %7316 = vmatprep.subr.bf16.mxu0 %v7315_v30  ;;  %v2869_v30 = vld [vmem:[#allocation13 + $0x1b68] sm:$0xff] }
 0x532   : > { %7444 = vmatprep.subr.bf16.mxu1 %v7443_v35  ;;  %v7461_v35 = vpack.c.bf16 %v2854_v28, %v2846_v25  ;;  %v7335_v36 = vpack.c.bf16 %v2869_v30, %v2861_v29  ;;  %v2933_v25 = vld [vmem:[#allocation13 + $0x1d68] sm:$0xff]  ;;  %v2935_v28 = vld [vmem:[#allocation13 + $0x1d78] sm:$0xff] }
 0x533   : > { %7318 = vmatpush1.bf16.msra.mxu0 %v7317_v41  ;;  %v2868_v41 = vld [vmem:[#allocation13 + $0x1b60] sm:$0xff] }
 0x534   : > { %7446 = vmatpush1.bf16.msra.mxu1 %v7445_v44  ;;  %7320 = vmatprep.subr.bf16.mxu0 %v7319_v45  ;;  %v2862_v44 = vld [vmem:[#allocation13 + $0x1b30] sm:$0xff]  ;;  %v7463_v45 = vpack.c.bf16 %v2871_v33, %v2863_v32  ;;  %v7337_v52 = vpack.c.bf16 %v2868_v41, %v2860_v37  ;;  %v7351_v32 = vpack.c.bf16 %v2933_v25, %v2925_v24  ;;  %v2924_v33 = vld [vmem:[#allocation13 + $0x1d20] sm:$0xff]  ;;  %v2941_v41 = vld [vmem:[#allocation13 + $0x1da8] sm:$0xff] }
 0x535   : > { %7448 = vmatprep.subr.bf16.mxu1 %v7447_v50  ;;  %v2879_v50 = vld [vmem:[#allocation13 + $0x1bb8] sm:$0xff]  ;;  %v7465_v53 = vpack.c.bf16 %v2870_v46, %v2862_v44  ;;  %v2934_v37 = vld [vmem:[#allocation13 + $0x1d70] sm:$0xff]  ;;  %v2949_v44 = vld [vmem:[#allocation13 + $0x1de8] sm:$0xff] }
 0x536   : > { %v2951_v46 = vld [vmem:[#allocation13 + $0x1df8] sm:$0xff] }
 0x537   : > { %7322 = vmatpush1.bf16.msra.mxu0 %v7321_v56  ;;  %v2884_v56 = vld [vmem:[#allocation13 + $0x1be0] sm:$0xff] }
 0x538   : > { %7450 = vmatpush1.bf16.msra.mxu1 %v7449_v57  ;;  %7324 = vmatprep.subr.bf16.mxu0 %v7323_v59  ;;  %v2878_v57 = vld [vmem:[#allocation13 + $0x1bb0] sm:$0xff]  ;;  %v7467_v59 = vpack.c.bf16 %v2887_v31, %v2879_v50  ;;  %v7341_v1 = vpack.c.bf16 %v2884_v56, %v2876_v55  ;;  %v7355_v50 = vpack.c.bf16 %v2949_v44, %v2941_v41  ;;  %v2940_v31 = vld [vmem:[#allocation13 + $0x1da0] sm:$0xff]  ;;  %v2957_v56 = vld [vmem:[#allocation13 + $0x1e28] sm:$0xff] }
 0x539   : > { %7452 = vmatprep.subr.bf16.mxu1 %v7451_v62  ;;  %v2895_v62 = vld [vmem:[#allocation13 + $0x1c38] sm:$0xff]  ;;  %v7469_v2 = vpack.c.bf16 %v2886_v60, %v2878_v57  ;;  %v2950_v55 = vld [vmem:[#allocation13 + $0x1df0] sm:$0xff]  ;;  %v2965_v57 = vld [vmem:[#allocation13 + $0x1e68] sm:$0xff] }
 0x53a   : > { %v2967_v60 = vld [vmem:[#allocation13 + $0x1e78] sm:$0xff] }
 0x53b   : > { %7326 = vmatpush1.bf16.msra.mxu0 %v7325_v6  ;;  %v2900_v6 = vld [vmem:[#allocation13 + $0x1c60] sm:$0xff] }
 0x53c   : > { %7454 = vmatpush1.bf16.msra.mxu1 %v7453_v7  ;;  %7328 = vmatprep.subr.bf16.mxu0 %v7327_v8  ;;  %v2894_v7 = vld [vmem:[#allocation13 + $0x1c30] sm:$0xff]  ;;  %v7471_v8 = vpack.c.bf16 %v2903_v63, %v2895_v62  ;;  %v7345_v15 = vpack.c.bf16 %v2900_v6, %v2892_v4  ;;  %v7359_v62 = vpack.c.bf16 %v2965_v57, %v2957_v56  ;;  %v2956_v63 = vld [vmem:[#allocation13 + $0x1e20] sm:$0xff]  ;;  %v2973_v6 = vld [vmem:[#allocation13 + $0x1ea8] sm:$0xff] }
 0x53d   : > { %7456 = vmatprep.subr.bf16.mxu1 %v7455_v12  ;;  %v2911_v12 = vld [vmem:[#allocation13 + $0x1cb8] sm:$0xff]  ;;  %v7473_v17 = vpack.c.bf16 %v2902_v9, %v2894_v7  ;;  %v2966_v4 = vld [vmem:[#allocation13 + $0x1e70] sm:$0xff]  ;;  %v2981_v7 = vld [vmem:[#allocation13 + $0x1ee8] sm:$0xff] }
 0x53e   : > { %v2983_v9 = vld [vmem:[#allocation13 + $0x1ef8] sm:$0xff] }
 0x53f   : > { %7330 = vmatpush1.bf16.msra.mxu0 %v7329_v20  ;;  %v2916_v20 = vld [vmem:[#allocation13 + $0x1ce0] sm:$0xff] }
 0x540   : > { %7458 = vmatpush1.bf16.msra.mxu1 %v7457_v21  ;;  %7332 = vmatprep.subr.bf16.mxu0 %v7331_v22  ;;  %v2910_v21 = vld [vmem:[#allocation13 + $0x1cb0] sm:$0xff]  ;;  %v7475_v22 = vpack.c.bf16 %v2919_v13, %v2911_v12  ;;  %v7349_v29 = vpack.c.bf16 %v2916_v20, %v2908_v19  ;;  %v7363_v12 = vpack.c.bf16 %v2981_v7, %v2973_v6  ;;  %v2972_v13 = vld [vmem:[#allocation13 + $0x1ea0] sm:$0xff]  ;;  %v2989_v20 = vld [vmem:[#allocation13 + $0x1f28] sm:$0xff] }
 0x541   : > { %7460 = vmatprep.subr.bf16.mxu1 %v7459_v27  ;;  %v2927_v27 = vld [vmem:[#allocation13 + $0x1d38] sm:$0xff]  ;;  %v7477_v30 = vpack.c.bf16 %v2918_v23, %v2910_v21  ;;  %v2982_v19 = vld [vmem:[#allocation13 + $0x1ef0] sm:$0xff]  ;;  %v2997_v21 = vld [vmem:[#allocation13 + $0x1f68] sm:$0xff] }
 0x542   : > { %v2999_v23 = vld [vmem:[#allocation13 + $0x1f78] sm:$0xff] }
 0x543   : > { %7334 = vmatpush1.bf16.msra.mxu0 %v7333_v34  ;;  %v2932_v34 = vld [vmem:[#allocation13 + $0x1d60] sm:$0xff]  ;;  %v2018_v6 = vld [vmem:[#allocation13 + $0xd8] sm:$0xff] }
 0x544   : > { %7462 = vmatpush1.bf16.msra.mxu1 %v7461_v35  ;;  %7336 = vmatprep.subr.bf16.mxu0 %v7335_v36  ;;  %v2926_v35 = vld [vmem:[#allocation13 + $0x1d30] sm:$0xff]  ;;  %v7479_v36 = vpack.c.bf16 %v2935_v28, %v2927_v27  ;;  %v7353_v47 = vpack.c.bf16 %v2932_v34, %v2924_v33  ;;  %v7367_v27 = vpack.c.bf16 %v2997_v21, %v2989_v20  ;;  %v2988_v28 = vld [vmem:[#allocation13 + $0x1f20] sm:$0xff]  ;;  %v3005_v34 = vld [vmem:[#allocation13 + $0x1fa8] sm:$0xff] }
 0x545   : > { %7464 = vmatprep.subr.bf16.mxu1 %v7463_v45  ;;  %v2943_v45 = vld [vmem:[#allocation13 + $0x1db8] sm:$0xff]  ;;  %v7481_v49 = vpack.c.bf16 %v2934_v37, %v2926_v35  ;;  %v2998_v33 = vld [vmem:[#allocation13 + $0x1f70] sm:$0xff]  ;;  %v3013_v35 = vld [vmem:[#allocation13 + $0x1fe8] sm:$0xff] }
 0x546   : > { %v3015_v37 = vld [vmem:[#allocation13 + $0x1ff8] sm:$0xff] }
 0x547   : > { %7338 = vmatpush1.bf16.msra.mxu0 %v7337_v52  ;;  %v2948_v52 = vld [vmem:[#allocation13 + $0x1de0] sm:$0xff]  ;;  %v2034_v20 = vld [vmem:[#allocation13 + $0x158] sm:$0xff] }
 0x548   : > { %7466 = vmatpush1.bf16.msra.mxu1 %v7465_v53  ;;  %7340 = vmatprep.subr.bf16.mxu0 %v7339_v54  ;;  %v2942_v53 = vld [vmem:[#allocation13 + $0x1db0] sm:$0xff]  ;;  %v7483_v54 = vpack.c.bf16 %v2951_v46, %v2943_v45  ;;  %v7357_v51 = vpack.c.bf16 %v2948_v52, %v2940_v31  ;;  %v7371_v45 = vpack.c.bf16 %v3013_v35, %v3005_v34  ;;  %v3004_v46 = vld [vmem:[#allocation13 + $0x1fa0] sm:$0xff]  ;;  %v1992_v52 = vld [vmem:[#allocation13 + $0x8] sm:$0xff] }
 0x549   : > { %7468 = vmatprep.subr.bf16.mxu1 %v7467_v59  ;;  %v2959_v59 = vld [vmem:[#allocation13 + $0x1e38] sm:$0xff]  ;;  %v7485_v61 = vpack.c.bf16 %v2950_v55, %v2942_v53  ;;  %v3014_v31 = vld [vmem:[#allocation13 + $0x1ff0] sm:$0xff]  ;;  %v2000_v53 = vld [vmem:[#allocation13 + $0x48] sm:$0xff] }
 0x54a   : > { %v2002_v55 = vld [vmem:[#allocation13 + $0x58] sm:$0xff] }
 0x54b   : > { %7342 = vmatpush1.bf16.msra.mxu0 %v7341_v1  ;;  %v2964_v1 = vld [vmem:[#allocation13 + $0x1e60] sm:$0xff]  ;;  %v2050_v34 = vld [vmem:[#allocation13 + $0x1d8] sm:$0xff] }
 0x54c   : > { %7470 = vmatpush1.bf16.msra.mxu1 %v7469_v2  ;;  %7344 = vmatprep.subr.bf16.mxu0 %v7343_v3  ;;  %v2958_v2 = vld [vmem:[#allocation13 + $0x1e30] sm:$0xff]  ;;  %v7487_v3 = vpack.c.bf16 %v2967_v60, %v2959_v59  ;;  %v7361_v10 = vpack.c.bf16 %v2964_v1, %v2956_v63  ;;  %v7503_v59 = vpack.c.bf16 %v2000_v53, %v1992_v52  ;;  %v1991_v60 = vld [vmem:[#allocation13] sm:$0xff]  ;;  %v2008_v1 = vld [vmem:[#allocation13 + $0x88] sm:$0xff] }
 0x54d   : > { %7472 = vmatprep.subr.bf16.mxu1 %v7471_v8  ;;  %v2975_v8 = vld [vmem:[#allocation13 + $0x1eb8] sm:$0xff]  ;;  %v7489_v11 = vpack.c.bf16 %v2966_v4, %v2958_v2  ;;  %v2001_v63 = vld [vmem:[#allocation13 + $0x50] sm:$0xff]  ;;  %v2016_v2 = vld [vmem:[#allocation13 + $0xc8] sm:$0xff] }
 0x54e   : > { %v2010_v4 = vld [vmem:[#allocation13 + $0x98] sm:$0xff] }
 0x54f   : > { %7346 = vmatpush1.bf16.msra.mxu0 %v7345_v15  ;;  %v2980_v15 = vld [vmem:[#allocation13 + $0x1ee0] sm:$0xff]  ;;  %v2066_v52 = vld [vmem:[#allocation13 + $0x258] sm:$0xff] }
 0x550   : > { %7474 = vmatpush1.bf16.msra.mxu1 %v7473_v17  ;;  %7348 = vmatprep.subr.bf16.mxu0 %v7347_v18  ;;  %v2974_v17 = vld [vmem:[#allocation13 + $0x1eb0] sm:$0xff]  ;;  %v7491_v18 = vpack.c.bf16 %v2983_v9, %v2975_v8  ;;  %v7365_v24 = vpack.c.bf16 %v2980_v15, %v2972_v13  ;;  %v2007_v8 = vld [vmem:[#allocation13 + $0x80] sm:$0xff]  ;;  %v2024_v13 = vld [vmem:[#allocation13 + $0x108] sm:$0xff] }
 0x551   : > { %7476 = vmatprep.subr.bf16.mxu1 %v7475_v22  ;;  %v2991_v22 = vld [vmem:[#allocation13 + $0x1f38] sm:$0xff]  ;;  %v7493_v25 = vpack.c.bf16 %v2982_v19, %v2974_v17  ;;  %v2015_v9 = vld [vmem:[#allocation13 + $0xc0] sm:$0xff]  ;;  %v2032_v15 = vld [vmem:[#allocation13 + $0x148] sm:$0xff]  ;;  %v10085_v17 = vrot.slane %v10060_v0, 7 }
 0x552   : > { %v2026_v19 = vld [vmem:[#allocation13 + $0x118] sm:$0xff]  ;;  %v7509_v21 = vpack.c.bf16 %v2015_v9, %v2007_v8  ;;  %v2073_v8 = vld [vmem:[#allocation13 + $0x290] sm:$0xff] }
 0x553   : > { %7350 = vmatpush1.bf16.msra.mxu0 %v7349_v29  ;;  %v2996_v29 = vld [vmem:[#allocation13 + $0x1f60] sm:$0xff] }
 0x554   : > { %7478 = vmatpush1.bf16.msra.mxu1 %v7477_v30  ;;  %7352 = vmatprep.subr.bf16.mxu0 %v7351_v32  ;;  %v2990_v30 = vld [vmem:[#allocation13 + $0x1f30] sm:$0xff]  ;;  %v7495_v32 = vpack.c.bf16 %v2999_v23, %v2991_v22  ;;  %v7369_v41 = vpack.c.bf16 %v2996_v29, %v2988_v28  ;;  %v7511_v23 = vpack.c.bf16 %v2032_v15, %v2024_v13  ;;  %v2090_v13 = vld [vmem:[#allocation13 + $0x318] sm:$0xff] }
 0x555   : > { %7480 = vmatprep.subr.bf16.mxu1 %v7479_v36  ;;  %v3007_v36 = vld [vmem:[#allocation13 + $0x1fb8] sm:$0xff]  ;;  %v7497_v44 = vpack.c.bf16 %v2998_v33, %v2990_v30  ;;  %v7639_v28 = vpack.c.bf16 %v2034_v20, %v2026_v19  ;;  %v2033_v29 = vld [vmem:[#allocation13 + $0x150] sm:$0xff]  ;;  %v2040_v30 = vld [vmem:[#allocation13 + $0x188] sm:$0xff] }
 0x556   : > { %v2042_v33 = vld [vmem:[#allocation13 + $0x198] sm:$0xff] }
 0x557   : > { %7354 = vmatpush1.bf16.msra.mxu0 %v7353_v47  ;;  %v3012_v47 = vld [vmem:[#allocation13 + $0x1fe0] sm:$0xff]  ;;  %v2098_v15 = vld [vmem:[#allocation13 + $0x358] sm:$0xff] }
 0x558   : > { %7482 = vmatpush1.bf16.msra.mxu1 %v7481_v49  ;;  %7356 = vmatprep.subr.bf16.mxu0 %v7355_v50  ;;  %v3006_v49 = vld [vmem:[#allocation13 + $0x1fb0] sm:$0xff]  ;;  %v7499_v50 = vpack.c.bf16 %v3015_v37, %v3007_v36  ;;  %v7373_v56 = vpack.c.bf16 %v3012_v47, %v3004_v46  ;;  %v7643_v46 = vpack.c.bf16 %v2050_v34, %v2042_v33 }
 0x559   : > { %7484 = vmatprep.subr.bf16.mxu1 %v7483_v54  ;;  %v1994_v54 = vld [vmem:[#allocation13 + $0x18] sm:$0xff]  ;;  %v7501_v57 = vpack.c.bf16 %v3014_v31, %v3006_v49  ;;  %v2049_v47 = vld [vmem:[#allocation13 + $0x1d0] sm:$0xff]  ;;  %v2056_v49 = vld [vmem:[#allocation13 + $0x208] sm:$0xff] }
 0x55a   : > { %v2058_v31 = vld [vmem:[#allocation13 + $0x218] sm:$0xff] }
 0x55b   : > { %7358 = vmatpush1.bf16.msra.mxu0 %v7357_v51  ;;  %v1999_v51 = vld [vmem:[#allocation13 + $0x40] sm:$0xff] }
 0x55c   : > { %7486 = vmatpush1.bf16.msra.mxu1 %v7485_v61  ;;  %7360 = vmatprep.subr.bf16.mxu0 %v7359_v62  ;;  %v7631_v61 = vpack.c.bf16 %v2002_v55, %v1994_v54  ;;  %v1993_v62 = vld [vmem:[#allocation13 + $0x10] sm:$0xff] }
 0x55d   : > { %7488 = vmatprep.subr.bf16.mxu1 %v7487_v3  ;;  %v7505_v3 = vpack.c.bf16 %v1999_v51, %v1991_v60  ;;  %v7633_v7 = vpack.c.bf16 %v2001_v63, %v1993_v62  ;;  %v7647_v60 = vpack.c.bf16 %v2066_v52, %v2058_v31  ;;  %v2065_v51 = vld [vmem:[#allocation13 + $0x250] sm:$0xff]  ;;  %v2080_v62 = vld [vmem:[#allocation13 + $0x2c8] sm:$0xff]  ;;  %v2074_v63 = vld [vmem:[#allocation13 + $0x298] sm:$0xff] }
 0x55f   : > { %7362 = vmatpush1.bf16.msra.mxu0 %v7361_v10  ;;  %v2009_v10 = vld [vmem:[#allocation13 + $0x90] sm:$0xff] }
 0x560   : > { %7490 = vmatpush1.bf16.msra.mxu1 %v7489_v11  ;;  %7364 = vmatprep.subr.bf16.mxu0 %v7363_v12  ;;  %v7507_v11 = vpack.c.bf16 %v2016_v2, %v2008_v1  ;;  %v2017_v12 = vld [vmem:[#allocation13 + $0xd0] sm:$0xff]  ;;  %v2082_v1 = vld [vmem:[#allocation13 + $0x2d8] sm:$0xff] }
 0x561   : > { %7492 = vmatprep.subr.bf16.mxu1 %v7491_v18  ;;  %v7635_v18 = vpack.c.bf16 %v2018_v6, %v2010_v4  ;;  %v7637_v22 = vpack.c.bf16 %v2017_v12, %v2009_v10  ;;  %v2071_v6 = vld [vmem:[#allocation13 + $0x280] sm:$0xff]  ;;  %v7651_v9 = vpack.c.bf16 %v2082_v1, %v2074_v63  ;;  %v2081_v10 = vld [vmem:[#allocation13 + $0x2d0] sm:$0xff]  ;;  %v2096_v12 = vld [vmem:[#allocation13 + $0x348] sm:$0xff] }
 0x562   : > { %v7653_v19 = vpack.c.bf16 %v2081_v10, %v2073_v8  ;;  %v2152_v8 = vld [vmem:[#allocation13 + $0x508] sm:$0xff]  ;;  %v2154_v10 = vld [vmem:[#allocation13 + $0x518] sm:$0xff] }
 0x563   : > { %7366 = vmatpush1.bf16.msra.mxu0 %v7365_v24  ;;  %v2023_v24 = vld [vmem:[#allocation13 + $0x100] sm:$0xff] }
 0x564   : > { %7494 = vmatpush1.bf16.msra.mxu1 %v7493_v25  ;;  %7368 = vmatprep.subr.bf16.mxu0 %v7367_v27  ;;  %v2031_v25 = vld [vmem:[#allocation13 + $0x140] sm:$0xff]  ;;  %v2025_v27 = vld [vmem:[#allocation13 + $0x110] sm:$0xff] }
 0x565   : > { %7496 = vmatprep.subr.bf16.mxu1 %v7495_v32  ;;  %v2048_v32 = vld [vmem:[#allocation13 + $0x1c8] sm:$0xff]  ;;  %v7513_v35 = vpack.c.bf16 %v2031_v25, %v2023_v24  ;;  %v7641_v36 = vpack.c.bf16 %v2033_v29, %v2025_v27  ;;  %v7655_v24 = vpack.c.bf16 %v2098_v15, %v2090_v13  ;;  %v2097_v25 = vld [vmem:[#allocation13 + $0x350] sm:$0xff]  ;;  %v2106_v29 = vld [vmem:[#allocation13 + $0x398] sm:$0xff] }
 0x566   : > { %v7515_v37 = vpack.c.bf16 %v2048_v32, %v2040_v30  ;;  %v2104_v27 = vld [vmem:[#allocation13 + $0x388] sm:$0xff]  ;;  %v2114_v30 = vld [vmem:[#allocation13 + $0x3d8] sm:$0xff] }
 0x567   : > { %7370 = vmatpush1.bf16.msra.mxu0 %v7369_v41  ;;  %v2039_v41 = vld [vmem:[#allocation13 + $0x180] sm:$0xff] }
 0x568   : > { %7498 = vmatpush1.bf16.msra.mxu1 %v7497_v44  ;;  %7372 = vmatprep.subr.bf16.mxu0 %v7371_v45  ;;  %v2047_v44 = vld [vmem:[#allocation13 + $0x1c0] sm:$0xff]  ;;  %v2041_v45 = vld [vmem:[#allocation13 + $0x190] sm:$0xff] }
 0x569   : > { %7500 = vmatprep.subr.bf16.mxu1 %v7499_v50  ;;  %v2064_v50 = vld [vmem:[#allocation13 + $0x248] sm:$0xff]  ;;  %v7517_v53 = vpack.c.bf16 %v2047_v44, %v2039_v41  ;;  %v7645_v54 = vpack.c.bf16 %v2049_v47, %v2041_v45  ;;  %v7659_v41 = vpack.c.bf16 %v2114_v30, %v2106_v29  ;;  %v2113_v44 = vld [vmem:[#allocation13 + $0x3d0] sm:$0xff]  ;;  %v2122_v47 = vld [vmem:[#allocation13 + $0x418] sm:$0xff] }
 0x56a   : > { %v7519_v55 = vpack.c.bf16 %v2064_v50, %v2056_v49  ;;  %v2120_v45 = vld [vmem:[#allocation13 + $0x408] sm:$0xff]  ;;  %v2130_v49 = vld [vmem:[#allocation13 + $0x458] sm:$0xff] }
 0x56b   : > { %7374 = vmatpush1.bf16.msra.mxu0 %v7373_v56  ;;  %v2055_v56 = vld [vmem:[#allocation13 + $0x200] sm:$0xff] }
 0x56c   : > { %7502 = vmatpush1.bf16.msra.mxu1 %v7501_v57  ;;  %7504 = vmatprep.subr.bf16.mxu0 %v7503_v59  ;;  %v2063_v57 = vld [vmem:[#allocation13 + $0x240] sm:$0xff]  ;;  %v2057_v59 = vld [vmem:[#allocation13 + $0x210] sm:$0xff] }
 0x56d   : > { %7632 = vmatprep.subr.bf16.mxu1 %v7631_v61  ;;  %v2072_v61 = vld [vmem:[#allocation13 + $0x288] sm:$0xff]  ;;  %v7521_v2 = vpack.c.bf16 %v2063_v57, %v2055_v56  ;;  %v7663_v56 = vpack.c.bf16 %v2130_v49, %v2122_v47  ;;  %v2129_v57 = vld [vmem:[#allocation13 + $0x450] sm:$0xff] }
 0x56e   : > { %3436 = vmatmul.mubr.f32.vlgmr.msra.gmra.mrb[6].mxu0 %v10073_v48  ;;  %v7523_v4 = vpack.c.bf16 %v2080_v62, %v2072_v61  ;;  %v2146_v61 = vld [vmem:[#allocation13 + $0x4d8] sm:$0xff] }
 0x56f   : > { %3578 = vmatmul.mubr.f32.vlgmr.msra.gmra.mrb[10].mxu1 %v10073_v48  ;;  %7506 = vmatpush1.bf16.msra.mxu0 %v7505_v3  ;;  %v7649_v3 = vpack.c.bf16 %v2065_v51, %v2057_v59  ;;  %v2136_v59 = vld [vmem:[#allocation13 + $0x488] sm:$0xff]  ;;  %v2138_v51 = vld [vmem:[#allocation13 + $0x498] sm:$0xff] }
 0x570   : > { %6358 = vmatprep.mubr.msk.f32.mxu0 %vm10027_vm10, %v10085_v17  ;;  %7634 = vmatpush1.bf16.msra.mxu1 %v7633_v7  ;;  %v2079_v7 = vld [vmem:[#allocation13 + $0x2c0] sm:$0xff] }
 0x571   : > { %6366 = vmatprep.mubr.msk.f32.mxu1 %vm10027_vm10, %v10085_v17  ;;  %7508 = vmatprep.subr.bf16.mxu0 %v7507_v11  ;;  %v2088_v11 = vld [vmem:[#allocation13 + $0x308] sm:$0xff] }
 0x572   : > { %7636 = vmatprep.subr.bf16.mxu1 %v7635_v18  ;;  %v7525_v18 = vpack.c.bf16 %v2079_v7, %v2071_v6  ;;  %v7527_v20 = vpack.c.bf16 %v2096_v12, %v2088_v11  ;;  %v7667_v6 = vpack.c.bf16 %v2146_v61, %v2138_v51  ;;  %v2145_v7 = vld [vmem:[#allocation13 + $0x4d0] sm:$0xff]  ;;  %v2162_v11 = vld [vmem:[#allocation13 + $0x558] sm:$0xff] }
 0x573   : > { %7510 = vmatpush1.bf16.msra.mxu0 %v7509_v21  ;;  %v2087_v21 = vld [vmem:[#allocation13 + $0x300] sm:$0xff] }
 0x574   : > { %7638 = vmatpush1.bf16.msra.mxu1 %v7637_v22  ;;  %7512 = vmatprep.subr.bf16.mxu0 %v7511_v23  ;;  %v2095_v22 = vld [vmem:[#allocation13 + $0x340] sm:$0xff]  ;;  %v2089_v23 = vld [vmem:[#allocation13 + $0x310] sm:$0xff] }
 0x575   : > { %7640 = vmatprep.subr.bf16.mxu1 %v7639_v28  ;;  %v2112_v28 = vld [vmem:[#allocation13 + $0x3c8] sm:$0xff]  ;;  %v7529_v32 = vpack.c.bf16 %v2095_v22, %v2087_v21  ;;  %v7657_v33 = vpack.c.bf16 %v2097_v25, %v2089_v23  ;;  %v7671_v21 = vpack.c.bf16 %v2162_v11, %v2154_v10  ;;  %v2161_v22 = vld [vmem:[#allocation13 + $0x550] sm:$0xff]  ;;  %v2170_v25 = vld [vmem:[#allocation13 + $0x598] sm:$0xff] }
 0x576   : > { %v7531_v34 = vpack.c.bf16 %v2112_v28, %v2104_v27  ;;  %v2168_v23 = vld [vmem:[#allocation13 + $0x588] sm:$0xff]  ;;  %v2178_v27 = vld [vmem:[#allocation13 + $0x5d8] sm:$0xff] }
 0x577   : > { %7514 = vmatpush1.bf16.msra.mxu0 %v7513_v35  ;;  %v2103_v35 = vld [vmem:[#allocation13 + $0x380] sm:$0xff] }
 0x578   : > { %7642 = vmatpush1.bf16.msra.mxu1 %v7641_v36  ;;  %7516 = vmatprep.subr.bf16.mxu0 %v7515_v37  ;;  %v2111_v36 = vld [vmem:[#allocation13 + $0x3c0] sm:$0xff]  ;;  %v2105_v37 = vld [vmem:[#allocation13 + $0x390] sm:$0xff] }
 0x579   : > { %7644 = vmatprep.subr.bf16.mxu1 %v7643_v46  ;;  %v2128_v46 = vld [vmem:[#allocation13 + $0x448] sm:$0xff]  ;;  %v7533_v50 = vpack.c.bf16 %v2111_v36, %v2103_v35  ;;  %v7661_v31 = vpack.c.bf16 %v2113_v44, %v2105_v37  ;;  %v7675_v35 = vpack.c.bf16 %v2178_v27, %v2170_v25  ;;  %v2177_v36 = vld [vmem:[#allocation13 + $0x5d0] sm:$0xff]  ;;  %v2186_v44 = vld [vmem:[#allocation13 + $0x618] sm:$0xff] }
 0x57a   : > { %v7535_v52 = vpack.c.bf16 %v2128_v46, %v2120_v45  ;;  %v2184_v37 = vld [vmem:[#allocation13 + $0x608] sm:$0xff]  ;;  %v2194_v45 = vld [vmem:[#allocation13 + $0x658] sm:$0xff] }
 0x57b   : > { %7518 = vmatpush1.bf16.msra.mxu0 %v7517_v53  ;;  %v2119_v53 = vld [vmem:[#allocation13 + $0x400] sm:$0xff] }
 0x57c   : > { %7646 = vmatpush1.bf16.msra.mxu1 %v7645_v54  ;;  %7520 = vmatprep.subr.bf16.mxu0 %v7519_v55  ;;  %v2127_v54 = vld [vmem:[#allocation13 + $0x440] sm:$0xff]  ;;  %v2121_v55 = vld [vmem:[#allocation13 + $0x410] sm:$0xff] }
 0x57d   : > { %7648 = vmatprep.subr.bf16.mxu1 %v7647_v60  ;;  %v2144_v60 = vld [vmem:[#allocation13 + $0x4c8] sm:$0xff]  ;;  %v7537_v62 = vpack.c.bf16 %v2127_v54, %v2119_v53  ;;  %v7665_v63 = vpack.c.bf16 %v2129_v57, %v2121_v55  ;;  %v7679_v53 = vpack.c.bf16 %v2194_v45, %v2186_v44  ;;  %v2193_v54 = vld [vmem:[#allocation13 + $0x650] sm:$0xff]  ;;  %v2202_v57 = vld [vmem:[#allocation13 + $0x698] sm:$0xff] }
 0x57e   : > { %v7539_v1 = vpack.c.bf16 %v2144_v60, %v2136_v59  ;;  %v2200_v55 = vld [vmem:[#allocation13 + $0x688] sm:$0xff]  ;;  %v2210_v59 = vld [vmem:[#allocation13 + $0x6d8] sm:$0xff] }
 0x57f   : > { %7522 = vmatpush1.bf16.msra.mxu0 %v7521_v2  ;;  %v2135_v2 = vld [vmem:[#allocation13 + $0x480] sm:$0xff] }
 0x580   : > { %7650 = vmatpush1.bf16.msra.mxu1 %v7649_v3  ;;  %7524 = vmatprep.subr.bf16.mxu0 %v7523_v4  ;;  %v2143_v3 = vld [vmem:[#allocation13 + $0x4c0] sm:$0xff]  ;;  %v2137_v4 = vld [vmem:[#allocation13 + $0x490] sm:$0xff] }
 0x581   : > { %7652 = vmatprep.subr.bf16.mxu1 %v7651_v9  ;;  %v2160_v9 = vld [vmem:[#allocation13 + $0x548] sm:$0xff]  ;;  %v7541_v12 = vpack.c.bf16 %v2143_v3, %v2135_v2  ;;  %v7669_v13 = vpack.c.bf16 %v2145_v7, %v2137_v4  ;;  %v7683_v2 = vpack.c.bf16 %v2210_v59, %v2202_v57  ;;  %v2209_v3 = vld [vmem:[#allocation13 + $0x6d0] sm:$0xff]  ;;  %v2218_v7 = vld [vmem:[#allocation13 + $0x718] sm:$0xff]  ;;  %v10095_v57 = vrot.slane %v10062_v5, 7 }
 0x582   : > { %v7543_v15 = vpack.c.bf16 %v2160_v9, %v2152_v8  ;;  %v2216_v4 = vld [vmem:[#allocation13 + $0x708] sm:$0xff]  ;;  %v2226_v8 = vld [vmem:[#allocation13 + $0x758] sm:$0xff] }
 0x583   : > { %7526 = vmatpush1.bf16.msra.mxu0 %v7525_v18  ;;  %v2151_v18 = vld [vmem:[#allocation13 + $0x500] sm:$0xff] }
 0x584   : > { %7654 = vmatpush1.bf16.msra.mxu1 %v7653_v19  ;;  %7528 = vmatprep.subr.bf16.mxu0 %v7527_v20  ;;  %v2159_v19 = vld [vmem:[#allocation13 + $0x540] sm:$0xff]  ;;  %v2153_v20 = vld [vmem:[#allocation13 + $0x510] sm:$0xff] }
 0x585   : > { %7656 = vmatprep.subr.bf16.mxu1 %v7655_v24  ;;  %v2176_v24 = vld [vmem:[#allocation13 + $0x5c8] sm:$0xff]  ;;  %v7545_v28 = vpack.c.bf16 %v2159_v19, %v2151_v18  ;;  %v7673_v29 = vpack.c.bf16 %v2161_v22, %v2153_v20  ;;  %v7687_v18 = vpack.c.bf16 %v2226_v8, %v2218_v7  ;;  %v2225_v19 = vld [vmem:[#allocation13 + $0x750] sm:$0xff]  ;;  %v2234_v22 = vld [vmem:[#allocation13 + $0x798] sm:$0xff] }
 0x586   : > { %v7547_v30 = vpack.c.bf16 %v2176_v24, %v2168_v23  ;;  %v2232_v20 = vld [vmem:[#allocation13 + $0x788] sm:$0xff]  ;;  %v2242_v23 = vld [vmem:[#allocation13 + $0x7d8] sm:$0xff] }
 0x587   : > { %7530 = vmatpush1.bf16.msra.mxu0 %v7529_v32  ;;  %v2167_v32 = vld [vmem:[#allocation13 + $0x580] sm:$0xff]  ;;  %v2290_v7 = vld [vmem:[#allocation13 + $0x958] sm:$0xff] }
 0x588   : > { %7658 = vmatpush1.bf16.msra.mxu1 %v7657_v33  ;;  %7532 = vmatprep.subr.bf16.mxu0 %v7531_v34  ;;  %v2175_v33 = vld [vmem:[#allocation13 + $0x5c0] sm:$0xff]  ;;  %v2169_v34 = vld [vmem:[#allocation13 + $0x590] sm:$0xff] }
 0x589   : > { %7660 = vmatprep.subr.bf16.mxu1 %v7659_v41  ;;  %v2192_v41 = vld [vmem:[#allocation13 + $0x648] sm:$0xff]  ;;  %v7549_v46 = vpack.c.bf16 %v2175_v33, %v2167_v32  ;;  %v7677_v47 = vpack.c.bf16 %v2177_v36, %v2169_v34  ;;  %v7691_v32 = vpack.c.bf16 %v2242_v23, %v2234_v22  ;;  %v2241_v33 = vld [vmem:[#allocation13 + $0x7d0] sm:$0xff]  ;;  %v2250_v36 = vld [vmem:[#allocation13 + $0x818] sm:$0xff] }
 0x58a   : > { %v7551_v49 = vpack.c.bf16 %v2192_v41, %v2184_v37  ;;  %v2248_v34 = vld [vmem:[#allocation13 + $0x808] sm:$0xff]  ;;  %v2258_v37 = vld [vmem:[#allocation13 + $0x858] sm:$0xff] }
 0x58b   : > { %7534 = vmatpush1.bf16.msra.mxu0 %v7533_v50  ;;  %v2183_v50 = vld [vmem:[#allocation13 + $0x600] sm:$0xff]  ;;  %v2306_v22 = vld [vmem:[#allocation13 + $0x9d8] sm:$0xff] }
 0x58c   : > { %7662 = vmatpush1.bf16.msra.mxu1 %v7661_v31  ;;  %7536 = vmatprep.subr.bf16.mxu0 %v7535_v52  ;;  %v2191_v31 = vld [vmem:[#allocation13 + $0x640] sm:$0xff]  ;;  %v2185_v52 = vld [vmem:[#allocation13 + $0x610] sm:$0xff] }
 0x58d   : > { %7664 = vmatprep.subr.bf16.mxu1 %v7663_v56  ;;  %v2208_v56 = vld [vmem:[#allocation13 + $0x6c8] sm:$0xff]  ;;  %v7553_v60 = vpack.c.bf16 %v2191_v31, %v2183_v50  ;;  %v7681_v51 = vpack.c.bf16 %v2193_v54, %v2185_v52  ;;  %v2249_v50 = vld [vmem:[#allocation13 + $0x810] sm:$0xff] }
 0x58e   : > { %v7555_v61 = vpack.c.bf16 %v2208_v56, %v2200_v55  ;;  %v2257_v31 = vld [vmem:[#allocation13 + $0x850] sm:$0xff]  ;;  %v2264_v52 = vld [vmem:[#allocation13 + $0x888] sm:$0xff]  ;;  %v2266_v55 = vld [vmem:[#allocation13 + $0x898] sm:$0xff] }
 0x58f   : > { %7538 = vmatpush1.bf16.msra.mxu0 %v7537_v62  ;;  %v2199_v62 = vld [vmem:[#allocation13 + $0x680] sm:$0xff]  ;;  %v2274_v56 = vld [vmem:[#allocation13 + $0x8d8] sm:$0xff]  ;;  %v7697_v59 = vpack.c.bf16 %v2257_v31, %v2249_v50  ;;  %v2321_v50 = vld [vmem:[#allocation13 + $0xa50] sm:$0xff] }
 0x590   : > { %7666 = vmatpush1.bf16.msra.mxu1 %v7665_v63  ;;  %7540 = vmatprep.subr.bf16.mxu0 %v7539_v1  ;;  %v2207_v63 = vld [vmem:[#allocation13 + $0x6c0] sm:$0xff]  ;;  %v2201_v1 = vld [vmem:[#allocation13 + $0x690] sm:$0xff]  ;;  %v2328_v31 = vld [vmem:[#allocation13 + $0xa88] sm:$0xff] }
 0x591   : > { %7668 = vmatprep.subr.bf16.mxu1 %v7667_v6  ;;  %v2224_v6 = vld [vmem:[#allocation13 + $0x748] sm:$0xff]  ;;  %v7557_v9 = vpack.c.bf16 %v2207_v63, %v2199_v62  ;;  %v7685_v10 = vpack.c.bf16 %v2209_v3, %v2201_v1  ;;  %v2273_v63 = vld [vmem:[#allocation13 + $0x8d0] sm:$0xff]  ;;  %v10101_v3 = vrot.slane %v10066_v14, 7 }
 0x592   : > { %v7559_v11 = vpack.c.bf16 %v2224_v6, %v2216_v4  ;;  %v2280_v1 = vld [vmem:[#allocation13 + $0x908] sm:$0xff]  ;;  %v7699_v4 = vpack.c.bf16 %v2274_v56, %v2266_v55  ;;  %v2282_v6 = vld [vmem:[#allocation13 + $0x918] sm:$0xff] }
 0x593   : > { %7542 = vmatpush1.bf16.msra.mxu0 %v7541_v12  ;;  %v2215_v12 = vld [vmem:[#allocation13 + $0x700] sm:$0xff] }
 0x594   : > { %7670 = vmatpush1.bf16.msra.mxu1 %v7669_v13  ;;  %7544 = vmatprep.subr.bf16.mxu0 %v7543_v15  ;;  %v2223_v13 = vld [vmem:[#allocation13 + $0x740] sm:$0xff]  ;;  %v2217_v15 = vld [vmem:[#allocation13 + $0x710] sm:$0xff] }
 0x595   : > { %7672 = vmatprep.subr.bf16.mxu1 %v7671_v21  ;;  %v2240_v21 = vld [vmem:[#allocation13 + $0x7c8] sm:$0xff]  ;;  %v7561_v24 = vpack.c.bf16 %v2223_v13, %v2215_v12  ;;  %v7689_v25 = vpack.c.bf16 %v2225_v19, %v2217_v15  ;;  %v2287_v12 = vld [vmem:[#allocation13 + $0x940] sm:$0xff]  ;;  %v2281_v13 = vld [vmem:[#allocation13 + $0x910] sm:$0xff]  ;;  %v7703_v15 = vpack.c.bf16 %v2290_v7, %v2282_v6 }
 0x596   : > { %v7563_v27 = vpack.c.bf16 %v2240_v21, %v2232_v20  ;;  %v2296_v19 = vld [vmem:[#allocation13 + $0x988] sm:$0xff]  ;;  %v2298_v21 = vld [vmem:[#allocation13 + $0x998] sm:$0xff] }
 0x597   : > { %7546 = vmatpush1.bf16.msra.mxu0 %v7545_v28  ;;  %v2231_v28 = vld [vmem:[#allocation13 + $0x780] sm:$0xff]  ;;  %v2304_v20 = vld [vmem:[#allocation13 + $0x9c8] sm:$0xff]  ;;  %v2354_v6 = vld [vmem:[#allocation13 + $0xb58] sm:$0xff] }
 0x598   : > { %7674 = vmatpush1.bf16.msra.mxu1 %v7673_v29  ;;  %7548 = vmatprep.subr.bf16.mxu0 %v7547_v30  ;;  %v2239_v29 = vld [vmem:[#allocation13 + $0x7c0] sm:$0xff]  ;;  %v2233_v30 = vld [vmem:[#allocation13 + $0x790] sm:$0xff] }
 0x599   : > { %7676 = vmatprep.subr.bf16.mxu1 %v7675_v35  ;;  %v2256_v35 = vld [vmem:[#allocation13 + $0x848] sm:$0xff]  ;;  %v7565_v41 = vpack.c.bf16 %v2239_v29, %v2231_v28  ;;  %v7693_v44 = vpack.c.bf16 %v2241_v33, %v2233_v30  ;;  %v2303_v28 = vld [vmem:[#allocation13 + $0x9c0] sm:$0xff]  ;;  %v2297_v29 = vld [vmem:[#allocation13 + $0x990] sm:$0xff]  ;;  %v7707_v30 = vpack.c.bf16 %v2306_v22, %v2298_v21 }
 0x59a   : > { %v7567_v45 = vpack.c.bf16 %v2256_v35, %v2248_v34  ;;  %v2312_v33 = vld [vmem:[#allocation13 + $0xa08] sm:$0xff]  ;;  %v2314_v35 = vld [vmem:[#allocation13 + $0xa18] sm:$0xff] }
 0x59b   : > { %7550 = vmatpush1.bf16.msra.mxu0 %v7549_v46  ;;  %v2247_v46 = vld [vmem:[#allocation13 + $0x800] sm:$0xff]  ;;  %v2320_v34 = vld [vmem:[#allocation13 + $0xa48] sm:$0xff]  ;;  %v2370_v21 = vld [vmem:[#allocation13 + $0xbd8] sm:$0xff] }
 0x59c   : > { %7678 = vmatpush1.bf16.msra.mxu1 %v7677_v47  ;;  %7552 = vmatprep.subr.bf16.mxu0 %v7551_v49  ;;  %v2255_v47 = vld [vmem:[#allocation13 + $0x840] sm:$0xff]  ;;  %v7695_v49 = vpack.c.bf16 %v2258_v37, %v2250_v36  ;;  %v2322_v36 = vld [vmem:[#allocation13 + $0xa58] sm:$0xff] }
 0x59d   : > { %7680 = vmatprep.subr.bf16.mxu1 %v7679_v53  ;;  %v2272_v53 = vld [vmem:[#allocation13 + $0x8c8] sm:$0xff]  ;;  %v7569_v54 = vpack.c.bf16 %v2255_v47, %v2247_v46  ;;  %v2319_v46 = vld [vmem:[#allocation13 + $0xa40] sm:$0xff]  ;;  %v2313_v47 = vld [vmem:[#allocation13 + $0xa10] sm:$0xff] }
 0x59e   : > { %v7571_v62 = vpack.c.bf16 %v2272_v53, %v2264_v52  ;;  %v2336_v52 = vld [vmem:[#allocation13 + $0xac8] sm:$0xff]  ;;  %v2330_v53 = vld [vmem:[#allocation13 + $0xa98] sm:$0xff]  ;;  %v7713_v56 = vpack.c.bf16 %v2321_v50, %v2313_v47 }
 0x59f   : > { %7554 = vmatpush1.bf16.msra.mxu0 %v7553_v60  ;;  %v2263_v60 = vld [vmem:[#allocation13 + $0x880] sm:$0xff]  ;;  %v2392_v50 = vld [vmem:[#allocation13 + $0xc88] sm:$0xff] }
 0x5a0   : > { %7682 = vmatpush1.bf16.msra.mxu1 %v7681_v51  ;;  %7556 = vmatprep.subr.bf16.mxu0 %v7555_v61  ;;  %v2271_v51 = vld [vmem:[#allocation13 + $0x8c0] sm:$0xff]  ;;  %v2265_v61 = vld [vmem:[#allocation13 + $0x890] sm:$0xff] }
 0x5a1   : > { %7684 = vmatprep.subr.bf16.mxu1 %v7683_v2  ;;  %v2288_v2 = vld [vmem:[#allocation13 + $0x948] sm:$0xff]  ;;  %v7573_v8 = vpack.c.bf16 %v2271_v51, %v2263_v60  ;;  %v2327_v60 = vld [vmem:[#allocation13 + $0xa80] sm:$0xff] }
 0x5a2   : > { %v2335_v51 = vld [vmem:[#allocation13 + $0xac0] sm:$0xff] }
 0x5a3   : > { %7558 = vmatpush1.bf16.msra.mxu0 %v7557_v9  ;;  %v7701_v9 = vpack.c.bf16 %v2273_v63, %v2265_v61  ;;  %v2329_v61 = vld [vmem:[#allocation13 + $0xa90] sm:$0xff]  ;;  %v7589_v7 = vpack.c.bf16 %v2335_v51, %v2327_v60  ;;  %v2399_v60 = vld [vmem:[#allocation13 + $0xcc0] sm:$0xff] }
 0x5a4   : > { %7686 = vmatpush1.bf16.msra.mxu1 %v7685_v10  ;;  %7560 = vmatprep.subr.bf16.mxu0 %v7559_v11  ;;  %v7575_v10 = vpack.c.bf16 %v2288_v2, %v2280_v1  ;;  %v2279_v11 = vld [vmem:[#allocation13 + $0x900] sm:$0xff]  ;;  %v2337_v63 = vld [vmem:[#allocation13 + $0xad0] sm:$0xff]  ;;  %v2344_v1 = vld [vmem:[#allocation13 + $0xb08] sm:$0xff] }
 0x5a5   : > { %7688 = vmatprep.subr.bf16.mxu1 %v7687_v18  ;;  %v2289_v18 = vld [vmem:[#allocation13 + $0x950] sm:$0xff]  ;;  %v7577_v23 = vpack.c.bf16 %v2287_v12, %v2279_v11  ;;  %v2352_v2 = vld [vmem:[#allocation13 + $0xb48] sm:$0xff]  ;;  %v2351_v11 = vld [vmem:[#allocation13 + $0xb40] sm:$0xff] }
 0x5a6   : > { %v2345_v12 = vld [vmem:[#allocation13 + $0xb10] sm:$0xff] }
 0x5a7   : > { %7562 = vmatpush1.bf16.msra.mxu0 %v7561_v24  ;;  %v7705_v24 = vpack.c.bf16 %v2289_v18, %v2281_v13  ;;  %v2360_v18 = vld [vmem:[#allocation13 + $0xb88] sm:$0xff]  ;;  %v2393_v51 = vld [vmem:[#allocation13 + $0xc90] sm:$0xff] }
 0x5a8   : > { %7690 = vmatpush1.bf16.msra.mxu1 %v7689_v25  ;;  %7564 = vmatprep.subr.bf16.mxu0 %v7563_v27  ;;  %v7579_v25 = vpack.c.bf16 %v2304_v20, %v2296_v19  ;;  %v2295_v27 = vld [vmem:[#allocation13 + $0x980] sm:$0xff]  ;;  %v2368_v19 = vld [vmem:[#allocation13 + $0xbc8] sm:$0xff]  ;;  %v2362_v20 = vld [vmem:[#allocation13 + $0xb98] sm:$0xff] }
 0x5a9   : > { %7692 = vmatprep.subr.bf16.mxu1 %v7691_v32  ;;  %v2305_v32 = vld [vmem:[#allocation13 + $0x9d0] sm:$0xff]  ;;  %v7581_v37 = vpack.c.bf16 %v2303_v28, %v2295_v27  ;;  %v2367_v27 = vld [vmem:[#allocation13 + $0xbc0] sm:$0xff] }
 0x5aa   : > { %v2361_v28 = vld [vmem:[#allocation13 + $0xb90] sm:$0xff] }
 0x5ab   : > { %7566 = vmatpush1.bf16.msra.mxu0 %v7565_v41  ;;  %v7709_v41 = vpack.c.bf16 %v2305_v32, %v2297_v29  ;;  %v7723_v29 = vpack.c.bf16 %v2370_v21, %v2362_v20  ;;  %v2376_v32 = vld [vmem:[#allocation13 + $0xc08] sm:$0xff]  ;;  %v2434_v20 = vld [vmem:[#allocation13 + $0xdd8] sm:$0xff] }
 0x5ac   : > { %7694 = vmatpush1.bf16.msra.mxu1 %v7693_v44  ;;  %7568 = vmatprep.subr.bf16.mxu0 %v7567_v45  ;;  %v7583_v44 = vpack.c.bf16 %v2320_v34, %v2312_v33  ;;  %v2311_v45 = vld [vmem:[#allocation13 + $0xa00] sm:$0xff]  ;;  %v2384_v33 = vld [vmem:[#allocation13 + $0xc48] sm:$0xff]  ;;  %v2378_v34 = vld [vmem:[#allocation13 + $0xc18] sm:$0xff] }
 0x5ad   : > { %7696 = vmatprep.subr.bf16.mxu1 %v7695_v49  ;;  %v7711_v49 = vpack.c.bf16 %v2322_v36, %v2314_v35  ;;  %v7585_v55 = vpack.c.bf16 %v2319_v46, %v2311_v45  ;;  %v2386_v35 = vld [vmem:[#allocation13 + $0xc58] sm:$0xff]  ;;  %v2383_v45 = vld [vmem:[#allocation13 + $0xc40] sm:$0xff]  ;;  %v2377_v46 = vld [vmem:[#allocation13 + $0xc10] sm:$0xff] }
 0x5ae   : > { %6360 = vmatmul.mubr.msk.f32.vlgmr.msra.gmra.mrb[4].mxu0 %vm10027_vm10, %v10095_v57  ;;  %v7727_v47 = vpack.c.bf16 %v2386_v35, %v2378_v34  ;;  %v2450_v34 = vld [vmem:[#allocation13 + $0xe58] sm:$0xff] }
 0x5af   : > { %6368 = vmatmul.mubr.msk.f32.vlgmr.msra.gmra.mrb[8].mxu1 %vm10027_vm10, %v10095_v57  ;;  %7570 = vmatpush1.bf16.msra.mxu0 %v7569_v54  ;;  %v2338_v54 = vld [vmem:[#allocation13 + $0xad8] sm:$0xff] }
 0x5b0   : > { %6362 = vmatprep.mubr.msk.f32.mxu0 %vm10027_vm10, %v10101_v3  ;;  %7698 = vmatpush1.bf16.msra.mxu1 %v7697_v59  ;;  %v7587_v59 = vpack.c.bf16 %v2336_v52, %v2328_v31  ;;  %v2400_v31 = vld [vmem:[#allocation13 + $0xcc8] sm:$0xff]  ;;  %v2394_v52 = vld [vmem:[#allocation13 + $0xc98] sm:$0xff] }
 0x5b1   : > { %6370 = vmatprep.mubr.msk.f32.mxu1 %vm10027_vm10, %v10101_v3  ;;  %7572 = vmatprep.subr.bf16.mxu0 %v7571_v62  ;;  %v7715_v62 = vpack.c.bf16 %v2338_v54, %v2330_v53  ;;  %v2402_v53 = vld [vmem:[#allocation13 + $0xcd8] sm:$0xff] }
 0x5b2   : > { %7700 = vmatprep.subr.bf16.mxu1 %v7699_v4  ;;  %v2346_v4 = vld [vmem:[#allocation13 + $0xb18] sm:$0xff] }
 0x5b3   : > { %7574 = vmatpush1.bf16.msra.mxu0 %v7573_v8  ;;  %v7717_v8 = vpack.c.bf16 %v2337_v63, %v2329_v61  ;;  %v7719_v13 = vpack.c.bf16 %v2354_v6, %v2346_v4  ;;  %v7731_v61 = vpack.c.bf16 %v2402_v53, %v2394_v52  ;;  %v2408_v63 = vld [vmem:[#allocation13 + $0xd08] sm:$0xff]  ;;  %v2418_v4 = vld [vmem:[#allocation13 + $0xd58] sm:$0xff] }
 0x5b4   : > { %7702 = vmatpush1.bf16.msra.mxu1 %v7701_v9  ;;  %7576 = vmatprep.subr.bf16.mxu0 %v7575_v10  ;;  %v7591_v9 = vpack.c.bf16 %v2352_v2, %v2344_v1  ;;  %v2343_v10 = vld [vmem:[#allocation13 + $0xb00] sm:$0xff]  ;;  %v2416_v1 = vld [vmem:[#allocation13 + $0xd48] sm:$0xff]  ;;  %v2410_v2 = vld [vmem:[#allocation13 + $0xd18] sm:$0xff] }
 0x5b5   : > { %7704 = vmatprep.subr.bf16.mxu1 %v7703_v15  ;;  %v2353_v15 = vld [vmem:[#allocation13 + $0xb50] sm:$0xff]  ;;  %v7593_v22 = vpack.c.bf16 %v2351_v11, %v2343_v10  ;;  %v2415_v10 = vld [vmem:[#allocation13 + $0xd40] sm:$0xff]  ;;  %v2466_v52 = vld [vmem:[#allocation13 + $0xed8] sm:$0xff] }
 0x5b6   : > { %v2409_v11 = vld [vmem:[#allocation13 + $0xd10] sm:$0xff] }
 0x5b7   : > { %7578 = vmatpush1.bf16.msra.mxu0 %v7577_v23  ;;  %v7721_v23 = vpack.c.bf16 %v2353_v15, %v2345_v12  ;;  %v7735_v12 = vpack.c.bf16 %v2418_v4, %v2410_v2  ;;  %v2424_v15 = vld [vmem:[#allocation13 + $0xd88] sm:$0xff]  ;;  %v2482_v2 = vld [vmem:[#allocation13 + $0xf58] sm:$0xff] }
 0x5b8   : > { %7706 = vmatpush1.bf16.msra.mxu1 %v7705_v24  ;;  %7580 = vmatprep.subr.bf16.mxu0 %v7579_v25  ;;  %v7595_v24 = vpack.c.bf16 %v2368_v19, %v2360_v18  ;;  %v2359_v25 = vld [vmem:[#allocation13 + $0xb80] sm:$0xff]  ;;  %v2432_v18 = vld [vmem:[#allocation13 + $0xdc8] sm:$0xff]  ;;  %v2426_v19 = vld [vmem:[#allocation13 + $0xd98] sm:$0xff] }
 0x5b9   : > { %7708 = vmatprep.subr.bf16.mxu1 %v7707_v30  ;;  %v2369_v30 = vld [vmem:[#allocation13 + $0xbd0] sm:$0xff]  ;;  %v7597_v36 = vpack.c.bf16 %v2367_v27, %v2359_v25  ;;  %v2431_v25 = vld [vmem:[#allocation13 + $0xdc0] sm:$0xff] }
 0x5ba   : > { %v2425_v27 = vld [vmem:[#allocation13 + $0xd90] sm:$0xff] }
 0x5bb   : > { %7582 = vmatpush1.bf16.msra.mxu0 %v7581_v37  ;;  %v7725_v37 = vpack.c.bf16 %v2369_v30, %v2361_v28  ;;  %v7739_v28 = vpack.c.bf16 %v2434_v20, %v2426_v19  ;;  %v2440_v30 = vld [vmem:[#allocation13 + $0xe08] sm:$0xff]  ;;  %v2498_v19 = vld [vmem:[#allocation13 + $0xfd8] sm:$0xff] }
 0x5bc   : > { %7710 = vmatpush1.bf16.msra.mxu1 %v7709_v41  ;;  %7584 = vmatprep.subr.bf16.mxu0 %v7583_v44  ;;  %v7599_v41 = vpack.c.bf16 %v2384_v33, %v2376_v32  ;;  %v2375_v44 = vld [vmem:[#allocation13 + $0xc00] sm:$0xff]  ;;  %v2448_v32 = vld [vmem:[#allocation13 + $0xe48] sm:$0xff]  ;;  %v2442_v33 = vld [vmem:[#allocation13 + $0xe18] sm:$0xff] }
 0x5bd   : > { %7712 = vmatprep.subr.bf16.mxu1 %v7711_v49  ;;  %v2385_v49 = vld [vmem:[#allocation13 + $0xc50] sm:$0xff]  ;;  %v7601_v54 = vpack.c.bf16 %v2383_v45, %v2375_v44  ;;  %v2447_v44 = vld [vmem:[#allocation13 + $0xe40] sm:$0xff] }
 0x5be   : > { %v2441_v45 = vld [vmem:[#allocation13 + $0xe10] sm:$0xff] }
 0x5bf   : > { %7586 = vmatpush1.bf16.msra.mxu0 %v7585_v55  ;;  %v7729_v55 = vpack.c.bf16 %v2385_v49, %v2377_v46  ;;  %v7743_v46 = vpack.c.bf16 %v2450_v34, %v2442_v33  ;;  %v2456_v49 = vld [vmem:[#allocation13 + $0xe88] sm:$0xff]  ;;  %v2006_v33 = vld [vmem:[#allocation13 + $0x78] sm:$0xff] }
 0x5c0   : > { %7714 = vmatpush1.bf16.msra.mxu1 %v7713_v56  ;;  %7588 = vmatprep.subr.bf16.mxu0 %v7587_v59  ;;  %v7603_v56 = vpack.c.bf16 %v2400_v31, %v2392_v50  ;;  %v2391_v59 = vld [vmem:[#allocation13 + $0xc80] sm:$0xff]  ;;  %v2464_v50 = vld [vmem:[#allocation13 + $0xec8] sm:$0xff]  ;;  %v2458_v31 = vld [vmem:[#allocation13 + $0xe98] sm:$0xff] }
 0x5c1   : > { %7716 = vmatprep.subr.bf16.mxu1 %v7715_v62  ;;  %v2401_v62 = vld [vmem:[#allocation13 + $0xcd0] sm:$0xff]  ;;  %v7605_v6 = vpack.c.bf16 %v2399_v60, %v2391_v59  ;;  %v2463_v59 = vld [vmem:[#allocation13 + $0xec0] sm:$0xff] }
 0x5c2   : > { %v2457_v60 = vld [vmem:[#allocation13 + $0xe90] sm:$0xff] }
 0x5c3   : > { %7590 = vmatpush1.bf16.msra.mxu0 %v7589_v7  ;;  %v7733_v7 = vpack.c.bf16 %v2401_v62, %v2393_v51  ;;  %v7747_v51 = vpack.c.bf16 %v2466_v52, %v2458_v31  ;;  %v2472_v62 = vld [vmem:[#allocation13 + $0xf08] sm:$0xff]  ;;  %v2014_v31 = vld [vmem:[#allocation13 + $0xb8] sm:$0xff] }
 0x5c4   : > { %7718 = vmatpush1.bf16.msra.mxu1 %v7717_v8  ;;  %7592 = vmatprep.subr.bf16.mxu0 %v7591_v9  ;;  %v7607_v8 = vpack.c.bf16 %v2416_v1, %v2408_v63  ;;  %v2407_v9 = vld [vmem:[#allocation13 + $0xd00] sm:$0xff]  ;;  %v2480_v63 = vld [vmem:[#allocation13 + $0xf48] sm:$0xff]  ;;  %v2474_v1 = vld [vmem:[#allocation13 + $0xf18] sm:$0xff] }
 0x5c5   : > { %7720 = vmatprep.subr.bf16.mxu1 %v7719_v13  ;;  %v2417_v13 = vld [vmem:[#allocation13 + $0xd50] sm:$0xff]  ;;  %v7609_v21 = vpack.c.bf16 %v2415_v10, %v2407_v9  ;;  %v2479_v9 = vld [vmem:[#allocation13 + $0xf40] sm:$0xff]  ;;  %v2022_v52 = vld [vmem:[#allocation13 + $0xf8] sm:$0xff] }
 0x5c6   : > { %v2473_v10 = vld [vmem:[#allocation13 + $0xf10] sm:$0xff] }
 0x5c7   : > { %7594 = vmatpush1.bf16.msra.mxu0 %v7593_v22  ;;  %v7737_v22 = vpack.c.bf16 %v2417_v13, %v2409_v11  ;;  %v7751_v11 = vpack.c.bf16 %v2482_v2, %v2474_v1  ;;  %v2488_v13 = vld [vmem:[#allocation13 + $0xf88] sm:$0xff]  ;;  %v2030_v1 = vld [vmem:[#allocation13 + $0x138] sm:$0xff] }
 0x5c8   : > { %7722 = vmatpush1.bf16.msra.mxu1 %v7721_v23  ;;  %7596 = vmatprep.subr.bf16.mxu0 %v7595_v24  ;;  %v7611_v23 = vpack.c.bf16 %v2432_v18, %v2424_v15  ;;  %v2423_v24 = vld [vmem:[#allocation13 + $0xd80] sm:$0xff]  ;;  %v2496_v15 = vld [vmem:[#allocation13 + $0xfc8] sm:$0xff]  ;;  %v2490_v18 = vld [vmem:[#allocation13 + $0xf98] sm:$0xff] }
 0x5c9   : > { %7724 = vmatprep.subr.bf16.mxu1 %v7723_v29  ;;  %v2433_v29 = vld [vmem:[#allocation13 + $0xdd0] sm:$0xff]  ;;  %v7613_v35 = vpack.c.bf16 %v2431_v25, %v2423_v24  ;;  %v2495_v24 = vld [vmem:[#allocation13 + $0xfc0] sm:$0xff]  ;;  %v2038_v2 = vld [vmem:[#allocation13 + $0x178] sm:$0xff] }
 0x5ca   : > { %v2489_v25 = vld [vmem:[#allocation13 + $0xf90] sm:$0xff] }
 0x5cb   : > { %7598 = vmatpush1.bf16.msra.mxu0 %v7597_v36  ;;  %v7741_v36 = vpack.c.bf16 %v2433_v29, %v2425_v27  ;;  %v7755_v27 = vpack.c.bf16 %v2498_v19, %v2490_v18  ;;  %v1996_v29 = vld [vmem:[#allocation13 + $0x28] sm:$0xff]  ;;  %v2046_v18 = vld [vmem:[#allocation13 + $0x1b8] sm:$0xff] }
 0x5cc   : > { %7726 = vmatpush1.bf16.msra.mxu1 %v7725_v37  ;;  %7600 = vmatprep.subr.bf16.mxu0 %v7599_v41  ;;  %v7615_v37 = vpack.c.bf16 %v2448_v32, %v2440_v30  ;;  %v2439_v41 = vld [vmem:[#allocation13 + $0xe00] sm:$0xff]  ;;  %v2004_v30 = vld [vmem:[#allocation13 + $0x68] sm:$0xff]  ;;  %v1998_v32 = vld [vmem:[#allocation13 + $0x38] sm:$0xff] }
 0x5cd   : > { %7728 = vmatprep.subr.bf16.mxu1 %v7727_v47  ;;  %v2449_v47 = vld [vmem:[#allocation13 + $0xe50] sm:$0xff]  ;;  %v7617_v53 = vpack.c.bf16 %v2447_v44, %v2439_v41  ;;  %v2003_v41 = vld [vmem:[#allocation13 + $0x60] sm:$0xff]  ;;  %v7887_v44 = vpack.c.bf16 %v2006_v33, %v1998_v32  ;;  %v2054_v19 = vld [vmem:[#allocation13 + $0x1f8] sm:$0xff] }
 0x5ce   : > { %v2070_v32 = vld [vmem:[#allocation13 + $0x278] sm:$0xff] }
 0x5cf   : > { %7602 = vmatpush1.bf16.msra.mxu0 %v7601_v54  ;;  %v7745_v54 = vpack.c.bf16 %v2449_v47, %v2441_v45  ;;  %v1997_v45 = vld [vmem:[#allocation13 + $0x30] sm:$0xff]  ;;  %v2012_v47 = vld [vmem:[#allocation13 + $0xa8] sm:$0xff] }
 0x5d0   : > { %7730 = vmatpush1.bf16.msra.mxu1 %v7729_v55  ;;  %7604 = vmatprep.subr.bf16.mxu0 %v7603_v56  ;;  %v7619_v55 = vpack.c.bf16 %v2464_v50, %v2456_v49  ;;  %v2455_v56 = vld [vmem:[#allocation13 + $0xe80] sm:$0xff]  ;;  %v2020_v49 = vld [vmem:[#allocation13 + $0xe8] sm:$0xff] }
 0x5d1   : > { %7732 = vmatprep.subr.bf16.mxu1 %v7731_v61  ;;  %v2465_v61 = vld [vmem:[#allocation13 + $0xed0] sm:$0xff]  ;;  %v7621_v4 = vpack.c.bf16 %v2463_v59, %v2455_v56  ;;  %v2019_v56 = vld [vmem:[#allocation13 + $0xe0] sm:$0xff] }
 0x5d2   : > { %v2013_v59 = vld [vmem:[#allocation13 + $0xb0] sm:$0xff] }
 0x5d3   : > { %7606 = vmatpush1.bf16.msra.mxu0 %v7605_v6  ;;  %v7749_v6 = vpack.c.bf16 %v2465_v61, %v2457_v60  ;;  %v7763_v60 = vpack.c.bf16 %v2020_v49, %v2012_v47  ;;  %v2028_v61 = vld [vmem:[#allocation13 + $0x128] sm:$0xff]  ;;  %v2078_v49 = vld [vmem:[#allocation13 + $0x2b8] sm:$0xff] }
 0x5d4   : > { %7734 = vmatpush1.bf16.msra.mxu1 %v7733_v7  ;;  %7608 = vmatprep.subr.bf16.mxu0 %v7607_v8  ;;  %v7623_v7 = vpack.c.bf16 %v2480_v63, %v2472_v62  ;;  %v2471_v8 = vld [vmem:[#allocation13 + $0xf00] sm:$0xff]  ;;  %v2036_v62 = vld [vmem:[#allocation13 + $0x168] sm:$0xff]  ;;  %v7891_v63 = vpack.c.bf16 %v2022_v52, %v2014_v31 }
 0x5d5   : > { %7736 = vmatprep.subr.bf16.mxu1 %v7735_v12  ;;  %v2481_v12 = vld [vmem:[#allocation13 + $0xf50] sm:$0xff]  ;;  %v7625_v20 = vpack.c.bf16 %v2479_v9, %v2471_v8  ;;  %v2027_v8 = vld [vmem:[#allocation13 + $0x120] sm:$0xff]  ;;  %v2084_v47 = vld [vmem:[#allocation13 + $0x2e8] sm:$0xff] }
 0x5d6   : > { %v2035_v9 = vld [vmem:[#allocation13 + $0x160] sm:$0xff] }
 0x5d7   : > { %7610 = vmatpush1.bf16.msra.mxu0 %v7609_v21  ;;  %v7753_v21 = vpack.c.bf16 %v2481_v12, %v2473_v10  ;;  %v2029_v10 = vld [vmem:[#allocation13 + $0x130] sm:$0xff] }
 0x5d8   : > { %7738 = vmatpush1.bf16.msra.mxu1 %v7737_v22  ;;  %7612 = vmatprep.subr.bf16.mxu0 %v7611_v23  ;;  %v7627_v22 = vpack.c.bf16 %v2496_v15, %v2488_v13  ;;  %v2487_v23 = vld [vmem:[#allocation13 + $0xf80] sm:$0xff]  ;;  %v2037_v12 = vld [vmem:[#allocation13 + $0x170] sm:$0xff]  ;;  %v2044_v13 = vld [vmem:[#allocation13 + $0x1a8] sm:$0xff] }
 0x5d9   : > { %7740 = vmatprep.subr.bf16.mxu1 %v7739_v28  ;;  %v2497_v28 = vld [vmem:[#allocation13 + $0xfd0] sm:$0xff]  ;;  %v7629_v34 = vpack.c.bf16 %v2495_v24, %v2487_v23  ;;  %v2052_v15 = vld [vmem:[#allocation13 + $0x1e8] sm:$0xff]  ;;  %v2043_v23 = vld [vmem:[#allocation13 + $0x1a0] sm:$0xff] }
 0x5da   : > { %v2051_v24 = vld [vmem:[#allocation13 + $0x1e0] sm:$0xff] }
 0x5db   : > { %7614 = vmatpush1.bf16.msra.mxu0 %v7613_v35  ;;  %v7757_v35 = vpack.c.bf16 %v2497_v28, %v2489_v25  ;;  %v2045_v25 = vld [vmem:[#allocation13 + $0x1b0] sm:$0xff]  ;;  %v2060_v28 = vld [vmem:[#allocation13 + $0x228] sm:$0xff]  ;;  %v7773_v33 = vpack.c.bf16 %v2051_v24, %v2043_v23  ;;  %v2115_v23 = vld [vmem:[#allocation13 + $0x3e0] sm:$0xff] }
 0x5dc   : > { %7742 = vmatpush1.bf16.msra.mxu1 %v7741_v36  ;;  %7616 = vmatprep.subr.bf16.mxu0 %v7615_v37  ;;  %v7759_v36 = vpack.c.bf16 %v2004_v30, %v1996_v29  ;;  %v1995_v37 = vld [vmem:[#allocation13 + $0x20] sm:$0xff]  ;;  %v2068_v29 = vld [vmem:[#allocation13 + $0x268] sm:$0xff]  ;;  %v2062_v30 = vld [vmem:[#allocation13 + $0x238] sm:$0xff] }
 0x5dd   : > { %7744 = vmatprep.subr.bf16.mxu1 %v7743_v46  ;;  %v2005_v46 = vld [vmem:[#allocation13 + $0x70] sm:$0xff]  ;;  %v7761_v50 = vpack.c.bf16 %v2003_v41, %v1995_v37  ;;  %v2067_v37 = vld [vmem:[#allocation13 + $0x260] sm:$0xff] }
 0x5de   : > { %v2061_v41 = vld [vmem:[#allocation13 + $0x230] sm:$0xff] }
 0x5df   : > { %7618 = vmatpush1.bf16.msra.mxu0 %v7617_v53  ;;  %v10113_v53 = vrot.slane %v10073_v48, 7  ;;  %v2109_v24 = vld [vmem:[#allocation13 + $0x3b0] sm:$0xff] }
 0x5e0   : > { %7746 = vmatpush1.bf16.msra.mxu1 %v7745_v54  ;;  %7620 = vmatprep.subr.bf16.mxu0 %v7619_v55  ;;  %v7889_v54 = vpack.c.bf16 %v2005_v46, %v1997_v45  ;;  %v2011_v55 = vld [vmem:[#allocation13 + $0xa0] sm:$0xff]  ;;  %v2069_v45 = vld [vmem:[#allocation13 + $0x270] sm:$0xff]  ;;  %v2076_v46 = vld [vmem:[#allocation13 + $0x2a8] sm:$0xff] }
 0x5e1   : > { %7748 = vmatprep.subr.bf16.mxu1 %v7747_v51  ;;  %v2021_v51 = vld [vmem:[#allocation13 + $0xf0] sm:$0xff]  ;;  %v7905_v52 = vpack.c.bf16 %v2069_v45, %v2061_v41  ;;  %v2140_v45 = vld [vmem:[#allocation13 + $0x4a8] sm:$0xff] }
 0x5e3   : > { %7622 = vmatpush1.bf16.msra.mxu0 %v7621_v4  ;;  %v7765_v4 = vpack.c.bf16 %v2019_v56, %v2011_v55  ;;  %v2075_v55 = vld [vmem:[#allocation13 + $0x2a0] sm:$0xff] }
 0x5e4   : > { %7750 = vmatpush1.bf16.msra.mxu1 %v7749_v6  ;;  %7624 = vmatprep.subr.bf16.mxu0 %v7623_v7  ;;  %v7893_v6 = vpack.c.bf16 %v2021_v51, %v2013_v59  ;;  %v7767_v7 = vpack.c.bf16 %v2036_v62, %v2028_v61  ;;  %v2083_v56 = vld [vmem:[#allocation13 + $0x2e0] sm:$0xff]  ;;  %v2077_v59 = vld [vmem:[#allocation13 + $0x2b0] sm:$0xff]  ;;  %v2092_v61 = vld [vmem:[#allocation13 + $0x328] sm:$0xff] }
 0x5e5   : > { %7752 = vmatprep.subr.bf16.mxu1 %v7751_v11  ;;  %v7895_v11 = vpack.c.bf16 %v2038_v2, %v2030_v1  ;;  %v2085_v51 = vld [vmem:[#allocation13 + $0x2f0] sm:$0xff]  ;;  %v2100_v62 = vld [vmem:[#allocation13 + $0x368] sm:$0xff]  ;;  %v2102_v1 = vld [vmem:[#allocation13 + $0x378] sm:$0xff]  ;;  %v7781_v2 = vpack.c.bf16 %v2083_v56, %v2075_v55 }
 0x5e6   : > { %v2147_v55 = vld [vmem:[#allocation13 + $0x4e0] sm:$0xff]  ;;  %v2141_v56 = vld [vmem:[#allocation13 + $0x4b0] sm:$0xff] }
 0x5e7   : > { %7626 = vmatpush1.bf16.msra.mxu0 %v7625_v20  ;;  %v7769_v20 = vpack.c.bf16 %v2035_v9, %v2027_v8  ;;  %v2099_v8 = vld [vmem:[#allocation13 + $0x360] sm:$0xff]  ;;  %v2093_v9 = vld [vmem:[#allocation13 + $0x330] sm:$0xff] }
 0x5e8   : > { %7754 = vmatpush1.bf16.msra.mxu1 %v7753_v21  ;;  %7628 = vmatprep.subr.bf16.mxu0 %v7627_v22  ;;  %v7897_v21 = vpack.c.bf16 %v2037_v12, %v2029_v10  ;;  %v7771_v22 = vpack.c.bf16 %v2052_v15, %v2044_v13  ;;  %v2108_v12 = vld [vmem:[#allocation13 + $0x3a8] sm:$0xff]  ;;  %v2110_v15 = vld [vmem:[#allocation13 + $0x3b8] sm:$0xff] }
 0x5e9   : > { %7756 = vmatprep.subr.bf16.mxu1 %v7755_v27  ;;  %v7899_v27 = vpack.c.bf16 %v2054_v19, %v2046_v18  ;;  %v2116_v13 = vld [vmem:[#allocation13 + $0x3e8] sm:$0xff]  ;;  %v2118_v18 = vld [vmem:[#allocation13 + $0x3f8] sm:$0xff] }
 0x5eb   : > { %7630 = vmatpush1.bf16.msra.mxu0 %v7629_v34 }
 0x5ec   : > { %7758 = vmatpush1.bf16.msra.mxu1 %v7757_v35  ;;  %7760 = vmatprep.subr.bf16.mxu0 %v7759_v36  ;;  %v7775_v35 = vpack.c.bf16 %v2068_v29, %v2060_v28  ;;  %v2059_v36 = vld [vmem:[#allocation13 + $0x220] sm:$0xff]  ;;  %v2132_v28 = vld [vmem:[#allocation13 + $0x468] sm:$0xff]  ;;  %v2126_v29 = vld [vmem:[#allocation13 + $0x438] sm:$0xff] }
 0x5ed   : > { %7888 = vmatprep.subr.bf16.mxu1 %v7887_v44  ;;  %v7903_v44 = vpack.c.bf16 %v2070_v32, %v2062_v30  ;;  %v7777_v31 = vpack.c.bf16 %v2067_v37, %v2059_v36  ;;  %v2134_v30 = vld [vmem:[#allocation13 + $0x478] sm:$0xff]  ;;  %v2131_v36 = vld [vmem:[#allocation13 + $0x460] sm:$0xff]  ;;  %v2125_v37 = vld [vmem:[#allocation13 + $0x430] sm:$0xff] }
 0x5ee   : > { %6364 = vmatmul.mubr.msk.f32.vlgmr.msra.gmra.mrb[4].mxu0 %vm10027_vm10, %v10113_v53  ;;  %v7919_v41 = vpack.c.bf16 %v2134_v30, %v2126_v29  ;;  %v2198_v29 = vld [vmem:[#allocation13 + $0x678] sm:$0xff] }
 0x5ef   : > { %6372 = vmatmul.mubr.msk.f32.vlgmr.msra.gmra.mrb[8].mxu1 %vm10027_vm10, %v10113_v53  ;;  %7762 = vmatpush1.bf16.msra.mxu0 %v7761_v50  ;;  %v2086_v50 = vld [vmem:[#allocation13 + $0x2f8] sm:$0xff] }
 0x5f0   : > { %6374 = vmatprep.mubr.msk.f32.mxu0 %vm10027_vm10, %v10085_v17  ;;  %7890 = vmatpush1.bf16.msra.mxu1 %v7889_v54  ;;  %v7779_v54 = vpack.c.bf16 %v2084_v47, %v2076_v46  ;;  %v2148_v46 = vld [vmem:[#allocation13 + $0x4e8] sm:$0xff]  ;;  %v2142_v47 = vld [vmem:[#allocation13 + $0x4b8] sm:$0xff] }
 0x5f1   : > { %6382 = vmatprep.mubr.msk.f32.mxu1 %vm10027_vm10, %v10085_v17  ;;  %7764 = vmatprep.subr.bf16.mxu0 %v7763_v60  ;;  %v2053_v17 = vld [vmem:[#allocation13 + $0x1f0] sm:$0xff]  ;;  %v7907_v60 = vpack.c.bf16 %v2086_v50, %v2078_v49  ;;  %v2150_v49 = vld [vmem:[#allocation13 + $0x4f8] sm:$0xff] }
 0x5f2   : > { %7892 = vmatprep.subr.bf16.mxu1 %v7891_v63  ;;  %v7901_v34 = vpack.c.bf16 %v2053_v17, %v2045_v25  ;;  %v2094_v63 = vld [vmem:[#allocation13 + $0x338] sm:$0xff]  ;;  %v7915_v25 = vpack.c.bf16 %v2118_v18, %v2110_v15  ;;  %v2124_v17 = vld [vmem:[#allocation13 + $0x428] sm:$0xff] }
 0x5f3   : > { %7766 = vmatpush1.bf16.msra.mxu0 %v7765_v4  ;;  %v7909_v4 = vpack.c.bf16 %v2085_v51, %v2077_v59  ;;  %v7911_v10 = vpack.c.bf16 %v2102_v1, %v2094_v63  ;;  %v7923_v59 = vpack.c.bf16 %v2150_v49, %v2142_v47  ;;  %v2156_v51 = vld [vmem:[#allocation13 + $0x528] sm:$0xff]  ;;  %v2166_v63 = vld [vmem:[#allocation13 + $0x578] sm:$0xff] }
 0x5f4   : > { %7894 = vmatpush1.bf16.msra.mxu1 %v7893_v6  ;;  %7768 = vmatprep.subr.bf16.mxu0 %v7767_v7  ;;  %v7783_v6 = vpack.c.bf16 %v2100_v62, %v2092_v61  ;;  %v2091_v7 = vld [vmem:[#allocation13 + $0x320] sm:$0xff]  ;;  %v2164_v61 = vld [vmem:[#allocation13 + $0x568] sm:$0xff]  ;;  %v2158_v62 = vld [vmem:[#allocation13 + $0x538] sm:$0xff] }
 0x5f5   : > { %7896 = vmatprep.subr.bf16.mxu1 %v7895_v11  ;;  %v2101_v11 = vld [vmem:[#allocation13 + $0x370] sm:$0xff]  ;;  %v7785_v19 = vpack.c.bf16 %v2099_v8, %v2091_v7  ;;  %v2163_v7 = vld [vmem:[#allocation13 + $0x560] sm:$0xff]  ;;  %v2182_v15 = vld [vmem:[#allocation13 + $0x5f8] sm:$0xff] }
 0x5f6   : > { %v2157_v8 = vld [vmem:[#allocation13 + $0x530] sm:$0xff]  ;;  %v2214_v47 = vld [vmem:[#allocation13 + $0x6f8] sm:$0xff] }
 0x5f7   : > { %7770 = vmatpush1.bf16.msra.mxu0 %v7769_v20  ;;  %v7913_v20 = vpack.c.bf16 %v2101_v11, %v2093_v9  ;;  %v7927_v9 = vpack.c.bf16 %v2166_v63, %v2158_v62  ;;  %v2172_v11 = vld [vmem:[#allocation13 + $0x5a8] sm:$0xff]  ;;  %v2230_v62 = vld [vmem:[#allocation13 + $0x778] sm:$0xff] }
 0x5f8   : > { %7898 = vmatpush1.bf16.msra.mxu1 %v7897_v21  ;;  %7772 = vmatprep.subr.bf16.mxu0 %v7771_v22  ;;  %v7787_v21 = vpack.c.bf16 %v2116_v13, %v2108_v12  ;;  %v2107_v22 = vld [vmem:[#allocation13 + $0x3a0] sm:$0xff]  ;;  %v2180_v12 = vld [vmem:[#allocation13 + $0x5e8] sm:$0xff]  ;;  %v2174_v13 = vld [vmem:[#allocation13 + $0x5b8] sm:$0xff] }
 0x5f9   : > { %7900 = vmatprep.subr.bf16.mxu1 %v7899_v27  ;;  %v2117_v27 = vld [vmem:[#allocation13 + $0x3f0] sm:$0xff]  ;;  %v7789_v32 = vpack.c.bf16 %v2115_v23, %v2107_v22  ;;  %v2179_v22 = vld [vmem:[#allocation13 + $0x5e0] sm:$0xff] }
 0x5fa   : > { %v2173_v23 = vld [vmem:[#allocation13 + $0x5b0] sm:$0xff] }
 0x5fb   : > { %7774 = vmatpush1.bf16.msra.mxu0 %v7773_v33  ;;  %v7917_v33 = vpack.c.bf16 %v2117_v27, %v2109_v24  ;;  %v7931_v24 = vpack.c.bf16 %v2182_v15, %v2174_v13  ;;  %v2188_v27 = vld [vmem:[#allocation13 + $0x628] sm:$0xff]  ;;  %v2246_v13 = vld [vmem:[#allocation13 + $0x7f8] sm:$0xff] }
 0x5fc   : > { %7902 = vmatpush1.bf16.msra.mxu1 %v7901_v34  ;;  %7776 = vmatprep.subr.bf16.mxu0 %v7775_v35  ;;  %v7791_v34 = vpack.c.bf16 %v2132_v28, %v2124_v17  ;;  %v2123_v35 = vld [vmem:[#allocation13 + $0x420] sm:$0xff]  ;;  %v2196_v17 = vld [vmem:[#allocation13 + $0x668] sm:$0xff]  ;;  %v2190_v28 = vld [vmem:[#allocation13 + $0x638] sm:$0xff] }
 0x5fd   : > { %7904 = vmatprep.subr.bf16.mxu1 %v7903_v44  ;;  %v2133_v44 = vld [vmem:[#allocation13 + $0x470] sm:$0xff]  ;;  %v7793_v50 = vpack.c.bf16 %v2131_v36, %v2123_v35  ;;  %v2195_v35 = vld [vmem:[#allocation13 + $0x660] sm:$0xff] }
 0x5fe   : > { %v2189_v36 = vld [vmem:[#allocation13 + $0x630] sm:$0xff] }
 0x5ff   : > { %7778 = vmatpush1.bf16.msra.mxu0 %v7777_v31  ;;  %v7921_v31 = vpack.c.bf16 %v2133_v44, %v2125_v37  ;;  %v7935_v37 = vpack.c.bf16 %v2198_v29, %v2190_v28  ;;  %v2204_v44 = vld [vmem:[#allocation13 + $0x6a8] sm:$0xff]  ;;  %v2262_v28 = vld [vmem:[#allocation13 + $0x878] sm:$0xff] }
 0x600   : > { %7906 = vmatpush1.bf16.msra.mxu1 %v7905_v52  ;;  %7780 = vmatprep.subr.bf16.mxu0 %v7779_v54  ;;  %v7795_v52 = vpack.c.bf16 %v2148_v46, %v2140_v45  ;;  %v2139_v54 = vld [vmem:[#allocation13 + $0x4a0] sm:$0xff]  ;;  %v2212_v45 = vld [vmem:[#allocation13 + $0x6e8] sm:$0xff]  ;;  %v2206_v46 = vld [vmem:[#allocation13 + $0x6b8] sm:$0xff] }
 0x601   : > { %7908 = vmatprep.subr.bf16.mxu1 %v7907_v60  ;;  %v2149_v60 = vld [vmem:[#allocation13 + $0x4f0] sm:$0xff]  ;;  %v7797_v1 = vpack.c.bf16 %v2147_v55, %v2139_v54  ;;  %v2211_v54 = vld [vmem:[#allocation13 + $0x6e0] sm:$0xff] }
 0x602   : > { %v2205_v55 = vld [vmem:[#allocation13 + $0x6b0] sm:$0xff] }
 0x603   : > { %7782 = vmatpush1.bf16.msra.mxu0 %v7781_v2  ;;  %v7925_v2 = vpack.c.bf16 %v2149_v60, %v2141_v56  ;;  %v7939_v56 = vpack.c.bf16 %v2214_v47, %v2206_v46  ;;  %v2220_v60 = vld [vmem:[#allocation13 + $0x728] sm:$0xff]  ;;  %v2270_v46 = vld [vmem:[#allocation13 + $0x8b8] sm:$0xff] }
 0x604   : > { %7910 = vmatpush1.bf16.msra.mxu1 %v7909_v4  ;;  %7784 = vmatprep.subr.bf16.mxu0 %v7783_v6  ;;  %v7799_v4 = vpack.c.bf16 %v2164_v61, %v2156_v51  ;;  %v2155_v6 = vld [vmem:[#allocation13 + $0x520] sm:$0xff]  ;;  %v2228_v51 = vld [vmem:[#allocation13 + $0x768] sm:$0xff]  ;;  %v2222_v61 = vld [vmem:[#allocation13 + $0x738] sm:$0xff] }
 0x605   : > { %7912 = vmatprep.subr.bf16.mxu1 %v7911_v10  ;;  %v2165_v10 = vld [vmem:[#allocation13 + $0x570] sm:$0xff]  ;;  %v7801_v18 = vpack.c.bf16 %v2163_v7, %v2155_v6  ;;  %v2227_v6 = vld [vmem:[#allocation13 + $0x760] sm:$0xff]  ;;  %v2278_v47 = vld [vmem:[#allocation13 + $0x8f8] sm:$0xff] }
 0x606   : > { %v2221_v7 = vld [vmem:[#allocation13 + $0x730] sm:$0xff] }
 0x607   : > { %7786 = vmatpush1.bf16.msra.mxu0 %v7785_v19  ;;  %v7929_v19 = vpack.c.bf16 %v2165_v10, %v2157_v8  ;;  %v7943_v8 = vpack.c.bf16 %v2230_v62, %v2222_v61  ;;  %v2236_v10 = vld [vmem:[#allocation13 + $0x7a8] sm:$0xff]  ;;  %v2294_v61 = vld [vmem:[#allocation13 + $0x978] sm:$0xff] }
 0x608   : > { %7914 = vmatpush1.bf16.msra.mxu1 %v7913_v20  ;;  %7788 = vmatprep.subr.bf16.mxu0 %v7787_v21  ;;  %v7803_v20 = vpack.c.bf16 %v2180_v12, %v2172_v11  ;;  %v2171_v21 = vld [vmem:[#allocation13 + $0x5a0] sm:$0xff]  ;;  %v2244_v11 = vld [vmem:[#allocation13 + $0x7e8] sm:$0xff]  ;;  %v2238_v12 = vld [vmem:[#allocation13 + $0x7b8] sm:$0xff] }
 0x609   : > { %7916 = vmatprep.subr.bf16.mxu1 %v7915_v25  ;;  %v2181_v25 = vld [vmem:[#allocation13 + $0x5f0] sm:$0xff]  ;;  %v7805_v30 = vpack.c.bf16 %v2179_v22, %v2171_v21  ;;  %v2243_v21 = vld [vmem:[#allocation13 + $0x7e0] sm:$0xff] }
 0x60a   : > { %v2237_v22 = vld [vmem:[#allocation13 + $0x7b0] sm:$0xff] }
 0x60b   : > { %7790 = vmatpush1.bf16.msra.mxu0 %v7789_v32  ;;  %v7933_v32 = vpack.c.bf16 %v2181_v25, %v2173_v23  ;;  %v7947_v23 = vpack.c.bf16 %v2246_v13, %v2238_v12  ;;  %v2252_v25 = vld [vmem:[#allocation13 + $0x828] sm:$0xff] }
 0x60c   : > { %7918 = vmatpush1.bf16.msra.mxu1 %v7917_v33  ;;  %7792 = vmatprep.subr.bf16.mxu0 %v7791_v34  ;;  %v7807_v33 = vpack.c.bf16 %v2196_v17, %v2188_v27  ;;  %v2187_v34 = vld [vmem:[#allocation13 + $0x620] sm:$0xff]  ;;  %v2260_v27 = vld [vmem:[#allocation13 + $0x868] sm:$0xff]  ;;  %v2254_v17 = vld [vmem:[#allocation13 + $0x838] sm:$0xff] }
 0x60d   : > { %7920 = vmatprep.subr.bf16.mxu1 %v7919_v41  ;;  %v2197_v41 = vld [vmem:[#allocation13 + $0x670] sm:$0xff]  ;;  %v7809_v49 = vpack.c.bf16 %v2195_v35, %v2187_v34  ;;  %v2259_v34 = vld [vmem:[#allocation13 + $0x860] sm:$0xff]  ;;  %v7951_v35 = vpack.c.bf16 %v2262_v28, %v2254_v17 }
 0x60f   : > { %7794 = vmatpush1.bf16.msra.mxu0 %v7793_v50  ;;  %v7937_v50 = vpack.c.bf16 %v2197_v41, %v2189_v36  ;;  %v2253_v36 = vld [vmem:[#allocation13 + $0x830] sm:$0xff]  ;;  %v2268_v41 = vld [vmem:[#allocation13 + $0x8a8] sm:$0xff] }
 0x610   : > { %7922 = vmatpush1.bf16.msra.mxu1 %v7921_v31  ;;  %7796 = vmatprep.subr.bf16.mxu0 %v7795_v52  ;;  %v7811_v31 = vpack.c.bf16 %v2212_v45, %v2204_v44  ;;  %v2203_v52 = vld [vmem:[#allocation13 + $0x6a0] sm:$0xff]  ;;  %v2276_v44 = vld [vmem:[#allocation13 + $0x8e8] sm:$0xff] }
 0x611   : > { %7924 = vmatprep.subr.bf16.mxu1 %v7923_v59  ;;  %v2213_v59 = vld [vmem:[#allocation13 + $0x6f0] sm:$0xff]  ;;  %v7813_v63 = vpack.c.bf16 %v2211_v54, %v2203_v52  ;;  %v7827_v54 = vpack.c.bf16 %v2276_v44, %v2268_v41  ;;  %v2342_v41 = vld [vmem:[#allocation13 + $0xaf8] sm:$0xff] }
 0x612   : > { %v2269_v52 = vld [vmem:[#allocation13 + $0x8b0] sm:$0xff] }
 0x613   : > { %7798 = vmatpush1.bf16.msra.mxu0 %v7797_v1  ;;  %v7941_v1 = vpack.c.bf16 %v2213_v59, %v2205_v55  ;;  %v2277_v55 = vld [vmem:[#allocation13 + $0x8f0] sm:$0xff]  ;;  %v2292_v59 = vld [vmem:[#allocation13 + $0x968] sm:$0xff] }
 0x614   : > { %7926 = vmatpush1.bf16.msra.mxu1 %v7925_v2  ;;  %7800 = vmatprep.subr.bf16.mxu0 %v7799_v4  ;;  %v7815_v2 = vpack.c.bf16 %v2228_v51, %v2220_v60  ;;  %v2219_v4 = vld [vmem:[#allocation13 + $0x720] sm:$0xff]  ;;  %v7955_v60 = vpack.c.bf16 %v2278_v47, %v2270_v46  ;;  %v2286_v51 = vld [vmem:[#allocation13 + $0x938] sm:$0xff] }
 0x615   : > { %7928 = vmatprep.subr.bf16.mxu1 %v7927_v9  ;;  %v2229_v9 = vld [vmem:[#allocation13 + $0x770] sm:$0xff]  ;;  %v7817_v15 = vpack.c.bf16 %v2227_v6, %v2219_v4  ;;  %v2291_v4 = vld [vmem:[#allocation13 + $0x960] sm:$0xff] }
 0x616   : > { %v2285_v6 = vld [vmem:[#allocation13 + $0x930] sm:$0xff]  ;;  %v2331_v47 = vld [vmem:[#allocation13 + $0xaa0] sm:$0xff] }
 0x617   : > { %7802 = vmatpush1.bf16.msra.mxu0 %v7801_v18  ;;  %v7945_v18 = vpack.c.bf16 %v2229_v9, %v2221_v7  ;;  %v7959_v7 = vpack.c.bf16 %v2294_v61, %v2286_v51  ;;  %v2308_v9 = vld [vmem:[#allocation13 + $0x9e8] sm:$0xff] }
 0x618   : > { %7930 = vmatpush1.bf16.msra.mxu1 %v7929_v19  ;;  %7804 = vmatprep.subr.bf16.mxu0 %v7803_v20  ;;  %v7819_v19 = vpack.c.bf16 %v2244_v11, %v2236_v10  ;;  %v2235_v20 = vld [vmem:[#allocation13 + $0x7a0] sm:$0xff]  ;;  %v2302_v10 = vld [vmem:[#allocation13 + $0x9b8] sm:$0xff] }
 0x619   : > { %7932 = vmatprep.subr.bf16.mxu1 %v7931_v24  ;;  %v2245_v24 = vld [vmem:[#allocation13 + $0x7f0] sm:$0xff]  ;;  %v7821_v29 = vpack.c.bf16 %v2243_v21, %v2235_v20  ;;  %v2310_v11 = vld [vmem:[#allocation13 + $0x9f8] sm:$0xff] }
 0x61a   : > { %v2301_v20 = vld [vmem:[#allocation13 + $0x9b0] sm:$0xff]  ;;  %v7963_v21 = vpack.c.bf16 %v2310_v11, %v2302_v10 }
 0x61b   : > { %7806 = vmatpush1.bf16.msra.mxu0 %v7805_v30  ;;  %v7949_v30 = vpack.c.bf16 %v2245_v24, %v2237_v22  ;;  %v2316_v22 = vld [vmem:[#allocation13 + $0xa28] sm:$0xff]  ;;  %v2318_v24 = vld [vmem:[#allocation13 + $0xa38] sm:$0xff] }
 0x61c   : > { %7934 = vmatpush1.bf16.msra.mxu1 %v7933_v32  ;;  %7808 = vmatprep.subr.bf16.mxu0 %v7807_v33  ;;  %v7823_v32 = vpack.c.bf16 %v2260_v27, %v2252_v25  ;;  %v2251_v33 = vld [vmem:[#allocation13 + $0x820] sm:$0xff]  ;;  %v2326_v25 = vld [vmem:[#allocation13 + $0xa78] sm:$0xff] }
 0x61d   : > { %7936 = vmatprep.subr.bf16.mxu1 %v7935_v37  ;;  %v2261_v37 = vld [vmem:[#allocation13 + $0x870] sm:$0xff]  ;;  %v7825_v45 = vpack.c.bf16 %v2259_v34, %v2251_v33  ;;  %v7967_v33 = vpack.c.bf16 %v2326_v25, %v2318_v24 }
 0x61e   : > { %v2325_v34 = vld [vmem:[#allocation13 + $0xa70] sm:$0xff] }
 0x61f   : > { %7810 = vmatpush1.bf16.msra.mxu0 %v7809_v49  ;;  %v7953_v49 = vpack.c.bf16 %v2261_v37, %v2253_v36  ;;  %v2340_v36 = vld [vmem:[#allocation13 + $0xae8] sm:$0xff]  ;;  %v2334_v37 = vld [vmem:[#allocation13 + $0xab8] sm:$0xff] }
 0x620   : > { %7938 = vmatpush1.bf16.msra.mxu1 %v7937_v50  ;;  %7812 = vmatprep.subr.bf16.mxu0 %v7811_v31  ;;  %v2267_v50 = vld [vmem:[#allocation13 + $0x8a0] sm:$0xff] }
 0x621   : > { %7940 = vmatprep.subr.bf16.mxu1 %v7939_v56  ;;  %v2275_v31 = vld [vmem:[#allocation13 + $0x8e0] sm:$0xff]  ;;  %v2284_v56 = vld [vmem:[#allocation13 + $0x928] sm:$0xff] }
 0x622   : > { %v7829_v62 = vpack.c.bf16 %v2275_v31, %v2267_v50  ;;  %v2333_v50 = vld [vmem:[#allocation13 + $0xab0] sm:$0xff]  ;;  %v7971_v31 = vpack.c.bf16 %v2342_v41, %v2334_v37 }
 0x623   : > { %7814 = vmatpush1.bf16.msra.mxu0 %v7813_v63  ;;  %v7957_v63 = vpack.c.bf16 %v2277_v55, %v2269_v52  ;;  %v2341_v52 = vld [vmem:[#allocation13 + $0xaf0] sm:$0xff]  ;;  %v2356_v55 = vld [vmem:[#allocation13 + $0xb68] sm:$0xff] }
 0x624   : > { %7942 = vmatpush1.bf16.msra.mxu1 %v7941_v1  ;;  %7816 = vmatprep.subr.bf16.mxu0 %v7815_v2  ;;  %v7831_v1 = vpack.c.bf16 %v2292_v59, %v2284_v56  ;;  %v2283_v2 = vld [vmem:[#allocation13 + $0x920] sm:$0xff]  ;;  %v2350_v56 = vld [vmem:[#allocation13 + $0xb38] sm:$0xff]  ;;  %v7973_v51 = vpack.c.bf16 %v2341_v52, %v2333_v50  ;;  %v2412_v50 = vld [vmem:[#allocation13 + $0xd28] sm:$0xff] }
 0x625   : > { %7944 = vmatprep.subr.bf16.mxu1 %v7943_v8  ;;  %v2293_v8 = vld [vmem:[#allocation13 + $0x970] sm:$0xff]  ;;  %v7833_v12 = vpack.c.bf16 %v2291_v4, %v2283_v2  ;;  %v2358_v59 = vld [vmem:[#allocation13 + $0xb78] sm:$0xff] }
 0x626   : > { %v7961_v13 = vpack.c.bf16 %v2293_v8, %v2285_v6  ;;  %v7975_v2 = vpack.c.bf16 %v2358_v59, %v2350_v56  ;;  %v2357_v4 = vld [vmem:[#allocation13 + $0xb70] sm:$0xff]  ;;  %v2364_v6 = vld [vmem:[#allocation13 + $0xba8] sm:$0xff]  ;;  %v2366_v8 = vld [vmem:[#allocation13 + $0xbb8] sm:$0xff] }
 0x627   : > { %7818 = vmatpush1.bf16.msra.mxu0 %v7817_v15  ;;  %v2414_v52 = vld [vmem:[#allocation13 + $0xd38] sm:$0xff] }
 0x628   : > { %7946 = vmatpush1.bf16.msra.mxu1 %v7945_v18  ;;  %7820 = vmatprep.subr.bf16.mxu0 %v7819_v19  ;;  %v2299_v18 = vld [vmem:[#allocation13 + $0x9a0] sm:$0xff] }
 0x629   : > { %7948 = vmatprep.subr.bf16.mxu1 %v7947_v23  ;;  %v2307_v19 = vld [vmem:[#allocation13 + $0x9e0] sm:$0xff]  ;;  %v2324_v23 = vld [vmem:[#allocation13 + $0xa68] sm:$0xff] }
 0x62a   : > { %v7837_v27 = vpack.c.bf16 %v2307_v19, %v2299_v18  ;;  %v7839_v28 = vpack.c.bf16 %v2324_v23, %v2316_v22  ;;  %v2373_v19 = vld [vmem:[#allocation13 + $0xbf0] sm:$0xff]  ;;  %v2390_v22 = vld [vmem:[#allocation13 + $0xc78] sm:$0xff] }
 0x62b   : > { %7822 = vmatpush1.bf16.msra.mxu0 %v7821_v29  ;;  %v2315_v29 = vld [vmem:[#allocation13 + $0xa20] sm:$0xff] }
 0x62c   : > { %7950 = vmatpush1.bf16.msra.mxu1 %v7949_v30  ;;  %7824 = vmatprep.subr.bf16.mxu0 %v7823_v32  ;;  %v2323_v30 = vld [vmem:[#allocation13 + $0xa60] sm:$0xff]  ;;  %v2317_v32 = vld [vmem:[#allocation13 + $0xa30] sm:$0xff] }
 0x62d   : > { %7952 = vmatprep.subr.bf16.mxu1 %v7951_v35  ;;  %v2332_v35 = vld [vmem:[#allocation13 + $0xaa8] sm:$0xff]  ;;  %v7841_v44 = vpack.c.bf16 %v2323_v30, %v2315_v29  ;;  %v2389_v30 = vld [vmem:[#allocation13 + $0xc70] sm:$0xff] }
 0x62e   : > { %6376 = vmatmul.mubr.msk.f32.vlgmr.msra.gmra.mrb[6].mxu0 %vm10027_vm10, %v10095_v57  ;;  %v7843_v46 = vpack.c.bf16 %v2340_v36, %v2332_v35  ;;  %v2406_v35 = vld [vmem:[#allocation13 + $0xcf8] sm:$0xff] }
 0x62f   : > { %6384 = vmatmul.mubr.msk.f32.vlgmr.msra.gmra.mrb[10].mxu1 %vm10027_vm10, %v10095_v57  ;;  %7826 = vmatpush1.bf16.msra.mxu0 %v7825_v45  ;;  %v2300_v57 = vld [vmem:[#allocation13 + $0x9a8] sm:$0xff]  ;;  %v7969_v45 = vpack.c.bf16 %v2325_v34, %v2317_v32  ;;  %v2398_v34 = vld [vmem:[#allocation13 + $0xcb8] sm:$0xff] }
 0x630   : > { %6378 = vmatprep.mubr.msk.f32.mxu0 %vm10027_vm10, %v10101_v3  ;;  %7954 = vmatpush1.bf16.msra.mxu1 %v7953_v49  ;;  %v7835_v15 = vpack.c.bf16 %v2308_v9, %v2300_v57  ;;  %v2339_v49 = vld [vmem:[#allocation13 + $0xae0] sm:$0xff]  ;;  %v2374_v57 = vld [vmem:[#allocation13 + $0xbf8] sm:$0xff]  ;;  %v2396_v32 = vld [vmem:[#allocation13 + $0xca8] sm:$0xff] }
 0x631   : > { %6386 = vmatprep.mubr.msk.f32.mxu1 %vm10027_vm10, %v10101_v3  ;;  %7828 = vmatprep.subr.bf16.mxu0 %v7827_v54  ;;  %v2309_v3 = vld [vmem:[#allocation13 + $0x9f0] sm:$0xff]  ;;  %v2348_v54 = vld [vmem:[#allocation13 + $0xb28] sm:$0xff]  ;;  %v7979_v18 = vpack.c.bf16 %v2374_v57, %v2366_v8 }
 0x632   : > { %7956 = vmatprep.subr.bf16.mxu1 %v7955_v60  ;;  %v7965_v17 = vpack.c.bf16 %v2309_v3, %v2301_v20  ;;  %v7845_v60 = vpack.c.bf16 %v2339_v49, %v2331_v47  ;;  %v7847_v61 = vpack.c.bf16 %v2356_v55, %v2348_v54  ;;  %v2380_v20 = vld [vmem:[#allocation13 + $0xc28] sm:$0xff]  ;;  %v2382_v3 = vld [vmem:[#allocation13 + $0xc38] sm:$0xff]  ;;  %v7987_v47 = vpack.c.bf16 %v2406_v35, %v2398_v34  ;;  %v2405_v49 = vld [vmem:[#allocation13 + $0xcf0] sm:$0xff] }
 0x633   : > { %7830 = vmatpush1.bf16.msra.mxu0 %v7829_v62  ;;  %v2347_v62 = vld [vmem:[#allocation13 + $0xb20] sm:$0xff]  ;;  %v7983_v29 = vpack.c.bf16 %v2390_v22, %v2382_v3  ;;  %v2422_v54 = vld [vmem:[#allocation13 + $0xd78] sm:$0xff] }
 0x634   : > { %7958 = vmatpush1.bf16.msra.mxu1 %v7957_v63  ;;  %7832 = vmatprep.subr.bf16.mxu0 %v7831_v1  ;;  %v2355_v63 = vld [vmem:[#allocation13 + $0xb60] sm:$0xff]  ;;  %v2349_v1 = vld [vmem:[#allocation13 + $0xb30] sm:$0xff] }
 0x635   : > { %7960 = vmatprep.subr.bf16.mxu1 %v7959_v7  ;;  %v2372_v7 = vld [vmem:[#allocation13 + $0xbe8] sm:$0xff]  ;;  %v7849_v9 = vpack.c.bf16 %v2355_v63, %v2347_v62  ;;  %v7977_v10 = vpack.c.bf16 %v2357_v4, %v2349_v1  ;;  %v7991_v62 = vpack.c.bf16 %v2422_v54, %v2414_v52  ;;  %v2421_v63 = vld [vmem:[#allocation13 + $0xd70] sm:$0xff]  ;;  %v2430_v4 = vld [vmem:[#allocation13 + $0xdb8] sm:$0xff] }
 0x636   : > { %v7851_v11 = vpack.c.bf16 %v2372_v7, %v2364_v6  ;;  %v2428_v1 = vld [vmem:[#allocation13 + $0xda8] sm:$0xff]  ;;  %v2438_v6 = vld [vmem:[#allocation13 + $0xdf8] sm:$0xff] }
 0x637   : > { %7834 = vmatpush1.bf16.msra.mxu0 %v7833_v12  ;;  %v2363_v12 = vld [vmem:[#allocation13 + $0xba0] sm:$0xff] }
 0x638   : > { %7962 = vmatpush1.bf16.msra.mxu1 %v7961_v13  ;;  %7836 = vmatprep.subr.bf16.mxu0 %v7835_v15  ;;  %v2371_v13 = vld [vmem:[#allocation13 + $0xbe0] sm:$0xff]  ;;  %v2365_v15 = vld [vmem:[#allocation13 + $0xbb0] sm:$0xff] }
 0x639   : > { %7964 = vmatprep.subr.bf16.mxu1 %v7963_v21  ;;  %v2388_v21 = vld [vmem:[#allocation13 + $0xc68] sm:$0xff]  ;;  %v7853_v23 = vpack.c.bf16 %v2371_v13, %v2363_v12  ;;  %v7981_v24 = vpack.c.bf16 %v2373_v19, %v2365_v15  ;;  %v7995_v12 = vpack.c.bf16 %v2438_v6, %v2430_v4  ;;  %v2437_v13 = vld [vmem:[#allocation13 + $0xdf0] sm:$0xff]  ;;  %v2446_v19 = vld [vmem:[#allocation13 + $0xe38] sm:$0xff] }
 0x63a   : > { %v7855_v25 = vpack.c.bf16 %v2388_v21, %v2380_v20  ;;  %v2444_v15 = vld [vmem:[#allocation13 + $0xe28] sm:$0xff]  ;;  %v2454_v20 = vld [vmem:[#allocation13 + $0xe78] sm:$0xff] }
 0x63b   : > { %7838 = vmatpush1.bf16.msra.mxu0 %v7837_v27  ;;  %v2379_v27 = vld [vmem:[#allocation13 + $0xc20] sm:$0xff] }
 0x63c   : > { %7966 = vmatpush1.bf16.msra.mxu1 %v7965_v17  ;;  %7840 = vmatprep.subr.bf16.mxu0 %v7839_v28  ;;  %v2387_v17 = vld [vmem:[#allocation13 + $0xc60] sm:$0xff]  ;;  %v2381_v28 = vld [vmem:[#allocation13 + $0xc30] sm:$0xff] }
 0x63d   : > { %7968 = vmatprep.subr.bf16.mxu1 %v7967_v33  ;;  %v2404_v33 = vld [vmem:[#allocation13 + $0xce8] sm:$0xff]  ;;  %v7857_v36 = vpack.c.bf16 %v2387_v17, %v2379_v27  ;;  %v7985_v37 = vpack.c.bf16 %v2389_v30, %v2381_v28  ;;  %v7999_v27 = vpack.c.bf16 %v2454_v20, %v2446_v19  ;;  %v2453_v17 = vld [vmem:[#allocation13 + $0xe70] sm:$0xff]  ;;  %v2462_v30 = vld [vmem:[#allocation13 + $0xeb8] sm:$0xff] }
 0x63e   : > { %v7859_v41 = vpack.c.bf16 %v2404_v33, %v2396_v32  ;;  %v2460_v28 = vld [vmem:[#allocation13 + $0xea8] sm:$0xff]  ;;  %v2470_v32 = vld [vmem:[#allocation13 + $0xef8] sm:$0xff] }
 0x63f   : > { %7842 = vmatpush1.bf16.msra.mxu0 %v7841_v44  ;;  %v2395_v44 = vld [vmem:[#allocation13 + $0xca0] sm:$0xff] }
 0x640   : > { %7970 = vmatpush1.bf16.msra.mxu1 %v7969_v45  ;;  %7844 = vmatprep.subr.bf16.mxu0 %v7843_v46  ;;  %v2403_v45 = vld [vmem:[#allocation13 + $0xce0] sm:$0xff]  ;;  %v2397_v46 = vld [vmem:[#allocation13 + $0xcb0] sm:$0xff] }
 0x641   : > { %7972 = vmatprep.subr.bf16.mxu1 %v7971_v31  ;;  %v2420_v31 = vld [vmem:[#allocation13 + $0xd68] sm:$0xff]  ;;  %v7861_v55 = vpack.c.bf16 %v2403_v45, %v2395_v44  ;;  %v7989_v56 = vpack.c.bf16 %v2405_v49, %v2397_v46  ;;  %v8003_v44 = vpack.c.bf16 %v2470_v32, %v2462_v30  ;;  %v2469_v45 = vld [vmem:[#allocation13 + $0xef0] sm:$0xff]  ;;  %v2478_v49 = vld [vmem:[#allocation13 + $0xf38] sm:$0xff] }
 0x642   : > { %v7863_v59 = vpack.c.bf16 %v2420_v31, %v2412_v50  ;;  %v2476_v46 = vld [vmem:[#allocation13 + $0xf28] sm:$0xff]  ;;  %v2486_v50 = vld [vmem:[#allocation13 + $0xf78] sm:$0xff]  ;;  %v4169_v32 = vld [vmem:[#allocation13 + $0x2080] sm:$0xff] }
 0x643   : > { %7846 = vmatpush1.bf16.msra.mxu0 %v7845_v60  ;;  %v2411_v60 = vld [vmem:[#allocation13 + $0xd20] sm:$0xff] }
 0x644   : > { %7974 = vmatpush1.bf16.msra.mxu1 %v7973_v51  ;;  %7848 = vmatprep.subr.bf16.mxu0 %v7847_v61  ;;  %v2419_v51 = vld [vmem:[#allocation13 + $0xd60] sm:$0xff]  ;;  %v2413_v61 = vld [vmem:[#allocation13 + $0xd30] sm:$0xff] }
 0x645   : > { %7976 = vmatprep.subr.bf16.mxu1 %v7975_v2  ;;  %v2436_v2 = vld [vmem:[#allocation13 + $0xde8] sm:$0xff]  ;;  %v7865_v7 = vpack.c.bf16 %v2419_v51, %v2411_v60  ;;  %v7993_v8 = vpack.c.bf16 %v2421_v63, %v2413_v61  ;;  %v8007_v60 = vpack.c.bf16 %v2486_v50, %v2478_v49  ;;  %v2485_v51 = vld [vmem:[#allocation13 + $0xf70] sm:$0xff]  ;;  %v2494_v63 = vld [vmem:[#allocation13 + $0xfb8] sm:$0xff] }
 0x646   : > { %v7867_v57 = vpack.c.bf16 %v2436_v2, %v2428_v1  ;;  %v2492_v61 = vld [vmem:[#allocation13 + $0xfa8] sm:$0xff]  ;;  %v2502_v1 = vld [vmem:[#allocation13 + $0xff8] sm:$0xff] }
 0x647   : > { %7850 = vmatpush1.bf16.msra.mxu0 %v7849_v9  ;;  %v2427_v9 = vld [vmem:[#allocation13 + $0xda0] sm:$0xff] }
 0x648   : > { %7978 = vmatpush1.bf16.msra.mxu1 %v7977_v10  ;;  %7852 = vmatprep.subr.bf16.mxu0 %v7851_v11  ;;  %v2435_v10 = vld [vmem:[#allocation13 + $0xde0] sm:$0xff]  ;;  %v2429_v11 = vld [vmem:[#allocation13 + $0xdb0] sm:$0xff] }
 0x649   : > { %7980 = vmatprep.subr.bf16.mxu1 %v7979_v18  ;;  %v2452_v18 = vld [vmem:[#allocation13 + $0xe68] sm:$0xff]  ;;  %v7869_v21 = vpack.c.bf16 %v2435_v10, %v2427_v9  ;;  %v7997_v3 = vpack.c.bf16 %v2437_v13, %v2429_v11  ;;  %v8011_v9 = vpack.c.bf16 %v2502_v1, %v2494_v63  ;;  %v2501_v10 = vld [vmem:[#allocation13 + $0xff0] sm:$0xff]  ;;  %v4156_v13 = vld [vmem:[#allocation13 + $0x2018] sm:$0xff] }
 0x64a   : > { %v7871_v22 = vpack.c.bf16 %v2452_v18, %v2444_v15  ;;  %v4154_v11 = vld [vmem:[#allocation13 + $0x2008] sm:$0xff]  ;;  %v4164_v15 = vld [vmem:[#allocation13 + $0x2058] sm:$0xff]  ;;  %v4201_v63 = vld [vmem:[#allocation13 + $0x2180] sm:$0xff] }
 0x64b   : > { %7854 = vmatpush1.bf16.msra.mxu0 %v7853_v23  ;;  %v2443_v23 = vld [vmem:[#allocation13 + $0xe20] sm:$0xff] }
 0x64c   : > { %7982 = vmatpush1.bf16.msra.mxu1 %v7981_v24  ;;  %7856 = vmatprep.subr.bf16.mxu0 %v7855_v25  ;;  %v2451_v24 = vld [vmem:[#allocation13 + $0xe60] sm:$0xff]  ;;  %v2445_v25 = vld [vmem:[#allocation13 + $0xe30] sm:$0xff] }
 0x64d   : > { %7984 = vmatprep.subr.bf16.mxu1 %v7983_v29  ;;  %v2468_v29 = vld [vmem:[#allocation13 + $0xee8] sm:$0xff]  ;;  %v7873_v33 = vpack.c.bf16 %v2451_v24, %v2443_v23  ;;  %v8001_v34 = vpack.c.bf16 %v2453_v17, %v2445_v25  ;;  %v4155_v23 = vld [vmem:[#allocation13 + $0x2010] sm:$0xff]  ;;  %v4209_v1 = vld [vmem:[#allocation13 + $0x21c0] sm:$0xff] }
 0x64e   : > { %v7875_v35 = vpack.c.bf16 %v2468_v29, %v2460_v28  ;;  %v4163_v24 = vld [vmem:[#allocation13 + $0x2050] sm:$0xff]  ;;  %v4170_v25 = vld [vmem:[#allocation13 + $0x2088] sm:$0xff]  ;;  %v4172_v28 = vld [vmem:[#allocation13 + $0x2098] sm:$0xff] }
 0x64f   : > { %7858 = vmatpush1.bf16.msra.mxu0 %v7857_v36  ;;  %v2459_v36 = vld [vmem:[#allocation13 + $0xea0] sm:$0xff]  ;;  %v4180_v29 = vld [vmem:[#allocation13 + $0x20d8] sm:$0xff]  ;;  %v8145_v30 = vpack.c.bf16 %v4163_v24, %v4155_v23 }
 0x650   : > { %7986 = vmatpush1.bf16.msra.mxu1 %v7985_v37  ;;  %7860 = vmatprep.subr.bf16.mxu0 %v7859_v41  ;;  %v2467_v37 = vld [vmem:[#allocation13 + $0xee0] sm:$0xff]  ;;  %v2461_v41 = vld [vmem:[#allocation13 + $0xeb0] sm:$0xff]  ;;  %v4244_v23 = vld [vmem:[#allocation13 + $0x22d8] sm:$0xff] }
 0x651   : > { %7988 = vmatprep.subr.bf16.mxu1 %v7987_v47  ;;  %v2484_v47 = vld [vmem:[#allocation13 + $0xf68] sm:$0xff]  ;;  %v7877_v31 = vpack.c.bf16 %v2467_v37, %v2459_v36  ;;  %v8005_v52 = vpack.c.bf16 %v2469_v45, %v2461_v41  ;;  %v4179_v36 = vld [vmem:[#allocation13 + $0x20d0] sm:$0xff]  ;;  %v8147_v45 = vpack.c.bf16 %v4180_v29, %v4172_v28  ;;  %v4241_v28 = vld [vmem:[#allocation13 + $0x22c0] sm:$0xff] }
 0x652   : > { %v7879_v54 = vpack.c.bf16 %v2484_v47, %v2476_v46  ;;  %v4186_v37 = vld [vmem:[#allocation13 + $0x2108] sm:$0xff]  ;;  %v4188_v46 = vld [vmem:[#allocation13 + $0x2118] sm:$0xff]  ;;  %v4235_v29 = vld [vmem:[#allocation13 + $0x2290] sm:$0xff] }
 0x653   : > { %7862 = vmatpush1.bf16.msra.mxu0 %v7861_v55  ;;  %v2475_v55 = vld [vmem:[#allocation13 + $0xf20] sm:$0xff]  ;;  %v4194_v41 = vld [vmem:[#allocation13 + $0x2148] sm:$0xff]  ;;  %v4196_v47 = vld [vmem:[#allocation13 + $0x2158] sm:$0xff] }
 0x654   : > { %7990 = vmatpush1.bf16.msra.mxu1 %v7989_v56  ;;  %7864 = vmatprep.subr.bf16.mxu0 %v7863_v59  ;;  %v2483_v56 = vld [vmem:[#allocation13 + $0xf60] sm:$0xff]  ;;  %v2477_v59 = vld [vmem:[#allocation13 + $0xf30] sm:$0xff] }
 0x655   : > { %7992 = vmatprep.subr.bf16.mxu1 %v7991_v62  ;;  %v2500_v62 = vld [vmem:[#allocation13 + $0xfe8] sm:$0xff]  ;;  %v7881_v2 = vpack.c.bf16 %v2483_v56, %v2475_v55  ;;  %v8009_v4 = vpack.c.bf16 %v2485_v51, %v2477_v59  ;;  %v4187_v55 = vld [vmem:[#allocation13 + $0x2110] sm:$0xff] }
 0x656   : > { %v7883_v6 = vpack.c.bf16 %v2500_v62, %v2492_v61  ;;  %v4195_v56 = vld [vmem:[#allocation13 + $0x2150] sm:$0xff]  ;;  %v4202_v59 = vld [vmem:[#allocation13 + $0x2188] sm:$0xff] }
 0x657   : > { %7866 = vmatpush1.bf16.msra.mxu0 %v7865_v7  ;;  %v2491_v7 = vld [vmem:[#allocation13 + $0xfa0] sm:$0xff]  ;;  %v8153_v61 = vpack.c.bf16 %v4195_v56, %v4187_v55  ;;  %v8027_v62 = vpack.c.bf16 %v4210_v58, %v4202_v59  ;;  %v4268_v55 = vld [vmem:[#allocation13 + $0x2398] sm:$0xff] }
 0x658   : > { %7994 = vmatpush1.bf16.msra.mxu1 %v7993_v8  ;;  %7868 = vmatprep.subr.bf16.mxu0 %v7867_v57  ;;  %v2499_v8 = vld [vmem:[#allocation13 + $0xfe0] sm:$0xff]  ;;  %v2493_v57 = vld [vmem:[#allocation13 + $0xfb0] sm:$0xff] }
 0x659   : > { %7996 = vmatprep.subr.bf16.mxu1 %v7995_v12  ;;  %v4162_v12 = vld [vmem:[#allocation13 + $0x2048] sm:$0xff]  ;;  %v7885_v18 = vpack.c.bf16 %v2499_v8, %v2491_v7  ;;  %v8013_v19 = vpack.c.bf16 %v2501_v10, %v2493_v57  ;;  %v4220_v57 = vld [vmem:[#allocation13 + $0x2218] sm:$0xff]  ;;  %v8029_v10 = vpack.c.bf16 %v4209_v1, %v4201_v63 }
 0x65a   : > { %v8015_v20 = vpack.c.bf16 %v4162_v12, %v4154_v11  ;;  %v4218_v7 = vld [vmem:[#allocation13 + $0x2208] sm:$0xff] }
 0x65b   : > { %7870 = vmatpush1.bf16.msra.mxu0 %v7869_v21  ;;  %v4153_v21 = vld [vmem:[#allocation13 + $0x2000] sm:$0xff]  ;;  %v4226_v8 = vld [vmem:[#allocation13 + $0x2248] sm:$0xff] }
 0x65c   : > { %7998 = vmatpush1.bf16.msra.mxu1 %v7997_v3  ;;  %7872 = vmatprep.subr.bf16.mxu0 %v7871_v22  ;;  %v4161_v3 = vld [vmem:[#allocation13 + $0x2040] sm:$0xff]  ;;  %v8143_v22 = vpack.c.bf16 %v4164_v15, %v4156_v13  ;;  %v8031_v12 = vpack.c.bf16 %v4226_v8, %v4218_v7  ;;  %v4282_v63 = vld [vmem:[#allocation13 + $0x2408] sm:$0xff] }
 0x65d   : > { %8000 = vmatprep.subr.bf16.mxu1 %v7999_v27  ;;  %v4178_v27 = vld [vmem:[#allocation13 + $0x20c8] sm:$0xff]  ;;  %v8017_v17 = vpack.c.bf16 %v4161_v3, %v4153_v21  ;;  %v4217_v13 = vld [vmem:[#allocation13 + $0x2200] sm:$0xff] }
 0x65e   : > { %v4225_v15 = vld [vmem:[#allocation13 + $0x2240] sm:$0xff]  ;;  %v4234_v21 = vld [vmem:[#allocation13 + $0x2288] sm:$0xff] }
 0x65f   : > { %7874 = vmatpush1.bf16.msra.mxu0 %v7873_v33  ;;  %v4177_v33 = vld [vmem:[#allocation13 + $0x20c0] sm:$0xff]  ;;  %v4242_v3 = vld [vmem:[#allocation13 + $0x22c8] sm:$0xff]  ;;  %v8033_v24 = vpack.c.bf16 %v4225_v15, %v4217_v13 }
 0x660   : > { %8002 = vmatpush1.bf16.msra.mxu1 %v8001_v34  ;;  %7876 = vmatprep.subr.bf16.mxu0 %v7875_v35  ;;  %v4171_v34 = vld [vmem:[#allocation13 + $0x2090] sm:$0xff]  ;;  %v8019_v35 = vpack.c.bf16 %v4178_v27, %v4170_v25  ;;  %v8021_v49 = vpack.c.bf16 %v4177_v33, %v4169_v32  ;;  %v8035_v27 = vpack.c.bf16 %v4242_v3, %v4234_v21  ;;  %v4250_v33 = vld [vmem:[#allocation13 + $0x2308] sm:$0xff] }
 0x661   : > { %8004 = vmatprep.subr.bf16.mxu1 %v8003_v44  ;;  %v10143_v44 = vrot.slane %v10060_v0, 1  ;;  %v8149_v50 = vpack.c.bf16 %v4179_v36, %v4171_v34  ;;  %v8151_v0 = vpack.c.bf16 %v4196_v47, %v4188_v46  ;;  %v4243_v32 = vld [vmem:[#allocation13 + $0x22d0] sm:$0xff]  ;;  %v4258_v34 = vld [vmem:[#allocation13 + $0x2348] sm:$0xff]  ;;  %v4260_v36 = vld [vmem:[#allocation13 + $0x2358] sm:$0xff] }
 0x662   : > { %v4249_v46 = vld [vmem:[#allocation13 + $0x2300] sm:$0xff]  ;;  %v4290_v1 = vld [vmem:[#allocation13 + $0x2448] sm:$0xff] }
 0x663   : > { %7878 = vmatpush1.bf16.msra.mxu0 %v7877_v31  ;;  %v8023_v31 = vpack.c.bf16 %v4194_v41, %v4186_v37  ;;  %v8165_v41 = vpack.c.bf16 %v4243_v32, %v4235_v29  ;;  %v4257_v47 = vld [vmem:[#allocation13 + $0x2340] sm:$0xff]  ;;  %v8047_v8 = vpack.c.bf16 %v4290_v1, %v4282_v63  ;;  %v4298_v13 = vld [vmem:[#allocation13 + $0x2488] sm:$0xff]  ;;  %v4316_v29 = vld [vmem:[#allocation13 + $0x2518] sm:$0xff] }
 0x664   : > { %8006 = vmatpush1.bf16.msra.mxu1 %v8005_v52  ;;  %7880 = vmatprep.subr.bf16.mxu0 %v7879_v54  ;;  %v4185_v52 = vld [vmem:[#allocation13 + $0x2100] sm:$0xff]  ;;  %v8041_v56 = vpack.c.bf16 %v4257_v47, %v4249_v46  ;;  %v4306_v15 = vld [vmem:[#allocation13 + $0x24c8] sm:$0xff] }
 0x665   : > { %8008 = vmatprep.subr.bf16.mxu1 %v8007_v60  ;;  %v4193_v54 = vld [vmem:[#allocation13 + $0x2140] sm:$0xff]  ;;  %v4212_v60 = vld [vmem:[#allocation13 + $0x21d8] sm:$0xff]  ;;  %v8051_v3 = vpack.c.bf16 %v4306_v15, %v4298_v13  ;;  %v4330_v46 = vld [vmem:[#allocation13 + $0x2588] sm:$0xff] }
 0x666   : > { %v8025_v51 = vpack.c.bf16 %v4193_v54, %v4185_v52  ;;  %v4266_v52 = vld [vmem:[#allocation13 + $0x2388] sm:$0xff] }
 0x667   : > { %7882 = vmatpush1.bf16.msra.mxu0 %v7881_v2  ;;  %v4203_v2 = vld [vmem:[#allocation13 + $0x2190] sm:$0xff]  ;;  %v4274_v54 = vld [vmem:[#allocation13 + $0x23c8] sm:$0xff] }
 0x668   : > { %8010 = vmatpush1.bf16.msra.mxu1 %v8009_v4  ;;  %7884 = vmatprep.subr.bf16.mxu0 %v7883_v6  ;;  %v4211_v6 = vld [vmem:[#allocation13 + $0x21d0] sm:$0xff]  ;;  %v8043_v58 = vpack.c.bf16 %v4274_v54, %v4266_v52  ;;  %v4338_v47 = vld [vmem:[#allocation13 + $0x25c8] sm:$0xff] }
 0x669   : > { %8012 = vmatprep.subr.bf16.mxu1 %v8011_v9  ;;  %v4228_v9 = vld [vmem:[#allocation13 + $0x2258] sm:$0xff]  ;;  %v8157_v11 = vpack.c.bf16 %v4211_v6, %v4203_v2  ;;  %v8059_v54 = vpack.c.bf16 %v4338_v47, %v4330_v46 }
 0x66a   : > { %v4284_v2 = vld [vmem:[#allocation13 + $0x2418] sm:$0xff] }
 0x66b   : > { %7886 = vmatpush1.bf16.msra.mxu0 %v7885_v18  ;;  %v4219_v18 = vld [vmem:[#allocation13 + $0x2210] sm:$0xff] }
 0x66c   : > { %8014 = vmatpush1.bf16.msra.mxu1 %v8013_v19  ;;  %8016 = vmatprep.subr.bf16.mxu0 %v8015_v20  ;;  %v8159_v19 = vpack.c.bf16 %v4228_v9, %v4220_v57  ;;  %v4227_v20 = vld [vmem:[#allocation13 + $0x2250] sm:$0xff]  ;;  %v4281_v57 = vld [vmem:[#allocation13 + $0x2400] sm:$0xff] }
 0x66d   : > { %8144 = vmatprep.subr.bf16.mxu1 %v8143_v22  ;;  %v4236_v22 = vld [vmem:[#allocation13 + $0x2298] sm:$0xff]  ;;  %v8161_v25 = vpack.c.bf16 %v4227_v20, %v4219_v18  ;;  %v4289_v9 = vld [vmem:[#allocation13 + $0x2440] sm:$0xff] }
 0x66e   : > { %6380 = vmatmul.mubr.msk.f32.vlgmr.msra.gmra.mrb[6].mxu0 %vm10027_vm10, %v10113_v53  ;;  %v4300_v18 = vld [vmem:[#allocation13 + $0x2498] sm:$0xff]  ;;  %v8049_v20 = vpack.c.bf16 %v4289_v9, %v4281_v57  ;;  %v4362_v57 = vld [vmem:[#allocation13 + $0x2688] sm:$0xff] }
 0x66f   : > { %6388 = vmatmul.mubr.msk.f32.vlgmr.msra.gmra.mrb[10].mxu1 %vm10027_vm10, %v10113_v53  ;;  %8018 = vmatpush1.bf16.msra.mxu0 %v8017_v17  ;;  %v4204_v53 = vld [vmem:[#allocation13 + $0x2198] sm:$0xff]  ;;  %v4233_v17 = vld [vmem:[#allocation13 + $0x2280] sm:$0xff]  ;;  %v4370_v9 = vld [vmem:[#allocation13 + $0x26c8] sm:$0xff] }
 0x670   : > { %6389 = vmatprep.mubr.msk.f32.mxu0 %vm1018_vm6, %v10143_v44  ;;  %8146 = vmatpush1.bf16.msra.mxu1 %v8145_v30  ;;  %v8155_v4 = vpack.c.bf16 %v4212_v60, %v4204_v53  ;;  %v8163_v30 = vpack.c.bf16 %v4244_v23, %v4236_v22  ;;  %v8037_v37 = vpack.c.bf16 %v4241_v28, %v4233_v17  ;;  %v4265_v53 = vld [vmem:[#allocation13 + $0x2380] sm:$0xff]  ;;  %v4314_v17 = vld [vmem:[#allocation13 + $0x2508] sm:$0xff] }
 0x671   : > { %6393 = vmatprep.mubr.msk.f32.mxu1 %vm1018_vm6, %v10143_v44  ;;  %8020 = vmatprep.subr.bf16.mxu0 %v8019_v35  ;;  %v4252_v35 = vld [vmem:[#allocation13 + $0x2318] sm:$0xff]  ;;  %v4273_v60 = vld [vmem:[#allocation13 + $0x23c0] sm:$0xff]  ;;  %v4322_v28 = vld [vmem:[#allocation13 + $0x2548] sm:$0xff]  ;;  %v8067_v15 = vpack.c.bf16 %v4370_v9, %v4362_v57  ;;  %v10153_v57 = vrot.slane %v10062_v5, 1 }
 0x672   : > { %8148 = vmatprep.subr.bf16.mxu1 %v8147_v45  ;;  %v8039_v45 = vpack.c.bf16 %v4258_v34, %v4250_v33  ;;  %v8045_v6 = vpack.c.bf16 %v4273_v60, %v4265_v53  ;;  %v4297_v22 = vld [vmem:[#allocation13 + $0x2480] sm:$0xff]  ;;  %v8055_v34 = vpack.c.bf16 %v4322_v28, %v4314_v17  ;;  %v4346_v53 = vld [vmem:[#allocation13 + $0x2608] sm:$0xff]  ;;  %v4452_v5 = vld [vmem:[#allocation13 + $0x2958] sm:$0xff] }
 0x673   : > { %8022 = vmatpush1.bf16.msra.mxu0 %v8021_v49  ;;  %v4251_v49 = vld [vmem:[#allocation13 + $0x2310] sm:$0xff]  ;;  %v4305_v23 = vld [vmem:[#allocation13 + $0x24c0] sm:$0xff]  ;;  %v4354_v60 = vld [vmem:[#allocation13 + $0x2648] sm:$0xff] }
 0x674   : > { %8150 = vmatpush1.bf16.msra.mxu1 %v8149_v50  ;;  %8024 = vmatprep.subr.bf16.mxu0 %v8023_v31  ;;  %v8167_v50 = vpack.c.bf16 %v4260_v36, %v4252_v35  ;;  %v4259_v31 = vld [vmem:[#allocation13 + $0x2350] sm:$0xff]  ;;  %v8053_v32 = vpack.c.bf16 %v4305_v23, %v4297_v22  ;;  %v4313_v35 = vld [vmem:[#allocation13 + $0x2500] sm:$0xff]  ;;  %v8063_v1 = vpack.c.bf16 %v4354_v60, %v4346_v53  ;;  %v4378_v22 = vld [vmem:[#allocation13 + $0x2708] sm:$0xff] }
 0x675   : > { %8152 = vmatprep.subr.bf16.mxu1 %v8151_v0  ;;  %v4276_v0 = vld [vmem:[#allocation13 + $0x23d8] sm:$0xff]  ;;  %v8169_v59 = vpack.c.bf16 %v4259_v31, %v4251_v49  ;;  %v4321_v36 = vld [vmem:[#allocation13 + $0x2540] sm:$0xff]  ;;  %v4386_v23 = vld [vmem:[#allocation13 + $0x2748] sm:$0xff] }
 0x676   : > { %v4332_v49 = vld [vmem:[#allocation13 + $0x2598] sm:$0xff]  ;;  %v8057_v31 = vpack.c.bf16 %v4321_v36, %v4313_v35  ;;  %v8071_v28 = vpack.c.bf16 %v4386_v23, %v4378_v22  ;;  %v4394_v35 = vld [vmem:[#allocation13 + $0x2788] sm:$0xff] }
 0x677   : > { %8026 = vmatpush1.bf16.msra.mxu0 %v8025_v51  ;;  %v4267_v51 = vld [vmem:[#allocation13 + $0x2390] sm:$0xff]  ;;  %v4402_v36 = vld [vmem:[#allocation13 + $0x27c8] sm:$0xff] }
 0x678   : > { %8154 = vmatpush1.bf16.msra.mxu1 %v8153_v61  ;;  %8028 = vmatprep.subr.bf16.mxu0 %v8027_v62  ;;  %v8171_v61 = vpack.c.bf16 %v4276_v0, %v4268_v55  ;;  %v4275_v62 = vld [vmem:[#allocation13 + $0x23d0] sm:$0xff]  ;;  %v4329_v55 = vld [vmem:[#allocation13 + $0x2580] sm:$0xff]  ;;  %v8075_v47 = vpack.c.bf16 %v4402_v36, %v4394_v35 }
 0x679   : > { %8156 = vmatprep.subr.bf16.mxu1 %v8155_v4  ;;  %v4292_v4 = vld [vmem:[#allocation13 + $0x2458] sm:$0xff]  ;;  %v8173_v7 = vpack.c.bf16 %v4275_v62, %v4267_v51  ;;  %v4337_v0 = vld [vmem:[#allocation13 + $0x25c0] sm:$0xff] }
 0x67a   : > { %v4348_v51 = vld [vmem:[#allocation13 + $0x2618] sm:$0xff]  ;;  %v8061_v62 = vpack.c.bf16 %v4337_v0, %v4329_v55  ;;  %v4410_v55 = vld [vmem:[#allocation13 + $0x2808] sm:$0xff] }
 0x67b   : > { %8030 = vmatpush1.bf16.msra.mxu0 %v8029_v10  ;;  %v4283_v10 = vld [vmem:[#allocation13 + $0x2410] sm:$0xff]  ;;  %v4418_v0 = vld [vmem:[#allocation13 + $0x2848] sm:$0xff] }
 0x67c   : > { %8158 = vmatpush1.bf16.msra.mxu1 %v8157_v11  ;;  %8032 = vmatprep.subr.bf16.mxu0 %v8031_v12  ;;  %v8175_v11 = vpack.c.bf16 %v4292_v4, %v4284_v2  ;;  %v4291_v12 = vld [vmem:[#allocation13 + $0x2450] sm:$0xff]  ;;  %v4345_v2 = vld [vmem:[#allocation13 + $0x2600] sm:$0xff]  ;;  %v8079_v60 = vpack.c.bf16 %v4418_v0, %v4410_v55 }
 0x67d   : > { %8160 = vmatprep.subr.bf16.mxu1 %v8159_v19  ;;  %v4308_v19 = vld [vmem:[#allocation13 + $0x24d8] sm:$0xff]  ;;  %v8177_v21 = vpack.c.bf16 %v4291_v12, %v4283_v10  ;;  %v4353_v4 = vld [vmem:[#allocation13 + $0x2640] sm:$0xff] }
 0x67e   : > { %v4364_v10 = vld [vmem:[#allocation13 + $0x2698] sm:$0xff]  ;;  %v8065_v12 = vpack.c.bf16 %v4353_v4, %v4345_v2  ;;  %v4426_v2 = vld [vmem:[#allocation13 + $0x2888] sm:$0xff] }
 0x67f   : > { %8034 = vmatpush1.bf16.msra.mxu0 %v8033_v24  ;;  %v4299_v24 = vld [vmem:[#allocation13 + $0x2490] sm:$0xff]  ;;  %v4434_v4 = vld [vmem:[#allocation13 + $0x28c8] sm:$0xff] }
 0x680   : > { %8162 = vmatpush1.bf16.msra.mxu1 %v8161_v25  ;;  %8036 = vmatprep.subr.bf16.mxu0 %v8035_v27  ;;  %v8179_v25 = vpack.c.bf16 %v4308_v19, %v4300_v18  ;;  %v4307_v27 = vld [vmem:[#allocation13 + $0x24d0] sm:$0xff]  ;;  %v4361_v18 = vld [vmem:[#allocation13 + $0x2680] sm:$0xff] }
 0x681   : > { %8164 = vmatprep.subr.bf16.mxu1 %v8163_v30  ;;  %v4324_v30 = vld [vmem:[#allocation13 + $0x2558] sm:$0xff]  ;;  %v8181_v33 = vpack.c.bf16 %v4307_v27, %v4299_v24  ;;  %v4369_v19 = vld [vmem:[#allocation13 + $0x26c0] sm:$0xff] }
 0x682   : > { %v4380_v24 = vld [vmem:[#allocation13 + $0x2718] sm:$0xff]  ;;  %v8069_v27 = vpack.c.bf16 %v4369_v19, %v4361_v18  ;;  %v4442_v18 = vld [vmem:[#allocation13 + $0x2908] sm:$0xff] }
 0x683   : > { %8038 = vmatpush1.bf16.msra.mxu0 %v8037_v37  ;;  %v4315_v37 = vld [vmem:[#allocation13 + $0x2510] sm:$0xff]  ;;  %v4450_v19 = vld [vmem:[#allocation13 + $0x2948] sm:$0xff] }
 0x684   : > { %8166 = vmatpush1.bf16.msra.mxu1 %v8165_v41  ;;  %8040 = vmatprep.subr.bf16.mxu0 %v8039_v45  ;;  %v8183_v41 = vpack.c.bf16 %v4324_v30, %v4316_v29  ;;  %v4323_v45 = vld [vmem:[#allocation13 + $0x2550] sm:$0xff]  ;;  %v4377_v29 = vld [vmem:[#allocation13 + $0x2700] sm:$0xff] }
 0x685   : > { %8168 = vmatprep.subr.bf16.mxu1 %v8167_v50  ;;  %v4340_v50 = vld [vmem:[#allocation13 + $0x25d8] sm:$0xff]  ;;  %v8185_v52 = vpack.c.bf16 %v4323_v45, %v4315_v37  ;;  %v4385_v30 = vld [vmem:[#allocation13 + $0x2740] sm:$0xff] }
 0x686   : > { %v4396_v37 = vld [vmem:[#allocation13 + $0x2798] sm:$0xff]  ;;  %v8073_v45 = vpack.c.bf16 %v4385_v30, %v4377_v29  ;;  %v4458_v29 = vld [vmem:[#allocation13 + $0x2988] sm:$0xff] }
 0x687   : > { %8042 = vmatpush1.bf16.msra.mxu0 %v8041_v56  ;;  %v4331_v56 = vld [vmem:[#allocation13 + $0x2590] sm:$0xff]  ;;  %v4466_v30 = vld [vmem:[#allocation13 + $0x29c8] sm:$0xff] }
 0x688   : > { %8170 = vmatpush1.bf16.msra.mxu1 %v8169_v59  ;;  %8044 = vmatprep.subr.bf16.mxu0 %v8043_v58  ;;  %v8187_v59 = vpack.c.bf16 %v4340_v50, %v4332_v49  ;;  %v4339_v58 = vld [vmem:[#allocation13 + $0x25d0] sm:$0xff]  ;;  %v4393_v49 = vld [vmem:[#allocation13 + $0x2780] sm:$0xff]  ;;  %v8091_v36 = vpack.c.bf16 %v4466_v30, %v4458_v29 }
 0x689   : > { %8172 = vmatprep.subr.bf16.mxu1 %v8171_v61  ;;  %v4356_v61 = vld [vmem:[#allocation13 + $0x2658] sm:$0xff]  ;;  %v8189_v63 = vpack.c.bf16 %v4339_v58, %v4331_v56  ;;  %v4401_v50 = vld [vmem:[#allocation13 + $0x27c0] sm:$0xff] }
 0x68a   : > { %v4412_v56 = vld [vmem:[#allocation13 + $0x2818] sm:$0xff]  ;;  %v8077_v58 = vpack.c.bf16 %v4401_v50, %v4393_v49  ;;  %v4474_v49 = vld [vmem:[#allocation13 + $0x2a08] sm:$0xff] }
 0x68b   : > { %8046 = vmatpush1.bf16.msra.mxu0 %v8045_v6  ;;  %v4347_v6 = vld [vmem:[#allocation13 + $0x2610] sm:$0xff]  ;;  %v4482_v50 = vld [vmem:[#allocation13 + $0x2a48] sm:$0xff] }
 0x68c   : > { %8174 = vmatpush1.bf16.msra.mxu1 %v8173_v7  ;;  %8048 = vmatprep.subr.bf16.mxu0 %v8047_v8  ;;  %v8191_v7 = vpack.c.bf16 %v4356_v61, %v4348_v51  ;;  %v4355_v8 = vld [vmem:[#allocation13 + $0x2650] sm:$0xff]  ;;  %v4409_v51 = vld [vmem:[#allocation13 + $0x2800] sm:$0xff]  ;;  %v8095_v0 = vpack.c.bf16 %v4482_v50, %v4474_v49 }
 0x68d   : > { %8176 = vmatprep.subr.bf16.mxu1 %v8175_v11  ;;  %v4372_v11 = vld [vmem:[#allocation13 + $0x26d8] sm:$0xff]  ;;  %v8193_v13 = vpack.c.bf16 %v4355_v8, %v4347_v6  ;;  %v4417_v61 = vld [vmem:[#allocation13 + $0x2840] sm:$0xff] }
 0x68e   : > { %v8081_v6 = vpack.c.bf16 %v4417_v61, %v4409_v51  ;;  %v4436_v8 = vld [vmem:[#allocation13 + $0x28d8] sm:$0xff]  ;;  %v4490_v51 = vld [vmem:[#allocation13 + $0x2a88] sm:$0xff] }
 0x68f   : > { %8050 = vmatpush1.bf16.msra.mxu0 %v8049_v20  ;;  %v4363_v20 = vld [vmem:[#allocation13 + $0x2690] sm:$0xff]  ;;  %v4498_v61 = vld [vmem:[#allocation13 + $0x2ac8] sm:$0xff] }
 0x690   : > { %8178 = vmatpush1.bf16.msra.mxu1 %v8177_v21  ;;  %8052 = vmatprep.subr.bf16.mxu0 %v8051_v3  ;;  %v8195_v21 = vpack.c.bf16 %v4372_v11, %v4364_v10  ;;  %v4371_v3 = vld [vmem:[#allocation13 + $0x26d0] sm:$0xff]  ;;  %v4425_v10 = vld [vmem:[#allocation13 + $0x2880] sm:$0xff] }
 0x691   : > { %8180 = vmatprep.subr.bf16.mxu1 %v8179_v25  ;;  %v4388_v25 = vld [vmem:[#allocation13 + $0x2758] sm:$0xff]  ;;  %v8197_v17 = vpack.c.bf16 %v4371_v3, %v4363_v20  ;;  %v4433_v11 = vld [vmem:[#allocation13 + $0x28c0] sm:$0xff]  ;;  %v10158_v20 = vrot.slane %v10066_v14, 1 }
 0x692   : > { %v4444_v3 = vld [vmem:[#allocation13 + $0x2918] sm:$0xff]  ;;  %v8085_v22 = vpack.c.bf16 %v4433_v11, %v4425_v10  ;;  %v4499_v10 = vld [vmem:[#allocation13 + $0x2ad0] sm:$0xff]  ;;  %v4506_v11 = vld [vmem:[#allocation13 + $0x2b08] sm:$0xff] }
 0x693   : > { %8054 = vmatpush1.bf16.msra.mxu0 %v8053_v32  ;;  %v4379_v32 = vld [vmem:[#allocation13 + $0x2710] sm:$0xff]  ;;  %v8215_v14 = vpack.c.bf16 %v4452_v5, %v4444_v3  ;;  %v4505_v3 = vld [vmem:[#allocation13 + $0x2b00] sm:$0xff] }
 0x694   : > { %8182 = vmatpush1.bf16.msra.mxu1 %v8181_v33  ;;  %8056 = vmatprep.subr.bf16.mxu0 %v8055_v34  ;;  %v8199_v33 = vpack.c.bf16 %v4388_v25, %v4380_v24  ;;  %v4387_v34 = vld [vmem:[#allocation13 + $0x2750] sm:$0xff]  ;;  %v8087_v24 = vpack.c.bf16 %v4450_v19, %v4442_v18  ;;  %v4441_v25 = vld [vmem:[#allocation13 + $0x2900] sm:$0xff] }
 0x695   : > { %8184 = vmatprep.subr.bf16.mxu1 %v8183_v41  ;;  %v4404_v41 = vld [vmem:[#allocation13 + $0x27d8] sm:$0xff]  ;;  %v8201_v46 = vpack.c.bf16 %v4387_v34, %v4379_v32  ;;  %v4513_v5 = vld [vmem:[#allocation13 + $0x2b40] sm:$0xff] }
 0x696   : > { %v4460_v32 = vld [vmem:[#allocation13 + $0x2998] sm:$0xff] }
 0x697   : > { %8058 = vmatpush1.bf16.msra.mxu0 %v8057_v31  ;;  %v4395_v31 = vld [vmem:[#allocation13 + $0x2790] sm:$0xff] }
 0x698   : > { %8186 = vmatpush1.bf16.msra.mxu1 %v8185_v52  ;;  %8060 = vmatprep.subr.bf16.mxu0 %v8059_v54  ;;  %v8203_v52 = vpack.c.bf16 %v4404_v41, %v4396_v37  ;;  %v4403_v54 = vld [vmem:[#allocation13 + $0x27d0] sm:$0xff]  ;;  %v4457_v37 = vld [vmem:[#allocation13 + $0x2980] sm:$0xff] }
 0x699   : > { %8188 = vmatprep.subr.bf16.mxu1 %v8187_v59  ;;  %v4420_v59 = vld [vmem:[#allocation13 + $0x2858] sm:$0xff]  ;;  %v8205_v53 = vpack.c.bf16 %v4403_v54, %v4395_v31  ;;  %v4465_v41 = vld [vmem:[#allocation13 + $0x29c0] sm:$0xff] }
 0x69a   : > { %v4476_v31 = vld [vmem:[#allocation13 + $0x2a18] sm:$0xff]  ;;  %v8093_v54 = vpack.c.bf16 %v4465_v41, %v4457_v37  ;;  %v4538_v37 = vld [vmem:[#allocation13 + $0x2c08] sm:$0xff] }
 0x69b   : > { %8062 = vmatpush1.bf16.msra.mxu0 %v8061_v62  ;;  %v8207_v62 = vpack.c.bf16 %v4420_v59, %v4412_v56  ;;  %v4473_v56 = vld [vmem:[#allocation13 + $0x2a00] sm:$0xff]  ;;  %v4546_v41 = vld [vmem:[#allocation13 + $0x2c48] sm:$0xff] }
 0x69c   : > { %8190 = vmatpush1.bf16.msra.mxu1 %v8189_v63  ;;  %8064 = vmatprep.subr.bf16.mxu0 %v8063_v1  ;;  %v4411_v63 = vld [vmem:[#allocation13 + $0x2810] sm:$0xff]  ;;  %v4481_v59 = vld [vmem:[#allocation13 + $0x2a40] sm:$0xff]  ;;  %v8111_v50 = vpack.c.bf16 %v4546_v41, %v4538_v37 }
 0x69d   : > { %8192 = vmatprep.subr.bf16.mxu1 %v8191_v7  ;;  %v4419_v1 = vld [vmem:[#allocation13 + $0x2850] sm:$0xff]  ;;  %v4428_v7 = vld [vmem:[#allocation13 + $0x2898] sm:$0xff] }
 0x69e   : > { %v8209_v9 = vpack.c.bf16 %v4419_v1, %v4411_v63  ;;  %v4500_v63 = vld [vmem:[#allocation13 + $0x2ad8] sm:$0xff]  ;;  %v8097_v1 = vpack.c.bf16 %v4481_v59, %v4473_v56  ;;  %v4554_v56 = vld [vmem:[#allocation13 + $0x2c88] sm:$0xff] }
 0x69f   : > { %8066 = vmatpush1.bf16.msra.mxu0 %v8065_v12  ;;  %v4427_v12 = vld [vmem:[#allocation13 + $0x2890] sm:$0xff]  ;;  %v4562_v59 = vld [vmem:[#allocation13 + $0x2cc8] sm:$0xff] }
 0x6a0   : > { %8194 = vmatpush1.bf16.msra.mxu1 %v8193_v13  ;;  %8068 = vmatprep.subr.bf16.mxu0 %v8067_v15  ;;  %v8083_v13 = vpack.c.bf16 %v4434_v4, %v4426_v2  ;;  %v4435_v15 = vld [vmem:[#allocation13 + $0x28d0] sm:$0xff]  ;;  %v8099_v4 = vpack.c.bf16 %v4498_v61, %v4490_v51  ;;  %v8115_v61 = vpack.c.bf16 %v4562_v59, %v4554_v56 }
 0x6a1   : > { %8196 = vmatprep.subr.bf16.mxu1 %v8195_v21  ;;  %v8211_v21 = vpack.c.bf16 %v4436_v8, %v4428_v7  ;;  %v8213_v23 = vpack.c.bf16 %v4435_v15, %v4427_v12  ;;  %v4497_v7 = vld [vmem:[#allocation13 + $0x2ac0] sm:$0xff]  ;;  %v4491_v8 = vld [vmem:[#allocation13 + $0x2a90] sm:$0xff]  ;;  %v4514_v12 = vld [vmem:[#allocation13 + $0x2b48] sm:$0xff] }
 0x6a2   : > { %v4516_v15 = vld [vmem:[#allocation13 + $0x2b58] sm:$0xff]  ;;  %v8229_v19 = vpack.c.bf16 %v4499_v10, %v4491_v8 }
 0x6a3   : > { %8070 = vmatpush1.bf16.msra.mxu0 %v8069_v27  ;;  %v4449_v27 = vld [vmem:[#allocation13 + $0x2940] sm:$0xff]  ;;  %v4572_v8 = vld [vmem:[#allocation13 + $0x2d18] sm:$0xff] }
 0x6a4   : > { %8198 = vmatpush1.bf16.msra.mxu1 %v8197_v17  ;;  %8072 = vmatprep.subr.bf16.mxu0 %v8071_v28  ;;  %v4443_v17 = vld [vmem:[#allocation13 + $0x2910] sm:$0xff]  ;;  %v8089_v34 = vpack.c.bf16 %v4449_v27, %v4441_v25  ;;  %v4522_v25 = vld [vmem:[#allocation13 + $0x2b88] sm:$0xff] }
 0x6a5   : > { %8200 = vmatprep.subr.bf16.mxu1 %v8199_v33  ;;  %v4451_v28 = vld [vmem:[#allocation13 + $0x2950] sm:$0xff]  ;;  %v4468_v33 = vld [vmem:[#allocation13 + $0x29d8] sm:$0xff]  ;;  %v4530_v27 = vld [vmem:[#allocation13 + $0x2bc8] sm:$0xff] }
 0x6a6   : > { %v8217_v35 = vpack.c.bf16 %v4451_v28, %v4443_v17  ;;  %v4524_v17 = vld [vmem:[#allocation13 + $0x2b98] sm:$0xff]  ;;  %v8105_v28 = vpack.c.bf16 %v4513_v5, %v4505_v3  ;;  %v8107_v30 = vpack.c.bf16 %v4530_v27, %v4522_v25  ;;  %v4586_v3 = vld [vmem:[#allocation13 + $0x2d88] sm:$0xff] }
 0x6a7   : > { %8074 = vmatpush1.bf16.msra.mxu0 %v8073_v45  ;;  %v4459_v45 = vld [vmem:[#allocation13 + $0x2990] sm:$0xff]  ;;  %v4594_v5 = vld [vmem:[#allocation13 + $0x2dc8] sm:$0xff] }
 0x6a8   : > { %8202 = vmatpush1.bf16.msra.mxu1 %v8201_v46  ;;  %8076 = vmatprep.subr.bf16.mxu0 %v8075_v47  ;;  %v8219_v46 = vpack.c.bf16 %v4468_v33, %v4460_v32  ;;  %v4467_v47 = vld [vmem:[#allocation13 + $0x29d0] sm:$0xff]  ;;  %v4521_v32 = vld [vmem:[#allocation13 + $0x2b80] sm:$0xff]  ;;  %v8123_v27 = vpack.c.bf16 %v4594_v5, %v4586_v3 }
 0x6a9   : > { %8204 = vmatprep.subr.bf16.mxu1 %v8203_v52  ;;  %v4484_v52 = vld [vmem:[#allocation13 + $0x2a58] sm:$0xff]  ;;  %v8221_v55 = vpack.c.bf16 %v4467_v47, %v4459_v45  ;;  %v4529_v33 = vld [vmem:[#allocation13 + $0x2bc0] sm:$0xff] }
 0x6aa   : > { %v4540_v45 = vld [vmem:[#allocation13 + $0x2c18] sm:$0xff]  ;;  %v8109_v47 = vpack.c.bf16 %v4529_v33, %v4521_v32  ;;  %v4602_v32 = vld [vmem:[#allocation13 + $0x2e08] sm:$0xff] }
 0x6ab   : > { %8078 = vmatpush1.bf16.msra.mxu0 %v8077_v58  ;;  %v4475_v58 = vld [vmem:[#allocation13 + $0x2a10] sm:$0xff]  ;;  %v4610_v33 = vld [vmem:[#allocation13 + $0x2e48] sm:$0xff] }
 0x6ac   : > { %8206 = vmatpush1.bf16.msra.mxu1 %v8205_v53  ;;  %8080 = vmatprep.subr.bf16.mxu0 %v8079_v60  ;;  %v8223_v53 = vpack.c.bf16 %v4484_v52, %v4476_v31  ;;  %v4483_v60 = vld [vmem:[#allocation13 + $0x2a50] sm:$0xff]  ;;  %v4537_v31 = vld [vmem:[#allocation13 + $0x2c00] sm:$0xff]  ;;  %v8127_v41 = vpack.c.bf16 %v4610_v33, %v4602_v32 }
 0x6ad   : > { %8208 = vmatprep.subr.bf16.mxu1 %v8207_v62  ;;  %v4492_v62 = vld [vmem:[#allocation13 + $0x2a98] sm:$0xff]  ;;  %v8225_v2 = vpack.c.bf16 %v4483_v60, %v4475_v58  ;;  %v4545_v52 = vld [vmem:[#allocation13 + $0x2c40] sm:$0xff] }
 0x6ae   : > { %6390 = vmatmul.mubr.msk.f32.vlgmr.msra.gmra.mrb[4].mxu0 %vm1018_vm6, %v10153_v57  ;;  %v4556_v58 = vld [vmem:[#allocation13 + $0x2c98] sm:$0xff]  ;;  %v8113_v60 = vpack.c.bf16 %v4545_v52, %v4537_v31  ;;  %v4618_v31 = vld [vmem:[#allocation13 + $0x2e88] sm:$0xff] }
 0x6af   : > { %6394 = vmatmul.mubr.msk.f32.vlgmr.msra.gmra.mrb[8].mxu1 %vm1018_vm6, %v10153_v57  ;;  %8082 = vmatpush1.bf16.msra.mxu0 %v8081_v6  ;;  %v4489_v6 = vld [vmem:[#allocation13 + $0x2a80] sm:$0xff]  ;;  %v4626_v52 = vld [vmem:[#allocation13 + $0x2ec8] sm:$0xff] }
 0x6b0   : > { %6391 = vmatprep.mubr.msk.f32.mxu0 %vm1018_vm6, %v10158_v20  ;;  %8210 = vmatpush1.bf16.msra.mxu1 %v8209_v9  ;;  %v8227_v9 = vpack.c.bf16 %v4500_v63, %v4492_v62  ;;  %v8101_v18 = vpack.c.bf16 %v4497_v7, %v4489_v6  ;;  %v4553_v62 = vld [vmem:[#allocation13 + $0x2c80] sm:$0xff]  ;;  %v4570_v6 = vld [vmem:[#allocation13 + $0x2d08] sm:$0xff]  ;;  %v8131_v59 = vpack.c.bf16 %v4626_v52, %v4618_v31  ;;  %v10167_v31 = vrot.slane %v10073_v48, 1 }
 0x6b1   : > { %6395 = vmatprep.mubr.msk.f32.mxu1 %vm1018_vm6, %v10158_v20  ;;  %8084 = vmatprep.subr.bf16.mxu0 %v8083_v13  ;;  %v4508_v13 = vld [vmem:[#allocation13 + $0x2b18] sm:$0xff]  ;;  %v4561_v63 = vld [vmem:[#allocation13 + $0x2cc0] sm:$0xff]  ;;  %v4578_v7 = vld [vmem:[#allocation13 + $0x2d48] sm:$0xff] }
 0x6b2   : > { %8212 = vmatprep.subr.bf16.mxu1 %v8211_v21  ;;  %v8103_v21 = vpack.c.bf16 %v4514_v12, %v4506_v11  ;;  %v8117_v10 = vpack.c.bf16 %v4561_v63, %v4553_v62  ;;  %v8119_v12 = vpack.c.bf16 %v4578_v7, %v4570_v6  ;;  %v4634_v62 = vld [vmem:[#allocation13 + $0x2f08] sm:$0xff] }
 0x6b3   : > { %8086 = vmatpush1.bf16.msra.mxu0 %v8085_v22  ;;  %v4507_v22 = vld [vmem:[#allocation13 + $0x2b10] sm:$0xff]  ;;  %v4642_v63 = vld [vmem:[#allocation13 + $0x2f48] sm:$0xff] }
 0x6b4   : > { %8214 = vmatpush1.bf16.msra.mxu1 %v8213_v23  ;;  %8088 = vmatprep.subr.bf16.mxu0 %v8087_v24  ;;  %v8231_v23 = vpack.c.bf16 %v4516_v15, %v4508_v13  ;;  %v4515_v24 = vld [vmem:[#allocation13 + $0x2b50] sm:$0xff]  ;;  %v4569_v13 = vld [vmem:[#allocation13 + $0x2d00] sm:$0xff]  ;;  %v8135_v7 = vpack.c.bf16 %v4642_v63, %v4634_v62 }
 0x6b5   : > { %8216 = vmatprep.subr.bf16.mxu1 %v8215_v14  ;;  %v4532_v14 = vld [vmem:[#allocation13 + $0x2bd8] sm:$0xff]  ;;  %v8233_v29 = vpack.c.bf16 %v4515_v24, %v4507_v22  ;;  %v4577_v15 = vld [vmem:[#allocation13 + $0x2d40] sm:$0xff] }
 0x6b6   : > { %v4588_v22 = vld [vmem:[#allocation13 + $0x2d98] sm:$0xff]  ;;  %v8121_v24 = vpack.c.bf16 %v4577_v15, %v4569_v13  ;;  %v4650_v13 = vld [vmem:[#allocation13 + $0x2f88] sm:$0xff] }
 0x6b7   : > { %8090 = vmatpush1.bf16.msra.mxu0 %v8089_v34  ;;  %v4523_v34 = vld [vmem:[#allocation13 + $0x2b90] sm:$0xff]  ;;  %v4658_v15 = vld [vmem:[#allocation13 + $0x2fc8] sm:$0xff] }
 0x6b8   : > { %8218 = vmatpush1.bf16.msra.mxu1 %v8217_v35  ;;  %8092 = vmatprep.subr.bf16.mxu0 %v8091_v36  ;;  %v8235_v35 = vpack.c.bf16 %v4532_v14, %v4524_v17  ;;  %v4531_v36 = vld [vmem:[#allocation13 + $0x2bd0] sm:$0xff]  ;;  %v4585_v17 = vld [vmem:[#allocation13 + $0x2d80] sm:$0xff]  ;;  %v8139_v5 = vpack.c.bf16 %v4658_v15, %v4650_v13 }
 0x6b9   : > { %8220 = vmatprep.subr.bf16.mxu1 %v8219_v46  ;;  %v4548_v46 = vld [vmem:[#allocation13 + $0x2c58] sm:$0xff]  ;;  %v8237_v49 = vpack.c.bf16 %v4531_v36, %v4523_v34  ;;  %v4593_v14 = vld [vmem:[#allocation13 + $0x2dc0] sm:$0xff] }
 0x6ba   : > { %v4604_v34 = vld [vmem:[#allocation13 + $0x2e18] sm:$0xff]  ;;  %v8125_v36 = vpack.c.bf16 %v4593_v14, %v4585_v17  ;;  %v4158_v17 = vld [vmem:[#allocation13 + $0x2028] sm:$0xff] }
 0x6bb   : > { %8094 = vmatpush1.bf16.msra.mxu0 %v8093_v54  ;;  %v4539_v54 = vld [vmem:[#allocation13 + $0x2c10] sm:$0xff]  ;;  %v4166_v14 = vld [vmem:[#allocation13 + $0x2068] sm:$0xff] }
 0x6bc   : > { %8222 = vmatpush1.bf16.msra.mxu1 %v8221_v55  ;;  %8096 = vmatprep.subr.bf16.mxu0 %v8095_v0  ;;  %v8239_v55 = vpack.c.bf16 %v4548_v46, %v4540_v45  ;;  %v4547_v0 = vld [vmem:[#allocation13 + $0x2c50] sm:$0xff]  ;;  %v4601_v45 = vld [vmem:[#allocation13 + $0x2e00] sm:$0xff]  ;;  %v8271_v33 = vpack.c.bf16 %v4166_v14, %v4158_v17 }
 0x6bd   : > { %8224 = vmatprep.subr.bf16.mxu1 %v8223_v53  ;;  %v4564_v53 = vld [vmem:[#allocation13 + $0x2cd8] sm:$0xff]  ;;  %v8241_v51 = vpack.c.bf16 %v4547_v0, %v4539_v54  ;;  %v4609_v46 = vld [vmem:[#allocation13 + $0x2e40] sm:$0xff] }
 0x6be   : > { %v4620_v54 = vld [vmem:[#allocation13 + $0x2e98] sm:$0xff]  ;;  %v8129_v0 = vpack.c.bf16 %v4609_v46, %v4601_v45  ;;  %v4174_v45 = vld [vmem:[#allocation13 + $0x20a8] sm:$0xff]  ;;  %v4221_v14 = vld [vmem:[#allocation13 + $0x2220] sm:$0xff] }
 0x6bf   : > { %8098 = vmatpush1.bf16.msra.mxu0 %v8097_v1  ;;  %v4555_v1 = vld [vmem:[#allocation13 + $0x2c90] sm:$0xff]  ;;  %v4182_v46 = vld [vmem:[#allocation13 + $0x20e8] sm:$0xff] }
 0x6c0   : > { %8226 = vmatpush1.bf16.msra.mxu1 %v8225_v2  ;;  %8100 = vmatprep.subr.bf16.mxu0 %v8099_v4  ;;  %v8243_v2 = vpack.c.bf16 %v4564_v53, %v4556_v58  ;;  %v4563_v4 = vld [vmem:[#allocation13 + $0x2cd0] sm:$0xff]  ;;  %v4617_v58 = vld [vmem:[#allocation13 + $0x2e80] sm:$0xff] }
 0x6c1   : > { %8228 = vmatprep.subr.bf16.mxu1 %v8227_v9  ;;  %v4580_v9 = vld [vmem:[#allocation13 + $0x2d58] sm:$0xff]  ;;  %v8245_v11 = vpack.c.bf16 %v4563_v4, %v4555_v1  ;;  %v4625_v53 = vld [vmem:[#allocation13 + $0x2ec0] sm:$0xff] }
 0x6c2   : > { %v4636_v1 = vld [vmem:[#allocation13 + $0x2f18] sm:$0xff]  ;;  %v8133_v4 = vpack.c.bf16 %v4625_v53, %v4617_v58  ;;  %v4190_v58 = vld [vmem:[#allocation13 + $0x2128] sm:$0xff] }
 0x6c3   : > { %8102 = vmatpush1.bf16.msra.mxu0 %v8101_v18  ;;  %v4571_v18 = vld [vmem:[#allocation13 + $0x2d10] sm:$0xff]  ;;  %v4198_v53 = vld [vmem:[#allocation13 + $0x2168] sm:$0xff] }
 0x6c4   : > { %8230 = vmatpush1.bf16.msra.mxu1 %v8229_v19  ;;  %8104 = vmatprep.subr.bf16.mxu0 %v8103_v21  ;;  %v8247_v19 = vpack.c.bf16 %v4580_v9, %v4572_v8  ;;  %v4579_v21 = vld [vmem:[#allocation13 + $0x2d50] sm:$0xff]  ;;  %v4633_v8 = vld [vmem:[#allocation13 + $0x2f00] sm:$0xff]  ;;  %v8279_v63 = vpack.c.bf16 %v4198_v53, %v4190_v58 }
 0x6c5   : > { %8232 = vmatprep.subr.bf16.mxu1 %v8231_v23  ;;  %v4596_v23 = vld [vmem:[#allocation13 + $0x2dd8] sm:$0xff]  ;;  %v8249_v25 = vpack.c.bf16 %v4579_v21, %v4571_v18  ;;  %v4641_v9 = vld [vmem:[#allocation13 + $0x2f40] sm:$0xff] }
 0x6c6   : > { %v4652_v18 = vld [vmem:[#allocation13 + $0x2f98] sm:$0xff]  ;;  %v8137_v21 = vpack.c.bf16 %v4641_v9, %v4633_v8  ;;  %v4206_v8 = vld [vmem:[#allocation13 + $0x21a8] sm:$0xff] }
 0x6c7   : > { %8106 = vmatpush1.bf16.msra.mxu0 %v8105_v28  ;;  %v4587_v28 = vld [vmem:[#allocation13 + $0x2d90] sm:$0xff]  ;;  %v4214_v9 = vld [vmem:[#allocation13 + $0x21e8] sm:$0xff] }
 0x6c8   : > { %8234 = vmatpush1.bf16.msra.mxu1 %v8233_v29  ;;  %8108 = vmatprep.subr.bf16.mxu0 %v8107_v30  ;;  %v8251_v29 = vpack.c.bf16 %v4596_v23, %v4588_v22  ;;  %v4595_v30 = vld [vmem:[#allocation13 + $0x2dd0] sm:$0xff]  ;;  %v4649_v22 = vld [vmem:[#allocation13 + $0x2f80] sm:$0xff]  ;;  %v8283_v15 = vpack.c.bf16 %v4214_v9, %v4206_v8 }
 0x6c9   : > { %8236 = vmatprep.subr.bf16.mxu1 %v8235_v35  ;;  %v4612_v35 = vld [vmem:[#allocation13 + $0x2e58] sm:$0xff]  ;;  %v8253_v37 = vpack.c.bf16 %v4595_v30, %v4587_v28  ;;  %v4657_v23 = vld [vmem:[#allocation13 + $0x2fc0] sm:$0xff] }
 0x6ca   : > { %v4160_v28 = vld [vmem:[#allocation13 + $0x2038] sm:$0xff]  ;;  %v8141_v30 = vpack.c.bf16 %v4657_v23, %v4649_v22  ;;  %v4230_v22 = vld [vmem:[#allocation13 + $0x2268] sm:$0xff]  ;;  %v4269_v9 = vld [vmem:[#allocation13 + $0x23a0] sm:$0xff] }
 0x6cb   : > { %8110 = vmatpush1.bf16.msra.mxu0 %v8109_v47  ;;  %v4603_v47 = vld [vmem:[#allocation13 + $0x2e10] sm:$0xff]  ;;  %v4224_v23 = vld [vmem:[#allocation13 + $0x2238] sm:$0xff] }
 0x6cc   : > { %8238 = vmatpush1.bf16.msra.mxu1 %v8237_v49  ;;  %8112 = vmatprep.subr.bf16.mxu0 %v8111_v50  ;;  %v8255_v49 = vpack.c.bf16 %v4612_v35, %v4604_v34  ;;  %v4611_v50 = vld [vmem:[#allocation13 + $0x2e50] sm:$0xff]  ;;  %v4157_v34 = vld [vmem:[#allocation13 + $0x2020] sm:$0xff] }
 0x6cd   : > { %8240 = vmatprep.subr.bf16.mxu1 %v8239_v55  ;;  %v4628_v55 = vld [vmem:[#allocation13 + $0x2ed8] sm:$0xff]  ;;  %v8257_v56 = vpack.c.bf16 %v4611_v50, %v4603_v47  ;;  %v4165_v35 = vld [vmem:[#allocation13 + $0x2060] sm:$0xff] }
 0x6ce   : > { %v8273_v47 = vpack.c.bf16 %v4165_v35, %v4157_v34  ;;  %v4184_v50 = vld [vmem:[#allocation13 + $0x20f8] sm:$0xff]  ;;  %v4246_v34 = vld [vmem:[#allocation13 + $0x22e8] sm:$0xff] }
 0x6cf   : > { %8114 = vmatpush1.bf16.msra.mxu0 %v8113_v60  ;;  %v4619_v60 = vld [vmem:[#allocation13 + $0x2e90] sm:$0xff]  ;;  %v4240_v35 = vld [vmem:[#allocation13 + $0x22b8] sm:$0xff] }
 0x6d0   : > { %8242 = vmatpush1.bf16.msra.mxu1 %v8241_v51  ;;  %8116 = vmatprep.subr.bf16.mxu0 %v8115_v61  ;;  %v8259_v51 = vpack.c.bf16 %v4628_v55, %v4620_v54  ;;  %v4627_v61 = vld [vmem:[#allocation13 + $0x2ed0] sm:$0xff]  ;;  %v4173_v54 = vld [vmem:[#allocation13 + $0x20a0] sm:$0xff] }
 0x6d1   : > { %8244 = vmatprep.subr.bf16.mxu1 %v8243_v2  ;;  %v4644_v2 = vld [vmem:[#allocation13 + $0x2f58] sm:$0xff]  ;;  %v8261_v6 = vpack.c.bf16 %v4627_v61, %v4619_v60  ;;  %v4181_v55 = vld [vmem:[#allocation13 + $0x20e0] sm:$0xff] }
 0x6d2   : > { %v4200_v61 = vld [vmem:[#allocation13 + $0x2178] sm:$0xff]  ;;  %v8277_v48 = vpack.c.bf16 %v4181_v55, %v4173_v54  ;;  %v4254_v54 = vld [vmem:[#allocation13 + $0x2328] sm:$0xff] }
 0x6d3   : > { %8118 = vmatpush1.bf16.msra.mxu0 %v8117_v10  ;;  %v4635_v10 = vld [vmem:[#allocation13 + $0x2f10] sm:$0xff]  ;;  %v4262_v55 = vld [vmem:[#allocation13 + $0x2368] sm:$0xff] }
 0x6d4   : > { %8246 = vmatpush1.bf16.msra.mxu1 %v8245_v11  ;;  %8120 = vmatprep.subr.bf16.mxu0 %v8119_v12  ;;  %v8263_v11 = vpack.c.bf16 %v4644_v2, %v4636_v1  ;;  %v4643_v12 = vld [vmem:[#allocation13 + $0x2f50] sm:$0xff]  ;;  %v4189_v1 = vld [vmem:[#allocation13 + $0x2120] sm:$0xff]  ;;  %v8295_v53 = vpack.c.bf16 %v4262_v55, %v4254_v54 }
 0x6d5   : > { %8248 = vmatprep.subr.bf16.mxu1 %v8247_v19  ;;  %v4660_v19 = vld [vmem:[#allocation13 + $0x2fd8] sm:$0xff]  ;;  %v8265_v3 = vpack.c.bf16 %v4643_v12, %v4635_v10  ;;  %v4197_v2 = vld [vmem:[#allocation13 + $0x2160] sm:$0xff] }
 0x6d6   : > { %v4208_v10 = vld [vmem:[#allocation13 + $0x21b8] sm:$0xff]  ;;  %v8281_v12 = vpack.c.bf16 %v4197_v2, %v4189_v1  ;;  %v4278_v1 = vld [vmem:[#allocation13 + $0x23e8] sm:$0xff]  ;;  %v4317_v55 = vld [vmem:[#allocation13 + $0x2520] sm:$0xff] }
 0x6d7   : > { %8122 = vmatpush1.bf16.msra.mxu0 %v8121_v24  ;;  %v4651_v24 = vld [vmem:[#allocation13 + $0x2f90] sm:$0xff]  ;;  %v4272_v2 = vld [vmem:[#allocation13 + $0x23b8] sm:$0xff] }
 0x6d8   : > { %8250 = vmatpush1.bf16.msra.mxu1 %v8249_v25  ;;  %8124 = vmatprep.subr.bf16.mxu0 %v8123_v27  ;;  %v8267_v25 = vpack.c.bf16 %v4660_v19, %v4652_v18  ;;  %v4659_v27 = vld [vmem:[#allocation13 + $0x2fd0] sm:$0xff]  ;;  %v4205_v18 = vld [vmem:[#allocation13 + $0x21a0] sm:$0xff] }
 0x6d9   : > { %8252 = vmatprep.subr.bf16.mxu1 %v8251_v29  ;;  %v4168_v29 = vld [vmem:[#allocation13 + $0x2078] sm:$0xff]  ;;  %v8269_v32 = vpack.c.bf16 %v4659_v27, %v4651_v24  ;;  %v4213_v19 = vld [vmem:[#allocation13 + $0x21e0] sm:$0xff] }
 0x6da   : > { %v4232_v24 = vld [vmem:[#allocation13 + $0x2278] sm:$0xff] }
 0x6db   : > { %8126 = vmatpush1.bf16.msra.mxu0 %v8125_v36  ;;  %v8399_v36 = vpack.c.bf16 %v4168_v29, %v4160_v28  ;;  %v4229_v28 = vld [vmem:[#allocation13 + $0x2260] sm:$0xff]  ;;  %v4223_v29 = vld [vmem:[#allocation13 + $0x2230] sm:$0xff] }
 0x6dc   : > { %8254 = vmatpush1.bf16.msra.mxu1 %v8253_v37  ;;  %8128 = vmatprep.subr.bf16.mxu0 %v8127_v41  ;;  %v4159_v37 = vld [vmem:[#allocation13 + $0x2030] sm:$0xff] }
 0x6dd   : > { %8256 = vmatprep.subr.bf16.mxu1 %v8255_v49  ;;  %v4167_v41 = vld [vmem:[#allocation13 + $0x2070] sm:$0xff]  ;;  %v4176_v49 = vld [vmem:[#allocation13 + $0x20b8] sm:$0xff] }
 0x6de   : > { %v8401_v52 = vpack.c.bf16 %v4167_v41, %v4159_v37  ;;  %v8403_v60 = vpack.c.bf16 %v4184_v50, %v4176_v49  ;;  %v8289_v37 = vpack.c.bf16 %v4229_v28, %v4221_v14  ;;  %v4239_v49 = vld [vmem:[#allocation13 + $0x22b0] sm:$0xff]  ;;  %v4310_v14 = vld [vmem:[#allocation13 + $0x24e8] sm:$0xff]  ;;  %v4304_v28 = vld [vmem:[#allocation13 + $0x24b8] sm:$0xff] }
 0x6df   : > { %8130 = vmatpush1.bf16.msra.mxu0 %v8129_v0  ;;  %v4175_v0 = vld [vmem:[#allocation13 + $0x20b0] sm:$0xff] }
 0x6e0   : > { %8258 = vmatpush1.bf16.msra.mxu1 %v8257_v56  ;;  %8132 = vmatprep.subr.bf16.mxu0 %v8131_v59  ;;  %v8275_v56 = vpack.c.bf16 %v4182_v46, %v4174_v45  ;;  %v4183_v59 = vld [vmem:[#allocation13 + $0x20f0] sm:$0xff]  ;;  %v4237_v46 = vld [vmem:[#allocation13 + $0x22a0] sm:$0xff] }
 0x6e1   : > { %8260 = vmatprep.subr.bf16.mxu1 %v8259_v51  ;;  %v4192_v51 = vld [vmem:[#allocation13 + $0x2138] sm:$0xff]  ;;  %v8405_v62 = vpack.c.bf16 %v4183_v59, %v4175_v0 }
 0x6e2   : > { %v4256_v0 = vld [vmem:[#allocation13 + $0x2338] sm:$0xff] }
 0x6e3   : > { %8134 = vmatpush1.bf16.msra.mxu0 %v8133_v4  ;;  %v4191_v4 = vld [vmem:[#allocation13 + $0x2130] sm:$0xff] }
 0x6e4   : > { %8262 = vmatpush1.bf16.msra.mxu1 %v8261_v6  ;;  %8136 = vmatprep.subr.bf16.mxu0 %v8135_v7  ;;  %v8407_v6 = vpack.c.bf16 %v4200_v61, %v4192_v51  ;;  %v4199_v7 = vld [vmem:[#allocation13 + $0x2170] sm:$0xff]  ;;  %v4261_v51 = vld [vmem:[#allocation13 + $0x2360] sm:$0xff] }
 0x6e5   : > { %8264 = vmatprep.subr.bf16.mxu1 %v8263_v11  ;;  %v4216_v11 = vld [vmem:[#allocation13 + $0x21f8] sm:$0xff]  ;;  %v8409_v13 = vpack.c.bf16 %v4199_v7, %v4191_v4  ;;  %v4255_v61 = vld [vmem:[#allocation13 + $0x2330] sm:$0xff] }
 0x6e6   : > { %v4280_v4 = vld [vmem:[#allocation13 + $0x23f8] sm:$0xff] }
 0x6e7   : > { %8138 = vmatpush1.bf16.msra.mxu0 %v8137_v21  ;;  %v4207_v21 = vld [vmem:[#allocation13 + $0x21b0] sm:$0xff] }
 0x6e8   : > { %8266 = vmatpush1.bf16.msra.mxu1 %v8265_v3  ;;  %8140 = vmatprep.subr.bf16.mxu0 %v8139_v5  ;;  %v8411_v3 = vpack.c.bf16 %v4216_v11, %v4208_v10  ;;  %v4222_v5 = vld [vmem:[#allocation13 + $0x2228] sm:$0xff]  ;;  %v4277_v10 = vld [vmem:[#allocation13 + $0x23e0] sm:$0xff]  ;;  %v4271_v11 = vld [vmem:[#allocation13 + $0x23b0] sm:$0xff] }
 0x6e9   : > { %8268 = vmatprep.subr.bf16.mxu1 %v8267_v25  ;;  %v8285_v25 = vpack.c.bf16 %v4213_v19, %v4205_v18  ;;  %v8287_v17 = vpack.c.bf16 %v4230_v22, %v4222_v5  ;;  %v4294_v18 = vld [vmem:[#allocation13 + $0x2468] sm:$0xff]  ;;  %v4288_v19 = vld [vmem:[#allocation13 + $0x2438] sm:$0xff]  ;;  %v4285_v22 = vld [vmem:[#allocation13 + $0x2420] sm:$0xff] }
 0x6eb   : > { %8142 = vmatpush1.bf16.msra.mxu0 %v8141_v30  ;;  %v8415_v30 = vpack.c.bf16 %v4232_v24, %v4224_v23  ;;  %v4293_v23 = vld [vmem:[#allocation13 + $0x2460] sm:$0xff]  ;;  %v4287_v24 = vld [vmem:[#allocation13 + $0x2430] sm:$0xff] }
 0x6ec   : > { %8270 = vmatpush1.bf16.msra.mxu1 %v8269_v32  ;;  %8272 = vmatprep.subr.bf16.mxu0 %v8271_v33  ;;  %v4231_v32 = vld [vmem:[#allocation13 + $0x2270] sm:$0xff]  ;;  %v4238_v33 = vld [vmem:[#allocation13 + $0x22a8] sm:$0xff] }
 0x6ed   : > { %8400 = vmatprep.subr.bf16.mxu1 %v8399_v36  ;;  %v4248_v36 = vld [vmem:[#allocation13 + $0x22f8] sm:$0xff]  ;;  %v8417_v41 = vpack.c.bf16 %v4231_v32, %v4223_v29  ;;  %v8291_v45 = vpack.c.bf16 %v4246_v34, %v4238_v33  ;;  %v4301_v34 = vld [vmem:[#allocation13 + $0x24a0] sm:$0xff] }
 0x6ee   : > { %6392 = vmatmul.mubr.msk.f32.vlgmr.msra.gmra.mrb[4].mxu0 %vm1018_vm6, %v10167_v31  ;;  %v8419_v50 = vpack.c.bf16 %v4248_v36, %v4240_v35  ;;  %v4312_v29 = vld [vmem:[#allocation13 + $0x24f8] sm:$0xff]  ;;  %v4309_v35 = vld [vmem:[#allocation13 + $0x24e0] sm:$0xff]  ;;  %v4303_v36 = vld [vmem:[#allocation13 + $0x24b0] sm:$0xff] }
 0x6ef   : > { %6396 = vmatmul.mubr.msk.f32.vlgmr.msra.gmra.mrb[8].mxu1 %vm1018_vm6, %v10167_v31  ;;  %8274 = vmatpush1.bf16.msra.mxu0 %v8273_v47  ;;  %v4245_v47 = vld [vmem:[#allocation13 + $0x22e0] sm:$0xff] }
 0x6f0   : > { %6397 = vmatprep.mubr.msk.f32.mxu0 %vm1018_vm6, %v10143_v44  ;;  %8402 = vmatpush1.bf16.msra.mxu1 %v8401_v52  ;;  %v4247_v52 = vld [vmem:[#allocation13 + $0x22f0] sm:$0xff]  ;;  %v8293_v59 = vpack.c.bf16 %v4245_v47, %v4237_v46  ;;  %v4326_v46 = vld [vmem:[#allocation13 + $0x2568] sm:$0xff]  ;;  %v4320_v47 = vld [vmem:[#allocation13 + $0x2538] sm:$0xff] }
 0x6f1   : > { %6401 = vmatprep.mubr.msk.f32.mxu1 %vm1018_vm6, %v10143_v44  ;;  %8276 = vmatprep.subr.bf16.mxu0 %v8275_v56  ;;  %v4215_v44 = vld [vmem:[#allocation13 + $0x21f0] sm:$0xff]  ;;  %v4264_v56 = vld [vmem:[#allocation13 + $0x2378] sm:$0xff]  ;;  %v8421_v58 = vpack.c.bf16 %v4247_v52, %v4239_v49 }
 0x6f2   : > { %8404 = vmatprep.subr.bf16.mxu1 %v8403_v60  ;;  %v8413_v27 = vpack.c.bf16 %v4215_v44, %v4207_v21  ;;  %v4253_v60 = vld [vmem:[#allocation13 + $0x2320] sm:$0xff]  ;;  %v4296_v21 = vld [vmem:[#allocation13 + $0x2478] sm:$0xff] }
 0x6f3   : > { %8278 = vmatpush1.bf16.msra.mxu0 %v8277_v48  ;;  %v8423_v48 = vpack.c.bf16 %v4264_v56, %v4256_v0  ;;  %v4328_v49 = vld [vmem:[#allocation13 + $0x2578] sm:$0xff]  ;;  %v4325_v0 = vld [vmem:[#allocation13 + $0x2560] sm:$0xff]  ;;  %v4319_v56 = vld [vmem:[#allocation13 + $0x2530] sm:$0xff] }
 0x6f4   : > { %8406 = vmatpush1.bf16.msra.mxu1 %v8405_v62  ;;  %8280 = vmatprep.subr.bf16.mxu0 %v8279_v63  ;;  %v4263_v62 = vld [vmem:[#allocation13 + $0x2370] sm:$0xff]  ;;  %v4270_v63 = vld [vmem:[#allocation13 + $0x23a8] sm:$0xff] }
 0x6f5   : > { %8408 = vmatprep.subr.bf16.mxu1 %v8407_v6  ;;  %v8297_v6 = vpack.c.bf16 %v4261_v51, %v4253_v60  ;;  %v8425_v7 = vpack.c.bf16 %v4263_v62, %v4255_v61  ;;  %v8299_v8 = vpack.c.bf16 %v4278_v1, %v4270_v63  ;;  %v4342_v60 = vld [vmem:[#allocation13 + $0x25e8] sm:$0xff]  ;;  %v4336_v51 = vld [vmem:[#allocation13 + $0x25b8] sm:$0xff]  ;;  %v4333_v1 = vld [vmem:[#allocation13 + $0x25a0] sm:$0xff] }
 0x6f6   : > { %v4344_v61 = vld [vmem:[#allocation13 + $0x25f8] sm:$0xff] }
 0x6f7   : > { %8282 = vmatpush1.bf16.msra.mxu0 %v8281_v12  ;;  %v8427_v12 = vpack.c.bf16 %v4280_v4, %v4272_v2  ;;  %v4341_v2 = vld [vmem:[#allocation13 + $0x25e0] sm:$0xff]  ;;  %v4335_v4 = vld [vmem:[#allocation13 + $0x25b0] sm:$0xff] }
 0x6f8   : > { %8410 = vmatpush1.bf16.msra.mxu1 %v8409_v13  ;;  %8284 = vmatprep.subr.bf16.mxu0 %v8283_v15  ;;  %v4279_v13 = vld [vmem:[#allocation13 + $0x23f0] sm:$0xff]  ;;  %v4286_v15 = vld [vmem:[#allocation13 + $0x2428] sm:$0xff] }
 0x6f9   : > { %8412 = vmatprep.subr.bf16.mxu1 %v8411_v3  ;;  %v8301_v3 = vpack.c.bf16 %v4277_v10, %v4269_v9  ;;  %v8429_v44 = vpack.c.bf16 %v4279_v13, %v4271_v11  ;;  %v8303_v5 = vpack.c.bf16 %v4294_v18, %v4286_v15  ;;  %v4358_v9 = vld [vmem:[#allocation13 + $0x2668] sm:$0xff]  ;;  %v4352_v10 = vld [vmem:[#allocation13 + $0x2638] sm:$0xff]  ;;  %v4349_v18 = vld [vmem:[#allocation13 + $0x2620] sm:$0xff] }
 0x6fa   : > { %v4360_v11 = vld [vmem:[#allocation13 + $0x2678] sm:$0xff] }
 0x6fb   : > { %8286 = vmatpush1.bf16.msra.mxu0 %v8285_v25  ;;  %v8431_v25 = vpack.c.bf16 %v4296_v21, %v4288_v19  ;;  %v4357_v19 = vld [vmem:[#allocation13 + $0x2660] sm:$0xff]  ;;  %v4351_v21 = vld [vmem:[#allocation13 + $0x2630] sm:$0xff] }
 0x6fc   : > { %8414 = vmatpush1.bf16.msra.mxu1 %v8413_v27  ;;  %8288 = vmatprep.subr.bf16.mxu0 %v8287_v17  ;;  %v4295_v27 = vld [vmem:[#allocation13 + $0x2470] sm:$0xff]  ;;  %v4302_v17 = vld [vmem:[#allocation13 + $0x24a8] sm:$0xff] }
 0x6fd   : > { %8416 = vmatprep.subr.bf16.mxu1 %v8415_v30  ;;  %v8305_v30 = vpack.c.bf16 %v4293_v23, %v4285_v22  ;;  %v8433_v32 = vpack.c.bf16 %v4295_v27, %v4287_v24  ;;  %v8307_v33 = vpack.c.bf16 %v4310_v14, %v4302_v17  ;;  %v4374_v22 = vld [vmem:[#allocation13 + $0x26e8] sm:$0xff]  ;;  %v4368_v23 = vld [vmem:[#allocation13 + $0x26b8] sm:$0xff]  ;;  %v4365_v14 = vld [vmem:[#allocation13 + $0x26a0] sm:$0xff] }
 0x6fe   : > { %v4376_v24 = vld [vmem:[#allocation13 + $0x26f8] sm:$0xff] }
 0x6ff   : > { %8290 = vmatpush1.bf16.msra.mxu0 %v8289_v37  ;;  %v8435_v37 = vpack.c.bf16 %v4312_v29, %v4304_v28  ;;  %v4373_v28 = vld [vmem:[#allocation13 + $0x26e0] sm:$0xff]  ;;  %v4367_v29 = vld [vmem:[#allocation13 + $0x26b0] sm:$0xff] }
 0x700   : > { %8418 = vmatpush1.bf16.msra.mxu1 %v8417_v41  ;;  %8292 = vmatprep.subr.bf16.mxu0 %v8291_v45  ;;  %v4311_v41 = vld [vmem:[#allocation13 + $0x24f0] sm:$0xff]  ;;  %v4318_v45 = vld [vmem:[#allocation13 + $0x2528] sm:$0xff] }
 0x701   : > { %8420 = vmatprep.subr.bf16.mxu1 %v8419_v50  ;;  %v8309_v50 = vpack.c.bf16 %v4309_v35, %v4301_v34  ;;  %v8437_v52 = vpack.c.bf16 %v4311_v41, %v4303_v36  ;;  %v8311_v54 = vpack.c.bf16 %v4326_v46, %v4318_v45  ;;  %v4390_v34 = vld [vmem:[#allocation13 + $0x2768] sm:$0xff]  ;;  %v4384_v35 = vld [vmem:[#allocation13 + $0x2738] sm:$0xff]  ;;  %v4381_v46 = vld [vmem:[#allocation13 + $0x2720] sm:$0xff] }
 0x702   : > { %v4392_v36 = vld [vmem:[#allocation13 + $0x2778] sm:$0xff] }
 0x703   : > { %8294 = vmatpush1.bf16.msra.mxu0 %v8293_v59  ;;  %v8439_v59 = vpack.c.bf16 %v4328_v49, %v4320_v47  ;;  %v4389_v47 = vld [vmem:[#allocation13 + $0x2760] sm:$0xff]  ;;  %v4383_v49 = vld [vmem:[#allocation13 + $0x2730] sm:$0xff] }
 0x704   : > { %8422 = vmatpush1.bf16.msra.mxu1 %v8421_v58  ;;  %8296 = vmatprep.subr.bf16.mxu0 %v8295_v53  ;;  %v4327_v58 = vld [vmem:[#allocation13 + $0x2570] sm:$0xff]  ;;  %v4334_v53 = vld [vmem:[#allocation13 + $0x25a8] sm:$0xff] }
 0x705   : > { %8424 = vmatprep.subr.bf16.mxu1 %v8423_v48  ;;  %v8313_v48 = vpack.c.bf16 %v4325_v0, %v4317_v55  ;;  %v8441_v62 = vpack.c.bf16 %v4327_v58, %v4319_v56  ;;  %v8315_v63 = vpack.c.bf16 %v4342_v60, %v4334_v53  ;;  %v4406_v55 = vld [vmem:[#allocation13 + $0x27e8] sm:$0xff]  ;;  %v4400_v0 = vld [vmem:[#allocation13 + $0x27b8] sm:$0xff]  ;;  %v4397_v60 = vld [vmem:[#allocation13 + $0x27a0] sm:$0xff] }
 0x706   : > { %v4408_v56 = vld [vmem:[#allocation13 + $0x27f8] sm:$0xff] }
 0x707   : > { %8298 = vmatpush1.bf16.msra.mxu0 %v8297_v6  ;;  %v8443_v6 = vpack.c.bf16 %v4344_v61, %v4336_v51  ;;  %v4405_v51 = vld [vmem:[#allocation13 + $0x27e0] sm:$0xff]  ;;  %v4399_v61 = vld [vmem:[#allocation13 + $0x27b0] sm:$0xff] }
 0x708   : > { %8426 = vmatpush1.bf16.msra.mxu1 %v8425_v7  ;;  %8300 = vmatprep.subr.bf16.mxu0 %v8299_v8  ;;  %v4343_v7 = vld [vmem:[#allocation13 + $0x25f0] sm:$0xff]  ;;  %v4350_v8 = vld [vmem:[#allocation13 + $0x2628] sm:$0xff] }
 0x709   : > { %8428 = vmatprep.subr.bf16.mxu1 %v8427_v12  ;;  %v8317_v12 = vpack.c.bf16 %v4341_v2, %v4333_v1  ;;  %v8445_v13 = vpack.c.bf16 %v4343_v7, %v4335_v4  ;;  %v8319_v15 = vpack.c.bf16 %v4358_v9, %v4350_v8  ;;  %v4422_v1 = vld [vmem:[#allocation13 + $0x2868] sm:$0xff]  ;;  %v4416_v2 = vld [vmem:[#allocation13 + $0x2838] sm:$0xff]  ;;  %v4413_v9 = vld [vmem:[#allocation13 + $0x2820] sm:$0xff] }
 0x70a   : > { %v4424_v4 = vld [vmem:[#allocation13 + $0x2878] sm:$0xff] }
 0x70b   : > { %8302 = vmatpush1.bf16.msra.mxu0 %v8301_v3  ;;  %v8447_v3 = vpack.c.bf16 %v4360_v11, %v4352_v10  ;;  %v4421_v10 = vld [vmem:[#allocation13 + $0x2860] sm:$0xff]  ;;  %v8463_v11 = vpack.c.bf16 %v4424_v4, %v4416_v2  ;;  %v4487_v4 = vld [vmem:[#allocation13 + $0x2a70] sm:$0xff] }
 0x70c   : > { %8430 = vmatpush1.bf16.msra.mxu1 %v8429_v44  ;;  %8304 = vmatprep.subr.bf16.mxu0 %v8303_v5  ;;  %v4359_v44 = vld [vmem:[#allocation13 + $0x2670] sm:$0xff]  ;;  %v4366_v5 = vld [vmem:[#allocation13 + $0x26a8] sm:$0xff] }
 0x70d   : > { %8432 = vmatprep.subr.bf16.mxu1 %v8431_v25  ;;  %v8321_v25 = vpack.c.bf16 %v4357_v19, %v4349_v18  ;;  %v8449_v27 = vpack.c.bf16 %v4359_v44, %v4351_v21  ;;  %v8323_v17 = vpack.c.bf16 %v4374_v22, %v4366_v5  ;;  %v4438_v18 = vld [vmem:[#allocation13 + $0x28e8] sm:$0xff]  ;;  %v8337_v19 = vpack.c.bf16 %v4421_v10, %v4413_v9  ;;  %v4432_v21 = vld [vmem:[#allocation13 + $0x28b8] sm:$0xff]  ;;  %v4429_v5 = vld [vmem:[#allocation13 + $0x28a0] sm:$0xff] }
 0x70e   : > { %v4437_v22 = vld [vmem:[#allocation13 + $0x28e0] sm:$0xff]  ;;  %v4504_v9 = vld [vmem:[#allocation13 + $0x2af8] sm:$0xff] }
 0x70f   : > { %8306 = vmatpush1.bf16.msra.mxu0 %v8305_v30  ;;  %v8451_v30 = vpack.c.bf16 %v4376_v24, %v4368_v23  ;;  %v4431_v23 = vld [vmem:[#allocation13 + $0x28b0] sm:$0xff] }
 0x710   : > { %8434 = vmatpush1.bf16.msra.mxu1 %v8433_v32  ;;  %8308 = vmatprep.subr.bf16.mxu0 %v8307_v33  ;;  %v4375_v32 = vld [vmem:[#allocation13 + $0x26f0] sm:$0xff]  ;;  %v4382_v33 = vld [vmem:[#allocation13 + $0x2728] sm:$0xff] }
 0x711   : > { %8436 = vmatprep.subr.bf16.mxu1 %v8435_v37  ;;  %v8325_v37 = vpack.c.bf16 %v4373_v28, %v4365_v14  ;;  %v8453_v41 = vpack.c.bf16 %v4375_v32, %v4367_v29  ;;  %v8327_v45 = vpack.c.bf16 %v4390_v34, %v4382_v33  ;;  %v4448_v28 = vld [vmem:[#allocation13 + $0x2938] sm:$0xff]  ;;  %v4445_v34 = vld [vmem:[#allocation13 + $0x2920] sm:$0xff] }
 0x712   : > { %v4456_v29 = vld [vmem:[#allocation13 + $0x2978] sm:$0xff] }
 0x713   : > { %8310 = vmatpush1.bf16.msra.mxu0 %v8309_v50  ;;  %v8455_v50 = vpack.c.bf16 %v4392_v36, %v4384_v35  ;;  %v4453_v35 = vld [vmem:[#allocation13 + $0x2960] sm:$0xff]  ;;  %v4447_v36 = vld [vmem:[#allocation13 + $0x2930] sm:$0xff] }
 0x714   : > { %8438 = vmatpush1.bf16.msra.mxu1 %v8437_v52  ;;  %8312 = vmatprep.subr.bf16.mxu0 %v8311_v54  ;;  %v4391_v52 = vld [vmem:[#allocation13 + $0x2770] sm:$0xff]  ;;  %v4398_v54 = vld [vmem:[#allocation13 + $0x27a8] sm:$0xff] }
 0x715   : > { %8440 = vmatprep.subr.bf16.mxu1 %v8439_v59  ;;  %v8329_v59 = vpack.c.bf16 %v4389_v47, %v4381_v46  ;;  %v8457_v58 = vpack.c.bf16 %v4391_v52, %v4383_v49  ;;  %v8331_v53 = vpack.c.bf16 %v4406_v55, %v4398_v54  ;;  %v4470_v46 = vld [vmem:[#allocation13 + $0x29e8] sm:$0xff]  ;;  %v4472_v47 = vld [vmem:[#allocation13 + $0x29f8] sm:$0xff]  ;;  %v8345_v49 = vpack.c.bf16 %v4453_v35, %v4445_v34  ;;  %v4461_v54 = vld [vmem:[#allocation13 + $0x29a0] sm:$0xff] }
 0x716   : > { %v4469_v55 = vld [vmem:[#allocation13 + $0x29e0] sm:$0xff]  ;;  %v4536_v34 = vld [vmem:[#allocation13 + $0x2bf8] sm:$0xff] }
 0x717   : > { %8314 = vmatpush1.bf16.msra.mxu0 %v8313_v48  ;;  %v8459_v48 = vpack.c.bf16 %v4408_v56, %v4400_v0  ;;  %v4463_v0 = vld [vmem:[#allocation13 + $0x29b0] sm:$0xff] }
 0x718   : > { %8442 = vmatpush1.bf16.msra.mxu1 %v8441_v62  ;;  %8316 = vmatprep.subr.bf16.mxu0 %v8315_v63  ;;  %v4407_v62 = vld [vmem:[#allocation13 + $0x27f0] sm:$0xff]  ;;  %v4414_v63 = vld [vmem:[#allocation13 + $0x2828] sm:$0xff] }
 0x719   : > { %8444 = vmatprep.subr.bf16.mxu1 %v8443_v6  ;;  %v8333_v6 = vpack.c.bf16 %v4405_v51, %v4397_v60  ;;  %v8461_v7 = vpack.c.bf16 %v4407_v62, %v4399_v61  ;;  %v8335_v8 = vpack.c.bf16 %v4422_v1, %v4414_v63  ;;  %v4488_v60 = vld [vmem:[#allocation13 + $0x2a78] sm:$0xff]  ;;  %v8349_v51 = vpack.c.bf16 %v4469_v55, %v4461_v54  ;;  %v4477_v62 = vld [vmem:[#allocation13 + $0x2a20] sm:$0xff]  ;;  %v4479_v1 = vld [vmem:[#allocation13 + $0x2a30] sm:$0xff] }
 0x71a   : > { %v4485_v63 = vld [vmem:[#allocation13 + $0x2a60] sm:$0xff]  ;;  %v4552_v54 = vld [vmem:[#allocation13 + $0x2c78] sm:$0xff] }
 0x71b   : > { %8318 = vmatpush1.bf16.msra.mxu0 %v8317_v12  ;;  %v4415_v12 = vld [vmem:[#allocation13 + $0x2830] sm:$0xff]  ;;  %v8353_v10 = vpack.c.bf16 %v4485_v63, %v4477_v62  ;;  %v4568_v62 = vld [vmem:[#allocation13 + $0x2cf8] sm:$0xff] }
 0x71c   : > { %8446 = vmatpush1.bf16.msra.mxu1 %v8445_v13  ;;  %8320 = vmatprep.subr.bf16.mxu0 %v8319_v15  ;;  %v4423_v13 = vld [vmem:[#allocation13 + $0x2870] sm:$0xff]  ;;  %v4430_v15 = vld [vmem:[#allocation13 + $0x28a8] sm:$0xff] }
 0x71d   : > { %8448 = vmatprep.subr.bf16.mxu1 %v8447_v3  ;;  %v4440_v3 = vld [vmem:[#allocation13 + $0x28f8] sm:$0xff]  ;;  %v8465_v44 = vpack.c.bf16 %v4423_v13, %v4415_v12  ;;  %v8339_v24 = vpack.c.bf16 %v4438_v18, %v4430_v15  ;;  %v4493_v13 = vld [vmem:[#allocation13 + $0x2aa0] sm:$0xff]  ;;  %v4495_v18 = vld [vmem:[#allocation13 + $0x2ab0] sm:$0xff] }
 0x71e   : > { %v8467_v14 = vpack.c.bf16 %v4440_v3, %v4432_v21  ;;  %v4501_v15 = vld [vmem:[#allocation13 + $0x2ae0] sm:$0xff]  ;;  %v4503_v21 = vld [vmem:[#allocation13 + $0x2af0] sm:$0xff]  ;;  %v4510_v3 = vld [vmem:[#allocation13 + $0x2b28] sm:$0xff] }
 0x71f   : > { %8322 = vmatpush1.bf16.msra.mxu0 %v8321_v25  ;;  %v4439_v25 = vld [vmem:[#allocation13 + $0x28f0] sm:$0xff] }
 0x720   : > { %8450 = vmatpush1.bf16.msra.mxu1 %v8449_v27  ;;  %8324 = vmatprep.subr.bf16.mxu0 %v8323_v17  ;;  %v4446_v27 = vld [vmem:[#allocation13 + $0x2928] sm:$0xff]  ;;  %v8469_v32 = vpack.c.bf16 %v4439_v25, %v4431_v23  ;;  %v8357_v23 = vpack.c.bf16 %v4501_v15, %v4493_v13  ;;  %v4584_v13 = vld [vmem:[#allocation13 + $0x2d78] sm:$0xff] }
 0x721   : > { %8452 = vmatprep.subr.bf16.mxu1 %v8451_v30  ;;  %v4454_v17 = vld [vmem:[#allocation13 + $0x2968] sm:$0xff]  ;;  %v8341_v30 = vpack.c.bf16 %v4437_v22, %v4429_v5  ;;  %v4512_v5 = vld [vmem:[#allocation13 + $0x2b38] sm:$0xff] }
 0x722   : > { %v8343_v33 = vpack.c.bf16 %v4454_v17, %v4446_v27  ;;  %v4520_v22 = vld [vmem:[#allocation13 + $0x2b78] sm:$0xff]  ;;  %v4509_v27 = vld [vmem:[#allocation13 + $0x2b20] sm:$0xff] }
 0x723   : > { %8326 = vmatpush1.bf16.msra.mxu0 %v8325_v37  ;;  %v8471_v37 = vpack.c.bf16 %v4456_v29, %v4448_v28  ;;  %v4517_v17 = vld [vmem:[#allocation13 + $0x2b60] sm:$0xff]  ;;  %v8487_v28 = vpack.c.bf16 %v4520_v22, %v4512_v5  ;;  %v4519_v29 = vld [vmem:[#allocation13 + $0x2b70] sm:$0xff] }
 0x724   : > { %8454 = vmatpush1.bf16.msra.mxu1 %v8453_v41  ;;  %8328 = vmatprep.subr.bf16.mxu0 %v8327_v45  ;;  %v4455_v41 = vld [vmem:[#allocation13 + $0x2970] sm:$0xff]  ;;  %v4462_v45 = vld [vmem:[#allocation13 + $0x29a8] sm:$0xff]  ;;  %v8361_v35 = vpack.c.bf16 %v4517_v17, %v4509_v27  ;;  %v4600_v27 = vld [vmem:[#allocation13 + $0x2df8] sm:$0xff] }
 0x725   : > { %8456 = vmatprep.subr.bf16.mxu1 %v8455_v50  ;;  %v8473_v50 = vpack.c.bf16 %v4455_v41, %v4447_v36  ;;  %v8347_v52 = vpack.c.bf16 %v4470_v46, %v4462_v45  ;;  %v4525_v41 = vld [vmem:[#allocation13 + $0x2ba0] sm:$0xff]  ;;  %v4527_v46 = vld [vmem:[#allocation13 + $0x2bb0] sm:$0xff] }
 0x726   : > { %v4533_v45 = vld [vmem:[#allocation13 + $0x2be0] sm:$0xff]  ;;  %v4583_v22 = vld [vmem:[#allocation13 + $0x2d70] sm:$0xff] }
 0x727   : > { %8330 = vmatpush1.bf16.msra.mxu0 %v8329_v59  ;;  %v4478_v59 = vld [vmem:[#allocation13 + $0x2a28] sm:$0xff]  ;;  %v8365_v55 = vpack.c.bf16 %v4533_v45, %v4525_v41  ;;  %v4616_v41 = vld [vmem:[#allocation13 + $0x2e78] sm:$0xff] }
 0x728   : > { %8458 = vmatpush1.bf16.msra.mxu1 %v8457_v58  ;;  %8332 = vmatprep.subr.bf16.mxu0 %v8331_v53  ;;  %v4486_v58 = vld [vmem:[#allocation13 + $0x2a68] sm:$0xff]  ;;  %v4480_v53 = vld [vmem:[#allocation13 + $0x2a38] sm:$0xff] }
 0x729   : > { %8460 = vmatprep.subr.bf16.mxu1 %v8459_v48  ;;  %v8351_v48 = vpack.c.bf16 %v4486_v58, %v4478_v59  ;;  %v8479_v2 = vpack.c.bf16 %v4488_v60, %v4480_v53  ;;  %v4549_v59 = vld [vmem:[#allocation13 + $0x2c60] sm:$0xff]  ;;  %v4543_v58 = vld [vmem:[#allocation13 + $0x2c30] sm:$0xff] }
 0x72a   : > { %v4551_v60 = vld [vmem:[#allocation13 + $0x2c70] sm:$0xff] }
 0x72b   : > { %8334 = vmatpush1.bf16.msra.mxu0 %v8333_v6  ;;  %v4494_v6 = vld [vmem:[#allocation13 + $0x2aa8] sm:$0xff] }
 0x72c   : > { %8462 = vmatpush1.bf16.msra.mxu1 %v8461_v7  ;;  %8336 = vmatprep.subr.bf16.mxu0 %v8335_v8  ;;  %v4502_v7 = vld [vmem:[#allocation13 + $0x2ae8] sm:$0xff]  ;;  %v4496_v8 = vld [vmem:[#allocation13 + $0x2ab8] sm:$0xff] }
 0x72d   : > { %8464 = vmatprep.subr.bf16.mxu1 %v8463_v11  ;;  %v8481_v11 = vpack.c.bf16 %v4487_v4, %v4479_v1  ;;  %v8355_v12 = vpack.c.bf16 %v4502_v7, %v4494_v6  ;;  %v8497_v1 = vpack.c.bf16 %v4551_v60, %v4543_v58  ;;  %v4557_v4 = vld [vmem:[#allocation13 + $0x2ca0] sm:$0xff]  ;;  %v4559_v7 = vld [vmem:[#allocation13 + $0x2cb0] sm:$0xff] }
 0x72e   : > { %6398 = vmatmul.mubr.msk.f32.vlgmr.msra.gmra.mrb[6].mxu0 %vm1018_vm6, %v10153_v57  ;;  %v4565_v6 = vld [vmem:[#allocation13 + $0x2ce0] sm:$0xff] }
 0x72f   : > { %6402 = vmatmul.mubr.msk.f32.vlgmr.msra.gmra.mrb[10].mxu1 %vm1018_vm6, %v10153_v57  ;;  %8338 = vmatpush1.bf16.msra.mxu0 %v8337_v19  ;;  %v4464_v57 = vld [vmem:[#allocation13 + $0x29b8] sm:$0xff]  ;;  %v8483_v19 = vpack.c.bf16 %v4504_v9, %v4496_v8  ;;  %v4567_v9 = vld [vmem:[#allocation13 + $0x2cf0] sm:$0xff]  ;;  %v8373_v15 = vpack.c.bf16 %v4565_v6, %v4557_v4  ;;  %v4621_v60 = vld [vmem:[#allocation13 + $0x2ea0] sm:$0xff] }
 0x730   : > { %6399 = vmatprep.mubr.msk.f32.mxu0 %vm1018_vm6, %v10158_v20  ;;  %8466 = vmatpush1.bf16.msra.mxu1 %v8465_v44  ;;  %v8475_v56 = vpack.c.bf16 %v4472_v47, %v4464_v57  ;;  %v4518_v44 = vld [vmem:[#allocation13 + $0x2b68] sm:$0xff]  ;;  %v4535_v47 = vld [vmem:[#allocation13 + $0x2bf0] sm:$0xff]  ;;  %v4648_v4 = vld [vmem:[#allocation13 + $0x2f78] sm:$0xff] }
 0x731   : > { %6403 = vmatprep.mubr.msk.f32.mxu1 %vm1018_vm6, %v10158_v20  ;;  %8340 = vmatprep.subr.bf16.mxu0 %v8339_v24  ;;  %v4471_v20 = vld [vmem:[#allocation13 + $0x29f0] sm:$0xff]  ;;  %v8485_v24 = vpack.c.bf16 %v4503_v21, %v4495_v18  ;;  %v8359_v25 = vpack.c.bf16 %v4518_v44, %v4510_v3  ;;  %v8501_v18 = vpack.c.bf16 %v4567_v9, %v4559_v7  ;;  %v4573_v21 = vld [vmem:[#allocation13 + $0x2d20] sm:$0xff] }
 0x732   : > { %8468 = vmatprep.subr.bf16.mxu1 %v8467_v14  ;;  %v8477_v61 = vpack.c.bf16 %v4471_v20, %v4463_v0  ;;  %v4511_v14 = vld [vmem:[#allocation13 + $0x2b30] sm:$0xff]  ;;  %v8493_v0 = vpack.c.bf16 %v4535_v47, %v4527_v46  ;;  %v4541_v20 = vld [vmem:[#allocation13 + $0x2c20] sm:$0xff] }
 0x733   : > { %8342 = vmatpush1.bf16.msra.mxu0 %v8341_v30  ;;  %v4526_v30 = vld [vmem:[#allocation13 + $0x2ba8] sm:$0xff]  ;;  %v8489_v36 = vpack.c.bf16 %v4519_v29, %v4511_v14  ;;  %v8369_v63 = vpack.c.bf16 %v4549_v59, %v4541_v20  ;;  %v4581_v3 = vld [vmem:[#allocation13 + $0x2d60] sm:$0xff]  ;;  %v4575_v44 = vld [vmem:[#allocation13 + $0x2d30] sm:$0xff] }
 0x734   : > { %8470 = vmatpush1.bf16.msra.mxu1 %v8469_v32  ;;  %8344 = vmatprep.subr.bf16.mxu0 %v8343_v33  ;;  %v4534_v32 = vld [vmem:[#allocation13 + $0x2be8] sm:$0xff]  ;;  %v4528_v33 = vld [vmem:[#allocation13 + $0x2bb8] sm:$0xff]  ;;  %v8377_v17 = vpack.c.bf16 %v4581_v3, %v4573_v21  ;;  %v8505_v14 = vpack.c.bf16 %v4583_v22, %v4575_v44  ;;  %v4589_v29 = vld [vmem:[#allocation13 + $0x2da0] sm:$0xff] }
 0x735   : > { %8472 = vmatprep.subr.bf16.mxu1 %v8471_v37  ;;  %v8363_v37 = vpack.c.bf16 %v4534_v32, %v4526_v30  ;;  %v8491_v57 = vpack.c.bf16 %v4536_v34, %v4528_v33  ;;  %v4597_v30 = vld [vmem:[#allocation13 + $0x2de0] sm:$0xff]  ;;  %v4591_v32 = vld [vmem:[#allocation13 + $0x2db0] sm:$0xff]  ;;  %v4632_v20 = vld [vmem:[#allocation13 + $0x2ef8] sm:$0xff] }
 0x736   : > { %v4599_v34 = vld [vmem:[#allocation13 + $0x2df0] sm:$0xff]  ;;  %v8381_v45 = vpack.c.bf16 %v4597_v30, %v4589_v29  ;;  %v4605_v47 = vld [vmem:[#allocation13 + $0x2e20] sm:$0xff]  ;;  %v4664_v21 = vld [vmem:[#allocation13 + $0x2ff8] sm:$0xff] }
 0x737   : > { %8346 = vmatpush1.bf16.msra.mxu0 %v8345_v49  ;;  %v4542_v49 = vld [vmem:[#allocation13 + $0x2c28] sm:$0xff]  ;;  %v8509_v46 = vpack.c.bf16 %v4599_v34, %v4591_v32  ;;  %v4637_v9 = vld [vmem:[#allocation13 + $0x2f20] sm:$0xff]  ;;  %v5413_v29 = vld [vmem:[#allocation16 + $0x188] sm:$0xff] }
 0x738   : > { %8474 = vmatpush1.bf16.msra.mxu1 %v8473_v50  ;;  %8348 = vmatprep.subr.bf16.mxu0 %v8347_v52  ;;  %v4550_v50 = vld [vmem:[#allocation13 + $0x2c68] sm:$0xff]  ;;  %v4544_v52 = vld [vmem:[#allocation13 + $0x2c38] sm:$0xff]  ;;  %v4653_v22 = vld [vmem:[#allocation13 + $0x2fa0] sm:$0xff] }
 0x739   : > { %8476 = vmatprep.subr.bf16.mxu1 %v8475_v56  ;;  %v8367_v56 = vpack.c.bf16 %v4550_v50, %v4542_v49  ;;  %v8495_v53 = vpack.c.bf16 %v4552_v54, %v4544_v52  ;;  %v4613_v49 = vld [vmem:[#allocation13 + $0x2e60] sm:$0xff]  ;;  %v4607_v50 = vld [vmem:[#allocation13 + $0x2e30] sm:$0xff]  ;;  %v5364_v34 = vld [vmem:[#allocation16] sm:$0xff] }
 0x73a   : > { %v4615_v54 = vld [vmem:[#allocation13 + $0x2e70] sm:$0xff]  ;;  %v8385_v59 = vpack.c.bf16 %v4613_v49, %v4605_v47  ;;  %v5415_v47 = vld [vmem:[#allocation16 + $0x198] sm:$0xff] }
 0x73b   : > { %8350 = vmatpush1.bf16.msra.mxu0 %v8349_v51  ;;  %v4558_v51 = vld [vmem:[#allocation13 + $0x2ca8] sm:$0xff]  ;;  %v8513_v58 = vpack.c.bf16 %v4615_v54, %v4607_v50  ;;  %v5366_v54 = vld [vmem:[#allocation16 + $0x10] sm:$0xff] }
 0x73c   : > { %8478 = vmatpush1.bf16.msra.mxu1 %v8477_v61  ;;  %8352 = vmatprep.subr.bf16.mxu0 %v8351_v48  ;;  %v4566_v61 = vld [vmem:[#allocation13 + $0x2ce8] sm:$0xff]  ;;  %v4560_v48 = vld [vmem:[#allocation13 + $0x2cb8] sm:$0xff] }
 0x73d   : > { %8480 = vmatprep.subr.bf16.mxu1 %v8479_v2  ;;  %v8371_v2 = vpack.c.bf16 %v4566_v61, %v4558_v51  ;;  %v8499_v8 = vpack.c.bf16 %v4568_v62, %v4560_v48  ;;  %v4629_v51 = vld [vmem:[#allocation13 + $0x2ee0] sm:$0xff]  ;;  %v4623_v61 = vld [vmem:[#allocation13 + $0x2eb0] sm:$0xff] }
 0x73e   : > { %v4631_v62 = vld [vmem:[#allocation13 + $0x2ef0] sm:$0xff]  ;;  %v8389_v6 = vpack.c.bf16 %v4629_v51, %v4621_v60 }
 0x73f   : > { %8354 = vmatpush1.bf16.msra.mxu0 %v8353_v10  ;;  %v4574_v10 = vld [vmem:[#allocation13 + $0x2d28] sm:$0xff]  ;;  %v8517_v7 = vpack.c.bf16 %v4631_v62, %v4623_v61  ;;  %v5417_v60 = vld [vmem:[#allocation16 + $0x1a8] sm:$0xff] }
 0x740   : > { %8482 = vmatpush1.bf16.msra.mxu1 %v8481_v11  ;;  %8356 = vmatprep.subr.bf16.mxu0 %v8355_v12  ;;  %v4582_v11 = vld [vmem:[#allocation13 + $0x2d68] sm:$0xff]  ;;  %v4576_v12 = vld [vmem:[#allocation13 + $0x2d38] sm:$0xff] }
 0x741   : > { %8484 = vmatprep.subr.bf16.mxu1 %v8483_v19  ;;  %v8375_v19 = vpack.c.bf16 %v4582_v11, %v4574_v10  ;;  %v8503_v5 = vpack.c.bf16 %v4584_v13, %v4576_v12  ;;  %v4645_v10 = vld [vmem:[#allocation13 + $0x2f60] sm:$0xff]  ;;  %v4639_v11 = vld [vmem:[#allocation13 + $0x2f30] sm:$0xff]  ;;  %v5368_v62 = vld [vmem:[#allocation16 + $0x20] sm:$0xff] }
 0x742   : > { %v4647_v13 = vld [vmem:[#allocation13 + $0x2f70] sm:$0xff]  ;;  %v8393_v3 = vpack.c.bf16 %v4645_v10, %v4637_v9  ;;  %v5419_v9 = vld [vmem:[#allocation16 + $0x1b8] sm:$0xff] }
 0x743   : > { %8358 = vmatpush1.bf16.msra.mxu0 %v8357_v23  ;;  %v4590_v23 = vld [vmem:[#allocation13 + $0x2da8] sm:$0xff]  ;;  %v8521_v44 = vpack.c.bf16 %v4647_v13, %v4639_v11  ;;  %v5371_v13 = vld [vmem:[#allocation16 + $0x38] sm:$0xff] }
 0x744   : > { %8486 = vmatpush1.bf16.msra.mxu1 %v8485_v24  ;;  %8360 = vmatprep.subr.bf16.mxu0 %v8359_v25  ;;  %v4598_v24 = vld [vmem:[#allocation13 + $0x2de8] sm:$0xff]  ;;  %v4592_v25 = vld [vmem:[#allocation13 + $0x2db8] sm:$0xff] }
 0x745   : > { %8488 = vmatprep.subr.bf16.mxu1 %v8487_v28  ;;  %v8379_v28 = vpack.c.bf16 %v4598_v24, %v4590_v23  ;;  %v8507_v33 = vpack.c.bf16 %v4600_v27, %v4592_v25  ;;  %v4661_v23 = vld [vmem:[#allocation13 + $0x2fe0] sm:$0xff]  ;;  %v4655_v24 = vld [vmem:[#allocation13 + $0x2fb0] sm:$0xff] }
 0x746   : > { %v4663_v27 = vld [vmem:[#allocation13 + $0x2ff0] sm:$0xff]  ;;  %v8397_v30 = vpack.c.bf16 %v4661_v23, %v4653_v22 }
 0x747   : > { %8362 = vmatpush1.bf16.msra.mxu0 %v8361_v35  ;;  %v4606_v35 = vld [vmem:[#allocation13 + $0x2e28] sm:$0xff]  ;;  %v8525_v32 = vpack.c.bf16 %v4663_v27, %v4655_v24  ;;  %v5373_v27 = vld [vmem:[#allocation16 + $0x48] sm:$0xff] }
 0x748   : > { %8490 = vmatpush1.bf16.msra.mxu1 %v8489_v36  ;;  %8364 = vmatprep.subr.bf16.mxu0 %v8363_v37  ;;  %v4614_v36 = vld [vmem:[#allocation13 + $0x2e68] sm:$0xff]  ;;  %v4608_v37 = vld [vmem:[#allocation13 + $0x2e38] sm:$0xff] }
 0x749   : > { %8492 = vmatprep.subr.bf16.mxu1 %v8491_v57  ;;  %v8383_v57 = vpack.c.bf16 %v4614_v36, %v4606_v35  ;;  %v8511_v52 = vpack.c.bf16 %v4616_v41, %v4608_v37  ;;  %v5365_v35 = vld [vmem:[#allocation16 + $0x8] sm:$0xff]  ;;  %v5396_v36 = vld [vmem:[#allocation16 + $0x100] sm:$0xff] }
 0x74a   : > { %v5397_v41 = vld [vmem:[#allocation16 + $0x108] sm:$0xff]  ;;  %v8529_v49 = vpack.c.bf16 %v5365_v35, %v5364_v34 }
 0x74b   : > { %8366 = vmatpush1.bf16.msra.mxu0 %v8365_v55  ;;  %v4622_v55 = vld [vmem:[#allocation13 + $0x2ea8] sm:$0xff]  ;;  %v8561_v50 = vpack.c.bf16 %v5397_v41, %v5396_v36  ;;  %v5375_v41 = vld [vmem:[#allocation16 + $0x58] sm:$0xff] }
 0x74c   : > { %8494 = vmatpush1.bf16.msra.mxu1 %v8493_v0  ;;  %8368 = vmatprep.subr.bf16.mxu0 %v8367_v56  ;;  %v4630_v0 = vld [vmem:[#allocation13 + $0x2ee8] sm:$0xff]  ;;  %v4624_v56 = vld [vmem:[#allocation13 + $0x2eb8] sm:$0xff] }
 0x74d   : > { %8496 = vmatprep.subr.bf16.mxu1 %v8495_v53  ;;  %v8387_v53 = vpack.c.bf16 %v4630_v0, %v4622_v55  ;;  %v8515_v48 = vpack.c.bf16 %v4632_v20, %v4624_v56  ;;  %v5367_v55 = vld [vmem:[#allocation16 + $0x18] sm:$0xff]  ;;  %v5398_v0 = vld [vmem:[#allocation16 + $0x110] sm:$0xff] }
 0x74e   : > { %v5399_v20 = vld [vmem:[#allocation16 + $0x118] sm:$0xff]  ;;  %v8533_v51 = vpack.c.bf16 %v5367_v55, %v5366_v54 }
 0x74f   : > { %8370 = vmatpush1.bf16.msra.mxu0 %v8369_v63  ;;  %v4638_v63 = vld [vmem:[#allocation13 + $0x2f28] sm:$0xff]  ;;  %v8565_v61 = vpack.c.bf16 %v5399_v20, %v5398_v0  ;;  %v5377_v20 = vld [vmem:[#allocation16 + $0x68] sm:$0xff] }
 0x750   : > { %8498 = vmatpush1.bf16.msra.mxu1 %v8497_v1  ;;  %8372 = vmatprep.subr.bf16.mxu0 %v8371_v2  ;;  %v4646_v1 = vld [vmem:[#allocation13 + $0x2f68] sm:$0xff]  ;;  %v4640_v2 = vld [vmem:[#allocation13 + $0x2f38] sm:$0xff] }
 0x751   : > { %8500 = vmatprep.subr.bf16.mxu1 %v8499_v8  ;;  %v8391_v8 = vpack.c.bf16 %v4646_v1, %v4638_v63  ;;  %v8519_v12 = vpack.c.bf16 %v4648_v4, %v4640_v2  ;;  %v5369_v63 = vld [vmem:[#allocation16 + $0x28] sm:$0xff]  ;;  %v5400_v1 = vld [vmem:[#allocation16 + $0x120] sm:$0xff] }
 0x752   : > { %v5401_v4 = vld [vmem:[#allocation16 + $0x128] sm:$0xff]  ;;  %v8537_v10 = vpack.c.bf16 %v5369_v63, %v5368_v62 }
 0x753   : > { %8374 = vmatpush1.bf16.msra.mxu0 %v8373_v15  ;;  %v4654_v15 = vld [vmem:[#allocation13 + $0x2fa8] sm:$0xff] }
 0x754   : > { %8502 = vmatpush1.bf16.msra.mxu1 %v8501_v18  ;;  %8376 = vmatprep.subr.bf16.mxu0 %v8375_v19  ;;  %v4662_v18 = vld [vmem:[#allocation13 + $0x2fe8] sm:$0xff]  ;;  %v4656_v19 = vld [vmem:[#allocation13 + $0x2fb8] sm:$0xff] }
 0x755   : > { %8504 = vmatprep.subr.bf16.mxu1 %v8503_v5  ;;  %v8395_v5 = vpack.c.bf16 %v4662_v18, %v4654_v15  ;;  %v8523_v25 = vpack.c.bf16 %v4664_v21, %v4656_v19  ;;  %v5402_v15 = vld [vmem:[#allocation16 + $0x130] sm:$0xff]  ;;  %v5403_v19 = vld [vmem:[#allocation16 + $0x138] sm:$0xff]  ;;  %v5388_v21 = vld [vmem:[#allocation16 + $0xc0] sm:$0xff] }
 0x756   : > { %v8573_v23 = vpack.c.bf16 %v5403_v19, %v5402_v15  ;;  %v10189_v19 = vld [vmem:[#allocation14] sm:$0xff] }
 0x757   : > { %8378 = vmatpush1.bf16.msra.mxu0 %v8377_v17  ;;  %v5380_v17 = vld [vmem:[#allocation16 + $0x80] sm:$0xff] }
 0x758   : > { %8506 = vmatpush1.bf16.msra.mxu1 %v8505_v14  ;;  %8380 = vmatprep.subr.bf16.mxu0 %v8379_v28  ;;  %v5381_v14 = vld [vmem:[#allocation16 + $0x88] sm:$0xff]  ;;  %v5412_v28 = vld [vmem:[#allocation16 + $0x180] sm:$0xff] }
 0x759   : > { %8508 = vmatprep.subr.bf16.mxu1 %v8507_v33  ;;  %v8527_v33 = vpack.c.bf16 %v5381_v14, %v5380_v17  ;;  %v8559_v37 = vpack.c.bf16 %v5413_v29, %v5412_v28  ;;  %v5404_v17 = vld [vmem:[#allocation16 + $0x140] sm:$0xff]  ;;  %v5405_v28 = vld [vmem:[#allocation16 + $0x148] sm:$0xff]  ;;  %v5390_v29 = vld [vmem:[#allocation16 + $0xd0] sm:$0xff] }
 0x75a   : > { %v8577_v35 = vpack.c.bf16 %v5405_v28, %v5404_v17 }
 0x75b   : > { %8382 = vmatpush1.bf16.msra.mxu0 %v8381_v45  ;;  %v5382_v45 = vld [vmem:[#allocation16 + $0x90] sm:$0xff] }
 0x75c   : > { %8510 = vmatpush1.bf16.msra.mxu1 %v8509_v46  ;;  %8384 = vmatprep.subr.bf16.mxu0 %v8383_v57  ;;  %v5383_v46 = vld [vmem:[#allocation16 + $0x98] sm:$0xff]  ;;  %v5414_v57 = vld [vmem:[#allocation16 + $0x190] sm:$0xff] }
 0x75d   : > { %8512 = vmatprep.subr.bf16.mxu1 %v8511_v52  ;;  %v8531_v52 = vpack.c.bf16 %v5383_v46, %v5382_v45  ;;  %v8563_v56 = vpack.c.bf16 %v5415_v47, %v5414_v57  ;;  %v5406_v45 = vld [vmem:[#allocation16 + $0x150] sm:$0xff]  ;;  %v5407_v57 = vld [vmem:[#allocation16 + $0x158] sm:$0xff]  ;;  %v5392_v47 = vld [vmem:[#allocation16 + $0xe0] sm:$0xff] }
 0x75e   : > { %v8581_v55 = vpack.c.bf16 %v5407_v57, %v5406_v45 }
 0x75f   : > { %8386 = vmatpush1.bf16.msra.mxu0 %v8385_v59  ;;  %v5384_v59 = vld [vmem:[#allocation16 + $0xa0] sm:$0xff] }
 0x760   : > { %8514 = vmatpush1.bf16.msra.mxu1 %v8513_v58  ;;  %8388 = vmatprep.subr.bf16.mxu0 %v8387_v53  ;;  %v5385_v58 = vld [vmem:[#allocation16 + $0xa8] sm:$0xff]  ;;  %v5416_v53 = vld [vmem:[#allocation16 + $0x1a0] sm:$0xff] }
 0x761   : > { %8516 = vmatprep.subr.bf16.mxu1 %v8515_v48  ;;  %v8535_v48 = vpack.c.bf16 %v5385_v58, %v5384_v59  ;;  %v8567_v2 = vpack.c.bf16 %v5417_v60, %v5416_v53  ;;  %v5408_v59 = vld [vmem:[#allocation16 + $0x160] sm:$0xff]  ;;  %v5409_v53 = vld [vmem:[#allocation16 + $0x168] sm:$0xff]  ;;  %v5394_v60 = vld [vmem:[#allocation16 + $0xf0] sm:$0xff] }
 0x762   : > { %v8585_v63 = vpack.c.bf16 %v5409_v53, %v5408_v59 }
 0x763   : > { %8390 = vmatpush1.bf16.msra.mxu0 %v8389_v6  ;;  %v5386_v6 = vld [vmem:[#allocation16 + $0xb0] sm:$0xff] }
 0x764   : > { %8518 = vmatpush1.bf16.msra.mxu1 %v8517_v7  ;;  %8392 = vmatprep.subr.bf16.mxu0 %v8391_v8  ;;  %v5387_v7 = vld [vmem:[#allocation16 + $0xb8] sm:$0xff]  ;;  %v5418_v8 = vld [vmem:[#allocation16 + $0x1b0] sm:$0xff] }
 0x765   : > { %8520 = vmatprep.subr.bf16.mxu1 %v8519_v12  ;;  %v8539_v11 = vpack.c.bf16 %v5387_v7, %v5386_v6  ;;  %v5370_v12 = vld [vmem:[#allocation16 + $0x30] sm:$0xff]  ;;  %v8571_v18 = vpack.c.bf16 %v5419_v9, %v5418_v8  ;;  %v5411_v8 = vld [vmem:[#allocation16 + $0x178] sm:$0xff]  ;;  %v5444_v9 = vld [vmem:[#allocation16 + $0x280] sm:$0xff] }
 0x766   : > { %v8541_v22 = vpack.c.bf16 %v5371_v13, %v5370_v12  ;;  %v5410_v6 = vld [vmem:[#allocation16 + $0x170] sm:$0xff] }
 0x767   : > { %8394 = vmatpush1.bf16.msra.mxu0 %v8393_v3  ;;  %v5389_v3 = vld [vmem:[#allocation16 + $0xc8] sm:$0xff]  ;;  %v8589_v13 = vpack.c.bf16 %v5411_v8, %v5410_v6  ;;  %v5447_v8 = vld [vmem:[#allocation16 + $0x298] sm:$0xff] }
 0x768   : > { %8522 = vmatpush1.bf16.msra.mxu1 %v8521_v44  ;;  %8396 = vmatprep.subr.bf16.mxu0 %v8395_v5  ;;  %v5420_v44 = vld [vmem:[#allocation16 + $0x1c0] sm:$0xff]  ;;  %v5421_v5 = vld [vmem:[#allocation16 + $0x1c8] sm:$0xff]  ;;  %v8543_v24 = vpack.c.bf16 %v5389_v3, %v5388_v21  ;;  %v5246_v21 = vrot.slane %v10189_v19, %v10044_v39  ;;  %v5254_v3 = vrot.slane %v10189_v19, %v10047_v40 }
 0x769   : > { %8524 = vmatprep.subr.bf16.mxu1 %v8523_v25  ;;  %v5372_v25 = vld [vmem:[#allocation16 + $0x40] sm:$0xff]  ;;  %v8575_v14 = vpack.c.bf16 %v5421_v5, %v5420_v44  ;;  %v5250_v44 = vrot.slane %v10189_v19, %v10050_v42  ;;  %v5258_v5 = vrot.slane %v10189_v19, %v1949_v43  ;;  %v5461_v6 = vld [vmem:[#allocation16 + $0x308] sm:$0xff] }
 0x76a   : > { %v8545_v34 = vpack.c.bf16 %v5373_v27, %v5372_v25 }
 0x76b   : > { %8398 = vmatpush1.bf16.msra.mxu0 %v8397_v30  ;;  %v5391_v30 = vld [vmem:[#allocation16 + $0xd8] sm:$0xff] }
 0x76c   : > { %8526 = vmatpush1.bf16.msra.mxu1 %v8525_v32  ;;  %8528 = vmatprep.subr.bf16.mxu0 %v8527_v33  ;;  %v5422_v32 = vld [vmem:[#allocation16 + $0x1d0] sm:$0xff]  ;;  %v5423_v33 = vld [vmem:[#allocation16 + $0x1d8] sm:$0xff]  ;;  %v8547_v36 = vpack.c.bf16 %v5391_v30, %v5390_v29 }
 0x76d   : > { %8560 = vmatprep.subr.bf16.mxu1 %v8559_v37  ;;  %v5374_v37 = vld [vmem:[#allocation16 + $0x50] sm:$0xff]  ;;  %v8579_v46 = vpack.c.bf16 %v5423_v33, %v5422_v32 }
 0x76e   : > { %6400 = vmatmul.mubr.msk.f32.vlgmr.msra.gmra.mrb[6].mxu0 %vm1018_vm6, %v10167_v31  ;;  %v8549_v54 = vpack.c.bf16 %v5375_v41, %v5374_v37 }
 0x76f   : > { %6404 = vmatmul.mubr.msk.f32.vlgmr.msra.gmra.mrb[10].mxu1 %vm1018_vm6, %v10167_v31  ;;  %8530 = vmatpush3.bf16.msra.mxu0 %v8529_v49  ;;  %v8569_v31 = vpack.c.bf16 %v5401_v4, %v5400_v1  ;;  %v5393_v49 = vld [vmem:[#allocation16 + $0xe8] sm:$0xff]  ;;  %v5379_v4 = vld [vmem:[#allocation16 + $0x78] sm:$0xff] }
 0x770   : > { %8562 = vmatpush3.bf16.msra.mxu1 %v8561_v50  ;;  %8532 = vmatprep.subr.bf16.mxu0 %v8531_v52  ;;  %v5424_v50 = vld [vmem:[#allocation16 + $0x1e0] sm:$0xff]  ;;  %v5425_v52 = vld [vmem:[#allocation16 + $0x1e8] sm:$0xff]  ;;  %v8551_v0 = vpack.c.bf16 %v5393_v49, %v5392_v47 }
 0x771   : > { %8564 = vmatprep.subr.bf16.mxu1 %v8563_v56  ;;  %v5376_v56 = vld [vmem:[#allocation16 + $0x60] sm:$0xff]  ;;  %v8583_v58 = vpack.c.bf16 %v5425_v52, %v5424_v50 }
 0x772   : > { %v8553_v62 = vpack.c.bf16 %v5377_v20, %v5376_v56 }
 0x773   : > { %8534 = vmatpush3.bf16.msra.mxu0 %v8533_v51  ;;  %v5395_v51 = vld [vmem:[#allocation16 + $0xf8] sm:$0xff] }
 0x774   : > { %8566 = vmatpush3.bf16.msra.mxu1 %v8565_v61  ;;  %8536 = vmatprep.subr.bf16.mxu0 %v8535_v48  ;;  %v5426_v61 = vld [vmem:[#allocation16 + $0x1f0] sm:$0xff]  ;;  %v5427_v48 = vld [vmem:[#allocation16 + $0x1f8] sm:$0xff]  ;;  %v8555_v1 = vpack.c.bf16 %v5395_v51, %v5394_v60 }
 0x775   : > { %8568 = vmatprep.subr.bf16.mxu1 %v8567_v2  ;;  %v5378_v2 = vld [vmem:[#allocation16 + $0x70] sm:$0xff]  ;;  %v8587_v7 = vpack.c.bf16 %v5427_v48, %v5426_v61 }
 0x776   : > { %v8557_v12 = vpack.c.bf16 %v5379_v4, %v5378_v2 }
 0x777   : > { %8538 = vmatpush3.bf16.msra.mxu0 %v8537_v10  ;;  %v5445_v10 = vld [vmem:[#allocation16 + $0x288] sm:$0xff] }
 0x778   : > { %8570 = vmatpush3.bf16.msra.mxu1 %v8569_v31  ;;  %8540 = vmatprep.subr.bf16.mxu0 %v8539_v11  ;;  %v5476_v31 = vld [vmem:[#allocation16 + $0x380] sm:$0xff]  ;;  %v5477_v11 = vld [vmem:[#allocation16 + $0x388] sm:$0xff]  ;;  %v8591_v15 = vpack.c.bf16 %v5445_v10, %v5444_v9  ;;  %v5478_v10 = vld [vmem:[#allocation16 + $0x390] sm:$0xff] }
 0x779   : > { %8572 = vmatprep.subr.bf16.mxu1 %v8571_v18  ;;  %v8623_v18 = vpack.c.bf16 %v5477_v11, %v5476_v31  ;;  %v5479_v31 = vld [vmem:[#allocation16 + $0x398] sm:$0xff] }
 0x77b   : > { %8542 = vmatpush3.bf16.msra.mxu0 %v8541_v22 }
 0x77c   : > { %8574 = vmatpush3.bf16.msra.mxu1 %v8573_v23  ;;  %8544 = vmatprep.subr.bf16.mxu0 %v8543_v24 }
 0x77d   : > { %8576 = vmatprep.subr.bf16.mxu1 %v8575_v14 }
 0x77f   : > { %8546 = vmatpush3.bf16.msra.mxu0 %v8545_v34 }
 0x780   : > { %8578 = vmatpush3.bf16.msra.mxu1 %v8577_v35  ;;  %8548 = vmatprep.subr.bf16.mxu0 %v8547_v36 }
 0x781   : > { %8580 = vmatprep.subr.bf16.mxu1 %v8579_v46 }
 0x783   : > { %8550 = vmatpush3.bf16.msra.mxu0 %v8549_v54 }
 0x784   : > { %8582 = vmatpush3.bf16.msra.mxu1 %v8581_v55  ;;  %8552 = vmatprep.subr.bf16.mxu0 %v8551_v0 }
 0x785   : > { %8584 = vmatprep.subr.bf16.mxu1 %v8583_v58 }
 0x787   : > { %8554 = vmatpush3.bf16.msra.mxu0 %v8553_v62  ;;  %v5428_v62 = vld [vmem:[#allocation16 + $0x200] sm:$0xff] }
 0x788   : > { %8586 = vmatpush3.bf16.msra.mxu1 %v8585_v63  ;;  %8556 = vmatprep.subr.bf16.mxu0 %v8555_v1  ;;  %v5429_v63 = vld [vmem:[#allocation16 + $0x208] sm:$0xff]  ;;  %v5460_v1 = vld [vmem:[#allocation16 + $0x300] sm:$0xff] }
 0x789   : > { %8588 = vmatprep.subr.bf16.mxu1 %v8587_v7  ;;  %v5446_v7 = vld [vmem:[#allocation16 + $0x290] sm:$0xff] }
 0x78b   : > { %8558 = vmatpush3.bf16.msra.mxu0 %v8557_v12  ;;  %v8593_v12 = vpack.c.bf16 %v5429_v63, %v5428_v62  ;;  %v5469_v63 = vld [vmem:[#allocation16 + $0x348] sm:$0xff] }
 0x78c   : > { %8590 = vmatpush3.bf16.msra.mxu1 %v8589_v13  ;;  %8592 = vmatprep.subr.bf16.mxu0 %v8591_v15 }
 0x78d   : > { %8624 = vmatprep.subr.bf16.mxu1 %v8623_v18  ;;  %v8625_v18 = vpack.c.bf16 %v5461_v6, %v5460_v1  ;;  %v5454_v1 = vld [vmem:[#allocation16 + $0x2d0] sm:$0xff]  ;;  %v5487_v6 = vld [vmem:[#allocation16 + $0x3d8] sm:$0xff] }
 0x7c1   : > { %v4802_v22 = vpop.f32.mrb[4].mxu0 }
 0x7c2   : > { %v5283_v23 = vadd.f32 %v5246_v21, %v4802_v22  ;;  %v4944_v24 = vpop.f32.mrb[8].mxu1  ;;  %v4804_v25 = vpop.f32.mrb[5].mxu0  ;;  %v8595_v21 = vpack.c.bf16 %v5447_v8, %v5446_v7 }
 0x7c3   : > { %v5285_v27 = vadd.f32 %v5254_v3, %v4944_v24  ;;  %v5284_v17 = vadd.f32 %v5250_v44, %v4804_v25  ;;  %v4946_v14 = vpop.f32.mrb[9].mxu1  ;;  %v5430_v3 = vld [vmem:[#allocation16 + $0x210] sm:$0xff]  ;;  %v5431_v44 = vld [vmem:[#allocation16 + $0x218] sm:$0xff]  ;;  %v5448_v25 = vld [vmem:[#allocation16 + $0x2a0] sm:$0xff] }
 0x7c4   : > { %v5291_v28 = vmax.f32 %v5283_v23, 0.0  ;;  %v5286_v29 = vadd.f32 %v5258_v5, %v4946_v14  ;;  %v5462_v5 = vld [vmem:[#allocation16 + $0x310] sm:$0xff]  ;;  %v8627_v23 = vpack.c.bf16 %v5479_v31, %v5478_v10  ;;  %v5463_v24 = vld [vmem:[#allocation16 + $0x318] sm:$0xff]  ;;  %v5481_v14 = vld [vmem:[#allocation16 + $0x3a8] sm:$0xff] }
 0x7c5   : > { %v5293_v30 = vmax.f32 %v5285_v27, 0.0  ;;  %v5292_v32 = vmax.f32 %v5284_v17, 0.0  ;;  %v5449_v27 = vld [vmem:[#allocation16 + $0x2a8] sm:$0xff]  ;;  %v5480_v17 = vld [vmem:[#allocation16 + $0x3a0] sm:$0xff]  ;;  %v5438_v10 = vld [vmem:[#allocation16 + $0x250] sm:$0xff] }
 0x7c6   : > { %v5299_v33 = vsel %vm731_vm0, %v5291_v28, 0.0  ;;  %v5294_v34 = vmax.f32 %v5286_v29, 0.0  ;;  %v8597_v28 = vpack.c.bf16 %v5431_v44, %v5430_v3  ;;  %v8629_v29 = vpack.c.bf16 %v5463_v24, %v5462_v5  ;;  %v5439_v31 = vld [vmem:[#allocation16 + $0x258] sm:$0xff]  ;;  %v5489_v3 = vld [vmem:[#allocation16 + $0x3e8] sm:$0xff] }
 0x7c7   : > { %v5300_v35 = vrot.slane %v5299_v33, 4  ;;  %v5313_v36 = vsel %vm731_vm0, %v5293_v30, 0.0  ;;  %v5306_v37 = vsel %vm731_vm0, %v5292_v32, 0.0  ;;  %v8599_v30 = vpack.c.bf16 %v5449_v27, %v5448_v25  ;;  %v5432_v32 = vld [vmem:[#allocation16 + $0x220] sm:$0xff]  ;;  %v5441_v24 = vld [vmem:[#allocation16 + $0x268] sm:$0xff] }
 0x7c8   : > { %v5314_v43 = vrot.slane %v5313_v36, 4  ;;  %v5307_v41 = vrot.slane %v5306_v37, 4  ;;  %v5320_v45 = vsel %vm731_vm0, %v5294_v34, 0.0  ;;  %v5464_v34 = vld [vmem:[#allocation16 + $0x320] sm:$0xff]  ;;  %v8613_v44 = vpack.c.bf16 %v5439_v31, %v5438_v10 }
 0x7c9   : > { %v5301_v46 = vadd.f32 %v5300_v35, %v5299_v33  ;;  %v5321_v57 = vrot.slane %v5320_v45, 4  ;;  %v5433_v33 = vld [vmem:[#allocation16 + $0x228] sm:$0xff]  ;;  %v8631_v35 = vpack.c.bf16 %v5481_v14, %v5480_v17  ;;  %v5472_v25 = vld [vmem:[#allocation16 + $0x360] sm:$0xff]  ;;  %v5458_v14 = vld [vmem:[#allocation16 + $0x2f0] sm:$0xff] }
 0x7ca   : > { %v5315_v47 = vadd.f32 %v5314_v43, %v5313_v36  ;;  %v5308_v49 = vadd.f32 %v5307_v41, %v5306_v37  ;;  %v5465_v36 = vld [vmem:[#allocation16 + $0x328] sm:$0xff]  ;;  %v5450_v37 = vld [vmem:[#allocation16 + $0x2b0] sm:$0xff]  ;;  %v5451_v43 = vld [vmem:[#allocation16 + $0x2b8] sm:$0xff] }
 0x7cb   : > { %v5302_v50 = vrot.slane %v5301_v46, 2  ;;  %v5322_v52 = vadd.f32 %v5321_v57, %v5320_v45  ;;  %v5482_v41 = vld [vmem:[#allocation16 + $0x3b0] sm:$0xff]  ;;  %v5483_v45 = vld [vmem:[#allocation16 + $0x3b8] sm:$0xff]  ;;  %v8633_v57 = vpack.c.bf16 %v5465_v36, %v5464_v34  ;;  %v5473_v17 = vld [vmem:[#allocation16 + $0x368] sm:$0xff] }
 0x7cc   : > { %v5316_v54 = vrot.slane %v5315_v47, 2  ;;  %v5309_v55 = vrot.slane %v5308_v49, 2  ;;  %v5443_v36 = vld [vmem:[#allocation16 + $0x278] sm:$0xff] }
 0x7cd   : > { %v5303_v0 = vadd.f32 %v5302_v50, %v5301_v46  ;;  %v5323_v56 = vrot.slane %v5322_v52, 2  ;;  %v8601_v46 = vpack.c.bf16 %v5433_v33, %v5432_v32  ;;  %v5435_v50 = vld [vmem:[#allocation16 + $0x238] sm:$0xff]  ;;  %v8649_v33 = vpack.c.bf16 %v5473_v17, %v5472_v25 }
 0x7ce   : > { %v5317_v20 = vadd.f32 %v5316_v54, %v5315_v47  ;;  %v5310_v59 = vadd.f32 %v5309_v55, %v5308_v49  ;;  %v8603_v47 = vpack.c.bf16 %v5451_v43, %v5450_v37  ;;  %v5434_v49 = vld [vmem:[#allocation16 + $0x230] sm:$0xff]  ;;  %v8635_v54 = vpack.c.bf16 %v5483_v45, %v5482_v41  ;;  %v5467_v55 = vld [vmem:[#allocation16 + $0x338] sm:$0xff] }
 0x7cf   : > { %v5304_v58 = vrot.slane %v5303_v0, 1  ;;  %v5324_v53 = vadd.f32 %v5323_v56, %v5322_v52  ;;  %v5466_v52 = vld [vmem:[#allocation16 + $0x330] sm:$0xff]  ;;  %v5453_v56 = vld [vmem:[#allocation16 + $0x2c8] sm:$0xff]  ;;  %v5475_v41 = vld [vmem:[#allocation16 + $0x378] sm:$0xff] }
 0x7d0   : > { %v5318_v60 = vrot.slane %v5317_v20, 1  ;;  %v5311_v51 = vrot.slane %v5310_v59, 1  ;;  %v5474_v43 = vld [vmem:[#allocation16 + $0x370] sm:$0xff] }
 0x7d1   : > { %v5325_v61 = vrot.slane %v5324_v53, 1  ;;  %v5305_v48 = vadd.f32 %v5304_v58, %v5303_v0  ;;  %v5452_v0 = vld [vmem:[#allocation16 + $0x2c0] sm:$0xff]  ;;  %v8605_v58 = vpack.c.bf16 %v5435_v50, %v5434_v49  ;;  %v5261_v50 = vsub.s32 4, %v10041_v38 }
 0x7d2   : > { %v5312_v2 = vadd.f32 %v5311_v51, %v5310_v59  ;;  %v5319_v4 = vadd.f32 %v5318_v60, %v5317_v20  ;;  %v5484_v20 = vld [vmem:[#allocation16 + $0x3c0] sm:$0xff]  ;;  %v5485_v59 = vld [vmem:[#allocation16 + $0x3c8] sm:$0xff]  ;;  %v8607_v60 = vpack.c.bf16 %v5453_v56, %v5452_v0 }
 0x7d3   : > { %v5326_v9 = vadd.f32 %v5325_v61, %v5324_v53  ;;  %v5356_v15 = vmul.f32 0.25, %v5305_v48  ;;  %v8637_v53 = vpack.c.bf16 %v5467_v55, %v5466_v52  ;;  %v5436_v51 = vld [vmem:[#allocation16 + $0x240] sm:$0xff]  ;;  %v5437_v61 = vld [vmem:[#allocation16 + $0x248] sm:$0xff]  ;;  %v8639_v62 = vpack.c.bf16 %v5485_v59, %v5484_v20 }
 0x7d4   : > { %v5357_v11 = vmul.f32 0.25, %v5312_v2  ;;  %v5358_v22 = vmul.f32 0.25, %v5319_v4  ;;  %v5468_v48 = vld [vmem:[#allocation16 + $0x340] sm:$0xff]  ;;  %v5455_v2 = vld [vmem:[#allocation16 + $0x2d8] sm:$0xff]  ;;  %v5486_v4 = vld [vmem:[#allocation16 + $0x3d0] sm:$0xff]  ;;  %v8609_v7 = vpack.c.bf16 %v5437_v61, %v5436_v51  ;;  %v5269_v52 = vsub.s32 6, %v10041_v38 }
 0x7d5   : > { %v5359_v13 = vmul.f32 0.25, %v5326_v9  ;;  %v8641_v8 = vpack.c.bf16 %v5469_v63, %v5468_v48  ;;  %v8611_v9 = vpack.c.bf16 %v5455_v2, %v5454_v1  ;;  %v5273_v55 = vsub.s32 7, %v10041_v38 }
 0x7d6   : > { %5557 = vmatprep.mubr.f32.mxu0 %v5357_v11  ;;  %v5470_v11 = vld [vmem:[#allocation16 + $0x350] sm:$0xff]  ;;  %v5262_v0 = vrot.slane %v10189_v19, %v5261_v50  ;;  %v5270_v56 = vrot.slane %v10189_v19, %v5269_v52 }
 0x7d7   : > { %5627 = vmatprep.mubr.f32.mxu1 %v5359_v13  ;;  %5558 = vmatmul.mubr.f32.vlgmr.msra.gmra.mrb[8].mxu0 %v5356_v15  ;;  %v5471_v13 = vld [vmem:[#allocation16 + $0x358] sm:$0xff]  ;;  %v5456_v15 = vld [vmem:[#allocation16 + $0x2e0] sm:$0xff]  ;;  %v5274_v59 = vrot.slane %v10189_v19, %v5273_v55 }
 0x7d8   : > { %5628 = vmatmul.mubr.f32.vlgmr.msra.gmra.mrb[12].mxu1 %v5358_v22  ;;  %8594 = vmatpush3.bf16.msra.mxu0 %v8593_v12  ;;  %v8643_v12 = vpack.c.bf16 %v5487_v6, %v5486_v4  ;;  %v8645_v5 = vpack.c.bf16 %v5471_v13, %v5470_v11  ;;  %v5779_v52 = vld [vmem:[#allocation19 + $0x30] sm:$0xff]  ;;  %v5781_v55 = vld [vmem:[#allocation19 + $0x40] sm:$0xff] }
 0x7d9   : > { %8626 = vmatpush3.bf16.msra.mxu1 %v8625_v18  ;;  %8596 = vmatprep.subr.bf16.mxu0 %v8595_v21  ;;  %v5457_v18 = vld [vmem:[#allocation16 + $0x2e8] sm:$0xff]  ;;  %v5488_v21 = vld [vmem:[#allocation16 + $0x3e0] sm:$0xff] }
 0x7da   : > { %8628 = vmatprep.subr.bf16.mxu1 %v8627_v23  ;;  %v8615_v22 = vpack.c.bf16 %v5457_v18, %v5456_v15  ;;  %v5440_v23 = vld [vmem:[#allocation16 + $0x260] sm:$0xff]  ;;  %v8647_v27 = vpack.c.bf16 %v5489_v3, %v5488_v21 }
 0x7db   : > { %v8617_v32 = vpack.c.bf16 %v5441_v24, %v5440_v23 }
 0x7dc   : > { %8598 = vmatpush3.bf16.msra.mxu0 %v8597_v28  ;;  %v5459_v28 = vld [vmem:[#allocation16 + $0x2f8] sm:$0xff] }
 0x7dd   : > { %8630 = vmatpush3.bf16.msra.mxu1 %v8629_v29  ;;  %8600 = vmatprep.subr.bf16.mxu0 %v8599_v30  ;;  %v5490_v29 = vld [vmem:[#allocation16 + $0x3f0] sm:$0xff]  ;;  %v5491_v30 = vld [vmem:[#allocation16 + $0x3f8] sm:$0xff]  ;;  %v8619_v34 = vpack.c.bf16 %v5459_v28, %v5458_v14 }
 0x7de   : > { %8632 = vmatprep.subr.bf16.mxu1 %v8631_v35  ;;  %v5442_v35 = vld [vmem:[#allocation16 + $0x270] sm:$0xff]  ;;  %v8651_v37 = vpack.c.bf16 %v5491_v30, %v5490_v29  ;;  %v5773_v30 = vld [vmem:[#allocation19] sm:$0xff] }
 0x7df   : > { %v8621_v45 = vpack.c.bf16 %v5443_v36, %v5442_v35  ;;  %v5778_v36 = vld [vmem:[#allocation19 + $0x28] sm:$0xff] }
 0x7e0   : > { %8602 = vmatpush3.bf16.msra.mxu0 %v8601_v46  ;;  %v8653_v46 = vpack.c.bf16 %v5475_v41, %v5474_v43  ;;  %v5783_v43 = vld [vmem:[#allocation19 + $0x50] sm:$0xff] }
 0x7e1   : > { %8634 = vmatpush3.bf16.msra.mxu1 %v8633_v57  ;;  %8604 = vmatprep.subr.bf16.mxu0 %v8603_v47  ;;  %v5774_v57 = vld [vmem:[#allocation19 + $0x8] sm:$0xff]  ;;  %v5777_v47 = vld [vmem:[#allocation19 + $0x20] sm:$0xff] }
 0x7e2   : > { %8636 = vmatprep.subr.bf16.mxu1 %v8635_v54  ;;  %v8655_v49 = vpack.c.bf16 %v5777_v47, %v5774_v57  ;;  %v5265_v54 = vsub.s32 5, %v10041_v38 }
 0x7e4   : > { %8606 = vmatpush3.bf16.msra.mxu0 %v8605_v58  ;;  %v5266_v20 = vrot.slane %v10189_v19, %v5265_v54  ;;  %v5782_v54 = vld [vmem:[#allocation19 + $0x48] sm:$0xff] }
 0x7e5   : > { %8638 = vmatpush3.bf16.msra.mxu1 %v8637_v53  ;;  %8608 = vmatprep.subr.bf16.mxu0 %v8607_v60 }
 0x7e6   : > { %8640 = vmatprep.subr.bf16.mxu1 %v8639_v62 }
 0x7e8   : > { %8610 = vmatpush3.bf16.msra.mxu0 %v8609_v7 }
 0x7e9   : > { %8642 = vmatpush3.bf16.msra.mxu1 %v8641_v8  ;;  %8612 = vmatprep.subr.bf16.mxu0 %v8611_v9 }
 0x7ea   : > { %8644 = vmatprep.subr.bf16.mxu1 %v8643_v12 }
 0x7ec   : > { %8614 = vmatpush3.bf16.msra.mxu0 %v8613_v44 }
 0x7ed   : > { %8646 = vmatpush3.bf16.msra.mxu1 %v8645_v5  ;;  %8616 = vmatprep.subr.bf16.mxu0 %v8615_v22 }
 0x7ee   : > { %8648 = vmatprep.subr.bf16.mxu1 %v8647_v27 }
 0x7f0   : > { %8618 = vmatpush3.bf16.msra.mxu0 %v8617_v32  ;;  %v5776_v32 = vld [vmem:[#allocation19 + $0x18] sm:$0xff] }
 0x7f1   : > { %8650 = vmatpush3.bf16.msra.mxu1 %v8649_v33  ;;  %8620 = vmatprep.subr.bf16.mxu0 %v8619_v34  ;;  %v5775_v33 = vld [vmem:[#allocation19 + $0x10] sm:$0xff] }
 0x7f2   : > { %8652 = vmatprep.subr.bf16.mxu1 %v8651_v37  ;;  %v5780_v37 = vld [vmem:[#allocation19 + $0x38] sm:$0xff] }
 0x7f3   : > { %v8659_v50 = vpack.c.bf16 %v5783_v43, %v5780_v37  ;;  %v5492_v43 = vld [vmem:[#allocation17] sm:$0x1] }
 0x7f4   : > { %8622 = vmatpush3.bf16.msra.mxu0 %v8621_v45 }
 0x7f5   : > { %8654 = vmatpush3.bf16.msra.mxu1 %v8653_v46  ;;  %8656 = vmatprep.subr.bf16.mxu0 %v8655_v49  ;;  %v8657_v46 = vpack.c.bf16 %v5776_v32, %v5773_v30  ;;  %v8688_v49 = vpack.c.bf16 %v5778_v36, %v5775_v33  ;;  %v5813_v30 = vld [vmem:[#allocation19 + $0x140] sm:$0xff]  ;;  %v5811_v36 = vld [vmem:[#allocation19 + $0x130] sm:$0xff] }
 0x7f6   : > { %8687 = vmatprep.subr.bf16.mxu1 %v9500_v16 }
 0x841   : > { %v5086_v58 = vpop.f32.mrb[6].mxu0 }
 0x842   : > { %v5287_v53 = vadd.f32 %v5262_v0, %v5086_v58  ;;  %v5228_v60 = vpop.f32.mrb[10].mxu1  ;;  %v5088_v51 = vpop.f32.mrb[7].mxu0  ;;  %v8661_v58 = vpack.c.bf16 %v5782_v54, %v5779_v52  ;;  %v5816_v52 = vld [vmem:[#allocation19 + $0x158] sm:$0xff]  ;;  %v5819_v54 = vld [vmem:[#allocation19 + $0x170] sm:$0xff] }
 0x843   : > { %v5289_v61 = vadd.f32 %v5270_v56, %v5228_v60  ;;  %v5288_v48 = vadd.f32 %v5266_v20, %v5088_v51  ;;  %v5230_v62 = vpop.f32.mrb[11].mxu1  ;;  %v5784_v56 = vld [vmem:[#allocation19 + $0x58] sm:$0xff]  ;;  %v5786_v20 = vld [vmem:[#allocation19 + $0x68] sm:$0xff]  ;;  %v5785_v51 = vld [vmem:[#allocation19 + $0x60] sm:$0xff] }
 0x844   : > { %v5295_v63 = vmax.f32 %v5287_v53, 0.0  ;;  %v5290_v1 = vadd.f32 %v5274_v59, %v5230_v62  ;;  %v5789_v59 = vld [vmem:[#allocation19 + $0x80] sm:$0xff]  ;;  %v8691_v53 = vpack.c.bf16 %v5784_v56, %v5781_v55  ;;  %v5790_v62 = vld [vmem:[#allocation19 + $0x88] sm:$0xff]  ;;  %v5815_v56 = vld [vmem:[#allocation19 + $0x150] sm:$0xff] }
 0x845   : > { %v5297_v2 = vmax.f32 %v5289_v61, 0.0  ;;  %v5296_v4 = vmax.f32 %v5288_v48, 0.0  ;;  %v8663_v60 = vpack.c.bf16 %v5789_v59, %v5786_v20  ;;  %v5788_v61 = vld [vmem:[#allocation19 + $0x78] sm:$0xff]  ;;  %v5787_v48 = vld [vmem:[#allocation19 + $0x70] sm:$0xff]  ;;  %v5818_v20 = vld [vmem:[#allocation19 + $0x168] sm:$0xff] }
 0x846   : > { %v5327_v38 = vsel %vm731_vm0, %v5295_v63, 0.0  ;;  %v5298_v6 = vmax.f32 %v5290_v1, 0.0  ;;  %v5792_v63 = vld [vmem:[#allocation19 + $0x98] sm:$0xff]  ;;  %v5795_v1 = vld [vmem:[#allocation19 + $0xb0] sm:$0xff]  ;;  %v5817_v59 = vld [vmem:[#allocation19 + $0x160] sm:$0xff] }
 0x847   : > { %v5328_v7 = vrot.slane %v5327_v38, 4  ;;  %v5341_v8 = vsel %vm731_vm0, %v5297_v2, 0.0  ;;  %v5334_v9 = vsel %vm731_vm0, %v5296_v4, 0.0  ;;  %v8665_v2 = vpack.c.bf16 %v5788_v61, %v5785_v51 }
 0x848   : > { %v5342_v19 = vrot.slane %v5341_v8, 4  ;;  %v5335_v10 = vrot.slane %v5334_v9, 4  ;;  %v5348_v31 = vsel %vm731_vm0, %v5298_v6, 0.0  ;;  %v8694_v4 = vpack.c.bf16 %v5790_v62, %v5787_v48  ;;  %v5791_v6 = vld [vmem:[#allocation19 + $0x90] sm:$0xff] }
 0x849   : > { %v5329_v11 = vadd.f32 %v5328_v7, %v5327_v38  ;;  %v5349_v12 = vrot.slane %v5348_v31, 4  ;;  %v8667_v38 = vpack.c.bf16 %v5795_v1, %v5792_v63  ;;  %v5794_v7 = vld [vmem:[#allocation19 + $0xa8] sm:$0xff] }
 0x84a   : > { %v5343_v13 = vadd.f32 %v5342_v19, %v5341_v8  ;;  %v5336_v15 = vadd.f32 %v5335_v10, %v5334_v9  ;;  %v5793_v8 = vld [vmem:[#allocation19 + $0xa0] sm:$0xff]  ;;  %v5796_v9 = vld [vmem:[#allocation19 + $0xb8] sm:$0xff]  ;;  %v5798_v19 = vld [vmem:[#allocation19 + $0xc8] sm:$0xff] }
 0x84b   : > { %v5330_v18 = vrot.slane %v5329_v11, 2  ;;  %v5350_v21 = vadd.f32 %v5349_v12, %v5348_v31  ;;  %v5801_v10 = vld [vmem:[#allocation19 + $0xe0] sm:$0xff]  ;;  %v8669_v31 = vpack.c.bf16 %v5794_v7, %v5791_v6  ;;  %v6011_v7 = vld [vmem:[%s10351_s14 + $0x8] sm:$0xff] }
 0x84c   : > { %v5344_v3 = vrot.slane %v5343_v13, 2  ;;  %v5337_v44 = vrot.slane %v5336_v15, 2  ;;  %v8671_v12 = vpack.c.bf16 %v5801_v10, %v5798_v19  ;;  %v6010_v6 = vld [vmem:[%s10351_s14] sm:$0xff] }
 0x84d   : > { %v5331_v5 = vadd.f32 %v5330_v18, %v5329_v11  ;;  %v5351_v22 = vrot.slane %v5350_v21, 2  ;;  %v8697_v11 = vpack.c.bf16 %v5796_v9, %v5793_v8  ;;  %v5799_v18 = vld [vmem:[#allocation19 + $0xd0] sm:$0xff]  ;;  %v8712_v8 = vpack.c.bf16 %v6011_v7, %v6010_v6  ;;  %v6014_v10 = vld [vmem:[%s10351_s14 + $0x20] sm:$0xff] }
 0x84e   : > { %v5345_v23 = vadd.f32 %v5344_v3, %v5343_v13  ;;  %v5338_v24 = vadd.f32 %v5337_v44, %v5336_v15  ;;  %v5797_v13 = vld [vmem:[#allocation19 + $0xc0] sm:$0xff]  ;;  %v5800_v15 = vld [vmem:[#allocation19 + $0xd8] sm:$0xff]  ;;  %v5807_v44 = vld [vmem:[#allocation19 + $0x110] sm:$0xff] }
 0x84f   : > { %v5332_v25 = vrot.slane %v5331_v5, 1  ;;  %v5352_v27 = vadd.f32 %v5351_v22, %v5350_v21  ;;  %v5802_v21 = vld [vmem:[#allocation19 + $0xe8] sm:$0xff]  ;;  %v5804_v3 = vld [vmem:[#allocation19 + $0xf8] sm:$0xff] }
 0x850   : > { %v5346_v17 = vrot.slane %v5345_v23, 1  ;;  %v5339_v14 = vrot.slane %v5338_v24, 1  ;;  %v8700_v22 = vpack.c.bf16 %v5802_v21, %v5799_v18  ;;  %v6012_v9 = vld [vmem:[%s10351_s14 + $0x10] sm:$0xff]  ;;  %v6018_v18 = vld [vmem:[%s10351_s14 + $0x40] sm:$0xff]  ;;  %v6019_v21 = vld [vmem:[%s10351_s14 + $0x48] sm:$0xff] }
 0x851   : > { %v5353_v28 = vrot.slane %v5352_v27, 1  ;;  %v5333_v29 = vadd.f32 %v5332_v25, %v5331_v5  ;;  %v8673_v5 = vpack.c.bf16 %v5800_v15, %v5797_v13  ;;  %v5806_v25 = vld [vmem:[#allocation19 + $0x108] sm:$0xff]  ;;  %v6017_v13 = vld [vmem:[%s10351_s14 + $0x38] sm:$0xff] }
 0x852   : > { %v5340_v34 = vadd.f32 %v5339_v14, %v5338_v24  ;;  %v5347_v35 = vadd.f32 %v5346_v17, %v5345_v23  ;;  %v8675_v23 = vpack.c.bf16 %v5807_v44, %v5804_v3  ;;  %v5803_v24 = vld [vmem:[#allocation19 + $0xf0] sm:$0xff]  ;;  %v5808_v17 = vld [vmem:[#allocation19 + $0x118] sm:$0xff]  ;;  %v8724_v3 = vpack.c.bf16 %v6019_v21, %v6018_v18 }
 0x853   : > { %v5354_v41 = vadd.f32 %v5353_v28, %v5352_v27  ;;  %v5360_v47 = vmul.f32 0.25, %v5333_v29  ;;  %v5805_v27 = vld [vmem:[#allocation19 + $0x100] sm:$0xff]  ;;  %v8677_v14 = vpack.c.bf16 %v5806_v25, %v5803_v24  ;;  %v5810_v29 = vld [vmem:[#allocation19 + $0x128] sm:$0xff]  ;;  %v6020_v44 = vld [vmem:[%s10351_s14 + $0x50] sm:$0xff] }
 0x854   : > { %v5361_v45 = vmul.f32 0.25, %v5340_v34  ;;  %v5362_v0 = vmul.f32 0.25, %v5347_v35  ;;  %v8703_v28 = vpack.c.bf16 %v5808_v17, %v5805_v27  ;;  %v8679_v33 = vpack.c.bf16 %v5813_v30, %v5810_v29  ;;  %v5809_v34 = vld [vmem:[#allocation19 + $0x120] sm:$0xff]  ;;  %v5812_v35 = vld [vmem:[#allocation19 + $0x138] sm:$0xff]  ;;  %v6023_v24 = vld [vmem:[%s10351_s14 + $0x68] sm:$0xff] }
 0x855   : > { %v5363_v57 = vmul.f32 0.25, %v5354_v41  ;;  %v6024_v27 = vld [vmem:[%s10351_s14 + $0x70] sm:$0xff]  ;;  %v6025_v17 = vld [vmem:[%s10351_s14 + $0x78] sm:$0xff] }
 0x856   : > { %5697 = vmatprep.mubr.f32.mxu0 %v5361_v45  ;;  %v8681_v45 = vpack.c.bf16 %v5812_v35, %v5809_v34 }
 0x857   : > { %5767 = vmatprep.mubr.f32.mxu1 %v5363_v57  ;;  %5698 = vmatmul.mubr.f32.vlgmr.msra.gmra.mrb[10].mxu0 %v5360_v47 }
 0x858   : > { %5768 = vmatmul.mubr.f32.vlgmr.msra.gmra.mrb[14].mxu1 %v5362_v0  ;;  %8658 = vmatpush1.bf16.msra.mxu0 %v8657_v46  ;;  %v5814_v46 = vld [vmem:[#allocation19 + $0x148] sm:$0xff]  ;;  %v8683_v0 = vpack.c.bf16 %v5819_v54, %v5816_v52 }
 0x859   : > { %8689 = vmatpush3.bf16.msra.mxu1 %v8688_v49  ;;  %8660 = vmatprep.subr.bf16.mxu0 %v8659_v50  ;;  %v8706_v49 = vpack.c.bf16 %v5814_v46, %v5811_v36 }
 0x85a   : > { %8690 = vmatprep.subr.bf16.mxu1 %v9500_v16  ;;  %5902 = vmatprep.mubr.f32.mxu0 %v9502_v26 }
 0x85b   : > { %6725 = vmatprep.mubr.msk.f32.mxu1 %vm9501_vm4, %v9502_v26 }
 0x85c   : > { %8662 = vmatpush1.bf16.msra.mxu0 %v8661_v58  ;;  %v8685_v58 = vpack.c.bf16 %v5818_v20, %v5815_v56 }
 0x85d   : > { %8692 = vmatpush3.bf16.msra.mxu1 %v8691_v53  ;;  %8664 = vmatprep.subr.bf16.mxu0 %v8663_v60  ;;  %v5820_v53 = vld [vmem:[#allocation19 + $0x178] sm:$0xff] }
 0x85e   : > { %8693 = vmatprep.subr.bf16.mxu1 %v9500_v16  ;;  %v8709_v51 = vpack.c.bf16 %v5820_v53, %v5817_v59 }
 0x860   : > { %8666 = vmatpush1.bf16.msra.mxu0 %v8665_v2 }
 0x861   : > { %8695 = vmatpush3.bf16.msra.mxu1 %v8694_v4  ;;  %8668 = vmatprep.subr.bf16.mxu0 %v8667_v38 }
 0x862   : > { %8696 = vmatprep.subr.bf16.mxu1 %v9500_v16 }
 0x864   : > { %8670 = vmatpush1.bf16.msra.mxu0 %v8669_v31  ;;  %v6015_v31 = vld [vmem:[%s10351_s14 + $0x28] sm:$0xff] }
 0x865   : > { %8698 = vmatpush3.bf16.msra.mxu1 %v8697_v11  ;;  %8672 = vmatprep.subr.bf16.mxu0 %v8671_v12  ;;  %v8718_v11 = vpack.c.bf16 %v6015_v31, %v6014_v10  ;;  %v6016_v12 = vld [vmem:[%s10351_s14 + $0x30] sm:$0xff] }
 0x866   : > { %8699 = vmatprep.subr.bf16.mxu1 %v9500_v16  ;;  %v8721_v15 = vpack.c.bf16 %v6017_v13, %v6016_v12 }
 0x868   : > { %8674 = vmatpush1.bf16.msra.mxu0 %v8673_v5  ;;  %v6021_v5 = vld [vmem:[%s10351_s14 + $0x58] sm:$0xff] }
 0x869   : > { %8701 = vmatpush3.bf16.msra.mxu1 %v8700_v22  ;;  %8676 = vmatprep.subr.bf16.mxu0 %v8675_v23  ;;  %v8727_v22 = vpack.c.bf16 %v6021_v5, %v6020_v44  ;;  %v6022_v23 = vld [vmem:[%s10351_s14 + $0x60] sm:$0xff] }
 0x86a   : > { %8702 = vmatprep.subr.bf16.mxu1 %v9500_v16  ;;  %v8730_v25 = vpack.c.bf16 %v6023_v24, %v6022_v23 }
 0x86c   : > { %8678 = vmatpush1.bf16.msra.mxu0 %v8677_v14  ;;  %v8733_v14 = vpack.c.bf16 %v6025_v17, %v6024_v27 }
 0x86d   : > { %8704 = vmatpush3.bf16.msra.mxu1 %v8703_v28  ;;  %8680 = vmatprep.subr.bf16.mxu0 %v8679_v33  ;;  %v5821_v28 = vld [vmem:[#allocation20] sm:$0x7] }
 0x86e   : > { %8705 = vmatprep.subr.bf16.mxu1 %v9500_v16  ;;  %v5826_v29 = vrot.slane %v5821_v28, %v10044_v39  ;;  %v5830_v30 = vrot.slane %v5821_v28, %v10050_v42 }
 0x870   : > { %8682 = vmatpush1.bf16.msra.mxu0 %v8681_v45 }
 0x871   : > { %8707 = vmatpush3.bf16.msra.mxu1 %v8706_v49  ;;  %8684 = vmatprep.subr.bf16.mxu0 %v8683_v0 }
 0x872   : > { %8708 = vmatprep.subr.bf16.mxu1 %v9500_v16 }
 0x874   : > { %8686 = vmatpush1.bf16.msra.mxu0 %v8685_v58 }
 0x875   : > { %8710 = vmatpush3.bf16.msra.mxu1 %v8709_v51  ;;  %8711 = vmatprep.subr.bf16.mxu0 %v9500_v16 }
 0x8aa   : > { %v6479_v32 = vpop.f32.mrb[8].mxu0 }
 0x8ab   : > { %v6514_v37 = vpop.f32.mrb[12].mxu1  ;;  %v6480_v41 = vpop.f32.mrb[9].mxu0 }
 0x8ac   : > { %v6481_v57 = vadd.f32 %v6480_v41, %v6479_v32  ;;  %v6515_v47 = vpop.f32.mrb[13].mxu1  ;;  %v5979_v32 = vld [vmem:[#allocation22] sm:$0x7] }
 0x8ad   : > { %v6516_v50 = vadd.f32 %v6515_v47, %v6514_v37  ;;  %v5991_v41 = vrot.slane %v5979_v32, %v10050_v42  ;;  %v6003_v52 = vrot.slane %v5979_v32, %v10047_v40 }
 0x8ae   : > { %v5560_v55 = vadd.f32 %v6481_v57, %v5492_v43 }
 0x8b0   : > { %v5630_v60 = vadd.f32 %v6516_v50, %v5560_v55  ;;  %v5834_v50 = vrot.slane %v5821_v28, %v10047_v40 }
 0x92a   : > { %v6549_v61 = vpop.f32.mrb[10].mxu0 }
 0x92b   : > { %v6584_v48 = vpop.f32.mrb[14].mxu1  ;;  %v6550_v62 = vpop.f32.mrb[11].mxu0 }
 0x92c   : > { %v6551_v63 = vadd.f32 %v6550_v62, %v6549_v61  ;;  %v6585_v1 = vpop.f32.mrb[15].mxu1 }
 0x92d   : > { %v6586_v2 = vadd.f32 %v6585_v1, %v6584_v48 }
 0x92e   : > { %v5700_v4 = vadd.f32 %v6551_v63, %v5630_v60  ;;  %v6026_v60 = vld [vmem:[#allocation23] sm:$0x1] }
 0x930   : > { %v5770_v38 = vadd.f32 %v6586_v2, %v5700_v4 }
 0x932   : > { %5903 = vmatmul.mubr.f32.vlgmr.msra.gmra.mrb[12].mxu0 %v5770_v38  ;;  %6726 = vmatmul.mubr.f32.vlgmr.msra.gmra.mrb[16].mxu1 %v5770_v38 }
 0x933   : > { %6760 = vmatprep.mubr.msk.f32.mxu0 %vm9501_vm4, %v9502_v26  ;;  %8713 = vmatpush3.bf16.msra.mxu0 %v8712_v8  ;;  %v6013_v26 = vld [vmem:[%s10351_s14 + $0x18] sm:$0xff] }
 0x934   : > { %8714 = vmatprep.subr.bf16.mxu0 %v9500_v16  ;;  %v8715_v19 = vpack.c.bf16 %v6013_v26, %v6012_v9 }
 0x937   : > { %8716 = vmatpush3.bf16.msra.mxu0 %v8715_v19 }
 0x938   : > { %8717 = vmatprep.subr.bf16.mxu0 %v9500_v16 }
 0x93b   : > { %8719 = vmatpush3.bf16.msra.mxu0 %v8718_v11 }
 0x93c   : > { %8720 = vmatprep.subr.bf16.mxu0 %v9500_v16 }
 0x93f   : > { %8722 = vmatpush3.bf16.msra.mxu0 %v8721_v15 }
 0x940   : > { %8723 = vmatprep.subr.bf16.mxu0 %v9500_v16 }
 0x943   : > { %8725 = vmatpush3.bf16.msra.mxu0 %v8724_v3 }
 0x944   : > { %8726 = vmatprep.subr.bf16.mxu0 %v9500_v16 }
 0x947   : > { %8728 = vmatpush3.bf16.msra.mxu0 %v8727_v22 }
 0x948   : > { %8729 = vmatprep.subr.bf16.mxu0 %v9500_v16 }
 0x94b   : > { %8731 = vmatpush3.bf16.msra.mxu0 %v8730_v25 }
 0x94c   : > { %8732 = vmatprep.subr.bf16.mxu0 %v9500_v16 }
 0x94f   : > { %8734 = vmatpush3.bf16.msra.mxu0 %v8733_v14 }
 0xa05   : > { %v5904_v33 = vpop.f32.mrb[12].mxu0  ;;  %v5975_v34 = vpop.f32.mrb[16].mxu1 }
 0xa06   : > { %v5905_v35 = vadd.f32 %v5904_v33, %v5826_v29  ;;  %v5906_v36 = vpop.f32.mrb[13].mxu0  ;;  %v6727_v37 = vpop.f32.mrb[17].mxu1  ;;  %v5976_v0 = vadd.f32 %v5975_v34, %v5834_v50 }
 0xa07   : > { %v5907_v43 = vadd.f32 %v5906_v36, %v5830_v30 }
 0xa08   : > { %v5980_v45 = vadd.f32 %v5979_v32, %v5905_v35 }
 0xa09   : > { %v5993_v57 = vadd.f32 %v5991_v41, %v5907_v43 }
 0xa0a   : > { %v6405_v46 = vmul.f32 -1.442695, %v5980_v45 }
 0xa0b   : > { %v6406_v16 = vmul.f32 -1.442695, %v5993_v57 }
 0xa0c   : > { %8979 = vpow2.f32 %v6405_v46 }
 0xa0d   : > { %8981 = vpow2.f32 %v6406_v16 }
 0xa16   : > { %v8980_v47 = vpop.eup %8979 }
 0xa17   : > { %v5984_v49 = vadd.f32 1.0, %v8980_v47  ;;  %v8982_v39 = vpop.eup %8981 }
 0xa18   : > { %v5997_v54 = vadd.f32 1.0, %v8982_v39 }
 0xa19   : > { %8983 = vrcp.f32 %v5984_v49 }
 0xa1a   : > { %8985 = vrcp.f32 %v5997_v54 }
 0xa23   : > { %v8984_v55 = vpop.eup %8983 }
 0xa24   : > { %v6005_v42 = vmul.f32 %v8984_v55, %v6003_v52  ;;  %v8986_v20 = vpop.eup %8985 }
 0xa25   : > { %v6008_v59 = vsub.f32 1.0, %v8986_v20 }
 0xa26   : > { %v6006_v56 = vadd.f32 %v6005_v42, %v5976_v0 }
 0xa28   : > { %8987 = vtanh.f32 %v6006_v56 }
 0xa32   : > { %v8988_v58 = vpop.eup %8987 }
 0xa33   : > { %v6009_v53 = vmul.f32 %v8988_v58, %v6008_v59 }
 0xa35   : > { %6761 = vmatmul.mubr.f32.vlgmr.msra.gmra.mrb[14].mxu0 %v6009_v53 }
 0xb08   : > { %v6093_v51 = vpop.f32.mrb[14].mxu0 }
 0xb09   : > { %v6094_v40 = vadd.f32 %v6093_v51, %v6026_v60  ;;  %v6762_v61 = vpop.f32.mrb[15].mxu0 }
 0xb0b   : > { %6098 = vst.msk [vmem:[%s701_s17] sm:$0x1] %vm6097_vm11, %v6094_v40 }
 0xb0c   : > { %9394 = shalt.err (!%p9391_p7)
}
 0xb0d   : > { %s9395_s30 = scalar_lea.hbm %s10295_s16, 16  ;;  %s9399_s20 = scalar_lea.hbm %s10417_s3, 32 }
 0xb0e   : > { %p9396_p8 = scmp.ne.s32.totalorder %s10295_s16, %s9395_s30  ;;  %p9400_p1 = scmp.lt.u32.totalorder %s10295_s16, %s10417_s3 }
 0xb0f   : > { %p9401_p0 = scmp.lt.u32.totalorder %s9399_s20, %s9395_s30  ;;  %p9403_p5 = scmp.lt.u32.totalorder %s9395_s30, %s10295_s16 }
 0xb10   : > { %p9397_p11 = pnand %p9396_p8, %p10418_p9 }
 0xb11   : > { %p9402_p6 = por %p9401_p0, %p9400_p1 }
 0xb12   : > { %p9398_p13 = pneg %p9397_p11 }
 0xb13   : > { %p9404_p12 = por %p9403_p5, %p9402_p6 }
 0xb15   : > { %p9405_p10 = pnand %p9404_p12, %p9398_p13 }
 0xb17   : > { %9408 = shalt.err (!%p9405_p10)
}
 0xb18   : > { %8843 = dma.vmem_to_hbm [thread:$0]  (%p10418_p9), %s10297_s27, 16, %s10295_s16, %s6100_s1  }
 0xb19 PF: > { %s10419_s26 = sld [smem:[#allocation38_spill]]  ;;  %s10420_s28 = sld [smem:[#allocation35_spill]] }
 0xb1a   : > { %s10421_s17 = sld [smem:[#allocation42_spill]] }
 0xb1f   : > { %p8920_p2 = scmp.ge.s32.totalorder %s10419_s26, 2  ;;  %s6124_s22 = sand.u32 1, %s10420_s28  }
 0xb20   : > { %p10422_p3 = scmp.ne.s32.totalorder %s10421_s17, 0  ;;  %s6125_s4 = scalar_lea.sflag [#allocation4], %s6124_s22 }
 0xb22   : > { %p8889_p4 = pnand %p8920_p2, %p10422_p3 }
 0xb24   : > { %9458 = dma.done.wait (!%p8889_p4), %s6125_s4, 16  }
 0xb25   : > { %9460 = vsyncadd (!%p8889_p4), %s6125_s4, 4294967280  ;;  %s10423_s24 = sld [smem:[#allocation39_spill]]  ;;  %s10424_s21 = sld [smem:[#allocation36_spill]] }
 0xb26   : > { %s10425_s22 = sld [smem:[#allocation37_spill]]  ;;  %s10426_s23 = sld [smem:[#allocation40_spill]] }
 0xb2b   : > { %p34_p7 = scmp.ge.s32.totalorder %s10423_s24, 4  }
 0xb2d   :  { %36 = sbr.rel (!%p34_p7) target bundleno = 18 (0x12), region = 184 }
 0xb34   :  { %6129 = vsyncpa [#allocation3], 1 }
 0xb35   :  { %6131 = vsyncpa [#allocation3 + $0x1], 1 }
 0xb36   :  { %6132 = vsyncpa [#allocation6], 1 }
 0xb37   :  { %6133 = vsyncpa [#allocation9], 1 }
 0xb38   :  { %6134 = vsyncpa [#allocation12], 1 }
 0xb39   :  { %6135 = vsyncpa [#allocation15], 1 }
 0xb3a   :  { %6136 = vsyncpa [#allocation18], 1 }
 0xb3b   :  { %6137 = vsyncpa [#allocation21], 1 }
 0xb3c   :  { %6138 = vsyncpa [#allocation24], 1 }
 0xb3d   :  { %6139 = vsyncpa [#allocation4], 1 }
 0xb3e   :  { %6141 = vsyncpa [#allocation4 + $0x1], 1 }

</bundles_post_ra>
